<compile_context>
chip_gen: v6e
topology: v6e:2x2x1
jax: 0.10.0
libtpu: 0.0.40
codegen_flags: <defaults>
</compile_context>

<pallas_src>
import functools
import numpy as np
import jax
import jax.numpy as jnp
from jax.experimental import pallas as pl
from jax.experimental.pallas import tpu as pltpu

LATENT_DIM = 16
PATCH_SIZE = 5
TIME_STEPS = 5
NUM_VARS = 9
BN_EPS = 1e-5
LANE = 128


# ----------------------------------------------------------------------------
# Host-side geometry matrices (0/1 gathers, scatter permutations, interpolation)
# ----------------------------------------------------------------------------
def _conv_gather(H, W, B):
    """3x3/pad=1 spatial gather.  Returns (R, 9R) if R%8==0 (single matmul form),
    otherwise (9, R, R) (accumulate form, avoids unaligned sublane concat)."""
    R = B * H * W
    S = np.zeros((9, R, R), np.float32)
    for b in range(B):
        for h in range(H):
            for w in range(W):
                p = b * H * W + h * W + w
                for kh in range(3):
                    for kw in range(3):
                        hh, ww = h + kh - 1, w + kw - 1
                        if 0 <= hh < H and 0 <= ww < W:
                            S[kh * 3 + kw, p, b * H * W + hh * W + ww] = 1.0
    if R % 8 == 0:
        return np.concatenate([S[k] for k in range(9)], axis=1)   # (R, 9R)
    return S                                                      # (9, R, R)


def _pool_gather(H, W, B):
    """MaxPool2d(2) as 4 row-gather matrices: (4, B*Ho*Wo, B*H*W)."""
    Ho, Wo = H // 2, W // 2
    G = np.zeros((4, B * Ho * Wo, B * H * W), np.float32)
    for b in range(B):
        for ho in range(Ho):
            for wo in range(Wo):
                p = b * Ho * Wo + ho * Wo + wo
                for dy in range(2):
                    for dx in range(2):
                        q = b * H * W + (2 * ho + dy) * W + (2 * wo + dx)
                        G[dy * 2 + dx, p, q] = 1.0
    return G


def _up_scatter(B, Hin, Win):
    """ConvTranspose2d(k=2,s=2) output scatter: (4, B*4*Hin*Win, B*Hin*Win)."""
    Rin = B * Hin * Win
    Rout = 4 * Rin
    Ho, Wo = 2 * Hin, 2 * Win
    P = np.zeros((4, Rout, Rin), np.float32)
    for b in range(B):
        for h in range(Hin):
            for w in range(Win):
                q = b * Hin * Win + h * Win + w
                for kh in range(2):
                    for kw in range(2):
                        p = b * Ho * Wo + (2 * h + kh) * Wo + (2 * w + kw)
                        P[kh * 2 + kw, p, q] = 1.0
    return P


def _crop_gather(B):
    """e1[:, :, :4, :4] row selection: (B*16, B*25)."""
    G = np.zeros((B * 16, B * 25), np.float32)
    for b in range(B):
        for h in range(4):
            for w in range(4):
                G[b * 16 + h * 4 + w, b * 25 + h * 5 + w] = 1.0
    return G


def _bilinear_4_to_5():
    """1-D interp matrix replicating F.interpolate(4->5, bilinear, align_corners=False)."""
    M = np.zeros((5, 4), np.float32)
    ratio = 4.0 / 5.0
    for o in range(5):
        src = max(ratio * (o + 0.5) - 0.5, 0.0)
        i0 = min(int(np.floor(src)), 3)
        i1 = min(i0 + 1, 3)
        lam = src - i0
        M[o, i0] += 1.0 - lam
        M[o, i1] += lam
    return M


def _bilinear_gather(B):
    Mi = _bilinear_4_to_5()
    G = np.zeros((B * 25, B * 16), np.float32)
    for b in range(B):
        for oh in range(5):
            for ow in range(5):
                for ih in range(4):
                    for iw in range(4):
                        G[b * 25 + oh * 5 + ow, b * 16 + ih * 4 + iw] = Mi[oh, ih] * Mi[ow, iw]
    return G


# ----------------------------------------------------------------------------
# Host-side weight repacking (PyTorch layout -> lane-padded matmul matrices)
# ----------------------------------------------------------------------------
def _conv3x3_wmat(w, cin_pad, cout_pad, in_map=None):
    """w: (Cout, Cin, 3, 3) -> (cin_pad, 9*cout_pad); Wm[lane(ci), k*cout_pad+co]."""
    w = np.asarray(w, np.float32)
    cout, cin = w.shape[:2]
    if in_map is None:
        in_map = [(0, cin, 0)]
    wm = np.zeros((cin_pad, 9 * cout_pad), np.float32)
    for (s0, s1, d0) in in_map:
        blk = np.transpose(w[:, s0:s1], (1, 2, 3, 0)).reshape(s1 - s0, 9, cout)
        pad = np.zeros((s1 - s0, 9, cout_pad), np.float32)
        pad[:, :, :cout] = blk
        wm[d0:d0 + (s1 - s0)] = pad.reshape(s1 - s0, 9 * cout_pad)
    return wm


def _conv_center_wmat(w, cin_pad, cout_pad):
    """3x3 conv on a 1x1 input (pad=1) == centre tap only."""
    w = np.asarray(w, np.float32)
    cout, cin = w.shape[:2]
    wm = np.zeros((cin_pad, cout_pad), np.float32)
    wm[:cin, :cout] = w[:, :, 1, 1].T
    return wm


def _convT_wmat(w, cin_pad, cout_pad):
    """ConvTranspose2d(k=2,s=2) weight (Cin, Cout, 2, 2) -> (cin_pad, 4*cout_pad)."""
    w = np.asarray(w, np.float32)
    cin, cout = w.shape[:2]
    blk = np.transpose(w, (0, 2, 3, 1)).reshape(cin, 4, cout)
    pad = np.zeros((cin, 4, cout_pad), np.float32)
    pad[:, :, :cout] = blk
    wm = np.zeros((cin_pad, 4 * cout_pad), np.float32)
    wm[:cin] = pad.reshape(cin, 4 * cout_pad)
    return wm


def _conv1x1_wmat(w, cin_pad, cout_pad):
    w = np.asarray(w, np.float32)
    cout, cin = w.shape[:2]
    wm = np.zeros((cin_pad, cout_pad), np.float32)
    wm[:cin, :cout] = w[:, :, 0, 0].T
    return wm


def _rowvec(v, cout_pad):
    v = np.asarray(v, np.float32).reshape(-1)
    out = np.zeros((1, cout_pad), np.float32)
    out[0, :v.shape[0]] = v
    return out


def prepare_layer_params(params):
    """One-time repack of PyTorch-layout params into kernel-ready matrices."""
    def bn3(p, i, cin_pad, cout_pad, in_map=None):
        return {
            "w": jnp.asarray(_conv3x3_wmat(p[f"w{i}"], cin_pad, cout_pad, in_map), jnp.bfloat16),
            "b": jnp.asarray(_rowvec(p[f"b{i}"], cout_pad)),
            "g": jnp.asarray(_rowvec(p[f"g{i}"], cout_pad)),
            "be": jnp.asarray(_rowvec(p[f"be{i}"], cout_pad)),
        }

    def bnc(p, i, cin_pad, cout_pad):
        return {
            "w": jnp.asarray(_conv_center_wmat(p[f"w{i}"], cin_pad, cout_pad), jnp.bfloat16),
            "b": jnp.asarray(_rowvec(p[f"b{i}"], cout_pad)),
            "g": jnp.asarray(_rowvec(p[f"g{i}"], cout_pad)),
            "be": jnp.asarray(_rowvec(p[f"be{i}"], cout_pad)),
        }

    L = {}
    L["enc1_1"] = bn3(params["enc1"], 1, 128, 128)
    L["enc1_2"] = bn3(params["enc1"], 2, 128, 128)
    L["enc2_1"] = bn3(params["enc2"], 1, 128, 128)
    L["enc2_2"] = bn3(params["enc2"], 2, 128, 128)
    L["enc3_1"] = bnc(params["enc3"], 1, 128, 256)
    L["enc3_2"] = bnc(params["enc3"], 2, 256, 256)
    L["bott_1"] = bnc(params["bottleneck"], 1, 256, 128)
    L["bott_2"] = bnc(params["bottleneck"], 2, 128, 128)
    L["dec1_1"] = bn3(params["dec1"], 1, 256, 128)
    L["dec1_2"] = bn3(params["dec1"], 2, 128, 128)
    # dec2 input is concat([up2 out (64 real of 128 lanes), e1 crop (64 real of 128 lanes)])
    L["dec2_1"] = bn3(params["dec2"], 1, 256, 128, in_map=[(0, 64, 0), (64, 128, 128)])
    L["dec2_2"] = bn3(params["dec2"], 2, 128, 128)
    L["up1"] = {"w": jnp.asarray(_convT_wmat(params["up1_w"], 128, 128), jnp.bfloat16),
                "b": jnp.asarray(_rowvec(params["up1_b"], 128))}
    L["up2"] = {"w": jnp.asarray(_convT_wmat(params["up2_w"], 128, 128), jnp.bfloat16),
                "b": jnp.asarray(_rowvec(params["up2_b"], 128))}
    L["final"] = {"w": jnp.asarray(_conv1x1_wmat(params["final_w"], 128, 128), jnp.bfloat16),
                  "b": jnp.asarray(_rowvec(params["final_b"], 128))}
    return L


# ----------------------------------------------------------------------------
# In-kernel building blocks (values only: matmuls, element-wise, reductions)
# ----------------------------------------------------------------------------
def _bn_relu(y, lyr):
    y = y + lyr["b"][...]
    mean = jnp.mean(y, axis=0, keepdims=True)                      # batch stats over N*H*W
    var = jnp.mean(jnp.square(y - mean), axis=0, keepdims=True)    # biased variance
    y = (y - mean) * jax.lax.rsqrt(var + BN_EPS)
    y = y * lyr["g"][...] + lyr["be"][...]
    return jnp.maximum(y, 0.0)


def _conv3x3(a, lyr, sh_ref):
    w = lyr["w"][...]                                  # bf16 (Cin_pad, 9*Cp)
    cp = w.shape[1] // 9
    xw = jnp.dot(a.astype(jnp.bfloat16), w, preferred_element_type=jnp.float32)
    if len(sh_ref.shape) == 2:                         # (R, 9R): single gather matmul
        z = jnp.concatenate([xw[:, k * cp:(k + 1) * cp] for k in range(9)], axis=0)
        y = jnp.dot(sh_ref[...], z, preferred_element_type=jnp.float32)
    else:                                              # (9, R, R): accumulate form
        y = jnp.dot(sh_ref[0], xw[:, 0:cp], preferred_element_type=jnp.float32)
        for k in range(1, 9):
            y = y + jnp.dot(sh_ref[k], xw[:, k * cp:(k + 1) * cp],
                            preferred_element_type=jnp.float32)
    return _bn_relu(y, lyr)


def _conv_center(a, lyr):
    y = jnp.dot(a.astype(jnp.bfloat16), lyr["w"][...], preferred_element_type=jnp.float32)
    return _bn_relu(y, lyr)


def _maxpool(a, g_ref):
    y = jnp.dot(g_ref[0], a, preferred_element_type=jnp.float32)
    for t in range(1, 4):
        y = jnp.maximum(y, jnp.dot(g_ref[t], a, preferred_element_type=jnp.float32))
    return y


def _upconv(a, lyr, p_ref):
    w = lyr["w"][...]                                  # bf16 (Cin_pad, 4*Cp)
    cp = w.shape[1] // 4
    y = jnp.dot(a.astype(jnp.bfloat16), w, preferred_element_type=jnp.float32)
    out = jnp.dot(p_ref[0], y[:, 0:cp], preferred_element_type=jnp.float32)
    for k in range(1, 4):
        out = out + jnp.dot(p_ref[k], y[:, k * cp:(k + 1) * cp],
                            preferred_element_type=jnp.float32)
    return out + lyr["b"][...]


# ----------------------------------------------------------------------------
# The fused kernel
# ----------------------------------------------------------------------------
def _unet_kernel(*refs, treedef, n_in):
    ins = jax.tree_util.tree_unflatten(treedef, refs[:n_in])
    out_ref = refs[n_in]
    z_ref = refs[n_in + 1]
    g = ins["geom"]
    L = ins["layers"]

    x = ins["x"][...]                                  # (B*25, 128) f32

    e1 = _conv3x3(x, L["enc1_1"], g["sh5"])            # (B*25, 128) : 64 real
    e1 = _conv3x3(e1, L["enc1_2"], g["sh5"])

    e2 = _maxpool(e1, g["pool1"])                      # (B*4, 128)
    e2 = _conv3x3(e2, L["enc2_1"], g["sh2"])           # 128 real
    e2 = _conv3x3(e2, L["enc2_2"], g["sh2"])

    e3 = _maxpool(e2, g["pool2"])                      # (B, 128)
    e3 = _conv_center(e3, L["enc3_1"])                 # (B, 256)
    e3 = _conv_center(e3, L["enc3_2"])

    z = _conv_center(e3, L["bott_1"])                  # (B, 128) : 16 real
    z = _conv_center(z, L["bott_2"])

    d1 = _upconv(z, L["up1"], g["up1"])                # (B*4, 128)
    d1 = jnp.concatenate([d1, e2], axis=1)             # (B*4, 256)
    d1 = _conv3x3(d1, L["dec1_1"], g["sh2"])
    d1 = _conv3x3(d1, L["dec1_2"], g["sh2"])

    d2 = _upconv(d1, L["up2"], g["up2"])               # (B*16, 128) : 64 real
    e1c = jnp.dot(g["crop"][...], e1, preferred_element_type=jnp.float32)
    d2 = jnp.concatenate([d2, e1c], axis=1)            # (B*16, 256)
    d2 = _conv3x3(d2, L["dec2_1"], g["sh4"])
    d2 = _conv3x3(d2, L["dec2_2"], g["sh4"])

    d2i = jnp.dot(g["interp"][...], d2, preferred_element_type=jnp.float32)   # (B*25, 128)
    y = jnp.dot(d2i.astype(jnp.bfloat16), L["final"]["w"][...],
                preferred_element_type=jnp.float32)
    y = jnp.tanh(y + L["final"]["b"][...])

    out_ref[...] = y                                   # (B*25, 128), 45 real lanes
    z_ref[...] = z                                     # (B, 128), 16 real lanes


# ----------------------------------------------------------------------------
# Forward wrapper: one NCHW->rows transpose in, one rows->NCHW transpose out.
# ----------------------------------------------------------------------------
def weather_unet_forward(x, layer_params):
    c_in = TIME_STEPS * NUM_VARS
    x = x.reshape(-1, c_in, PATCH_SIZE, PATCH_SIZE)
    B = x.shape[0]
    R5 = B * PATCH_SIZE * PATCH_SIZE

    x2d = jnp.transpose(x, (0, 2, 3, 1)).reshape(R5, c_in).astype(jnp.float32)
    x2d = jnp.pad(x2d, ((0, 0), (0, LANE - c_in)))

    geom = {
        "sh5": jnp.asarray(_conv_gather(5, 5, B)),
        "sh2": jnp.asarray(_conv_gather(2, 2, B)),
        "sh4": jnp.asarray(_conv_gather(4, 4, B)),
        "pool1": jnp.asarray(_pool_gather(5, 5, B)),
        "pool2": jnp.asarray(_pool_gather(2, 2, B)),
        "crop": jnp.asarray(_crop_gather(B)),
        "up1": jnp.asarray(_up_scatter(B, 1, 1)),
        "up2": jnp.asarray(_up_scatter(B, 2, 2)),
        "interp": jnp.asarray(_bilinear_gather(B)),
    }

    ins = {"x": x2d, "geom": geom, "layers": layer_params}
    flat, treedef = jax.tree_util.tree_flatten(ins)
    kernel = functools.partial(_unet_kernel, treedef=treedef, n_in=len(flat))

    vmem = pl.BlockSpec(memory_space=pltpu.MemorySpace.VMEM)
    out2d, z2d = pl.pallas_call(
        kernel,
        out_shape=(
            jax.ShapeDtypeStruct((R5, LANE), jnp.float32),
            jax.ShapeDtypeStruct((B, LANE), jnp.float32),
        ),
        in_specs=[vmem] * len(flat),
        out_specs=(vmem, vmem),
    )(*flat)

    out = out2d[:, :c_in].reshape(B, PATCH_SIZE, PATCH_SIZE, c_in)
    out = jnp.transpose(out, (0, 3, 1, 2)).reshape(B, PATCH_SIZE * PATCH_SIZE * c_in)
    z = z2d[:, :LATENT_DIM]
    return out, z


# ----------------------------------------------------------------------------
# Deterministic parameter construction (same shapes as the nn.Module __init__)
# ----------------------------------------------------------------------------
def init_params(key):
    keys = iter(jax.random.split(key, 64))

    def conv(cin, cout, k):
        fan_in = cin * k * k
        bound = 1.0 / float(np.sqrt(fan_in))
        w = jax.random.uniform(next(keys), (cout, cin, k, k), jnp.float32, -bound, bound)
        b = jax.random.uniform(next(keys), (cout,), jnp.float32, -bound, bound)
        return w, b

    def blockp(cin, cout):
        w1, b1 = conv(cin, cout, 3)
        w2, b2 = conv(cout, cout, 3)
        return {
            "w1": w1, "b1": b1,
            "g1": jnp.ones((cout,), jnp.float32), "be1": jnp.zeros((cout,), jnp.float32),
            "w2": w2, "b2": b2,
            "g2": jnp.ones((cout,), jnp.float32), "be2": jnp.zeros((cout,), jnp.float32),
        }

    def convT(cin, cout, k):
        fan_in = cout * k * k
        bound = 1.0 / float(np.sqrt(fan_in))
        w = jax.random.uniform(next(keys), (cin, cout, k, k), jnp.float32, -bound, bound)
        b = jax.random.uniform(next(keys), (cout,), jnp.float32, -bound, bound)
        return w, b

    c_in = TIME_STEPS * NUM_VARS
    p = {}
    p["enc1"] = blockp(c_in, 64)
    p["enc2"] = blockp(64, 128)
    p["enc3"] = blockp(128, 256)
    p["bottleneck"] = blockp(256, LATENT_DIM)
    p["up1_w"], p["up1_b"] = convT(LATENT_DIM, 128, 2)
    p["dec1"] = blockp(256, 128)
    p["up2_w"], p["up2_b"] = convT(128, 64, 2)
    p["dec2"] = blockp(128, 64)
    p["final_w"], p["final_b"] = conv(64, c_in, 1)
    return p


if __name__ == "__main__":
    key = jax.random.PRNGKey(0)
    pkey, xkey = jax.random.split(key)
    params = init_params(pkey)
    layer_params = prepare_layer_params(params)   # one-time weight repack (host)

    # batch=2, channels=TIME_STEPS*num_vars=45, spatial=5x5 (as the forward implies)
    x = jax.random.normal(xkey, (2, TIME_STEPS * NUM_VARS, PATCH_SIZE, PATCH_SIZE),
                          dtype=jnp.float32)

    fwd = jax.jit(weather_unet_forward)
    out, z = fwd(x, layer_params)
    jax.block_until_ready((out, z))

    assert out.shape == (2, PATCH_SIZE * PATCH_SIZE * TIME_STEPS * NUM_VARS)
    assert z.shape == (2, LATENT_DIM)
    assert bool(jnp.all(jnp.isfinite(out))) and bool(jnp.all(jnp.isfinite(z)))
    print("KERNEL_OK")
</pallas_src>

<mosaic_0001>
module attributes {stable_mosaic.version = 11 : i64} {
  func.func @_unet_kernel(%arg0: memref<32x50xf32, #tpu.memory_space<vmem>>, %arg1: memref<50x32xf32, #tpu.memory_space<vmem>>, %arg2: memref<4x8x50xf32, #tpu.memory_space<vmem>>, %arg3: memref<4x2x8xf32, #tpu.memory_space<vmem>>, %arg4: memref<8x72xf32, #tpu.memory_space<vmem>>, %arg5: memref<32x288xf32, #tpu.memory_space<vmem>>, %arg6: memref<9x50x50xf32, #tpu.memory_space<vmem>>, %arg7: memref<4x8x2xf32, #tpu.memory_space<vmem>>, %arg8: memref<4x32x8xf32, #tpu.memory_space<vmem>>, %arg9: memref<1x128xf32, #tpu.memory_space<vmem>>, %arg10: memref<1x128xf32, #tpu.memory_space<vmem>>, %arg11: memref<1x128xf32, #tpu.memory_space<vmem>>, %arg12: memref<256x128xbf16, #tpu.memory_space<vmem>>, %arg13: memref<1x128xf32, #tpu.memory_space<vmem>>, %arg14: memref<1x128xf32, #tpu.memory_space<vmem>>, %arg15: memref<1x128xf32, #tpu.memory_space<vmem>>, %arg16: memref<128x128xbf16, #tpu.memory_space<vmem>>, %arg17: memref<1x128xf32, #tpu.memory_space<vmem>>, %arg18: memref<1x128xf32, #tpu.memory_space<vmem>>, %arg19: memref<1x128xf32, #tpu.memory_space<vmem>>, %arg20: memref<256x1152xbf16, #tpu.memory_space<vmem>>, %arg21: memref<1x128xf32, #tpu.memory_space<vmem>>, %arg22: memref<1x128xf32, #tpu.memory_space<vmem>>, %arg23: memref<1x128xf32, #tpu.memory_space<vmem>>, %arg24: memref<128x1152xbf16, #tpu.memory_space<vmem>>, %arg25: memref<1x128xf32, #tpu.memory_space<vmem>>, %arg26: memref<1x128xf32, #tpu.memory_space<vmem>>, %arg27: memref<1x128xf32, #tpu.memory_space<vmem>>, %arg28: memref<256x1152xbf16, #tpu.memory_space<vmem>>, %arg29: memref<1x128xf32, #tpu.memory_space<vmem>>, %arg30: memref<1x128xf32, #tpu.memory_space<vmem>>, %arg31: memref<1x128xf32, #tpu.memory_space<vmem>>, %arg32: memref<128x1152xbf16, #tpu.memory_space<vmem>>, %arg33: memref<1x128xf32, #tpu.memory_space<vmem>>, %arg34: memref<1x128xf32, #tpu.memory_space<vmem>>, %arg35: memref<1x128xf32, #tpu.memory_space<vmem>>, %arg36: memref<128x1152xbf16, #tpu.memory_space<vmem>>, %arg37: memref<1x128xf32, #tpu.memory_space<vmem>>, %arg38: memref<1x128xf32, #tpu.memory_space<vmem>>, %arg39: memref<1x128xf32, #tpu.memory_space<vmem>>, %arg40: memref<128x1152xbf16, #tpu.memory_space<vmem>>, %arg41: memref<1x128xf32, #tpu.memory_space<vmem>>, %arg42: memref<1x128xf32, #tpu.memory_space<vmem>>, %arg43: memref<1x128xf32, #tpu.memory_space<vmem>>, %arg44: memref<128x1152xbf16, #tpu.memory_space<vmem>>, %arg45: memref<1x128xf32, #tpu.memory_space<vmem>>, %arg46: memref<1x128xf32, #tpu.memory_space<vmem>>, %arg47: memref<1x128xf32, #tpu.memory_space<vmem>>, %arg48: memref<128x1152xbf16, #tpu.memory_space<vmem>>, %arg49: memref<1x256xf32, #tpu.memory_space<vmem>>, %arg50: memref<1x256xf32, #tpu.memory_space<vmem>>, %arg51: memref<1x256xf32, #tpu.memory_space<vmem>>, %arg52: memref<128x256xbf16, #tpu.memory_space<vmem>>, %arg53: memref<1x256xf32, #tpu.memory_space<vmem>>, %arg54: memref<1x256xf32, #tpu.memory_space<vmem>>, %arg55: memref<1x256xf32, #tpu.memory_space<vmem>>, %arg56: memref<256x256xbf16, #tpu.memory_space<vmem>>, %arg57: memref<1x128xf32, #tpu.memory_space<vmem>>, %arg58: memref<128x128xbf16, #tpu.memory_space<vmem>>, %arg59: memref<1x128xf32, #tpu.memory_space<vmem>>, %arg60: memref<128x512xbf16, #tpu.memory_space<vmem>>, %arg61: memref<1x128xf32, #tpu.memory_space<vmem>>, %arg62: memref<128x512xbf16, #tpu.memory_space<vmem>>, %arg63: memref<50x128xf32, #tpu.memory_space<vmem>>, %arg64: memref<50x128xf32, #tpu.memory_space<vmem>>, %arg65: memref<2x128xf32, #tpu.memory_space<vmem>>) attributes {dimension_semantics = [], scalar_prefetch = 0 : i64, scratch_operands = 0 : i64, tpu.core_type = #tpu.core_type<tc>} {
    %c0 = arith.constant 0 : index
    %c0_0 = arith.constant 0 : index
    %0 = vector.load %arg63[%c0, %c0_0] : memref<50x128xf32, #tpu.memory_space<vmem>>, vector<50x128xf32>
    %c0_1 = arith.constant 0 : index
    %c0_2 = arith.constant 0 : index
    %1 = vector.load %arg36[%c0_1, %c0_2] : memref<128x1152xbf16, #tpu.memory_space<vmem>>, vector<128x1152xbf16>
    %2 = arith.truncf %0 : vector<50x128xf32> to vector<50x128xbf16>
    %cst = arith.constant dense<0.000000e+00> : vector<50x1152xf32>
    %3 = tpu.matmul %2, %1, %cst {dimension_numbers = #tpu.dot_dimension_numbers<[1], [0], [0], [1], [0, 0, 1, 1], [], []>} : vector<50x128xbf16>, vector<128x1152xbf16>, vector<50x1152xf32> -> vector<50x1152xf32>
    %c0_3 = arith.constant 0 : index
    %c0_4 = arith.constant 0 : index
    %c0_5 = arith.constant 0 : index
    %4 = vector.load %arg6[%c0_3, %c0_4, %c0_5] : memref<9x50x50xf32, #tpu.memory_space<vmem>>, vector<1x50x50xf32>
    %5 = vector.shape_cast %4 : vector<1x50x50xf32> to vector<50x50xf32>
    %6 = vector.extract_strided_slice %3 {offsets = [0, 0], sizes = [50, 128], strides = [1, 1]} : vector<50x1152xf32> to vector<50x128xf32>
    %cst_6 = arith.constant dense<0.000000e+00> : vector<50x128xf32>
    %7 = tpu.matmul %5, %6, %cst_6 {dimension_numbers = #tpu.dot_dimension_numbers<[1], [0], [0], [1], [0, 0, 1, 1], [], []>} : vector<50x50xf32>, vector<50x128xf32>, vector<50x128xf32> -> vector<50x128xf32>
    %c1 = arith.constant 1 : index
    %c0_7 = arith.constant 0 : index
    %c0_8 = arith.constant 0 : index
    %8 = vector.load %arg6[%c1, %c0_7, %c0_8] : memref<9x50x50xf32, #tpu.memory_space<vmem>>, vector<1x50x50xf32>
    %9 = vector.shape_cast %8 : vector<1x50x50xf32> to vector<50x50xf32>
    %10 = vector.extract_strided_slice %3 {offsets = [0, 128], sizes = [50, 128], strides = [1, 1]} : vector<50x1152xf32> to vector<50x128xf32>
    %cst_9 = arith.constant dense<0.000000e+00> : vector<50x128xf32>
    %11 = tpu.matmul %9, %10, %cst_9 {dimension_numbers = #tpu.dot_dimension_numbers<[1], [0], [0], [1], [0, 0, 1, 1], [], []>} : vector<50x50xf32>, vector<50x128xf32>, vector<50x128xf32> -> vector<50x128xf32>
    %12 = arith.addf %7, %11 : vector<50x128xf32>
    %c2 = arith.constant 2 : index
    %c0_10 = arith.constant 0 : index
    %c0_11 = arith.constant 0 : index
    %13 = vector.load %arg6[%c2, %c0_10, %c0_11] : memref<9x50x50xf32, #tpu.memory_space<vmem>>, vector<1x50x50xf32>
    %14 = vector.shape_cast %13 : vector<1x50x50xf32> to vector<50x50xf32>
    %15 = vector.extract_strided_slice %3 {offsets = [0, 256], sizes = [50, 128], strides = [1, 1]} : vector<50x1152xf32> to vector<50x128xf32>
    %cst_12 = arith.constant dense<0.000000e+00> : vector<50x128xf32>
    %16 = tpu.matmul %14, %15, %cst_12 {dimension_numbers = #tpu.dot_dimension_numbers<[1], [0], [0], [1], [0, 0, 1, 1], [], []>} : vector<50x50xf32>, vector<50x128xf32>, vector<50x128xf32> -> vector<50x128xf32>
    %17 = arith.addf %12, %16 : vector<50x128xf32>
    %c3 = arith.constant 3 : index
    %c0_13 = arith.constant 0 : index
    %c0_14 = arith.constant 0 : index
    %18 = vector.load %arg6[%c3, %c0_13, %c0_14] : memref<9x50x50xf32, #tpu.memory_space<vmem>>, vector<1x50x50xf32>
    %19 = vector.shape_cast %18 : vector<1x50x50xf32> to vector<50x50xf32>
    %20 = vector.extract_strided_slice %3 {offsets = [0, 384], sizes = [50, 128], strides = [1, 1]} : vector<50x1152xf32> to vector<50x128xf32>
    %cst_15 = arith.constant dense<0.000000e+00> : vector<50x128xf32>
    %21 = tpu.matmul %19, %20, %cst_15 {dimension_numbers = #tpu.dot_dimension_numbers<[1], [0], [0], [1], [0, 0, 1, 1], [], []>} : vector<50x50xf32>, vector<50x128xf32>, vector<50x128xf32> -> vector<50x128xf32>
    %22 = arith.addf %17, %21 : vector<50x128xf32>
    %c4 = arith.constant 4 : index
    %c0_16 = arith.constant 0 : index
    %c0_17 = arith.constant 0 : index
    %23 = vector.load %arg6[%c4, %c0_16, %c0_17] : memref<9x50x50xf32, #tpu.memory_space<vmem>>, vector<1x50x50xf32>
    %24 = vector.shape_cast %23 : vector<1x50x50xf32> to vector<50x50xf32>
    %25 = vector.extract_strided_slice %3 {offsets = [0, 512], sizes = [50, 128], strides = [1, 1]} : vector<50x1152xf32> to vector<50x128xf32>
    %cst_18 = arith.constant dense<0.000000e+00> : vector<50x128xf32>
    %26 = tpu.matmul %24, %25, %cst_18 {dimension_numbers = #tpu.dot_dimension_numbers<[1], [0], [0], [1], [0, 0, 1, 1], [], []>} : vector<50x50xf32>, vector<50x128xf32>, vector<50x128xf32> -> vector<50x128xf32>
    %27 = arith.addf %22, %26 : vector<50x128xf32>
    %c5 = arith.constant 5 : index
    %c0_19 = arith.constant 0 : index
    %c0_20 = arith.constant 0 : index
    %28 = vector.load %arg6[%c5, %c0_19, %c0_20] : memref<9x50x50xf32, #tpu.memory_space<vmem>>, vector<1x50x50xf32>
    %29 = vector.shape_cast %28 : vector<1x50x50xf32> to vector<50x50xf32>
    %30 = vector.extract_strided_slice %3 {offsets = [0, 640], sizes = [50, 128], strides = [1, 1]} : vector<50x1152xf32> to vector<50x128xf32>
    %cst_21 = arith.constant dense<0.000000e+00> : vector<50x128xf32>
    %31 = tpu.matmul %29, %30, %cst_21 {dimension_numbers = #tpu.dot_dimension_numbers<[1], [0], [0], [1], [0, 0, 1, 1], [], []>} : vector<50x50xf32>, vector<50x128xf32>, vector<50x128xf32> -> vector<50x128xf32>
    %32 = arith.addf %27, %31 : vector<50x128xf32>
    %c6 = arith.constant 6 : index
    %c0_22 = arith.constant 0 : index
    %c0_23 = arith.constant 0 : index
    %33 = vector.load %arg6[%c6, %c0_22, %c0_23] : memref<9x50x50xf32, #tpu.memory_space<vmem>>, vector<1x50x50xf32>
    %34 = vector.shape_cast %33 : vector<1x50x50xf32> to vector<50x50xf32>
    %35 = vector.extract_strided_slice %3 {offsets = [0, 768], sizes = [50, 128], strides = [1, 1]} : vector<50x1152xf32> to vector<50x128xf32>
    %cst_24 = arith.constant dense<0.000000e+00> : vector<50x128xf32>
    %36 = tpu.matmul %34, %35, %cst_24 {dimension_numbers = #tpu.dot_dimension_numbers<[1], [0], [0], [1], [0, 0, 1, 1], [], []>} : vector<50x50xf32>, vector<50x128xf32>, vector<50x128xf32> -> vector<50x128xf32>
    %37 = arith.addf %32, %36 : vector<50x128xf32>
    %c7 = arith.constant 7 : index
    %c0_25 = arith.constant 0 : index
    %c0_26 = arith.constant 0 : index
    %38 = vector.load %arg6[%c7, %c0_25, %c0_26] : memref<9x50x50xf32, #tpu.memory_space<vmem>>, vector<1x50x50xf32>
    %39 = vector.shape_cast %38 : vector<1x50x50xf32> to vector<50x50xf32>
    %40 = vector.extract_strided_slice %3 {offsets = [0, 896], sizes = [50, 128], strides = [1, 1]} : vector<50x1152xf32> to vector<50x128xf32>
    %cst_27 = arith.constant dense<0.000000e+00> : vector<50x128xf32>
    %41 = tpu.matmul %39, %40, %cst_27 {dimension_numbers = #tpu.dot_dimension_numbers<[1], [0], [0], [1], [0, 0, 1, 1], [], []>} : vector<50x50xf32>, vector<50x128xf32>, vector<50x128xf32> -> vector<50x128xf32>
    %42 = arith.addf %37, %41 : vector<50x128xf32>
    %c8 = arith.constant 8 : index
    %c0_28 = arith.constant 0 : index
    %c0_29 = arith.constant 0 : index
    %43 = vector.load %arg6[%c8, %c0_28, %c0_29] : memref<9x50x50xf32, #tpu.memory_space<vmem>>, vector<1x50x50xf32>
    %44 = vector.shape_cast %43 : vector<1x50x50xf32> to vector<50x50xf32>
    %45 = vector.extract_strided_slice %3 {offsets = [0, 1024], sizes = [50, 128], strides = [1, 1]} : vector<50x1152xf32> to vector<50x128xf32>
    %cst_30 = arith.constant dense<0.000000e+00> : vector<50x128xf32>
    %46 = tpu.matmul %44, %45, %cst_30 {dimension_numbers = #tpu.dot_dimension_numbers<[1], [0], [0], [1], [0, 0, 1, 1], [], []>} : vector<50x50xf32>, vector<50x128xf32>, vector<50x128xf32> -> vector<50x128xf32>
    %47 = arith.addf %42, %46 : vector<50x128xf32>
    %c0_31 = arith.constant 0 : index
    %c0_32 = arith.constant 0 : index
    %48 = vector.load %arg33[%c0_31, %c0_32] : memref<1x128xf32, #tpu.memory_space<vmem>>, vector<1x128xf32>
    %49 = vector.broadcast %48 : vector<1x128xf32> to vector<50x128xf32>
    %50 = arith.addf %47, %49 : vector<50x128xf32>
    %cst_33 = arith.constant dense<0.000000e+00> : vector<128xf32>
    %51 = vector.multi_reduction <add>, %50, %cst_33 [0] : vector<50x128xf32> to vector<128xf32>
    %52 = vector.shape_cast %51 : vector<128xf32> to vector<1x128xf32>
    %cst_34 = arith.constant 5.000000e+01 : f32
    %53 = vector.broadcast %cst_34 : f32 to vector<1x128xf32>
    %54 = arith.divf %52, %53 : vector<1x128xf32>
    %55 = vector.broadcast %54 : vector<1x128xf32> to vector<50x128xf32>
    %56 = arith.subf %50, %55 : vector<50x128xf32>
    %57 = arith.mulf %56, %56 : vector<50x128xf32>
    %cst_35 = arith.constant dense<0.000000e+00> : vector<128xf32>
    %58 = vector.multi_reduction <add>, %57, %cst_35 [0] : vector<50x128xf32> to vector<128xf32>
    %59 = vector.shape_cast %58 : vector<128xf32> to vector<1x128xf32>
    %cst_36 = arith.constant 5.000000e+01 : f32
    %60 = vector.broadcast %cst_36 : f32 to vector<1x128xf32>
    %61 = arith.divf %59, %60 : vector<1x128xf32>
    %62 = vector.broadcast %54 : vector<1x128xf32> to vector<50x128xf32>
    %63 = arith.subf %50, %62 : vector<50x128xf32>
    %cst_37 = arith.constant 9.99999974E-6 : f32
    %64 = vector.broadcast %cst_37 : f32 to vector<1x128xf32>
    %65 = arith.addf %61, %64 : vector<1x128xf32>
    %66 = math.rsqrt %65 : vector<1x128xf32>
    %67 = vector.broadcast %66 : vector<1x128xf32> to vector<50x128xf32>
    %68 = arith.mulf %63, %67 : vector<50x128xf32>
    %c0_38 = arith.constant 0 : index
    %c0_39 = arith.constant 0 : index
    %69 = vector.load %arg35[%c0_38, %c0_39] : memref<1x128xf32, #tpu.memory_space<vmem>>, vector<1x128xf32>
    %70 = vector.broadcast %69 : vector<1x128xf32> to vector<50x128xf32>
    %71 = arith.mulf %68, %70 : vector<50x128xf32>
    %c0_40 = arith.constant 0 : index
    %c0_41 = arith.constant 0 : index
    %72 = vector.load %arg34[%c0_40, %c0_41] : memref<1x128xf32, #tpu.memory_space<vmem>>, vector<1x128xf32>
    %73 = vector.broadcast %72 : vector<1x128xf32> to vector<50x128xf32>
    %74 = arith.addf %71, %73 : vector<50x128xf32>
    %cst_42 = arith.constant 0.000000e+00 : f32
    %75 = vector.broadcast %cst_42 : f32 to vector<50x128xf32>
    %76 = arith.maximumf %74, %75 : vector<50x128xf32>
    %c0_43 = arith.constant 0 : index
    %c0_44 = arith.constant 0 : index
    %77 = vector.load %arg40[%c0_43, %c0_44] : memref<128x1152xbf16, #tpu.memory_space<vmem>>, vector<128x1152xbf16>
    %78 = arith.truncf %76 : vector<50x128xf32> to vector<50x128xbf16>
    %cst_45 = arith.constant dense<0.000000e+00> : vector<50x1152xf32>
    %79 = tpu.matmul %78, %77, %cst_45 {dimension_numbers = #tpu.dot_dimension_numbers<[1], [0], [0], [1], [0, 0, 1, 1], [], []>} : vector<50x128xbf16>, vector<128x1152xbf16>, vector<50x1152xf32> -> vector<50x1152xf32>
    %c0_46 = arith.constant 0 : index
    %c0_47 = arith.constant 0 : index
    %c0_48 = arith.constant 0 : index
    %80 = vector.load %arg6[%c0_46, %c0_47, %c0_48] : memref<9x50x50xf32, #tpu.memory_space<vmem>>, vector<1x50x50xf32>
    %81 = vector.shape_cast %80 : vector<1x50x50xf32> to vector<50x50xf32>
    %82 = vector.extract_strided_slice %79 {offsets = [0, 0], sizes = [50, 128], strides = [1, 1]} : vector<50x1152xf32> to vector<50x128xf32>
    %cst_49 = arith.constant dense<0.000000e+00> : vector<50x128xf32>
    %83 = tpu.matmul %81, %82, %cst_49 {dimension_numbers = #tpu.dot_dimension_numbers<[1], [0], [0], [1], [0, 0, 1, 1], [], []>} : vector<50x50xf32>, vector<50x128xf32>, vector<50x128xf32> -> vector<50x128xf32>
    %c1_50 = arith.constant 1 : index
    %c0_51 = arith.constant 0 : index
    %c0_52 = arith.constant 0 : index
    %84 = vector.load %arg6[%c1_50, %c0_51, %c0_52] : memref<9x50x50xf32, #tpu.memory_space<vmem>>, vector<1x50x50xf32>
    %85 = vector.shape_cast %84 : vector<1x50x50xf32> to vector<50x50xf32>
    %86 = vector.extract_strided_slice %79 {offsets = [0, 128], sizes = [50, 128], strides = [1, 1]} : vector<50x1152xf32> to vector<50x128xf32>
    %cst_53 = arith.constant dense<0.000000e+00> : vector<50x128xf32>
    %87 = tpu.matmul %85, %86, %cst_53 {dimension_numbers = #tpu.dot_dimension_numbers<[1], [0], [0], [1], [0, 0, 1, 1], [], []>} : vector<50x50xf32>, vector<50x128xf32>, vector<50x128xf32> -> vector<50x128xf32>
    %88 = arith.addf %83, %87 : vector<50x128xf32>
    %c2_54 = arith.constant 2 : index
    %c0_55 = arith.constant 0 : index
    %c0_56 = arith.constant 0 : index
    %89 = vector.load %arg6[%c2_54, %c0_55, %c0_56] : memref<9x50x50xf32, #tpu.memory_space<vmem>>, vector<1x50x50xf32>
    %90 = vector.shape_cast %89 : vector<1x50x50xf32> to vector<50x50xf32>
    %91 = vector.extract_strided_slice %79 {offsets = [0, 256], sizes = [50, 128], strides = [1, 1]} : vector<50x1152xf32> to vector<50x128xf32>
    %cst_57 = arith.constant dense<0.000000e+00> : vector<50x128xf32>
    %92 = tpu.matmul %90, %91, %cst_57 {dimension_numbers = #tpu.dot_dimension_numbers<[1], [0], [0], [1], [0, 0, 1, 1], [], []>} : vector<50x50xf32>, vector<50x128xf32>, vector<50x128xf32> -> vector<50x128xf32>
    %93 = arith.addf %88, %92 : vector<50x128xf32>
    %c3_58 = arith.constant 3 : index
    %c0_59 = arith.constant 0 : index
    %c0_60 = arith.constant 0 : index
    %94 = vector.load %arg6[%c3_58, %c0_59, %c0_60] : memref<9x50x50xf32, #tpu.memory_space<vmem>>, vector<1x50x50xf32>
    %95 = vector.shape_cast %94 : vector<1x50x50xf32> to vector<50x50xf32>
    %96 = vector.extract_strided_slice %79 {offsets = [0, 384], sizes = [50, 128], strides = [1, 1]} : vector<50x1152xf32> to vector<50x128xf32>
    %cst_61 = arith.constant dense<0.000000e+00> : vector<50x128xf32>
    %97 = tpu.matmul %95, %96, %cst_61 {dimension_numbers = #tpu.dot_dimension_numbers<[1], [0], [0], [1], [0, 0, 1, 1], [], []>} : vector<50x50xf32>, vector<50x128xf32>, vector<50x128xf32> -> vector<50x128xf32>
    %98 = arith.addf %93, %97 : vector<50x128xf32>
    %c4_62 = arith.constant 4 : index
    %c0_63 = arith.constant 0 : index
    %c0_64 = arith.constant 0 : index
    %99 = vector.load %arg6[%c4_62, %c0_63, %c0_64] : memref<9x50x50xf32, #tpu.memory_space<vmem>>, vector<1x50x50xf32>
    %100 = vector.shape_cast %99 : vector<1x50x50xf32> to vector<50x50xf32>
    %101 = vector.extract_strided_slice %79 {offsets = [0, 512], sizes = [50, 128], strides = [1, 1]} : vector<50x1152xf32> to vector<50x128xf32>
    %cst_65 = arith.constant dense<0.000000e+00> : vector<50x128xf32>
    %102 = tpu.matmul %100, %101, %cst_65 {dimension_numbers = #tpu.dot_dimension_numbers<[1], [0], [0], [1], [0, 0, 1, 1], [], []>} : vector<50x50xf32>, vector<50x128xf32>, vector<50x128xf32> -> vector<50x128xf32>
    %103 = arith.addf %98, %102 : vector<50x128xf32>
    %c5_66 = arith.constant 5 : index
    %c0_67 = arith.constant 0 : index
    %c0_68 = arith.constant 0 : index
    %104 = vector.load %arg6[%c5_66, %c0_67, %c0_68] : memref<9x50x50xf32, #tpu.memory_space<vmem>>, vector<1x50x50xf32>
    %105 = vector.shape_cast %104 : vector<1x50x50xf32> to vector<50x50xf32>
    %106 = vector.extract_strided_slice %79 {offsets = [0, 640], sizes = [50, 128], strides = [1, 1]} : vector<50x1152xf32> to vector<50x128xf32>
    %cst_69 = arith.constant dense<0.000000e+00> : vector<50x128xf32>
    %107 = tpu.matmul %105, %106, %cst_69 {dimension_numbers = #tpu.dot_dimension_numbers<[1], [0], [0], [1], [0, 0, 1, 1], [], []>} : vector<50x50xf32>, vector<50x128xf32>, vector<50x128xf32> -> vector<50x128xf32>
    %108 = arith.addf %103, %107 : vector<50x128xf32>
    %c6_70 = arith.constant 6 : index
    %c0_71 = arith.constant 0 : index
    %c0_72 = arith.constant 0 : index
    %109 = vector.load %arg6[%c6_70, %c0_71, %c0_72] : memref<9x50x50xf32, #tpu.memory_space<vmem>>, vector<1x50x50xf32>
    %110 = vector.shape_cast %109 : vector<1x50x50xf32> to vector<50x50xf32>
    %111 = vector.extract_strided_slice %79 {offsets = [0, 768], sizes = [50, 128], strides = [1, 1]} : vector<50x1152xf32> to vector<50x128xf32>
    %cst_73 = arith.constant dense<0.000000e+00> : vector<50x128xf32>
    %112 = tpu.matmul %110, %111, %cst_73 {dimension_numbers = #tpu.dot_dimension_numbers<[1], [0], [0], [1], [0, 0, 1, 1], [], []>} : vector<50x50xf32>, vector<50x128xf32>, vector<50x128xf32> -> vector<50x128xf32>
    %113 = arith.addf %108, %112 : vector<50x128xf32>
    %c7_74 = arith.constant 7 : index
    %c0_75 = arith.constant 0 : index
    %c0_76 = arith.constant 0 : index
    %114 = vector.load %arg6[%c7_74, %c0_75, %c0_76] : memref<9x50x50xf32, #tpu.memory_space<vmem>>, vector<1x50x50xf32>
    %115 = vector.shape_cast %114 : vector<1x50x50xf32> to vector<50x50xf32>
    %116 = vector.extract_strided_slice %79 {offsets = [0, 896], sizes = [50, 128], strides = [1, 1]} : vector<50x1152xf32> to vector<50x128xf32>
    %cst_77 = arith.constant dense<0.000000e+00> : vector<50x128xf32>
    %117 = tpu.matmul %115, %116, %cst_77 {dimension_numbers = #tpu.dot_dimension_numbers<[1], [0], [0], [1], [0, 0, 1, 1], [], []>} : vector<50x50xf32>, vector<50x128xf32>, vector<50x128xf32> -> vector<50x128xf32>
    %118 = arith.addf %113, %117 : vector<50x128xf32>
    %c8_78 = arith.constant 8 : index
    %c0_79 = arith.constant 0 : index
    %c0_80 = arith.constant 0 : index
    %119 = vector.load %arg6[%c8_78, %c0_79, %c0_80] : memref<9x50x50xf32, #tpu.memory_space<vmem>>, vector<1x50x50xf32>
    %120 = vector.shape_cast %119 : vector<1x50x50xf32> to vector<50x50xf32>
    %121 = vector.extract_strided_slice %79 {offsets = [0, 1024], sizes = [50, 128], strides = [1, 1]} : vector<50x1152xf32> to vector<50x128xf32>
    %cst_81 = arith.constant dense<0.000000e+00> : vector<50x128xf32>
    %122 = tpu.matmul %120, %121, %cst_81 {dimension_numbers = #tpu.dot_dimension_numbers<[1], [0], [0], [1], [0, 0, 1, 1], [], []>} : vector<50x50xf32>, vector<50x128xf32>, vector<50x128xf32> -> vector<50x128xf32>
    %123 = arith.addf %118, %122 : vector<50x128xf32>
    %c0_82 = arith.constant 0 : index
    %c0_83 = arith.constant 0 : index
    %124 = vector.load %arg37[%c0_82, %c0_83] : memref<1x128xf32, #tpu.memory_space<vmem>>, vector<1x128xf32>
    %125 = vector.broadcast %124 : vector<1x128xf32> to vector<50x128xf32>
    %126 = arith.addf %123, %125 : vector<50x128xf32>
    %cst_84 = arith.constant dense<0.000000e+00> : vector<128xf32>
    %127 = vector.multi_reduction <add>, %126, %cst_84 [0] : vector<50x128xf32> to vector<128xf32>
    %128 = vector.shape_cast %127 : vector<128xf32> to vector<1x128xf32>
    %cst_85 = arith.constant 5.000000e+01 : f32
    %129 = vector.broadcast %cst_85 : f32 to vector<1x128xf32>
    %130 = arith.divf %128, %129 : vector<1x128xf32>
    %131 = vector.broadcast %130 : vector<1x128xf32> to vector<50x128xf32>
    %132 = arith.subf %126, %131 : vector<50x128xf32>
    %133 = arith.mulf %132, %132 : vector<50x128xf32>
    %cst_86 = arith.constant dense<0.000000e+00> : vector<128xf32>
    %134 = vector.multi_reduction <add>, %133, %cst_86 [0] : vector<50x128xf32> to vector<128xf32>
    %135 = vector.shape_cast %134 : vector<128xf32> to vector<1x128xf32>
    %cst_87 = arith.constant 5.000000e+01 : f32
    %136 = vector.broadcast %cst_87 : f32 to vector<1x128xf32>
    %137 = arith.divf %135, %136 : vector<1x128xf32>
    %138 = vector.broadcast %130 : vector<1x128xf32> to vector<50x128xf32>
    %139 = arith.subf %126, %138 : vector<50x128xf32>
    %cst_88 = arith.constant 9.99999974E-6 : f32
    %140 = vector.broadcast %cst_88 : f32 to vector<1x128xf32>
    %141 = arith.addf %137, %140 : vector<1x128xf32>
    %142 = math.rsqrt %141 : vector<1x128xf32>
    %143 = vector.broadcast %142 : vector<1x128xf32> to vector<50x128xf32>
    %144 = arith.mulf %139, %143 : vector<50x128xf32>
    %c0_89 = arith.constant 0 : index
    %c0_90 = arith.constant 0 : index
    %145 = vector.load %arg39[%c0_89, %c0_90] : memref<1x128xf32, #tpu.memory_space<vmem>>, vector<1x128xf32>
    %146 = vector.broadcast %145 : vector<1x128xf32> to vector<50x128xf32>
    %147 = arith.mulf %144, %146 : vector<50x128xf32>
    %c0_91 = arith.constant 0 : index
    %c0_92 = arith.constant 0 : index
    %148 = vector.load %arg38[%c0_91, %c0_92] : memref<1x128xf32, #tpu.memory_space<vmem>>, vector<1x128xf32>
    %149 = vector.broadcast %148 : vector<1x128xf32> to vector<50x128xf32>
    %150 = arith.addf %147, %149 : vector<50x128xf32>
    %cst_93 = arith.constant 0.000000e+00 : f32
    %151 = vector.broadcast %cst_93 : f32 to vector<50x128xf32>
    %152 = arith.maximumf %150, %151 : vector<50x128xf32>
    %c0_94 = arith.constant 0 : index
    %c0_95 = arith.constant 0 : index
    %c0_96 = arith.constant 0 : index
    %153 = vector.load %arg2[%c0_94, %c0_95, %c0_96] : memref<4x8x50xf32, #tpu.memory_space<vmem>>, vector<1x8x50xf32>
    %154 = vector.shape_cast %153 : vector<1x8x50xf32> to vector<8x50xf32>
    %cst_97 = arith.constant dense<0.000000e+00> : vector<8x128xf32>
    %155 = tpu.matmul %154, %152, %cst_97 {dimension_numbers = #tpu.dot_dimension_numbers<[1], [0], [0], [1], [0, 0, 1, 1], [], []>} : vector<8x50xf32>, vector<50x128xf32>, vector<8x128xf32> -> vector<8x128xf32>
    %c1_98 = arith.constant 1 : index
    %c0_99 = arith.constant 0 : index
    %c0_100 = arith.constant 0 : index
    %156 = vector.load %arg2[%c1_98, %c0_99, %c0_100] : memref<4x8x50xf32, #tpu.memory_space<vmem>>, vector<1x8x50xf32>
    %157 = vector.shape_cast %156 : vector<1x8x50xf32> to vector<8x50xf32>
    %cst_101 = arith.constant dense<0.000000e+00> : vector<8x128xf32>
    %158 = tpu.matmul %157, %152, %cst_101 {dimension_numbers = #tpu.dot_dimension_numbers<[1], [0], [0], [1], [0, 0, 1, 1], [], []>} : vector<8x50xf32>, vector<50x128xf32>, vector<8x128xf32> -> vector<8x128xf32>
    %159 = arith.maximumf %155, %158 : vector<8x128xf32>
    %c2_102 = arith.constant 2 : index
    %c0_103 = arith.constant 0 : index
    %c0_104 = arith.constant 0 : index
    %160 = vector.load %arg2[%c2_102, %c0_103, %c0_104] : memref<4x8x50xf32, #tpu.memory_space<vmem>>, vector<1x8x50xf32>
    %161 = vector.shape_cast %160 : vector<1x8x50xf32> to vector<8x50xf32>
    %cst_105 = arith.constant dense<0.000000e+00> : vector<8x128xf32>
    %162 = tpu.matmul %161, %152, %cst_105 {dimension_numbers = #tpu.dot_dimension_numbers<[1], [0], [0], [1], [0, 0, 1, 1], [], []>} : vector<8x50xf32>, vector<50x128xf32>, vector<8x128xf32> -> vector<8x128xf32>
    %163 = arith.maximumf %159, %162 : vector<8x128xf32>
    %c3_106 = arith.constant 3 : index
    %c0_107 = arith.constant 0 : index
    %c0_108 = arith.constant 0 : index
    %164 = vector.load %arg2[%c3_106, %c0_107, %c0_108] : memref<4x8x50xf32, #tpu.memory_space<vmem>>, vector<1x8x50xf32>
    %165 = vector.shape_cast %164 : vector<1x8x50xf32> to vector<8x50xf32>
    %cst_109 = arith.constant dense<0.000000e+00> : vector<8x128xf32>
    %166 = tpu.matmul %165, %152, %cst_109 {dimension_numbers = #tpu.dot_dimension_numbers<[1], [0], [0], [1], [0, 0, 1, 1], [], []>} : vector<8x50xf32>, vector<50x128xf32>, vector<8x128xf32> -> vector<8x128xf32>
    %167 = arith.maximumf %163, %166 : vector<8x128xf32>
    %c0_110 = arith.constant 0 : index
    %c0_111 = arith.constant 0 : index
    %168 = vector.load %arg44[%c0_110, %c0_111] : memref<128x1152xbf16, #tpu.memory_space<vmem>>, vector<128x1152xbf16>
    %169 = arith.truncf %167 : vector<8x128xf32> to vector<8x128xbf16>
    %cst_112 = arith.constant dense<0.000000e+00> : vector<8x1152xf32>
    %170 = tpu.matmul %169, %168, %cst_112 {dimension_numbers = #tpu.dot_dimension_numbers<[1], [0], [0], [1], [0, 0, 1, 1], [], []>} : vector<8x128xbf16>, vector<128x1152xbf16>, vector<8x1152xf32> -> vector<8x1152xf32>
    %171 = vector.extract_strided_slice %170 {offsets = [0, 0], sizes = [8, 128], strides = [1, 1]} : vector<8x1152xf32> to vector<8x128xf32>
    %172 = vector.extract_strided_slice %170 {offsets = [0, 128], sizes = [8, 128], strides = [1, 1]} : vector<8x1152xf32> to vector<8x128xf32>
    %173 = vector.extract_strided_slice %170 {offsets = [0, 256], sizes = [8, 128], strides = [1, 1]} : vector<8x1152xf32> to vector<8x128xf32>
    %174 = vector.extract_strided_slice %170 {offsets = [0, 384], sizes = [8, 128], strides = [1, 1]} : vector<8x1152xf32> to vector<8x128xf32>
    %175 = vector.extract_strided_slice %170 {offsets = [0, 512], sizes = [8, 128], strides = [1, 1]} : vector<8x1152xf32> to vector<8x128xf32>
    %176 = vector.extract_strided_slice %170 {offsets = [0, 640], sizes = [8, 128], strides = [1, 1]} : vector<8x1152xf32> to vector<8x128xf32>
    %177 = vector.extract_strided_slice %170 {offsets = [0, 768], sizes = [8, 128], strides = [1, 1]} : vector<8x1152xf32> to vector<8x128xf32>
    %178 = vector.extract_strided_slice %170 {offsets = [0, 896], sizes = [8, 128], strides = [1, 1]} : vector<8x1152xf32> to vector<8x128xf32>
    %179 = vector.extract_strided_slice %170 {offsets = [0, 1024], sizes = [8, 128], strides = [1, 1]} : vector<8x1152xf32> to vector<8x128xf32>
    %180 = tpu.concatenate %171, %172, %173, %174, %175, %176, %177, %178, %179 in 0 : vector<8x128xf32>, vector<8x128xf32>, vector<8x128xf32>, vector<8x128xf32>, vector<8x128xf32>, vector<8x128xf32>, vector<8x128xf32>, vector<8x128xf32>, vector<8x128xf32> -> vector<72x128xf32>
    %c0_113 = arith.constant 0 : index
    %c0_114 = arith.constant 0 : index
    %181 = vector.load %arg4[%c0_113, %c0_114] : memref<8x72xf32, #tpu.memory_space<vmem>>, vector<8x72xf32>
    %cst_115 = arith.constant dense<0.000000e+00> : vector<8x128xf32>
    %182 = tpu.matmul %181, %180, %cst_115 {dimension_numbers = #tpu.dot_dimension_numbers<[1], [0], [0], [1], [0, 0, 1, 1], [], []>} : vector<8x72xf32>, vector<72x128xf32>, vector<8x128xf32> -> vector<8x128xf32>
    %c0_116 = arith.constant 0 : index
    %c0_117 = arith.constant 0 : index
    %183 = vector.load %arg41[%c0_116, %c0_117] : memref<1x128xf32, #tpu.memory_space<vmem>>, vector<1x128xf32>
    %184 = vector.broadcast %183 : vector<1x128xf32> to vector<8x128xf32>
    %185 = arith.addf %182, %184 : vector<8x128xf32>
    %cst_118 = arith.constant dense<0.000000e+00> : vector<128xf32>
    %186 = vector.multi_reduction <add>, %185, %cst_118 [0] : vector<8x128xf32> to vector<128xf32>
    %187 = vector.shape_cast %186 : vector<128xf32> to vector<1x128xf32>
    %cst_119 = arith.constant 8.000000e+00 : f32
    %188 = vector.broadcast %cst_119 : f32 to vector<1x128xf32>
    %189 = arith.divf %187, %188 : vector<1x128xf32>
    %190 = vector.broadcast %189 : vector<1x128xf32> to vector<8x128xf32>
    %191 = arith.subf %185, %190 : vector<8x128xf32>
    %192 = arith.mulf %191, %191 : vector<8x128xf32>
    %cst_120 = arith.constant dense<0.000000e+00> : vector<128xf32>
    %193 = vector.multi_reduction <add>, %192, %cst_120 [0] : vector<8x128xf32> to vector<128xf32>
    %194 = vector.shape_cast %193 : vector<128xf32> to vector<1x128xf32>
    %cst_121 = arith.constant 8.000000e+00 : f32
    %195 = vector.broadcast %cst_121 : f32 to vector<1x128xf32>
    %196 = arith.divf %194, %195 : vector<1x128xf32>
    %197 = vector.broadcast %189 : vector<1x128xf32> to vector<8x128xf32>
    %198 = arith.subf %185, %197 : vector<8x128xf32>
    %cst_122 = arith.constant 9.99999974E-6 : f32
    %199 = vector.broadcast %cst_122 : f32 to vector<1x128xf32>
    %200 = arith.addf %196, %199 : vector<1x128xf32>
    %201 = math.rsqrt %200 : vector<1x128xf32>
    %202 = vector.broadcast %201 : vector<1x128xf32> to vector<8x128xf32>
    %203 = arith.mulf %198, %202 : vector<8x128xf32>
    %c0_123 = arith.constant 0 : index
    %c0_124 = arith.constant 0 : index
    %204 = vector.load %arg43[%c0_123, %c0_124] : memref<1x128xf32, #tpu.memory_space<vmem>>, vector<1x128xf32>
    %205 = vector.broadcast %204 : vector<1x128xf32> to vector<8x128xf32>
    %206 = arith.mulf %203, %205 : vector<8x128xf32>
    %c0_125 = arith.constant 0 : index
    %c0_126 = arith.constant 0 : index
    %207 = vector.load %arg42[%c0_125, %c0_126] : memref<1x128xf32, #tpu.memory_space<vmem>>, vector<1x128xf32>
    %208 = vector.broadcast %207 : vector<1x128xf32> to vector<8x128xf32>
    %209 = arith.addf %206, %208 : vector<8x128xf32>
    %cst_127 = arith.constant 0.000000e+00 : f32
    %210 = vector.broadcast %cst_127 : f32 to vector<8x128xf32>
    %211 = arith.maximumf %209, %210 : vector<8x128xf32>
    %c0_128 = arith.constant 0 : index
    %c0_129 = arith.constant 0 : index
    %212 = vector.load %arg48[%c0_128, %c0_129] : memref<128x1152xbf16, #tpu.memory_space<vmem>>, vector<128x1152xbf16>
    %213 = arith.truncf %211 : vector<8x128xf32> to vector<8x128xbf16>
    %cst_130 = arith.constant dense<0.000000e+00> : vector<8x1152xf32>
    %214 = tpu.matmul %213, %212, %cst_130 {dimension_numbers = #tpu.dot_dimension_numbers<[1], [0], [0], [1], [0, 0, 1, 1], [], []>} : vector<8x128xbf16>, vector<128x1152xbf16>, vector<8x1152xf32> -> vector<8x1152xf32>
    %215 = vector.extract_strided_slice %214 {offsets = [0, 0], sizes = [8, 128], strides = [1, 1]} : vector<8x1152xf32> to vector<8x128xf32>
    %216 = vector.extract_strided_slice %214 {offsets = [0, 128], sizes = [8, 128], strides = [1, 1]} : vector<8x1152xf32> to vector<8x128xf32>
    %217 = vector.extract_strided_slice %214 {offsets = [0, 256], sizes = [8, 128], strides = [1, 1]} : vector<8x1152xf32> to vector<8x128xf32>
    %218 = vector.extract_strided_slice %214 {offsets = [0, 384], sizes = [8, 128], strides = [1, 1]} : vector<8x1152xf32> to vector<8x128xf32>
    %219 = vector.extract_strided_slice %214 {offsets = [0, 512], sizes = [8, 128], strides = [1, 1]} : vector<8x1152xf32> to vector<8x128xf32>
    %220 = vector.extract_strided_slice %214 {offsets = [0, 640], sizes = [8, 128], strides = [1, 1]} : vector<8x1152xf32> to vector<8x128xf32>
    %221 = vector.extract_strided_slice %214 {offsets = [0, 768], sizes = [8, 128], strides = [1, 1]} : vector<8x1152xf32> to vector<8x128xf32>
    %222 = vector.extract_strided_slice %214 {offsets = [0, 896], sizes = [8, 128], strides = [1, 1]} : vector<8x1152xf32> to vector<8x128xf32>
    %223 = vector.extract_strided_slice %214 {offsets = [0, 1024], sizes = [8, 128], strides = [1, 1]} : vector<8x1152xf32> to vector<8x128xf32>
    %224 = tpu.concatenate %215, %216, %217, %218, %219, %220, %221, %222, %223 in 0 : vector<8x128xf32>, vector<8x128xf32>, vector<8x128xf32>, vector<8x128xf32>, vector<8x128xf32>, vector<8x128xf32>, vector<8x128xf32>, vector<8x128xf32>, vector<8x128xf32> -> vector<72x128xf32>
    %c0_131 = arith.constant 0 : index
    %c0_132 = arith.constant 0 : index
    %225 = vector.load %arg4[%c0_131, %c0_132] : memref<8x72xf32, #tpu.memory_space<vmem>>, vector<8x72xf32>
    %cst_133 = arith.constant dense<0.000000e+00> : vector<8x128xf32>
    %226 = tpu.matmul %225, %224, %cst_133 {dimension_numbers = #tpu.dot_dimension_numbers<[1], [0], [0], [1], [0, 0, 1, 1], [], []>} : vector<8x72xf32>, vector<72x128xf32>, vector<8x128xf32> -> vector<8x128xf32>
    %c0_134 = arith.constant 0 : index
    %c0_135 = arith.constant 0 : index
    %227 = vector.load %arg45[%c0_134, %c0_135] : memref<1x128xf32, #tpu.memory_space<vmem>>, vector<1x128xf32>
    %228 = vector.broadcast %227 : vector<1x128xf32> to vector<8x128xf32>
    %229 = arith.addf %226, %228 : vector<8x128xf32>
    %cst_136 = arith.constant dense<0.000000e+00> : vector<128xf32>
    %230 = vector.multi_reduction <add>, %229, %cst_136 [0] : vector<8x128xf32> to vector<128xf32>
    %231 = vector.shape_cast %230 : vector<128xf32> to vector<1x128xf32>
    %cst_137 = arith.constant 8.000000e+00 : f32
    %232 = vector.broadcast %cst_137 : f32 to vector<1x128xf32>
    %233 = arith.divf %231, %232 : vector<1x128xf32>
    %234 = vector.broadcast %233 : vector<1x128xf32> to vector<8x128xf32>
    %235 = arith.subf %229, %234 : vector<8x128xf32>
    %236 = arith.mulf %235, %235 : vector<8x128xf32>
    %cst_138 = arith.constant dense<0.000000e+00> : vector<128xf32>
    %237 = vector.multi_reduction <add>, %236, %cst_138 [0] : vector<8x128xf32> to vector<128xf32>
    %238 = vector.shape_cast %237 : vector<128xf32> to vector<1x128xf32>
    %cst_139 = arith.constant 8.000000e+00 : f32
    %239 = vector.broadcast %cst_139 : f32 to vector<1x128xf32>
    %240 = arith.divf %238, %239 : vector<1x128xf32>
    %241 = vector.broadcast %233 : vector<1x128xf32> to vector<8x128xf32>
    %242 = arith.subf %229, %241 : vector<8x128xf32>
    %cst_140 = arith.constant 9.99999974E-6 : f32
    %243 = vector.broadcast %cst_140 : f32 to vector<1x128xf32>
    %244 = arith.addf %240, %243 : vector<1x128xf32>
    %245 = math.rsqrt %244 : vector<1x128xf32>
    %246 = vector.broadcast %245 : vector<1x128xf32> to vector<8x128xf32>
    %247 = arith.mulf %242, %246 : vector<8x128xf32>
    %c0_141 = arith.constant 0 : index
    %c0_142 = arith.constant 0 : index
    %248 = vector.load %arg47[%c0_141, %c0_142] : memref<1x128xf32, #tpu.memory_space<vmem>>, vector<1x128xf32>
    %249 = vector.broadcast %248 : vector<1x128xf32> to vector<8x128xf32>
    %250 = arith.mulf %247, %249 : vector<8x128xf32>
    %c0_143 = arith.constant 0 : index
    %c0_144 = arith.constant 0 : index
    %251 = vector.load %arg46[%c0_143, %c0_144] : memref<1x128xf32, #tpu.memory_space<vmem>>, vector<1x128xf32>
    %252 = vector.broadcast %251 : vector<1x128xf32> to vector<8x128xf32>
    %253 = arith.addf %250, %252 : vector<8x128xf32>
    %cst_145 = arith.constant 0.000000e+00 : f32
    %254 = vector.broadcast %cst_145 : f32 to vector<8x128xf32>
    %255 = arith.maximumf %253, %254 : vector<8x128xf32>
    %c0_146 = arith.constant 0 : index
    %c0_147 = arith.constant 0 : index
    %c0_148 = arith.constant 0 : index
    %256 = vector.load %arg3[%c0_146, %c0_147, %c0_148] : memref<4x2x8xf32, #tpu.memory_space<vmem>>, vector<1x2x8xf32>
    %257 = vector.shape_cast %256 : vector<1x2x8xf32> to vector<2x8xf32>
    %cst_149 = arith.constant dense<0.000000e+00> : vector<2x128xf32>
    %258 = tpu.matmul %257, %255, %cst_149 {dimension_numbers = #tpu.dot_dimension_numbers<[1], [0], [0], [1], [0, 0, 1, 1], [], []>} : vector<2x8xf32>, vector<8x128xf32>, vector<2x128xf32> -> vector<2x128xf32>
    %c1_150 = arith.constant 1 : index
    %c0_151 = arith.constant 0 : index
    %c0_152 = arith.constant 0 : index
    %259 = vector.load %arg3[%c1_150, %c0_151, %c0_152] : memref<4x2x8xf32, #tpu.memory_space<vmem>>, vector<1x2x8xf32>
    %260 = vector.shape_cast %259 : vector<1x2x8xf32> to vector<2x8xf32>
    %cst_153 = arith.constant dense<0.000000e+00> : vector<2x128xf32>
    %261 = tpu.matmul %260, %255, %cst_153 {dimension_numbers = #tpu.dot_dimension_numbers<[1], [0], [0], [1], [0, 0, 1, 1], [], []>} : vector<2x8xf32>, vector<8x128xf32>, vector<2x128xf32> -> vector<2x128xf32>
    %262 = arith.maximumf %258, %261 : vector<2x128xf32>
    %c2_154 = arith.constant 2 : index
    %c0_155 = arith.constant 0 : index
    %c0_156 = arith.constant 0 : index
    %263 = vector.load %arg3[%c2_154, %c0_155, %c0_156] : memref<4x2x8xf32, #tpu.memory_space<vmem>>, vector<1x2x8xf32>
    %264 = vector.shape_cast %263 : vector<1x2x8xf32> to vector<2x8xf32>
    %cst_157 = arith.constant dense<0.000000e+00> : vector<2x128xf32>
    %265 = tpu.matmul %264, %255, %cst_157 {dimension_numbers = #tpu.dot_dimension_numbers<[1], [0], [0], [1], [0, 0, 1, 1], [], []>} : vector<2x8xf32>, vector<8x128xf32>, vector<2x128xf32> -> vector<2x128xf32>
    %266 = arith.maximumf %262, %265 : vector<2x128xf32>
    %c3_158 = arith.constant 3 : index
    %c0_159 = arith.constant 0 : index
    %c0_160 = arith.constant 0 : index
    %267 = vector.load %arg3[%c3_158, %c0_159, %c0_160] : memref<4x2x8xf32, #tpu.memory_space<vmem>>, vector<1x2x8xf32>
    %268 = vector.shape_cast %267 : vector<1x2x8xf32> to vector<2x8xf32>
    %cst_161 = arith.constant dense<0.000000e+00> : vector<2x128xf32>
    %269 = tpu.matmul %268, %255, %cst_161 {dimension_numbers = #tpu.dot_dimension_numbers<[1], [0], [0], [1], [0, 0, 1, 1], [], []>} : vector<2x8xf32>, vector<8x128xf32>, vector<2x128xf32> -> vector<2x128xf32>
    %270 = arith.maximumf %266, %269 : vector<2x128xf32>
    %271 = arith.truncf %270 : vector<2x128xf32> to vector<2x128xbf16>
    %c0_162 = arith.constant 0 : index
    %c0_163 = arith.constant 0 : index
    %272 = vector.load %arg52[%c0_162, %c0_163] : memref<128x256xbf16, #tpu.memory_space<vmem>>, vector<128x256xbf16>
    %cst_164 = arith.constant dense<0.000000e+00> : vector<2x256xf32>
    %273 = tpu.matmul %271, %272, %cst_164 {dimension_numbers = #tpu.dot_dimension_numbers<[1], [0], [0], [1], [0, 0, 1, 1], [], []>} : vector<2x128xbf16>, vector<128x256xbf16>, vector<2x256xf32> -> vector<2x256xf32>
    %c0_165 = arith.constant 0 : index
    %c0_166 = arith.constant 0 : index
    %274 = vector.load %arg49[%c0_165, %c0_166] : memref<1x256xf32, #tpu.memory_space<vmem>>, vector<1x256xf32>
    %275 = vector.broadcast %274 : vector<1x256xf32> to vector<2x256xf32>
    %276 = arith.addf %273, %275 : vector<2x256xf32>
    %cst_167 = arith.constant dense<0.000000e+00> : vector<256xf32>
    %277 = vector.multi_reduction <add>, %276, %cst_167 [0] : vector<2x256xf32> to vector<256xf32>
    %278 = vector.shape_cast %277 : vector<256xf32> to vector<1x256xf32>
    %cst_168 = arith.constant 2.000000e+00 : f32
    %279 = vector.broadcast %cst_168 : f32 to vector<1x256xf32>
    %280 = arith.divf %278, %279 : vector<1x256xf32>
    %281 = vector.broadcast %280 : vector<1x256xf32> to vector<2x256xf32>
    %282 = arith.subf %276, %281 : vector<2x256xf32>
    %283 = arith.mulf %282, %282 : vector<2x256xf32>
    %cst_169 = arith.constant dense<0.000000e+00> : vector<256xf32>
    %284 = vector.multi_reduction <add>, %283, %cst_169 [0] : vector<2x256xf32> to vector<256xf32>
    %285 = vector.shape_cast %284 : vector<256xf32> to vector<1x256xf32>
    %cst_170 = arith.constant 2.000000e+00 : f32
    %286 = vector.broadcast %cst_170 : f32 to vector<1x256xf32>
    %287 = arith.divf %285, %286 : vector<1x256xf32>
    %288 = vector.broadcast %280 : vector<1x256xf32> to vector<2x256xf32>
    %289 = arith.subf %276, %288 : vector<2x256xf32>
    %cst_171 = arith.constant 9.99999974E-6 : f32
    %290 = vector.broadcast %cst_171 : f32 to vector<1x256xf32>
    %291 = arith.addf %287, %290 : vector<1x256xf32>
    %292 = math.rsqrt %291 : vector<1x256xf32>
    %293 = vector.broadcast %292 : vector<1x256xf32> to vector<2x256xf32>
    %294 = arith.mulf %289, %293 : vector<2x256xf32>
    %c0_172 = arith.constant 0 : index
    %c0_173 = arith.constant 0 : index
    %295 = vector.load %arg51[%c0_172, %c0_173] : memref<1x256xf32, #tpu.memory_space<vmem>>, vector<1x256xf32>
    %296 = vector.broadcast %295 : vector<1x256xf32> to vector<2x256xf32>
    %297 = arith.mulf %294, %296 : vector<2x256xf32>
    %c0_174 = arith.constant 0 : index
    %c0_175 = arith.constant 0 : index
    %298 = vector.load %arg50[%c0_174, %c0_175] : memref<1x256xf32, #tpu.memory_space<vmem>>, vector<1x256xf32>
    %299 = vector.broadcast %298 : vector<1x256xf32> to vector<2x256xf32>
    %300 = arith.addf %297, %299 : vector<2x256xf32>
    %cst_176 = arith.constant 0.000000e+00 : f32
    %301 = vector.broadcast %cst_176 : f32 to vector<2x256xf32>
    %302 = arith.maximumf %300, %301 : vector<2x256xf32>
    %303 = arith.truncf %302 : vector<2x256xf32> to vector<2x256xbf16>
    %c0_177 = arith.constant 0 : index
    %c0_178 = arith.constant 0 : index
    %304 = vector.load %arg56[%c0_177, %c0_178] : memref<256x256xbf16, #tpu.memory_space<vmem>>, vector<256x256xbf16>
    %cst_179 = arith.constant dense<0.000000e+00> : vector<2x256xf32>
    %305 = tpu.matmul %303, %304, %cst_179 {dimension_numbers = #tpu.dot_dimension_numbers<[1], [0], [0], [1], [0, 0, 1, 1], [], []>} : vector<2x256xbf16>, vector<256x256xbf16>, vector<2x256xf32> -> vector<2x256xf32>
    %c0_180 = arith.constant 0 : index
    %c0_181 = arith.constant 0 : index
    %306 = vector.load %arg53[%c0_180, %c0_181] : memref<1x256xf32, #tpu.memory_space<vmem>>, vector<1x256xf32>
    %307 = vector.broadcast %306 : vector<1x256xf32> to vector<2x256xf32>
    %308 = arith.addf %305, %307 : vector<2x256xf32>
    %cst_182 = arith.constant dense<0.000000e+00> : vector<256xf32>
    %309 = vector.multi_reduction <add>, %308, %cst_182 [0] : vector<2x256xf32> to vector<256xf32>
    %310 = vector.shape_cast %309 : vector<256xf32> to vector<1x256xf32>
    %cst_183 = arith.constant 2.000000e+00 : f32
    %311 = vector.broadcast %cst_183 : f32 to vector<1x256xf32>
    %312 = arith.divf %310, %311 : vector<1x256xf32>
    %313 = vector.broadcast %312 : vector<1x256xf32> to vector<2x256xf32>
    %314 = arith.subf %308, %313 : vector<2x256xf32>
    %315 = arith.mulf %314, %314 : vector<2x256xf32>
    %cst_184 = arith.constant dense<0.000000e+00> : vector<256xf32>
    %316 = vector.multi_reduction <add>, %315, %cst_184 [0] : vector<2x256xf32> to vector<256xf32>
    %317 = vector.shape_cast %316 : vector<256xf32> to vector<1x256xf32>
    %cst_185 = arith.constant 2.000000e+00 : f32
    %318 = vector.broadcast %cst_185 : f32 to vector<1x256xf32>
    %319 = arith.divf %317, %318 : vector<1x256xf32>
    %320 = vector.broadcast %312 : vector<1x256xf32> to vector<2x256xf32>
    %321 = arith.subf %308, %320 : vector<2x256xf32>
    %cst_186 = arith.constant 9.99999974E-6 : f32
    %322 = vector.broadcast %cst_186 : f32 to vector<1x256xf32>
    %323 = arith.addf %319, %322 : vector<1x256xf32>
    %324 = math.rsqrt %323 : vector<1x256xf32>
    %325 = vector.broadcast %324 : vector<1x256xf32> to vector<2x256xf32>
    %326 = arith.mulf %321, %325 : vector<2x256xf32>
    %c0_187 = arith.constant 0 : index
    %c0_188 = arith.constant 0 : index
    %327 = vector.load %arg55[%c0_187, %c0_188] : memref<1x256xf32, #tpu.memory_space<vmem>>, vector<1x256xf32>
    %328 = vector.broadcast %327 : vector<1x256xf32> to vector<2x256xf32>
    %329 = arith.mulf %326, %328 : vector<2x256xf32>
    %c0_189 = arith.constant 0 : index
    %c0_190 = arith.constant 0 : index
    %330 = vector.load %arg54[%c0_189, %c0_190] : memref<1x256xf32, #tpu.memory_space<vmem>>, vector<1x256xf32>
    %331 = vector.broadcast %330 : vector<1x256xf32> to vector<2x256xf32>
    %332 = arith.addf %329, %331 : vector<2x256xf32>
    %cst_191 = arith.constant 0.000000e+00 : f32
    %333 = vector.broadcast %cst_191 : f32 to vector<2x256xf32>
    %334 = arith.maximumf %332, %333 : vector<2x256xf32>
    %335 = arith.truncf %334 : vector<2x256xf32> to vector<2x256xbf16>
    %c0_192 = arith.constant 0 : index
    %c0_193 = arith.constant 0 : index
    %336 = vector.load %arg12[%c0_192, %c0_193] : memref<256x128xbf16, #tpu.memory_space<vmem>>, vector<256x128xbf16>
    %cst_194 = arith.constant dense<0.000000e+00> : vector<2x128xf32>
    %337 = tpu.matmul %335, %336, %cst_194 {dimension_numbers = #tpu.dot_dimension_numbers<[1], [0], [0], [1], [0, 0, 1, 1], [], []>} : vector<2x256xbf16>, vector<256x128xbf16>, vector<2x128xf32> -> vector<2x128xf32>
    %c0_195 = arith.constant 0 : index
    %c0_196 = arith.constant 0 : index
    %338 = vector.load %arg9[%c0_195, %c0_196] : memref<1x128xf32, #tpu.memory_space<vmem>>, vector<1x128xf32>
    %339 = vector.broadcast %338 : vector<1x128xf32> to vector<2x128xf32>
    %340 = arith.addf %337, %339 : vector<2x128xf32>
    %cst_197 = arith.constant dense<0.000000e+00> : vector<128xf32>
    %341 = vector.multi_reduction <add>, %340, %cst_197 [0] : vector<2x128xf32> to vector<128xf32>
    %342 = vector.shape_cast %341 : vector<128xf32> to vector<1x128xf32>
    %cst_198 = arith.constant 2.000000e+00 : f32
    %343 = vector.broadcast %cst_198 : f32 to vector<1x128xf32>
    %344 = arith.divf %342, %343 : vector<1x128xf32>
    %345 = vector.broadcast %344 : vector<1x128xf32> to vector<2x128xf32>
    %346 = arith.subf %340, %345 : vector<2x128xf32>
    %347 = arith.mulf %346, %346 : vector<2x128xf32>
    %cst_199 = arith.constant dense<0.000000e+00> : vector<128xf32>
    %348 = vector.multi_reduction <add>, %347, %cst_199 [0] : vector<2x128xf32> to vector<128xf32>
    %349 = vector.shape_cast %348 : vector<128xf32> to vector<1x128xf32>
    %cst_200 = arith.constant 2.000000e+00 : f32
    %350 = vector.broadcast %cst_200 : f32 to vector<1x128xf32>
    %351 = arith.divf %349, %350 : vector<1x128xf32>
    %352 = vector.broadcast %344 : vector<1x128xf32> to vector<2x128xf32>
    %353 = arith.subf %340, %352 : vector<2x128xf32>
    %cst_201 = arith.constant 9.99999974E-6 : f32
    %354 = vector.broadcast %cst_201 : f32 to vector<1x128xf32>
    %355 = arith.addf %351, %354 : vector<1x128xf32>
    %356 = math.rsqrt %355 : vector<1x128xf32>
    %357 = vector.broadcast %356 : vector<1x128xf32> to vector<2x128xf32>
    %358 = arith.mulf %353, %357 : vector<2x128xf32>
    %c0_202 = arith.constant 0 : index
    %c0_203 = arith.constant 0 : index
    %359 = vector.load %arg11[%c0_202, %c0_203] : memref<1x128xf32, #tpu.memory_space<vmem>>, vector<1x128xf32>
    %360 = vector.broadcast %359 : vector<1x128xf32> to vector<2x128xf32>
    %361 = arith.mulf %358, %360 : vector<2x128xf32>
    %c0_204 = arith.constant 0 : index
    %c0_205 = arith.constant 0 : index
    %362 = vector.load %arg10[%c0_204, %c0_205] : memref<1x128xf32, #tpu.memory_space<vmem>>, vector<1x128xf32>
    %363 = vector.broadcast %362 : vector<1x128xf32> to vector<2x128xf32>
    %364 = arith.addf %361, %363 : vector<2x128xf32>
    %cst_206 = arith.constant 0.000000e+00 : f32
    %365 = vector.broadcast %cst_206 : f32 to vector<2x128xf32>
    %366 = arith.maximumf %364, %365 : vector<2x128xf32>
    %367 = arith.truncf %366 : vector<2x128xf32> to vector<2x128xbf16>
    %c0_207 = arith.constant 0 : index
    %c0_208 = arith.constant 0 : index
    %368 = vector.load %arg16[%c0_207, %c0_208] : memref<128x128xbf16, #tpu.memory_space<vmem>>, vector<128x128xbf16>
    %cst_209 = arith.constant dense<0.000000e+00> : vector<2x128xf32>
    %369 = tpu.matmul %367, %368, %cst_209 {dimension_numbers = #tpu.dot_dimension_numbers<[1], [0], [0], [1], [0, 0, 1, 1], [], []>} : vector<2x128xbf16>, vector<128x128xbf16>, vector<2x128xf32> -> vector<2x128xf32>
    %c0_210 = arith.constant 0 : index
    %c0_211 = arith.constant 0 : index
    %370 = vector.load %arg13[%c0_210, %c0_211] : memref<1x128xf32, #tpu.memory_space<vmem>>, vector<1x128xf32>
    %371 = vector.broadcast %370 : vector<1x128xf32> to vector<2x128xf32>
    %372 = arith.addf %369, %371 : vector<2x128xf32>
    %cst_212 = arith.constant dense<0.000000e+00> : vector<128xf32>
    %373 = vector.multi_reduction <add>, %372, %cst_212 [0] : vector<2x128xf32> to vector<128xf32>
    %374 = vector.shape_cast %373 : vector<128xf32> to vector<1x128xf32>
    %cst_213 = arith.constant 2.000000e+00 : f32
    %375 = vector.broadcast %cst_213 : f32 to vector<1x128xf32>
    %376 = arith.divf %374, %375 : vector<1x128xf32>
    %377 = vector.broadcast %376 : vector<1x128xf32> to vector<2x128xf32>
    %378 = arith.subf %372, %377 : vector<2x128xf32>
    %379 = arith.mulf %378, %378 : vector<2x128xf32>
    %cst_214 = arith.constant dense<0.000000e+00> : vector<128xf32>
    %380 = vector.multi_reduction <add>, %379, %cst_214 [0] : vector<2x128xf32> to vector<128xf32>
    %381 = vector.shape_cast %380 : vector<128xf32> to vector<1x128xf32>
    %cst_215 = arith.constant 2.000000e+00 : f32
    %382 = vector.broadcast %cst_215 : f32 to vector<1x128xf32>
    %383 = arith.divf %381, %382 : vector<1x128xf32>
    %384 = vector.broadcast %376 : vector<1x128xf32> to vector<2x128xf32>
    %385 = arith.subf %372, %384 : vector<2x128xf32>
    %cst_216 = arith.constant 9.99999974E-6 : f32
    %386 = vector.broadcast %cst_216 : f32 to vector<1x128xf32>
    %387 = arith.addf %383, %386 : vector<1x128xf32>
    %388 = math.rsqrt %387 : vector<1x128xf32>
    %389 = vector.broadcast %388 : vector<1x128xf32> to vector<2x128xf32>
    %390 = arith.mulf %385, %389 : vector<2x128xf32>
    %c0_217 = arith.constant 0 : index
    %c0_218 = arith.constant 0 : index
    %391 = vector.load %arg15[%c0_217, %c0_218] : memref<1x128xf32, #tpu.memory_space<vmem>>, vector<1x128xf32>
    %392 = vector.broadcast %391 : vector<1x128xf32> to vector<2x128xf32>
    %393 = arith.mulf %390, %392 : vector<2x128xf32>
    %c0_219 = arith.constant 0 : index
    %c0_220 = arith.constant 0 : index
    %394 = vector.load %arg14[%c0_219, %c0_220] : memref<1x128xf32, #tpu.memory_space<vmem>>, vector<1x128xf32>
    %395 = vector.broadcast %394 : vector<1x128xf32> to vector<2x128xf32>
    %396 = arith.addf %393, %395 : vector<2x128xf32>
    %cst_221 = arith.constant 0.000000e+00 : f32
    %397 = vector.broadcast %cst_221 : f32 to vector<2x128xf32>
    %398 = arith.maximumf %396, %397 : vector<2x128xf32>
    %c0_222 = arith.constant 0 : index
    %c0_223 = arith.constant 0 : index
    %399 = vector.load %arg60[%c0_222, %c0_223] : memref<128x512xbf16, #tpu.memory_space<vmem>>, vector<128x512xbf16>
    %400 = arith.truncf %398 : vector<2x128xf32> to vector<2x128xbf16>
    %cst_224 = arith.constant dense<0.000000e+00> : vector<2x512xf32>
    %401 = tpu.matmul %400, %399, %cst_224 {dimension_numbers = #tpu.dot_dimension_numbers<[1], [0], [0], [1], [0, 0, 1, 1], [], []>} : vector<2x128xbf16>, vector<128x512xbf16>, vector<2x512xf32> -> vector<2x512xf32>
    %c0_225 = arith.constant 0 : index
    %c0_226 = arith.constant 0 : index
    %c0_227 = arith.constant 0 : index
    %402 = vector.load %arg7[%c0_225, %c0_226, %c0_227] : memref<4x8x2xf32, #tpu.memory_space<vmem>>, vector<1x8x2xf32>
    %403 = vector.shape_cast %402 : vector<1x8x2xf32> to vector<8x2xf32>
    %404 = vector.extract_strided_slice %401 {offsets = [0, 0], sizes = [2, 128], strides = [1, 1]} : vector<2x512xf32> to vector<2x128xf32>
    %cst_228 = arith.constant dense<0.000000e+00> : vector<8x128xf32>
    %405 = tpu.matmul %403, %404, %cst_228 {dimension_numbers = #tpu.dot_dimension_numbers<[1], [0], [0], [1], [0, 0, 1, 1], [], []>} : vector<8x2xf32>, vector<2x128xf32>, vector<8x128xf32> -> vector<8x128xf32>
    %c1_229 = arith.constant 1 : index
    %c0_230 = arith.constant 0 : index
    %c0_231 = arith.constant 0 : index
    %406 = vector.load %arg7[%c1_229, %c0_230, %c0_231] : memref<4x8x2xf32, #tpu.memory_space<vmem>>, vector<1x8x2xf32>
    %407 = vector.shape_cast %406 : vector<1x8x2xf32> to vector<8x2xf32>
    %408 = vector.extract_strided_slice %401 {offsets = [0, 128], sizes = [2, 128], strides = [1, 1]} : vector<2x512xf32> to vector<2x128xf32>
    %cst_232 = arith.constant dense<0.000000e+00> : vector<8x128xf32>
    %409 = tpu.matmul %407, %408, %cst_232 {dimension_numbers = #tpu.dot_dimension_numbers<[1], [0], [0], [1], [0, 0, 1, 1], [], []>} : vector<8x2xf32>, vector<2x128xf32>, vector<8x128xf32> -> vector<8x128xf32>
    %410 = arith.addf %405, %409 : vector<8x128xf32>
    %c2_233 = arith.constant 2 : index
    %c0_234 = arith.constant 0 : index
    %c0_235 = arith.constant 0 : index
    %411 = vector.load %arg7[%c2_233, %c0_234, %c0_235] : memref<4x8x2xf32, #tpu.memory_space<vmem>>, vector<1x8x2xf32>
    %412 = vector.shape_cast %411 : vector<1x8x2xf32> to vector<8x2xf32>
    %413 = vector.extract_strided_slice %401 {offsets = [0, 256], sizes = [2, 128], strides = [1, 1]} : vector<2x512xf32> to vector<2x128xf32>
    %cst_236 = arith.constant dense<0.000000e+00> : vector<8x128xf32>
    %414 = tpu.matmul %412, %413, %cst_236 {dimension_numbers = #tpu.dot_dimension_numbers<[1], [0], [0], [1], [0, 0, 1, 1], [], []>} : vector<8x2xf32>, vector<2x128xf32>, vector<8x128xf32> -> vector<8x128xf32>
    %415 = arith.addf %410, %414 : vector<8x128xf32>
    %c3_237 = arith.constant 3 : index
    %c0_238 = arith.constant 0 : index
    %c0_239 = arith.constant 0 : index
    %416 = vector.load %arg7[%c3_237, %c0_238, %c0_239] : memref<4x8x2xf32, #tpu.memory_space<vmem>>, vector<1x8x2xf32>
    %417 = vector.shape_cast %416 : vector<1x8x2xf32> to vector<8x2xf32>
    %418 = vector.extract_strided_slice %401 {offsets = [0, 384], sizes = [2, 128], strides = [1, 1]} : vector<2x512xf32> to vector<2x128xf32>
    %cst_240 = arith.constant dense<0.000000e+00> : vector<8x128xf32>
    %419 = tpu.matmul %417, %418, %cst_240 {dimension_numbers = #tpu.dot_dimension_numbers<[1], [0], [0], [1], [0, 0, 1, 1], [], []>} : vector<8x2xf32>, vector<2x128xf32>, vector<8x128xf32> -> vector<8x128xf32>
    %420 = arith.addf %415, %419 : vector<8x128xf32>
    %c0_241 = arith.constant 0 : index
    %c0_242 = arith.constant 0 : index
    %421 = vector.load %arg59[%c0_241, %c0_242] : memref<1x128xf32, #tpu.memory_space<vmem>>, vector<1x128xf32>
    %422 = vector.broadcast %421 : vector<1x128xf32> to vector<8x128xf32>
    %423 = arith.addf %420, %422 : vector<8x128xf32>
    %424 = tpu.concatenate %423, %255 in 1 : vector<8x128xf32>, vector<8x128xf32> -> vector<8x256xf32>
    %c0_243 = arith.constant 0 : index
    %c0_244 = arith.constant 0 : index
    %425 = vector.load %arg20[%c0_243, %c0_244] : memref<256x1152xbf16, #tpu.memory_space<vmem>>, vector<256x1152xbf16>
    %426 = arith.truncf %424 : vector<8x256xf32> to vector<8x256xbf16>
    %cst_245 = arith.constant dense<0.000000e+00> : vector<8x1152xf32>
    %427 = tpu.matmul %426, %425, %cst_245 {dimension_numbers = #tpu.dot_dimension_numbers<[1], [0], [0], [1], [0, 0, 1, 1], [], []>} : vector<8x256xbf16>, vector<256x1152xbf16>, vector<8x1152xf32> -> vector<8x1152xf32>
    %428 = vector.extract_strided_slice %427 {offsets = [0, 0], sizes = [8, 128], strides = [1, 1]} : vector<8x1152xf32> to vector<8x128xf32>
    %429 = vector.extract_strided_slice %427 {offsets = [0, 128], sizes = [8, 128], strides = [1, 1]} : vector<8x1152xf32> to vector<8x128xf32>
    %430 = vector.extract_strided_slice %427 {offsets = [0, 256], sizes = [8, 128], strides = [1, 1]} : vector<8x1152xf32> to vector<8x128xf32>
    %431 = vector.extract_strided_slice %427 {offsets = [0, 384], sizes = [8, 128], strides = [1, 1]} : vector<8x1152xf32> to vector<8x128xf32>
    %432 = vector.extract_strided_slice %427 {offsets = [0, 512], sizes = [8, 128], strides = [1, 1]} : vector<8x1152xf32> to vector<8x128xf32>
    %433 = vector.extract_strided_slice %427 {offsets = [0, 640], sizes = [8, 128], strides = [1, 1]} : vector<8x1152xf32> to vector<8x128xf32>
    %434 = vector.extract_strided_slice %427 {offsets = [0, 768], sizes = [8, 128], strides = [1, 1]} : vector<8x1152xf32> to vector<8x128xf32>
    %435 = vector.extract_strided_slice %427 {offsets = [0, 896], sizes = [8, 128], strides = [1, 1]} : vector<8x1152xf32> to vector<8x128xf32>
    %436 = vector.extract_strided_slice %427 {offsets = [0, 1024], sizes = [8, 128], strides = [1, 1]} : vector<8x1152xf32> to vector<8x128xf32>
    %437 = tpu.concatenate %428, %429, %430, %431, %432, %433, %434, %435, %436 in 0 : vector<8x128xf32>, vector<8x128xf32>, vector<8x128xf32>, vector<8x128xf32>, vector<8x128xf32>, vector<8x128xf32>, vector<8x128xf32>, vector<8x128xf32>, vector<8x128xf32> -> vector<72x128xf32>
    %c0_246 = arith.constant 0 : index
    %c0_247 = arith.constant 0 : index
    %438 = vector.load %arg4[%c0_246, %c0_247] : memref<8x72xf32, #tpu.memory_space<vmem>>, vector<8x72xf32>
    %cst_248 = arith.constant dense<0.000000e+00> : vector<8x128xf32>
    %439 = tpu.matmul %438, %437, %cst_248 {dimension_numbers = #tpu.dot_dimension_numbers<[1], [0], [0], [1], [0, 0, 1, 1], [], []>} : vector<8x72xf32>, vector<72x128xf32>, vector<8x128xf32> -> vector<8x128xf32>
    %c0_249 = arith.constant 0 : index
    %c0_250 = arith.constant 0 : index
    %440 = vector.load %arg17[%c0_249, %c0_250] : memref<1x128xf32, #tpu.memory_space<vmem>>, vector<1x128xf32>
    %441 = vector.broadcast %440 : vector<1x128xf32> to vector<8x128xf32>
    %442 = arith.addf %439, %441 : vector<8x128xf32>
    %cst_251 = arith.constant dense<0.000000e+00> : vector<128xf32>
    %443 = vector.multi_reduction <add>, %442, %cst_251 [0] : vector<8x128xf32> to vector<128xf32>
    %444 = vector.shape_cast %443 : vector<128xf32> to vector<1x128xf32>
    %cst_252 = arith.constant 8.000000e+00 : f32
    %445 = vector.broadcast %cst_252 : f32 to vector<1x128xf32>
    %446 = arith.divf %444, %445 : vector<1x128xf32>
    %447 = vector.broadcast %446 : vector<1x128xf32> to vector<8x128xf32>
    %448 = arith.subf %442, %447 : vector<8x128xf32>
    %449 = arith.mulf %448, %448 : vector<8x128xf32>
    %cst_253 = arith.constant dense<0.000000e+00> : vector<128xf32>
    %450 = vector.multi_reduction <add>, %449, %cst_253 [0] : vector<8x128xf32> to vector<128xf32>
    %451 = vector.shape_cast %450 : vector<128xf32> to vector<1x128xf32>
    %cst_254 = arith.constant 8.000000e+00 : f32
    %452 = vector.broadcast %cst_254 : f32 to vector<1x128xf32>
    %453 = arith.divf %451, %452 : vector<1x128xf32>
    %454 = vector.broadcast %446 : vector<1x128xf32> to vector<8x128xf32>
    %455 = arith.subf %442, %454 : vector<8x128xf32>
    %cst_255 = arith.constant 9.99999974E-6 : f32
    %456 = vector.broadcast %cst_255 : f32 to vector<1x128xf32>
    %457 = arith.addf %453, %456 : vector<1x128xf32>
    %458 = math.rsqrt %457 : vector<1x128xf32>
    %459 = vector.broadcast %458 : vector<1x128xf32> to vector<8x128xf32>
    %460 = arith.mulf %455, %459 : vector<8x128xf32>
    %c0_256 = arith.constant 0 : index
    %c0_257 = arith.constant 0 : index
    %461 = vector.load %arg19[%c0_256, %c0_257] : memref<1x128xf32, #tpu.memory_space<vmem>>, vector<1x128xf32>
    %462 = vector.broadcast %461 : vector<1x128xf32> to vector<8x128xf32>
    %463 = arith.mulf %460, %462 : vector<8x128xf32>
    %c0_258 = arith.constant 0 : index
    %c0_259 = arith.constant 0 : index
    %464 = vector.load %arg18[%c0_258, %c0_259] : memref<1x128xf32, #tpu.memory_space<vmem>>, vector<1x128xf32>
    %465 = vector.broadcast %464 : vector<1x128xf32> to vector<8x128xf32>
    %466 = arith.addf %463, %465 : vector<8x128xf32>
    %cst_260 = arith.constant 0.000000e+00 : f32
    %467 = vector.broadcast %cst_260 : f32 to vector<8x128xf32>
    %468 = arith.maximumf %466, %467 : vector<8x128xf32>
    %c0_261 = arith.constant 0 : index
    %c0_262 = arith.constant 0 : index
    %469 = vector.load %arg24[%c0_261, %c0_262] : memref<128x1152xbf16, #tpu.memory_space<vmem>>, vector<128x1152xbf16>
    %470 = arith.truncf %468 : vector<8x128xf32> to vector<8x128xbf16>
    %cst_263 = arith.constant dense<0.000000e+00> : vector<8x1152xf32>
    %471 = tpu.matmul %470, %469, %cst_263 {dimension_numbers = #tpu.dot_dimension_numbers<[1], [0], [0], [1], [0, 0, 1, 1], [], []>} : vector<8x128xbf16>, vector<128x1152xbf16>, vector<8x1152xf32> -> vector<8x1152xf32>
    %472 = vector.extract_strided_slice %471 {offsets = [0, 0], sizes = [8, 128], strides = [1, 1]} : vector<8x1152xf32> to vector<8x128xf32>
    %473 = vector.extract_strided_slice %471 {offsets = [0, 128], sizes = [8, 128], strides = [1, 1]} : vector<8x1152xf32> to vector<8x128xf32>
    %474 = vector.extract_strided_slice %471 {offsets = [0, 256], sizes = [8, 128], strides = [1, 1]} : vector<8x1152xf32> to vector<8x128xf32>
    %475 = vector.extract_strided_slice %471 {offsets = [0, 384], sizes = [8, 128], strides = [1, 1]} : vector<8x1152xf32> to vector<8x128xf32>
    %476 = vector.extract_strided_slice %471 {offsets = [0, 512], sizes = [8, 128], strides = [1, 1]} : vector<8x1152xf32> to vector<8x128xf32>
    %477 = vector.extract_strided_slice %471 {offsets = [0, 640], sizes = [8, 128], strides = [1, 1]} : vector<8x1152xf32> to vector<8x128xf32>
    %478 = vector.extract_strided_slice %471 {offsets = [0, 768], sizes = [8, 128], strides = [1, 1]} : vector<8x1152xf32> to vector<8x128xf32>
    %479 = vector.extract_strided_slice %471 {offsets = [0, 896], sizes = [8, 128], strides = [1, 1]} : vector<8x1152xf32> to vector<8x128xf32>
    %480 = vector.extract_strided_slice %471 {offsets = [0, 1024], sizes = [8, 128], strides = [1, 1]} : vector<8x1152xf32> to vector<8x128xf32>
    %481 = tpu.concatenate %472, %473, %474, %475, %476, %477, %478, %479, %480 in 0 : vector<8x128xf32>, vector<8x128xf32>, vector<8x128xf32>, vector<8x128xf32>, vector<8x128xf32>, vector<8x128xf32>, vector<8x128xf32>, vector<8x128xf32>, vector<8x128xf32> -> vector<72x128xf32>
    %c0_264 = arith.constant 0 : index
    %c0_265 = arith.constant 0 : index
    %482 = vector.load %arg4[%c0_264, %c0_265] : memref<8x72xf32, #tpu.memory_space<vmem>>, vector<8x72xf32>
    %cst_266 = arith.constant dense<0.000000e+00> : vector<8x128xf32>
    %483 = tpu.matmul %482, %481, %cst_266 {dimension_numbers = #tpu.dot_dimension_numbers<[1], [0], [0], [1], [0, 0, 1, 1], [], []>} : vector<8x72xf32>, vector<72x128xf32>, vector<8x128xf32> -> vector<8x128xf32>
    %c0_267 = arith.constant 0 : index
    %c0_268 = arith.constant 0 : index
    %484 = vector.load %arg21[%c0_267, %c0_268] : memref<1x128xf32, #tpu.memory_space<vmem>>, vector<1x128xf32>
    %485 = vector.broadcast %484 : vector<1x128xf32> to vector<8x128xf32>
    %486 = arith.addf %483, %485 : vector<8x128xf32>
    %cst_269 = arith.constant dense<0.000000e+00> : vector<128xf32>
    %487 = vector.multi_reduction <add>, %486, %cst_269 [0] : vector<8x128xf32> to vector<128xf32>
    %488 = vector.shape_cast %487 : vector<128xf32> to vector<1x128xf32>
    %cst_270 = arith.constant 8.000000e+00 : f32
    %489 = vector.broadcast %cst_270 : f32 to vector<1x128xf32>
    %490 = arith.divf %488, %489 : vector<1x128xf32>
    %491 = vector.broadcast %490 : vector<1x128xf32> to vector<8x128xf32>
    %492 = arith.subf %486, %491 : vector<8x128xf32>
    %493 = arith.mulf %492, %492 : vector<8x128xf32>
    %cst_271 = arith.constant dense<0.000000e+00> : vector<128xf32>
    %494 = vector.multi_reduction <add>, %493, %cst_271 [0] : vector<8x128xf32> to vector<128xf32>
    %495 = vector.shape_cast %494 : vector<128xf32> to vector<1x128xf32>
    %cst_272 = arith.constant 8.000000e+00 : f32
    %496 = vector.broadcast %cst_272 : f32 to vector<1x128xf32>
    %497 = arith.divf %495, %496 : vector<1x128xf32>
    %498 = vector.broadcast %490 : vector<1x128xf32> to vector<8x128xf32>
    %499 = arith.subf %486, %498 : vector<8x128xf32>
    %cst_273 = arith.constant 9.99999974E-6 : f32
    %500 = vector.broadcast %cst_273 : f32 to vector<1x128xf32>
    %501 = arith.addf %497, %500 : vector<1x128xf32>
    %502 = math.rsqrt %501 : vector<1x128xf32>
    %503 = vector.broadcast %502 : vector<1x128xf32> to vector<8x128xf32>
    %504 = arith.mulf %499, %503 : vector<8x128xf32>
    %c0_274 = arith.constant 0 : index
    %c0_275 = arith.constant 0 : index
    %505 = vector.load %arg23[%c0_274, %c0_275] : memref<1x128xf32, #tpu.memory_space<vmem>>, vector<1x128xf32>
    %506 = vector.broadcast %505 : vector<1x128xf32> to vector<8x128xf32>
    %507 = arith.mulf %504, %506 : vector<8x128xf32>
    %c0_276 = arith.constant 0 : index
    %c0_277 = arith.constant 0 : index
    %508 = vector.load %arg22[%c0_276, %c0_277] : memref<1x128xf32, #tpu.memory_space<vmem>>, vector<1x128xf32>
    %509 = vector.broadcast %508 : vector<1x128xf32> to vector<8x128xf32>
    %510 = arith.addf %507, %509 : vector<8x128xf32>
    %cst_278 = arith.constant 0.000000e+00 : f32
    %511 = vector.broadcast %cst_278 : f32 to vector<8x128xf32>
    %512 = arith.maximumf %510, %511 : vector<8x128xf32>
    %c0_279 = arith.constant 0 : index
    %c0_280 = arith.constant 0 : index
    %513 = vector.load %arg62[%c0_279, %c0_280] : memref<128x512xbf16, #tpu.memory_space<vmem>>, vector<128x512xbf16>
    %514 = arith.truncf %512 : vector<8x128xf32> to vector<8x128xbf16>
    %cst_281 = arith.constant dense<0.000000e+00> : vector<8x512xf32>
    %515 = tpu.matmul %514, %513, %cst_281 {dimension_numbers = #tpu.dot_dimension_numbers<[1], [0], [0], [1], [0, 0, 1, 1], [], []>} : vector<8x128xbf16>, vector<128x512xbf16>, vector<8x512xf32> -> vector<8x512xf32>
    %c0_282 = arith.constant 0 : index
    %c0_283 = arith.constant 0 : index
    %c0_284 = arith.constant 0 : index
    %516 = vector.load %arg8[%c0_282, %c0_283, %c0_284] : memref<4x32x8xf32, #tpu.memory_space<vmem>>, vector<1x32x8xf32>
    %517 = vector.shape_cast %516 : vector<1x32x8xf32> to vector<32x8xf32>
    %518 = vector.extract_strided_slice %515 {offsets = [0, 0], sizes = [8, 128], strides = [1, 1]} : vector<8x512xf32> to vector<8x128xf32>
    %cst_285 = arith.constant dense<0.000000e+00> : vector<32x128xf32>
    %519 = tpu.matmul %517, %518, %cst_285 {dimension_numbers = #tpu.dot_dimension_numbers<[1], [0], [0], [1], [0, 0, 1, 1], [], []>} : vector<32x8xf32>, vector<8x128xf32>, vector<32x128xf32> -> vector<32x128xf32>
    %c1_286 = arith.constant 1 : index
    %c0_287 = arith.constant 0 : index
    %c0_288 = arith.constant 0 : index
    %520 = vector.load %arg8[%c1_286, %c0_287, %c0_288] : memref<4x32x8xf32, #tpu.memory_space<vmem>>, vector<1x32x8xf32>
    %521 = vector.shape_cast %520 : vector<1x32x8xf32> to vector<32x8xf32>
    %522 = vector.extract_strided_slice %515 {offsets = [0, 128], sizes = [8, 128], strides = [1, 1]} : vector<8x512xf32> to vector<8x128xf32>
    %cst_289 = arith.constant dense<0.000000e+00> : vector<32x128xf32>
    %523 = tpu.matmul %521, %522, %cst_289 {dimension_numbers = #tpu.dot_dimension_numbers<[1], [0], [0], [1], [0, 0, 1, 1], [], []>} : vector<32x8xf32>, vector<8x128xf32>, vector<32x128xf32> -> vector<32x128xf32>
    %524 = arith.addf %519, %523 : vector<32x128xf32>
    %c2_290 = arith.constant 2 : index
    %c0_291 = arith.constant 0 : index
    %c0_292 = arith.constant 0 : index
    %525 = vector.load %arg8[%c2_290, %c0_291, %c0_292] : memref<4x32x8xf32, #tpu.memory_space<vmem>>, vector<1x32x8xf32>
    %526 = vector.shape_cast %525 : vector<1x32x8xf32> to vector<32x8xf32>
    %527 = vector.extract_strided_slice %515 {offsets = [0, 256], sizes = [8, 128], strides = [1, 1]} : vector<8x512xf32> to vector<8x128xf32>
    %cst_293 = arith.constant dense<0.000000e+00> : vector<32x128xf32>
    %528 = tpu.matmul %526, %527, %cst_293 {dimension_numbers = #tpu.dot_dimension_numbers<[1], [0], [0], [1], [0, 0, 1, 1], [], []>} : vector<32x8xf32>, vector<8x128xf32>, vector<32x128xf32> -> vector<32x128xf32>
    %529 = arith.addf %524, %528 : vector<32x128xf32>
    %c3_294 = arith.constant 3 : index
    %c0_295 = arith.constant 0 : index
    %c0_296 = arith.constant 0 : index
    %530 = vector.load %arg8[%c3_294, %c0_295, %c0_296] : memref<4x32x8xf32, #tpu.memory_space<vmem>>, vector<1x32x8xf32>
    %531 = vector.shape_cast %530 : vector<1x32x8xf32> to vector<32x8xf32>
    %532 = vector.extract_strided_slice %515 {offsets = [0, 384], sizes = [8, 128], strides = [1, 1]} : vector<8x512xf32> to vector<8x128xf32>
    %cst_297 = arith.constant dense<0.000000e+00> : vector<32x128xf32>
    %533 = tpu.matmul %531, %532, %cst_297 {dimension_numbers = #tpu.dot_dimension_numbers<[1], [0], [0], [1], [0, 0, 1, 1], [], []>} : vector<32x8xf32>, vector<8x128xf32>, vector<32x128xf32> -> vector<32x128xf32>
    %534 = arith.addf %529, %533 : vector<32x128xf32>
    %c0_298 = arith.constant 0 : index
    %c0_299 = arith.constant 0 : index
    %535 = vector.load %arg61[%c0_298, %c0_299] : memref<1x128xf32, #tpu.memory_space<vmem>>, vector<1x128xf32>
    %536 = vector.broadcast %535 : vector<1x128xf32> to vector<32x128xf32>
    %537 = arith.addf %534, %536 : vector<32x128xf32>
    %c0_300 = arith.constant 0 : index
    %c0_301 = arith.constant 0 : index
    %538 = vector.load %arg0[%c0_300, %c0_301] : memref<32x50xf32, #tpu.memory_space<vmem>>, vector<32x50xf32>
    %cst_302 = arith.constant dense<0.000000e+00> : vector<32x128xf32>
    %539 = tpu.matmul %538, %152, %cst_302 {dimension_numbers = #tpu.dot_dimension_numbers<[1], [0], [0], [1], [0, 0, 1, 1], [], []>} : vector<32x50xf32>, vector<50x128xf32>, vector<32x128xf32> -> vector<32x128xf32>
    %540 = tpu.concatenate %537, %539 in 1 : vector<32x128xf32>, vector<32x128xf32> -> vector<32x256xf32>
    %c0_303 = arith.constant 0 : index
    %c0_304 = arith.constant 0 : index
    %541 = vector.load %arg28[%c0_303, %c0_304] : memref<256x1152xbf16, #tpu.memory_space<vmem>>, vector<256x1152xbf16>
    %542 = arith.truncf %540 : vector<32x256xf32> to vector<32x256xbf16>
    %cst_305 = arith.constant dense<0.000000e+00> : vector<32x1152xf32>
    %543 = tpu.matmul %542, %541, %cst_305 {dimension_numbers = #tpu.dot_dimension_numbers<[1], [0], [0], [1], [0, 0, 1, 1], [], []>} : vector<32x256xbf16>, vector<256x1152xbf16>, vector<32x1152xf32> -> vector<32x1152xf32>
    %544 = vector.extract_strided_slice %543 {offsets = [0, 0], sizes = [32, 128], strides = [1, 1]} : vector<32x1152xf32> to vector<32x128xf32>
    %545 = vector.extract_strided_slice %543 {offsets = [0, 128], sizes = [32, 128], strides = [1, 1]} : vector<32x1152xf32> to vector<32x128xf32>
    %546 = vector.extract_strided_slice %543 {offsets = [0, 256], sizes = [32, 128], strides = [1, 1]} : vector<32x1152xf32> to vector<32x128xf32>
    %547 = vector.extract_strided_slice %543 {offsets = [0, 384], sizes = [32, 128], strides = [1, 1]} : vector<32x1152xf32> to vector<32x128xf32>
    %548 = vector.extract_strided_slice %543 {offsets = [0, 512], sizes = [32, 128], strides = [1, 1]} : vector<32x1152xf32> to vector<32x128xf32>
    %549 = vector.extract_strided_slice %543 {offsets = [0, 640], sizes = [32, 128], strides = [1, 1]} : vector<32x1152xf32> to vector<32x128xf32>
    %550 = vector.extract_strided_slice %543 {offsets = [0, 768], sizes = [32, 128], strides = [1, 1]} : vector<32x1152xf32> to vector<32x128xf32>
    %551 = vector.extract_strided_slice %543 {offsets = [0, 896], sizes = [32, 128], strides = [1, 1]} : vector<32x1152xf32> to vector<32x128xf32>
    %552 = vector.extract_strided_slice %543 {offsets = [0, 1024], sizes = [32, 128], strides = [1, 1]} : vector<32x1152xf32> to vector<32x128xf32>
    %553 = tpu.concatenate %544, %545, %546, %547, %548, %549, %550, %551, %552 in 0 : vector<32x128xf32>, vector<32x128xf32>, vector<32x128xf32>, vector<32x128xf32>, vector<32x128xf32>, vector<32x128xf32>, vector<32x128xf32>, vector<32x128xf32>, vector<32x128xf32> -> vector<288x128xf32>
    %c0_306 = arith.constant 0 : index
    %c0_307 = arith.constant 0 : index
    %554 = vector.load %arg5[%c0_306, %c0_307] : memref<32x288xf32, #tpu.memory_space<vmem>>, vector<32x288xf32>
    %cst_308 = arith.constant dense<0.000000e+00> : vector<32x128xf32>
    %555 = tpu.matmul %554, %553, %cst_308 {dimension_numbers = #tpu.dot_dimension_numbers<[1], [0], [0], [1], [0, 0, 1, 1], [], []>} : vector<32x288xf32>, vector<288x128xf32>, vector<32x128xf32> -> vector<32x128xf32>
    %c0_309 = arith.constant 0 : index
    %c0_310 = arith.constant 0 : index
    %556 = vector.load %arg25[%c0_309, %c0_310] : memref<1x128xf32, #tpu.memory_space<vmem>>, vector<1x128xf32>
    %557 = vector.broadcast %556 : vector<1x128xf32> to vector<32x128xf32>
    %558 = arith.addf %555, %557 : vector<32x128xf32>
    %cst_311 = arith.constant dense<0.000000e+00> : vector<128xf32>
    %559 = vector.multi_reduction <add>, %558, %cst_311 [0] : vector<32x128xf32> to vector<128xf32>
    %560 = vector.shape_cast %559 : vector<128xf32> to vector<1x128xf32>
    %cst_312 = arith.constant 3.200000e+01 : f32
    %561 = vector.broadcast %cst_312 : f32 to vector<1x128xf32>
    %562 = arith.divf %560, %561 : vector<1x128xf32>
    %563 = vector.broadcast %562 : vector<1x128xf32> to vector<32x128xf32>
    %564 = arith.subf %558, %563 : vector<32x128xf32>
    %565 = arith.mulf %564, %564 : vector<32x128xf32>
    %cst_313 = arith.constant dense<0.000000e+00> : vector<128xf32>
    %566 = vector.multi_reduction <add>, %565, %cst_313 [0] : vector<32x128xf32> to vector<128xf32>
    %567 = vector.shape_cast %566 : vector<128xf32> to vector<1x128xf32>
    %cst_314 = arith.constant 3.200000e+01 : f32
    %568 = vector.broadcast %cst_314 : f32 to vector<1x128xf32>
    %569 = arith.divf %567, %568 : vector<1x128xf32>
    %570 = vector.broadcast %562 : vector<1x128xf32> to vector<32x128xf32>
    %571 = arith.subf %558, %570 : vector<32x128xf32>
    %cst_315 = arith.constant 9.99999974E-6 : f32
    %572 = vector.broadcast %cst_315 : f32 to vector<1x128xf32>
    %573 = arith.addf %569, %572 : vector<1x128xf32>
    %574 = math.rsqrt %573 : vector<1x128xf32>
    %575 = vector.broadcast %574 : vector<1x128xf32> to vector<32x128xf32>
    %576 = arith.mulf %571, %575 : vector<32x128xf32>
    %c0_316 = arith.constant 0 : index
    %c0_317 = arith.constant 0 : index
    %577 = vector.load %arg27[%c0_316, %c0_317] : memref<1x128xf32, #tpu.memory_space<vmem>>, vector<1x128xf32>
    %578 = vector.broadcast %577 : vector<1x128xf32> to vector<32x128xf32>
    %579 = arith.mulf %576, %578 : vector<32x128xf32>
    %c0_318 = arith.constant 0 : index
    %c0_319 = arith.constant 0 : index
    %580 = vector.load %arg26[%c0_318, %c0_319] : memref<1x128xf32, #tpu.memory_space<vmem>>, vector<1x128xf32>
    %581 = vector.broadcast %580 : vector<1x128xf32> to vector<32x128xf32>
    %582 = arith.addf %579, %581 : vector<32x128xf32>
    %cst_320 = arith.constant 0.000000e+00 : f32
    %583 = vector.broadcast %cst_320 : f32 to vector<32x128xf32>
    %584 = arith.maximumf %582, %583 : vector<32x128xf32>
    %c0_321 = arith.constant 0 : index
    %c0_322 = arith.constant 0 : index
    %585 = vector.load %arg32[%c0_321, %c0_322] : memref<128x1152xbf16, #tpu.memory_space<vmem>>, vector<128x1152xbf16>
    %586 = arith.truncf %584 : vector<32x128xf32> to vector<32x128xbf16>
    %cst_323 = arith.constant dense<0.000000e+00> : vector<32x1152xf32>
    %587 = tpu.matmul %586, %585, %cst_323 {dimension_numbers = #tpu.dot_dimension_numbers<[1], [0], [0], [1], [0, 0, 1, 1], [], []>} : vector<32x128xbf16>, vector<128x1152xbf16>, vector<32x1152xf32> -> vector<32x1152xf32>
    %588 = vector.extract_strided_slice %587 {offsets = [0, 0], sizes = [32, 128], strides = [1, 1]} : vector<32x1152xf32> to vector<32x128xf32>
    %589 = vector.extract_strided_slice %587 {offsets = [0, 128], sizes = [32, 128], strides = [1, 1]} : vector<32x1152xf32> to vector<32x128xf32>
    %590 = vector.extract_strided_slice %587 {offsets = [0, 256], sizes = [32, 128], strides = [1, 1]} : vector<32x1152xf32> to vector<32x128xf32>
    %591 = vector.extract_strided_slice %587 {offsets = [0, 384], sizes = [32, 128], strides = [1, 1]} : vector<32x1152xf32> to vector<32x128xf32>
    %592 = vector.extract_strided_slice %587 {offsets = [0, 512], sizes = [32, 128], strides = [1, 1]} : vector<32x1152xf32> to vector<32x128xf32>
    %593 = vector.extract_strided_slice %587 {offsets = [0, 640], sizes = [32, 128], strides = [1, 1]} : vector<32x1152xf32> to vector<32x128xf32>
    %594 = vector.extract_strided_slice %587 {offsets = [0, 768], sizes = [32, 128], strides = [1, 1]} : vector<32x1152xf32> to vector<32x128xf32>
    %595 = vector.extract_strided_slice %587 {offsets = [0, 896], sizes = [32, 128], strides = [1, 1]} : vector<32x1152xf32> to vector<32x128xf32>
    %596 = vector.extract_strided_slice %587 {offsets = [0, 1024], sizes = [32, 128], strides = [1, 1]} : vector<32x1152xf32> to vector<32x128xf32>
    %597 = tpu.concatenate %588, %589, %590, %591, %592, %593, %594, %595, %596 in 0 : vector<32x128xf32>, vector<32x128xf32>, vector<32x128xf32>, vector<32x128xf32>, vector<32x128xf32>, vector<32x128xf32>, vector<32x128xf32>, vector<32x128xf32>, vector<32x128xf32> -> vector<288x128xf32>
    %c0_324 = arith.constant 0 : index
    %c0_325 = arith.constant 0 : index
    %598 = vector.load %arg5[%c0_324, %c0_325] : memref<32x288xf32, #tpu.memory_space<vmem>>, vector<32x288xf32>
    %cst_326 = arith.constant dense<0.000000e+00> : vector<32x128xf32>
    %599 = tpu.matmul %598, %597, %cst_326 {dimension_numbers = #tpu.dot_dimension_numbers<[1], [0], [0], [1], [0, 0, 1, 1], [], []>} : vector<32x288xf32>, vector<288x128xf32>, vector<32x128xf32> -> vector<32x128xf32>
    %c0_327 = arith.constant 0 : index
    %c0_328 = arith.constant 0 : index
    %600 = vector.load %arg29[%c0_327, %c0_328] : memref<1x128xf32, #tpu.memory_space<vmem>>, vector<1x128xf32>
    %601 = vector.broadcast %600 : vector<1x128xf32> to vector<32x128xf32>
    %602 = arith.addf %599, %601 : vector<32x128xf32>
    %cst_329 = arith.constant dense<0.000000e+00> : vector<128xf32>
    %603 = vector.multi_reduction <add>, %602, %cst_329 [0] : vector<32x128xf32> to vector<128xf32>
    %604 = vector.shape_cast %603 : vector<128xf32> to vector<1x128xf32>
    %cst_330 = arith.constant 3.200000e+01 : f32
    %605 = vector.broadcast %cst_330 : f32 to vector<1x128xf32>
    %606 = arith.divf %604, %605 : vector<1x128xf32>
    %607 = vector.broadcast %606 : vector<1x128xf32> to vector<32x128xf32>
    %608 = arith.subf %602, %607 : vector<32x128xf32>
    %609 = arith.mulf %608, %608 : vector<32x128xf32>
    %cst_331 = arith.constant dense<0.000000e+00> : vector<128xf32>
    %610 = vector.multi_reduction <add>, %609, %cst_331 [0] : vector<32x128xf32> to vector<128xf32>
    %611 = vector.shape_cast %610 : vector<128xf32> to vector<1x128xf32>
    %cst_332 = arith.constant 3.200000e+01 : f32
    %612 = vector.broadcast %cst_332 : f32 to vector<1x128xf32>
    %613 = arith.divf %611, %612 : vector<1x128xf32>
    %614 = vector.broadcast %606 : vector<1x128xf32> to vector<32x128xf32>
    %615 = arith.subf %602, %614 : vector<32x128xf32>
    %cst_333 = arith.constant 9.99999974E-6 : f32
    %616 = vector.broadcast %cst_333 : f32 to vector<1x128xf32>
    %617 = arith.addf %613, %616 : vector<1x128xf32>
    %618 = math.rsqrt %617 : vector<1x128xf32>
    %619 = vector.broadcast %618 : vector<1x128xf32> to vector<32x128xf32>
    %620 = arith.mulf %615, %619 : vector<32x128xf32>
    %c0_334 = arith.constant 0 : index
    %c0_335 = arith.constant 0 : index
    %621 = vector.load %arg31[%c0_334, %c0_335] : memref<1x128xf32, #tpu.memory_space<vmem>>, vector<1x128xf32>
    %622 = vector.broadcast %621 : vector<1x128xf32> to vector<32x128xf32>
    %623 = arith.mulf %620, %622 : vector<32x128xf32>
    %c0_336 = arith.constant 0 : index
    %c0_337 = arith.constant 0 : index
    %624 = vector.load %arg30[%c0_336, %c0_337] : memref<1x128xf32, #tpu.memory_space<vmem>>, vector<1x128xf32>
    %625 = vector.broadcast %624 : vector<1x128xf32> to vector<32x128xf32>
    %626 = arith.addf %623, %625 : vector<32x128xf32>
    %cst_338 = arith.constant 0.000000e+00 : f32
    %627 = vector.broadcast %cst_338 : f32 to vector<32x128xf32>
    %628 = arith.maximumf %626, %627 : vector<32x128xf32>
    %c0_339 = arith.constant 0 : index
    %c0_340 = arith.constant 0 : index
    %629 = vector.load %arg1[%c0_339, %c0_340] : memref<50x32xf32, #tpu.memory_space<vmem>>, vector<50x32xf32>
    %cst_341 = arith.constant dense<0.000000e+00> : vector<50x128xf32>
    %630 = tpu.matmul %629, %628, %cst_341 {dimension_numbers = #tpu.dot_dimension_numbers<[1], [0], [0], [1], [0, 0, 1, 1], [], []>} : vector<50x32xf32>, vector<32x128xf32>, vector<50x128xf32> -> vector<50x128xf32>
    %631 = arith.truncf %630 : vector<50x128xf32> to vector<50x128xbf16>
    %c0_342 = arith.constant 0 : index
    %c0_343 = arith.constant 0 : index
    %632 = vector.load %arg58[%c0_342, %c0_343] : memref<128x128xbf16, #tpu.memory_space<vmem>>, vector<128x128xbf16>
    %cst_344 = arith.constant dense<0.000000e+00> : vector<50x128xf32>
    %633 = tpu.matmul %631, %632, %cst_344 {dimension_numbers = #tpu.dot_dimension_numbers<[1], [0], [0], [1], [0, 0, 1, 1], [], []>} : vector<50x128xbf16>, vector<128x128xbf16>, vector<50x128xf32> -> vector<50x128xf32>
    %c0_345 = arith.constant 0 : index
    %c0_346 = arith.constant 0 : index
    %634 = vector.load %arg57[%c0_345, %c0_346] : memref<1x128xf32, #tpu.memory_space<vmem>>, vector<1x128xf32>
    %635 = vector.broadcast %634 : vector<1x128xf32> to vector<50x128xf32>
    %636 = arith.addf %633, %635 : vector<50x128xf32>
    %637 = math.tanh %636 : vector<50x128xf32>
    %c0_347 = arith.constant 0 : index
    %c0_348 = arith.constant 0 : index
    %638 = vector.load %arg64[%c0_347, %c0_348] : memref<50x128xf32, #tpu.memory_space<vmem>>, vector<50x128xf32>
    tpu.vector_store %arg64[%c0_347, %c0_348], %637 {strides = array<i32>} : memref<50x128xf32, #tpu.memory_space<vmem>>, vector<50x128xf32>,
    %c0_349 = arith.constant 0 : index
    %c0_350 = arith.constant 0 : index
    %639 = vector.load %arg65[%c0_349, %c0_350] : memref<2x128xf32, #tpu.memory_space<vmem>>, vector<2x128xf32>
    tpu.vector_store %arg65[%c0_349, %c0_350], %398 {strides = array<i32>} : memref<2x128xf32, #tpu.memory_space<vmem>>, vector<2x128xf32>,
    return
  }
}

</mosaic_0001>

<bundles_post_ra>
// kernel: weather_unet_forward.1
= control target key start
LH: loop header
LB: loop body
LE: loop exit
PB: predicated region body
PF: predicated region fallthrough
CT: control target
= control target key end

     0   :  { %s19797_s6 = smov 1   ;;  %s19798_s10 = smov 2   ;;  %s21897_s0 = inlined_call_operand.smem [shape: u32[66], index: -1, kind: input, shape index: {}] }
   0x1   :  { %s19941_s5 = sld [smem:[%s21897_s0]]   ;;  %s19799_s14 = smov 3  }
   0x2   :  { %s19946_s9 = sld [smem:[%s21897_s0 + %s19797_s6]]   ;;  %s19800_s18 = smov 4  }
   0x3   :  { %s19951_s13 = sld [smem:[%s21897_s0 + %s19798_s10]]   ;;  %s19801_s22 = smov 5  }
   0x4   :  { %s19956_s17 = sld [smem:[%s21897_s0 + %s19799_s14]]   ;;  %s19802_s26 = smov 6  }
   0x5   :  { %s19961_s21 = sld [smem:[%s21897_s0 + %s19800_s18]]   ;;  %s19803_s30 = smov 7  }
   0x6   :  { %s19966_s25 = sld [smem:[%s21897_s0 + %s19801_s22]]   ;;  %s19804_s4 = smov 8  }
   0x7   :  { %21902 = sst [smem:[#allocation124_spill]] %s19941_s5  ;;  %s19805_s10 = smov 9  }
   0x8   :  { %s19971_s29 = sld [smem:[%s21897_s0 + %s19802_s26]]   ;;  %s19806_s15 = smov 10  }
   0x9   :  { %21903 = sst [smem:[#allocation125_spill]] %s19951_s13  ;;  %s19807_s20 = smov 11  }
   0xa   :  { %21904 = sst [smem:[#allocation126_spill]] %s19956_s17  ;;  %s19808_s26 = smov 12  }
   0xb   :  { %s19976_s3 = sld [smem:[%s21897_s0 + %s19803_s30]]   ;;  %s19809_s1 = smov 13  }
   0xc   :  { %21905 = sst [smem:[#allocation127_spill]] %s19966_s25  ;;  %s19810_s7 = smov 14  }
   0xd   :  { %s19981_s8 = sld [smem:[%s21897_s0 + %s19804_s4]]   ;;  %s19812_s22 = smov 16  }
   0xe   :  { %21906 = sst [smem:[#allocation128_spill]] %s19971_s29  ;;  %s19813_s28 = smov 17  }
   0xf   :  { %s19986_s14 = sld [smem:[%s21897_s0 + %s19805_s10]]  }
  0x10   :  { %s19991_s19 = sld [smem:[%s21897_s0 + %s19806_s15]]   ;;  %s19811_s15 = smov 15  }
  0x11   :  { %s19996_s24 = sld [smem:[%s21897_s0 + %s19807_s20]]  }
  0x12   :  { %s20001_s30 = sld [smem:[%s21897_s0 + %s19808_s26]]  }
  0x13   :  { %21907 = sst [smem:[#allocation129_spill]] %s19981_s8 }
  0x14   :  { %s20006_s6 = sld [smem:[%s21897_s0 + %s19809_s1]]  }
  0x15   :  { %s20011_s12 = sld [smem:[%s21897_s0 + %s19810_s7]]   ;;  %s19814_s7 = smov 18  }
  0x16   :  { %21908 = sst [smem:[#allocation130_spill]] %s19991_s19 }
  0x17   :  { %s20016_s20 = sld [smem:[%s21897_s0 + %s19811_s15]]   ;;  %s19815_s15 = smov 19  }
  0x18   :  { %21909 = sst [smem:[#allocation131_spill]] %s20001_s30 }
  0x19   :  { %s20021_s27 = sld [smem:[%s21897_s0 + %s19812_s22]]   ;;  %s19816_s22 = smov 20  }
  0x1a   :  { %21910 = sst [smem:[#allocation132_spill]] %s20006_s6 }
  0x1b   :  { %s20026_s4 = sld [smem:[%s21897_s0 + %s19813_s28]]   ;;  %s19817_s28 = smov 21  }
  0x1c   :  { %s20031_s25 = sld [smem:[%s21897_s0 + %s19814_s7]]   ;;  %s19818_s7 = smov 22  }
  0x1d   :  { %21911 = sst [smem:[#allocation133_spill]] %s20016_s20 }
  0x1e   :  { %s20036_s30 = sld [smem:[%s21897_s0 + %s19815_s15]]   ;;  %s19819_s15 = smov 23  }
  0x1f   :  { %s20041_s17 = sld [smem:[%s21897_s0 + %s19816_s22]]   ;;  %s19820_s22 = smov 24  }
  0x20   :  { %s20051_s20 = sld [smem:[%s21897_s0 + %s19818_s7]]   ;;  %s19822_s7 = smov 26  }
  0x21   :  { %21912 = sst [smem:[#allocation134_spill]] %s20026_s4 }
  0x22   :  { %s20046_s4 = sld [smem:[%s21897_s0 + %s19817_s28]]   ;;  %s19821_s28 = smov 25  }
  0x23   :  { %s20061_s6 = sld [smem:[%s21897_s0 + %s19820_s22]]   ;;  %s19824_s22 = smov 28  }
  0x24   :  { %21913 = sst [smem:[#allocation135_spill]] %s20036_s30 }
  0x25   :  { %s20056_s30 = sld [smem:[%s21897_s0 + %s19819_s15]]   ;;  %s19823_s15 = smov 27  }
  0x26   :  { %s20071_s19 = sld [smem:[%s21897_s0 + %s19822_s7]]   ;;  %s19826_s7 = smov 30  }
  0x27   :  { %s20081_s8 = sld [smem:[%s21897_s0 + %s19824_s22]]   ;;  %s19828_s22 = smov 32  }
  0x28   :  { %21914 = sst [smem:[#allocation136_spill]] %s20046_s4 }
  0x29   :  { %s20066_s4 = sld [smem:[%s21897_s0 + %s19821_s28]]   ;;  %s19825_s28 = smov 29  }
  0x2a   :  { %s20091_s29 = sld [smem:[%s21897_s0 + %s19826_s7]]   ;;  %s19830_s7 = smov 34  }
  0x2b   :  { %21915 = sst [smem:[#allocation137_spill]] %s20056_s30 }
  0x2c   :  { %s20076_s30 = sld [smem:[%s21897_s0 + %s19823_s15]]   ;;  %s19827_s15 = smov 31  }
  0x2d   :  { %s20101_s13 = sld [smem:[%s21897_s0 + %s19828_s22]]   ;;  %s19832_s22 = smov 36  }
  0x2e   :  { %s20111_s5 = sld [smem:[%s21897_s0 + %s19830_s7]]   ;;  %s19834_s7 = smov 38  }
  0x2f   :  { %21916 = sst [smem:[#allocation138_spill]] %s20066_s4 }
  0x30   :  { %s20086_s4 = sld [smem:[%s21897_s0 + %s19825_s28]]   ;;  %s19829_s28 = smov 33  }
  0x32   :  { %21917 = sst [smem:[#allocation139_spill]] %s20076_s30 }
  0x33   :  { %s20096_s30 = sld [smem:[%s21897_s0 + %s19827_s15]]   ;;  %s19831_s15 = smov 35  }
  0x34   :  { %21920 = sst [smem:[#allocation142_spill]] %s20101_s13 }
  0x35   :  { %21922 = sst [smem:[#allocation144_spill]] %s20111_s5 }
  0x36   :  { %21918 = sst [smem:[#allocation140_spill]] %s20086_s4 }
  0x37   :  { %s20106_s4 = sld [smem:[%s21897_s0 + %s19829_s28]]   ;;  %s19833_s28 = smov 37  }
  0x38   :  { %s20121_s13 = sld [smem:[%s21897_s0 + %s19832_s22]]   ;;  %s19836_s22 = smov 40  }
  0x39   :  { %21919 = sst [smem:[#allocation141_spill]] %s20096_s30 }
  0x3a   :  { %s20116_s30 = sld [smem:[%s21897_s0 + %s19831_s15]]   ;;  %s19835_s15 = smov 39  }
  0x3b   :  { %s20131_s5 = sld [smem:[%s21897_s0 + %s19834_s7]]   ;;  %s19838_s7 = smov 42  }
  0x3d   :  { %21921 = sst [smem:[#allocation143_spill]] %s20106_s4 }
  0x3e   :  { %21924 = sst [smem:[#allocation146_spill]] %s20121_s13 }
  0x3f   :  { %s20126_s4 = sld [smem:[%s21897_s0 + %s19833_s28]]   ;;  %s19837_s28 = smov 41  }
  0x40   :  { %21923 = sst [smem:[#allocation145_spill]] %s20116_s30 }
  0x41   :  { %21926 = sst [smem:[#allocation148_spill]] %s20131_s5 }
  0x42   :  { %s20136_s30 = sld [smem:[%s21897_s0 + %s19835_s15]]   ;;  %s19839_s15 = smov 43  }
  0x43   :  { %s20141_s13 = sld [smem:[%s21897_s0 + %s19836_s22]]   ;;  %s19840_s22 = smov 44  }
  0x44   :  { %s20151_s5 = sld [smem:[%s21897_s0 + %s19838_s7]]   ;;  %s19842_s7 = smov 46  }
  0x45   :  { %21925 = sst [smem:[#allocation147_spill]] %s20126_s4 }
  0x46   :  { %s20146_s4 = sld [smem:[%s21897_s0 + %s19837_s28]]   ;;  %s19841_s28 = smov 45  }
  0x48   :  { %21927 = sst [smem:[#allocation149_spill]] %s20136_s30 }
  0x49   :  { %21928 = sst [smem:[#allocation150_spill]] %s20141_s13 }
  0x4a   :  { %21930 = sst [smem:[#allocation152_spill]] %s20151_s5 }
  0x4b   :  { %s20156_s30 = sld [smem:[%s21897_s0 + %s19839_s15]]   ;;  %s19843_s15 = smov 47  }
  0x4c   :  { %21929 = sst [smem:[#allocation151_spill]] %s20146_s4 }
  0x4d   :  { %s20161_s13 = sld [smem:[%s21897_s0 + %s19840_s22]]   ;;  %s19844_s22 = smov 48  }
  0x4e   :  { %s20166_s4 = sld [smem:[%s21897_s0 + %s19841_s28]]   ;;  %s19845_s28 = smov 49  }
  0x4f   :  { %s20171_s5 = sld [smem:[%s21897_s0 + %s19842_s7]]   ;;  %s19846_s7 = smov 50  }
  0x51   :  { %21931 = sst [smem:[#allocation153_spill]] %s20156_s30 }
  0x52   :  { %s20176_s30 = sld [smem:[%s21897_s0 + %s19843_s15]]   ;;  %s19847_s15 = smov 51  }
  0x53   :  { %21932 = sst [smem:[#allocation154_spill]] %s20161_s13 }
  0x54   :  { %21933 = sst [smem:[#allocation155_spill]] %s20166_s4 }
  0x55   :  { %21934 = sst [smem:[#allocation156_spill]] %s20171_s5 }
  0x56   :  { %s20181_s13 = sld [smem:[%s21897_s0 + %s19844_s22]]   ;;  %s19848_s22 = smov 52  }
  0x57   :  { %s20186_s4 = sld [smem:[%s21897_s0 + %s19845_s28]]   ;;  %s19849_s28 = smov 53  }
  0x58   :  { %21935 = sst [smem:[#allocation157_spill]] %s20176_s30 }
  0x59   :  { %s20191_s5 = sld [smem:[%s21897_s0 + %s19846_s7]]   ;;  %s19850_s7 = smov 54  }
  0x5a   :  { %s20196_s30 = sld [smem:[%s21897_s0 + %s19847_s15]]   ;;  %s19851_s15 = smov 55  }
  0x5c   :  { %21936 = sst [smem:[#allocation158_spill]] %s20181_s13 }
  0x5d   :  { %21937 = sst [smem:[#allocation159_spill]] %s20186_s4 }
  0x5e   :  { %s20201_s13 = sld [smem:[%s21897_s0 + %s19848_s22]]   ;;  %s19852_s22 = smov 56  }
  0x5f   :  { %21938 = sst [smem:[#allocation160_spill]] %s20191_s5 }
  0x60   :  { %21939 = sst [smem:[#allocation161_spill]] %s20196_s30 }
  0x61   :  { %s20206_s4 = sld [smem:[%s21897_s0 + %s19849_s28]]   ;;  %s19853_s28 = smov 57  }
  0x62   :  { %s20211_s5 = sld [smem:[%s21897_s0 + %s19850_s7]]   ;;  %s19854_s7 = smov 58  }
  0x63   :  { %s20216_s30 = sld [smem:[%s21897_s0 + %s19851_s15]]   ;;  %s19855_s15 = smov 59  }
  0x64   :  { %21940 = sst [smem:[#allocation162_spill]] %s20201_s13 }
  0x65   :  { %s20221_s13 = sld [smem:[%s21897_s0 + %s19852_s22]]   ;;  %s19856_s22 = smov 60  }
  0x67   :  { %21941 = sst [smem:[#allocation163_spill]] %s20206_s4 }
  0x68   :  { %21942 = sst [smem:[#allocation164_spill]] %s20211_s5 }
  0x69   :  { %21943 = sst [smem:[#allocation165_spill]] %s20216_s30 }
  0x6a   :  { %s20226_s4 = sld [smem:[%s21897_s0 + %s19853_s28]]   ;;  %s19857_s28 = smov 61  }
  0x6b   :  { %21944 = sst [smem:[#allocation166_spill]] %s20221_s13 }
  0x6c   :  { %s20231_s5 = sld [smem:[%s21897_s0 + %s19854_s7]]   ;;  %s19858_s7 = smov 62  }
  0x6d   :  { %s20236_s30 = sld [smem:[%s21897_s0 + %s19855_s15]]   ;;  %s19859_s15 = smov 63  }
  0x6e   :  { %s20241_s13 = sld [smem:[%s21897_s0 + %s19856_s22]]   ;;  %s19860_s22 = smov 64  }
  0x70   :  { %21945 = sst [smem:[#allocation167_spill]] %s20226_s4 }
  0x71   :  { %s20246_s4 = sld [smem:[%s21897_s0 + %s19857_s28]]   ;;  %s19861_s28 = smov 65  }
  0x72   :  { %21946 = sst [smem:[#allocation168_spill]] %s20231_s5 }
  0x73   :  { %21947 = sst [smem:[#allocation169_spill]] %s20236_s30 }
  0x74   :  { %21948 = sst [smem:[#allocation170_spill]] %s20241_s13 }
  0x75   :  { %s20251_s5 = sld [smem:[%s21897_s0 + %s19858_s7]]  }
  0x76   :  { %s20256_s30 = sld [smem:[%s21897_s0 + %s19859_s15]]  }
  0x77   :  { %21949 = sst [smem:[#allocation171_spill]] %s20246_s4 }
  0x78   :  { %s20261_s13 = sld [smem:[%s21897_s0 + %s19860_s22]]  }
  0x79   :  { %s20266_s4 = sld [smem:[%s21897_s0 + %s19861_s28]]  }
  0x7a   :  { %137 = vsyncpa [#allocation3], 0 }
  0x7b   :  { %138 = vsyncpa [#allocation6], 0 }
  0x7c   :  { %139 = vsyncpa [#allocation9], 0 }
  0x7d   :  { %140 = vsyncpa [#allocation12], 0 }
  0x7e   :  { %141 = vsyncpa [#allocation15], 0 }
  0x7f   :  { %142 = vsyncpa [#allocation18], 0 }
  0x80   :  { %143 = vsyncpa [#allocation21], 0 }
  0x81   :  { %144 = vsyncpa [#allocation24], 0 }
  0x82   :  { %145 = vsyncpa [#allocation27], 0 }
  0x83   :  { %146 = vsyncpa [#allocation30], 0 }
  0x84   :  { %147 = vsyncpa [#allocation33], 0 }
  0x85   :  { %148 = vsyncpa [#allocation36], 0 }
  0x86   :  { %149 = vsyncpa [#allocation39], 0 }
  0x87   :  { %150 = vsyncpa [#allocation42], 0 }
  0x88   :  { %151 = vsyncpa [#allocation45], 0 }
  0x89   :  { %152 = vsyncpa [#allocation48], 0 }
  0x8a   :  { %153 = vsyncpa [#allocation51], 0 }
  0x8b   :  { %154 = vsyncpa [#allocation54], 0 }
  0x8c   :  { %155 = vsyncpa [#allocation57], 0 }
  0x8d   :  { %156 = vsyncpa [#allocation60], 0 }
  0x8e   :  { %157 = vsyncpa [#allocation63], 0 }
  0x8f   :  { %158 = vsyncpa [#allocation66], 0 }
  0x90   :  { %159 = vsyncpa [#allocation69], 0 }
  0x91   :  { %160 = vsyncpa [#allocation72], 0 }
  0x92   :  { %161 = vsyncpa [#allocation75], 0 }
  0x93   :  { %162 = vsyncpa [#allocation78], 0 }
  0x94   :  { %163 = vsyncpa [#allocation81], 0 }
  0x95   :  { %164 = vsyncpa [#allocation84], 0 }
  0x96   :  { %165 = vsyncpa [#allocation87], 0 }
  0x97   :  { %166 = vsyncpa [#allocation90], 0 }
  0x98   :  { %167 = vsyncpa [#allocation4], 0  ;;  %s19862_s0 = smov [#allocation5]   ;;  %s19863_s10 = smov [#allocation8]  }
  0x99   :  { %s185_s7 = sshll.u32 %s19862_s0, 4  ;;  %s212_s11 = sshll.u32 %s19863_s10, 4  ;;  %s186_s7 = int_to_ptr.vmem [resolvable:$true] %s185_s7  ;;  %s213_s11 = int_to_ptr.vmem [resolvable:$true] %s212_s11 }
  0x9a   :  { %s18543_s15 = scalar_lea.vmem %s186_s7, 896  ;;  %p18548_p1 = scmp.lt.s32.totalorder %s186_s7, %s186_s7 }
  0x9b   :  { %p18544_p0 = scmp.ne.s32.totalorder %s186_s7, %s18543_s15  ;;  %p18549_p2 = scmp.lt.s32.totalorder %s18543_s15, %s18543_s15 }
  0x9d   :  { %p18550_p3 = por %p18549_p2, %p18548_p1 }
  0x9f   :  { %p18551_p4 = pnand %p18550_p3, %p18544_p0 }
  0xa1   :  { %18554 = shalt.err (!%p18551_p4)
}
  0xa2   :  { %s19864_s16 = smov 128   ;;  %s19865_s18 = smov 8  }
  0xa3   :  { %191 = dma.hbm_to_vmem [thread:$0]  %s19946_s9, 896, %s186_s7, [#allocation6], %s19864_s16, %s19864_s16, %s19865_s18  }
  0xa4   :  { %s18563_s22 = scalar_lea.vmem %s213_s11, 128  ;;  %p18568_p6 = scmp.lt.s32.totalorder %s213_s11, %s213_s11 }
  0xa5   :  { %p18564_p5 = scmp.ne.s32.totalorder %s213_s11, %s18563_s22  ;;  %p18569_p7 = scmp.lt.s32.totalorder %s18563_s22, %s18563_s22 }
  0xa7   :  { %p18570_p8 = por %p18569_p7, %p18568_p6 }
  0xa9   :  { %p18571_p9 = pnand %p18570_p8, %p18564_p5 }
  0xab   :  { %18574 = shalt.err (!%p18571_p9)
}
  0xac   :  { %215 = dma.hbm_to_vmem [thread:$0]  %s19961_s21, 128, %s213_s11, [#allocation9]  }
  0xad   :  { %s19866_s23 = smov [#allocation11]   ;;  %s19867_s28 = smov [#allocation14]  }
  0xae   :  { %s235_s26 = sshll.u32 %s19866_s23, 4  ;;  %s260_s1 = sshll.u32 %s19867_s28, 4  ;;  %s236_s26 = int_to_ptr.vmem [resolvable:$true] %s235_s26  ;;  %s261_s1 = int_to_ptr.vmem [resolvable:$true] %s260_s1 }
  0xaf   :  { %s18583_s2 = scalar_lea.vmem %s236_s26, 512  ;;  %p18588_p11 = scmp.lt.s32.totalorder %s236_s26, %s236_s26 }
  0xb0   :  { %p18584_p10 = scmp.ne.s32.totalorder %s236_s26, %s18583_s2  ;;  %p18589_p12 = scmp.lt.s32.totalorder %s18583_s2, %s18583_s2 }
  0xb2   :  { %p18590_p13 = por %p18589_p12, %p18588_p11 }
  0xb4   :  { %p18591_p0 = pnand %p18590_p13, %p18584_p10 }
  0xb6   :  { %18594 = shalt.err (!%p18591_p0)
}
  0xb7   :  { %241 = dma.hbm_to_vmem [thread:$0]  %s19976_s3, 512, %s236_s26, [#allocation12], %s19864_s16, %s19864_s16, %s19865_s18  }
  0xb8   :  { %s18603_s9 = scalar_lea.vmem %s261_s1, 16  ;;  %s18607_s21 = scalar_lea.vmem %s261_s1, 32 }
  0xb9   :  { %p18604_p1 = scmp.ne.s32.totalorder %s261_s1, %s18603_s9  ;;  %p18608_p2 = scmp.lt.s32.totalorder %s261_s1, %s261_s1 }
  0xba   :  { %p18609_p3 = scmp.lt.s32.totalorder %s18607_s21, %s18603_s9 }
  0xbc   :  { %p18610_p4 = por %p18609_p3, %p18608_p2 }
  0xbe   :  { %p18611_p5 = pnand %p18610_p4, %p18604_p1 }
  0xc0   :  { %18614 = shalt.err (!%p18611_p5)
}
  0xc1   :  { %263 = dma.hbm_to_vmem [thread:$0]  %s19986_s14, 16, %s261_s1, [#allocation15]  }
  0xc2   :  { %s19868_s0 = smov [#allocation17]   ;;  %s19869_s10 = smov [#allocation20]  }
  0xc3   :  { %s280_s7 = sshll.u32 %s19868_s0, 4  ;;  %s302_s11 = sshll.u32 %s19869_s10, 4  ;;  %s281_s7 = int_to_ptr.vmem [resolvable:$true] %s280_s7  ;;  %s303_s11 = int_to_ptr.vmem [resolvable:$true] %s302_s11 }
  0xc4   :  { %s18623_s15 = scalar_lea.vmem %s281_s7, 16  ;;  %s18627_s22 = scalar_lea.vmem %s281_s7, 32 }
  0xc5   :  { %p18624_p6 = scmp.ne.s32.totalorder %s281_s7, %s18623_s15  ;;  %p18628_p7 = scmp.lt.s32.totalorder %s281_s7, %s281_s7 }
  0xc6   :  { %p18629_p8 = scmp.lt.s32.totalorder %s18627_s22, %s18623_s15 }
  0xc8   :  { %p18630_p9 = por %p18629_p8, %p18628_p7 }
  0xca   :  { %p18631_p10 = pnand %p18630_p9, %p18624_p6 }
  0xcc   :  { %18634 = shalt.err (!%p18631_p10)
}
  0xcd   :  { %283 = dma.hbm_to_vmem [thread:$0]  %s19996_s24, 16, %s281_s7, [#allocation18]  }
  0xce   :  { %s18643_s3 = scalar_lea.vmem %s303_s11, 16  ;;  %s18647_s23 = scalar_lea.vmem %s303_s11, 32 }
  0xcf   :  { %p18644_p11 = scmp.ne.s32.totalorder %s303_s11, %s18643_s3  ;;  %p18648_p12 = scmp.lt.s32.totalorder %s303_s11, %s303_s11 }
  0xd0   :  { %p18649_p13 = scmp.lt.s32.totalorder %s18647_s23, %s18643_s3 }
  0xd2   :  { %p18650_p0 = por %p18649_p13, %p18648_p12 }
  0xd4   :  { %p18651_p1 = pnand %p18650_p0, %p18644_p11 }
  0xd6   :  { %18654 = shalt.err (!%p18651_p1)
}
  0xd7   :  { %305 = dma.hbm_to_vmem [thread:$0]  %s20011_s12, 16, %s303_s11, [#allocation21]  }
  0xd8   :  { %s19870_s14 = smov [#allocation23]  }
  0xd9   :  { %s321_s26 = sshll.u32 %s19870_s14, 4  ;;  %s322_s26 = int_to_ptr.vmem [resolvable:$true] %s321_s26 }
  0xda   :  { %s18663_s28 = scalar_lea.vmem %s322_s26, 1024  ;;  %p18668_p3 = scmp.lt.s32.totalorder %s322_s26, %s322_s26 }
  0xdb   :  { %p18664_p2 = scmp.ne.s32.totalorder %s322_s26, %s18663_s28  ;;  %p18669_p4 = scmp.lt.s32.totalorder %s18663_s28, %s18663_s28 }
  0xdd   :  { %p18670_p5 = por %p18669_p4, %p18668_p3 }
  0xdf   :  { %p18671_p6 = pnand %p18670_p5, %p18664_p2 }
  0xe1   :  { %18674 = shalt.err (!%p18671_p6)
}
  0xe2   :  { %s19871_s24 = smov 64   ;;  %s19872_s1 = smov 4  }
  0xe3   :  { %327 = dma.hbm_to_vmem [thread:$0]  %s20021_s27, 1024, %s322_s26, [#allocation24], %s19871_s24, %s19871_s24, %s19872_s1  }
  0xe4   :  { %s19873_s2 = smov [#allocation26]   ;;  %s19874_s12 = smov [#allocation29]  }
  0xe5   :  { %s344_s9 = sshll.u32 %s19873_s2, 4  ;;  %s363_s21 = sshll.u32 %s19874_s12, 4  ;;  %s345_s9 = int_to_ptr.vmem [resolvable:$true] %s344_s9  ;;  %s364_s21 = int_to_ptr.vmem [resolvable:$true] %s363_s21 }
  0xe6   :  { %s18683_s0 = scalar_lea.vmem %s345_s9, 16  ;;  %s18687_s7 = scalar_lea.vmem %s345_s9, 32 }
  0xe7   :  { %p18684_p7 = scmp.ne.s32.totalorder %s345_s9, %s18683_s0  ;;  %p18688_p8 = scmp.lt.s32.totalorder %s345_s9, %s345_s9 }
  0xe8   :  { %p18689_p9 = scmp.lt.s32.totalorder %s18687_s7, %s18683_s0 }
  0xea   :  { %p18690_p10 = por %p18689_p9, %p18688_p8 }
  0xec   :  { %p18691_p11 = pnand %p18690_p10, %p18684_p7 }
  0xee   :  { %18694 = shalt.err (!%p18691_p11)
}
  0xef   :  { %347 = dma.hbm_to_vmem [thread:$0]  %s20031_s25, 16, %s345_s9, [#allocation27]  }
  0xf0   :  { %s18703_s10 = scalar_lea.vmem %s364_s21, 18432  ;;  %p18708_p13 = scmp.lt.s32.totalorder %s364_s21, %s364_s21 }
  0xf1   :  { %p18704_p12 = scmp.ne.s32.totalorder %s364_s21, %s18703_s10  ;;  %p18709_p0 = scmp.lt.s32.totalorder %s18703_s10, %s18703_s10 }
  0xf3   :  { %p18710_p1 = por %p18709_p0, %p18708_p13 }
  0xf5   :  { %p18711_p2 = pnand %p18710_p1, %p18704_p12 }
  0xf7   :  { %18714 = shalt.err (!%p18711_p2)
}
  0xf8   :  { %s19875_s27 = smov 576   ;;  %s19876_s11 = smov 36  }
  0xf9   :  { %369 = dma.hbm_to_vmem [thread:$0]  %s20041_s17, 18432, %s364_s21, [#allocation30], %s19875_s27, %s19875_s27, %s19876_s11  }
  0xfa   :  { %s19877_s15 = smov [#allocation32]   ;;  %s19878_s3 = smov [#allocation35]  }
  0xfb   :  { %s386_s22 = sshll.u32 %s19877_s15, 4  ;;  %s405_s25 = sshll.u32 %s19878_s3, 4  ;;  %s387_s22 = int_to_ptr.vmem [resolvable:$true] %s386_s22  ;;  %s406_s25 = int_to_ptr.vmem [resolvable:$true] %s405_s25 }
  0xfc   :  { %s18723_s23 = scalar_lea.vmem %s387_s22, 16  ;;  %s18727_s14 = scalar_lea.vmem %s387_s22, 32 }
  0xfd   :  { %p18724_p3 = scmp.ne.s32.totalorder %s387_s22, %s18723_s23  ;;  %p18728_p4 = scmp.lt.s32.totalorder %s387_s22, %s387_s22 }
  0xfe   :  { %p18729_p5 = scmp.lt.s32.totalorder %s18727_s14, %s18723_s23 }
 0x100   :  { %p18730_p6 = por %p18729_p5, %p18728_p4 }
 0x102   :  { %p18731_p7 = pnand %p18730_p6, %p18724_p3 }
 0x104   :  { %18734 = shalt.err (!%p18731_p7)
}
 0x105   :  { %389 = dma.hbm_to_vmem [thread:$0]  %s20051_s20, 16, %s387_s22, [#allocation33]  }
 0x106   :  { %s18743_s26 = scalar_lea.vmem %s406_s25, 9216  ;;  %p18748_p9 = scmp.lt.s32.totalorder %s406_s25, %s406_s25 }
 0x107   :  { %p18744_p8 = scmp.ne.s32.totalorder %s406_s25, %s18743_s26  ;;  %p18749_p10 = scmp.lt.s32.totalorder %s18743_s26, %s18743_s26 }
 0x109   :  { %p18750_p11 = por %p18749_p10, %p18748_p9 }
 0x10b   :  { %p18751_p12 = pnand %p18750_p11, %p18744_p8 }
 0x10d   :  { %18754 = shalt.err (!%p18751_p12)
}
 0x10e   :  { %411 = dma.hbm_to_vmem [thread:$0]  %s20061_s6, 9216, %s406_s25, [#allocation36], %s19875_s27, %s19875_s27, %s19876_s11  }
 0x10f   :  { %s19879_s17 = smov [#allocation38]   ;;  %s19880_s2 = smov [#allocation41]  }
 0x110   :  { %s428_s28 = sshll.u32 %s19879_s17, 4  ;;  %s447_s9 = sshll.u32 %s19880_s2, 4  ;;  %s429_s28 = int_to_ptr.vmem [resolvable:$true] %s428_s28  ;;  %s448_s9 = int_to_ptr.vmem [resolvable:$true] %s447_s9 }
 0x111   :  { %s18763_s12 = scalar_lea.vmem %s429_s28, 16  ;;  %s18767_s20 = scalar_lea.vmem %s429_s28, 32 }
 0x112   :  { %p18764_p13 = scmp.ne.s32.totalorder %s429_s28, %s18763_s12  ;;  %p18768_p0 = scmp.lt.s32.totalorder %s429_s28, %s429_s28 }
 0x113   :  { %p18769_p1 = scmp.lt.s32.totalorder %s18767_s20, %s18763_s12 }
 0x115   :  { %p18770_p2 = por %p18769_p1, %p18768_p0 }
 0x117   :  { %p18771_p3 = pnand %p18770_p2, %p18764_p13 }
 0x119   :  { %18774 = shalt.err (!%p18771_p3)
}
 0x11a   :  { %431 = dma.hbm_to_vmem [thread:$0]  %s20071_s19, 16, %s429_s28, [#allocation39]  }
 0x11b   :  { %s18783_s21 = scalar_lea.vmem %s448_s9, 18432  ;;  %p18788_p5 = scmp.lt.s32.totalorder %s448_s9, %s448_s9 }
 0x11c   :  { %p18784_p4 = scmp.ne.s32.totalorder %s448_s9, %s18783_s21  ;;  %p18789_p6 = scmp.lt.s32.totalorder %s18783_s21, %s18783_s21 }
 0x11e   :  { %p18790_p7 = por %p18789_p6, %p18788_p5 }
 0x120   :  { %p18791_p8 = pnand %p18790_p7, %p18784_p4 }
 0x122   :  { %18794 = shalt.err (!%p18791_p8)
}
 0x123   :  { %453 = dma.hbm_to_vmem [thread:$0]  %s20081_s8, 18432, %s448_s9, [#allocation42], %s19875_s27, %s19875_s27, %s19876_s11  }
 0x124   :  { %s19881_s6 = smov [#allocation44]   ;;  %s19882_s7 = smov [#allocation47]  }
 0x125   :  { %s470_s0 = sshll.u32 %s19881_s6, 4  ;;  %s489_s10 = sshll.u32 %s19882_s7, 4  ;;  %s471_s0 = int_to_ptr.vmem [resolvable:$true] %s470_s0  ;;  %s490_s10 = int_to_ptr.vmem [resolvable:$true] %s489_s10 }
 0x126   :  { %s18803_s15 = scalar_lea.vmem %s471_s0, 16  ;;  %s18807_s19 = scalar_lea.vmem %s471_s0, 32 }
 0x127   :  { %p18804_p9 = scmp.ne.s32.totalorder %s471_s0, %s18803_s15  ;;  %p18808_p10 = scmp.lt.s32.totalorder %s471_s0, %s471_s0 }
 0x128   :  { %p18809_p11 = scmp.lt.s32.totalorder %s18807_s19, %s18803_s15 }
 0x12a   :  { %p18810_p12 = por %p18809_p11, %p18808_p10 }
 0x12c   :  { %p18811_p13 = pnand %p18810_p12, %p18804_p9 }
 0x12e   :  { %18814 = shalt.err (!%p18811_p13)
}
 0x12f   :  { %473 = dma.hbm_to_vmem [thread:$0]  %s20091_s29, 16, %s471_s0, [#allocation45]  }
 0x130   :  { %s18823_s22 = scalar_lea.vmem %s490_s10, 9216  ;;  %p18828_p1 = scmp.lt.s32.totalorder %s490_s10, %s490_s10 }
 0x131   :  { %p18824_p0 = scmp.ne.s32.totalorder %s490_s10, %s18823_s22  ;;  %p18829_p2 = scmp.lt.s32.totalorder %s18823_s22, %s18823_s22 }
 0x133   :  { %p18830_p3 = por %p18829_p2, %p18828_p1 }
 0x135   :  { %p18831_p4 = pnand %p18830_p3, %p18824_p0 }
 0x137   :  { %18834 = shalt.err (!%p18831_p4)
}
 0x138   :  { %s21950_s8 = sld [smem:[#allocation142_spill]]  ;;  %s19883_s3 = smov [#allocation50]  }
 0x139   :  { %s512_s25 = sshll.u32 %s19883_s3, 4  ;;  %s19884_s23 = smov [#allocation53]   ;;  %s513_s25 = int_to_ptr.vmem [resolvable:$true] %s512_s25 }
 0x13a   :  { %s531_s14 = sshll.u32 %s19884_s23, 4  ;;  %s18843_s26 = scalar_lea.vmem %s513_s25, 16  ;;  %s532_s14 = int_to_ptr.vmem [resolvable:$true] %s531_s14 }
 0x13b   :  { %p18844_p5 = scmp.ne.s32.totalorder %s513_s25, %s18843_s26  ;;  %s18847_s29 = scalar_lea.vmem %s513_s25, 32 }
 0x13c   :  { %p18848_p6 = scmp.lt.s32.totalorder %s513_s25, %s513_s25  ;;  %p18849_p7 = scmp.lt.s32.totalorder %s18847_s29, %s18843_s26 }
 0x13e   :  { %495 = dma.hbm_to_vmem [thread:$0]  %s21950_s8, 9216, %s490_s10, [#allocation48], %s19875_s27, %s19875_s27, %s19876_s11  }
 0x13f   :  { %p18850_p8 = por %p18849_p7, %p18848_p6 }
 0x141   :  { %p18851_p9 = pnand %p18850_p8, %p18844_p5 }
 0x143   :  { %18854 = shalt.err (!%p18851_p9)
}
 0x144   :  { %s21951_s17 = sld [smem:[#allocation144_spill]]  ;;  %s18863_s28 = scalar_lea.vmem %s532_s14, 9216 }
 0x145   :  { %p18864_p10 = scmp.ne.s32.totalorder %s532_s14, %s18863_s28  ;;  %p18868_p11 = scmp.lt.s32.totalorder %s532_s14, %s532_s14 }
 0x146   :  { %p18869_p12 = scmp.lt.s32.totalorder %s18863_s28, %s18863_s28 }
 0x148   :  { %p18870_p13 = por %p18869_p12, %p18868_p11 }
 0x14a   :  { %515 = dma.hbm_to_vmem [thread:$0]  %s21951_s17, 16, %s513_s25, [#allocation51]  }
 0x14b   :  { %p18871_p0 = pnand %p18870_p13, %p18864_p10 }
 0x14d   :  { %18874 = shalt.err (!%p18871_p0)
}
 0x14e   :  { %s21952_s2 = sld [smem:[#allocation146_spill]]  ;;  %s19885_s9 = smov [#allocation56]  }
 0x14f   :  { %s554_s12 = sshll.u32 %s19885_s9, 4  ;;  %s19886_s20 = smov [#allocation59]   ;;  %s555_s12 = int_to_ptr.vmem [resolvable:$true] %s554_s12 }
 0x150   :  { %s573_s21 = sshll.u32 %s19886_s20, 4  ;;  %s18883_s6 = scalar_lea.vmem %s555_s12, 16  ;;  %s574_s21 = int_to_ptr.vmem [resolvable:$true] %s573_s21 }
 0x151   :  { %p18884_p1 = scmp.ne.s32.totalorder %s555_s12, %s18883_s6  ;;  %s18887_s0 = scalar_lea.vmem %s555_s12, 32 }
 0x152   :  { %p18888_p2 = scmp.lt.s32.totalorder %s555_s12, %s555_s12  ;;  %p18889_p3 = scmp.lt.s32.totalorder %s18887_s0, %s18883_s6 }
 0x154   :  { %537 = dma.hbm_to_vmem [thread:$0]  %s21952_s2, 9216, %s532_s14, [#allocation54], %s19875_s27, %s19875_s27, %s19876_s11  }
 0x155   :  { %p18890_p4 = por %p18889_p3, %p18888_p2 }
 0x157   :  { %p18891_p5 = pnand %p18890_p4, %p18884_p1 }
 0x159   :  { %18894 = shalt.err (!%p18891_p5)
}
 0x15a   :  { %s21953_s7 = sld [smem:[#allocation148_spill]]  ;;  %s18903_s10 = scalar_lea.vmem %s574_s21, 9216 }
 0x15b   :  { %p18904_p6 = scmp.ne.s32.totalorder %s574_s21, %s18903_s10  ;;  %p18908_p7 = scmp.lt.s32.totalorder %s574_s21, %s574_s21 }
 0x15c   :  { %p18909_p8 = scmp.lt.s32.totalorder %s18903_s10, %s18903_s10 }
 0x15e   :  { %p18910_p9 = por %p18909_p8, %p18908_p7 }
 0x160   :  { %557 = dma.hbm_to_vmem [thread:$0]  %s21953_s7, 16, %s555_s12, [#allocation57]  }
 0x161   :  { %p18911_p10 = pnand %p18910_p9, %p18904_p6 }
 0x163   :  { %18914 = shalt.err (!%p18911_p10)
}
 0x164   :  { %s21954_s15 = sld [smem:[#allocation150_spill]]  ;;  %s19887_s19 = smov [#allocation62]  }
 0x165   :  { %s596_s22 = sshll.u32 %s19887_s19, 4  ;;  %s19888_s8 = smov [#allocation65]   ;;  %s597_s22 = int_to_ptr.vmem [resolvable:$true] %s596_s22 }
 0x166   :  { %s615_s3 = sshll.u32 %s19888_s8, 4  ;;  %s18923_s25 = scalar_lea.vmem %s597_s22, 16  ;;  %s616_s3 = int_to_ptr.vmem [resolvable:$true] %s615_s3 }
 0x167   :  { %p18924_p11 = scmp.ne.s32.totalorder %s597_s22, %s18923_s25  ;;  %s18927_s23 = scalar_lea.vmem %s597_s22, 32 }
 0x168   :  { %p18928_p12 = scmp.lt.s32.totalorder %s597_s22, %s597_s22  ;;  %p18929_p13 = scmp.lt.s32.totalorder %s18927_s23, %s18923_s25 }
 0x16a   :  { %579 = dma.hbm_to_vmem [thread:$0]  %s21954_s15, 9216, %s574_s21, [#allocation60], %s19875_s27, %s19875_s27, %s19876_s11  }
 0x16b   :  { %p18930_p0 = por %p18929_p13, %p18928_p12 }
 0x16d   :  { %p18931_p1 = pnand %p18930_p0, %p18924_p11 }
 0x16f   :  { %18934 = shalt.err (!%p18931_p1)
}
 0x170   :  { %s21955_s14 = sld [smem:[#allocation152_spill]]  ;;  %s18943_s26 = scalar_lea.vmem %s616_s3, 9216 }
 0x171   :  { %p18944_p2 = scmp.ne.s32.totalorder %s616_s3, %s18943_s26  ;;  %p18948_p3 = scmp.lt.s32.totalorder %s616_s3, %s616_s3 }
 0x172   :  { %p18949_p4 = scmp.lt.s32.totalorder %s18943_s26, %s18943_s26 }
 0x174   :  { %p18950_p5 = por %p18949_p4, %p18948_p3 }
 0x176   :  { %599 = dma.hbm_to_vmem [thread:$0]  %s21955_s14, 16, %s597_s22, [#allocation63]  }
 0x177   :  { %p18951_p6 = pnand %p18950_p5, %p18944_p2 }
 0x179   :  { %18954 = shalt.err (!%p18951_p6)
}
 0x17a   :  { %s21956_s29 = sld [smem:[#allocation154_spill]]  ;;  %s19889_s17 = smov [#allocation68]  }
 0x17b   :  { %s638_s28 = sshll.u32 %s19889_s17, 4  ;;  %s19890_s2 = smov [#allocation71]   ;;  %s639_s28 = int_to_ptr.vmem [resolvable:$true] %s638_s28 }
 0x17c   :  { %s657_s9 = sshll.u32 %s19890_s2, 4  ;;  %s18963_s12 = scalar_lea.vmem %s639_s28, 16  ;;  %s658_s9 = int_to_ptr.vmem [resolvable:$true] %s657_s9 }
 0x17d   :  { %p18964_p7 = scmp.ne.s32.totalorder %s639_s28, %s18963_s12  ;;  %s18967_s20 = scalar_lea.vmem %s639_s28, 32 }
 0x17e   :  { %p18968_p8 = scmp.lt.s32.totalorder %s639_s28, %s639_s28  ;;  %p18969_p9 = scmp.lt.s32.totalorder %s18967_s20, %s18963_s12 }
 0x180   :  { %621 = dma.hbm_to_vmem [thread:$0]  %s21956_s29, 9216, %s616_s3, [#allocation66], %s19875_s27, %s19875_s27, %s19876_s11  }
 0x181   :  { %p18970_p10 = por %p18969_p9, %p18968_p8 }
 0x183   :  { %p18971_p11 = pnand %p18970_p10, %p18964_p7 }
 0x185   :  { %18974 = shalt.err (!%p18971_p11)
}
 0x186   :  { %s21957_s21 = sld [smem:[#allocation156_spill]]  ;;  %s18983_s6 = scalar_lea.vmem %s658_s9, 9216 }
 0x187   :  { %p18984_p12 = scmp.ne.s32.totalorder %s658_s9, %s18983_s6  ;;  %p18988_p13 = scmp.lt.s32.totalorder %s658_s9, %s658_s9 }
 0x188   :  { %p18989_p0 = scmp.lt.s32.totalorder %s18983_s6, %s18983_s6 }
 0x18a   :  { %p18990_p1 = por %p18989_p0, %p18988_p13 }
 0x18c   :  { %641 = dma.hbm_to_vmem [thread:$0]  %s21957_s21, 16, %s639_s28, [#allocation69]  }
 0x18d   :  { %p18991_p2 = pnand %p18990_p1, %p18984_p12 }
 0x18f   :  { %18994 = shalt.err (!%p18991_p2)
}
 0x190   :  { %s21958_s0 = sld [smem:[#allocation158_spill]]  ;;  %s19891_s7 = smov [#allocation74]  }
 0x191   :  { %s680_s10 = sshll.u32 %s19891_s7, 4  ;;  %s19892_s15 = smov [#allocation77]   ;;  %s681_s10 = int_to_ptr.vmem [resolvable:$true] %s680_s10 }
 0x192   :  { %s699_s19 = sshll.u32 %s19892_s15, 4  ;;  %s19003_s22 = scalar_lea.vmem %s681_s10, 32  ;;  %s700_s19 = int_to_ptr.vmem [resolvable:$true] %s699_s19 }
 0x193   :  { %p19004_p3 = scmp.ne.s32.totalorder %s681_s10, %s19003_s22  ;;  %p19008_p4 = scmp.lt.s32.totalorder %s681_s10, %s681_s10 }
 0x194   :  { %p19009_p5 = scmp.lt.s32.totalorder %s19003_s22, %s19003_s22 }
 0x196   :  { %663 = dma.hbm_to_vmem [thread:$0]  %s21958_s0, 9216, %s658_s9, [#allocation72], %s19875_s27, %s19875_s27, %s19876_s11  }
 0x197   :  { %p19010_p6 = por %p19009_p5, %p19008_p4 }
 0x199   :  { %p19011_p7 = pnand %p19010_p6, %p19004_p3 }
 0x19b   :  { %19014 = shalt.err (!%p19011_p7)
}
 0x19c   :  { %s21959_s8 = sld [smem:[#allocation160_spill]]  ;;  %s19023_s3 = scalar_lea.vmem %s700_s19, 2048 }
 0x19d   :  { %p19024_p8 = scmp.ne.s32.totalorder %s700_s19, %s19023_s3  ;;  %p19028_p9 = scmp.lt.s32.totalorder %s700_s19, %s700_s19 }
 0x19e   :  { %p19029_p10 = scmp.lt.s32.totalorder %s19023_s3, %s19023_s3 }
 0x1a0   :  { %p19030_p11 = por %p19029_p10, %p19028_p9 }
 0x1a2   :  { %683 = dma.hbm_to_vmem [thread:$0]  %s21959_s8, 32, %s681_s10, [#allocation75]  }
 0x1a3   :  { %p19031_p12 = pnand %p19030_p11, %p19024_p8 }
 0x1a5   :  { %19034 = shalt.err (!%p19031_p12)
}
 0x1a6   :  { %s21960_s27 = sld [smem:[#allocation162_spill]]  ;;  %s19893_s11 = smov [#allocation80]  }
 0x1a7   :  { %s722_s25 = sshll.u32 %s19893_s11, 4  ;;  %s19894_s23 = smov [#allocation83]   ;;  %s723_s25 = int_to_ptr.vmem [resolvable:$true] %s722_s25 }
 0x1a8   :  { %s744_s14 = sshll.u32 %s19894_s23, 4  ;;  %s19043_s26 = scalar_lea.vmem %s723_s25, 32  ;;  %s745_s14 = int_to_ptr.vmem [resolvable:$true] %s744_s14 }
 0x1a9   :  { %p19044_p13 = scmp.ne.s32.totalorder %s723_s25, %s19043_s26  ;;  %p19048_p0 = scmp.lt.s32.totalorder %s723_s25, %s723_s25 }
 0x1aa   :  { %p19049_p1 = scmp.lt.s32.totalorder %s19043_s26, %s19043_s26 }
 0x1ac   :  { %705 = dma.hbm_to_vmem [thread:$0]  %s21960_s27, 2048, %s700_s19, [#allocation78], %s19864_s16, %s19864_s16, %s19865_s18  }
 0x1ad   :  { %p19050_p2 = por %p19049_p1, %p19048_p0 }
 0x1af   :  { %p19051_p3 = pnand %p19050_p2, %p19044_p13 }
 0x1b1   :  { %19054 = shalt.err (!%p19051_p3)
}
 0x1b2   :  { %s21961_s29 = sld [smem:[#allocation164_spill]]  ;;  %s19063_s17 = scalar_lea.vmem %s745_s14, 16 }
 0x1b3   :  { %p19064_p4 = scmp.ne.s32.totalorder %s745_s14, %s19063_s17  ;;  %s19067_s28 = scalar_lea.vmem %s745_s14, 32 }
 0x1b4   :  { %p19068_p5 = scmp.lt.s32.totalorder %s745_s14, %s745_s14  ;;  %p19069_p6 = scmp.lt.s32.totalorder %s19067_s28, %s19063_s17 }
 0x1b6   :  { %p19070_p7 = por %p19069_p6, %p19068_p5 }
 0x1b8   :  { %725 = dma.hbm_to_vmem [thread:$0]  %s21961_s29, 32, %s723_s25, [#allocation81]  }
 0x1b9   :  { %p19071_p8 = pnand %p19070_p7, %p19064_p4 }
 0x1bb   :  { %19074 = shalt.err (!%p19071_p8)
}
 0x1bc   :  { %s21962_s2 = sld [smem:[#allocation167_spill]]  ;;  %s19895_s9 = smov [#allocation86]  }
 0x1bd   :  { %s766_s12 = sshll.u32 %s19895_s9, 4  ;;  %s19896_s20 = smov [#allocation89]   ;;  %s767_s12 = int_to_ptr.vmem [resolvable:$true] %s766_s12 }
 0x1be   :  { %s788_s21 = sshll.u32 %s19896_s20, 4  ;;  %s19083_s6 = scalar_lea.vmem %s767_s12, 16  ;;  %s789_s21 = int_to_ptr.vmem [resolvable:$true] %s788_s21 }
 0x1bf   :  { %p19084_p9 = scmp.ne.s32.totalorder %s767_s12, %s19083_s6  ;;  %s19087_s0 = scalar_lea.vmem %s767_s12, 32 }
 0x1c0   :  { %p19088_p10 = scmp.lt.s32.totalorder %s767_s12, %s767_s12  ;;  %p19089_p11 = scmp.lt.s32.totalorder %s19087_s0, %s19083_s6 }
 0x1c2   :  { %747 = dma.hbm_to_vmem [thread:$0]  %s21962_s2, 16, %s745_s14, [#allocation84]  }
 0x1c3   :  { %p19090_p12 = por %p19089_p11, %p19088_p10 }
 0x1c5   :  { %p19091_p13 = pnand %p19090_p12, %p19084_p9 }
 0x1c7   :  { %19094 = shalt.err (!%p19091_p13)
}
 0x1c8   :  { %s21963_s7 = sld [smem:[#allocation169_spill]]  ;;  %s19103_s10 = scalar_lea.vmem %s789_s21, 16 }
 0x1c9   :  { %p19104_p0 = scmp.ne.s32.totalorder %s789_s21, %s19103_s10  ;;  %s19107_s15 = scalar_lea.vmem %s789_s21, 32 }
 0x1ca   :  { %p19108_p1 = scmp.lt.s32.totalorder %s789_s21, %s789_s21  ;;  %p19109_p2 = scmp.lt.s32.totalorder %s19107_s15, %s19103_s10 }
 0x1cc   :  { %p19110_p3 = por %p19109_p2, %p19108_p1 }
 0x1ce   :  { %769 = dma.hbm_to_vmem [thread:$0]  %s21963_s7, 16, %s767_s12, [#allocation87]  }
 0x1cf   :  { %p19111_p4 = pnand %p19110_p3, %p19104_p0 }
 0x1d1   :  { %19114 = shalt.err (!%p19111_p4)
}
 0x1d2   :  { %s21964_s19 = sld [smem:[#allocation171_spill]]  ;;  %s19897_s22 = smov [#allocation2]  }
 0x1d3   :  { %s173_s8 = sshll.u32 %s19897_s22, 4  ;;  %s19898_s3 = smov [#allocation7]   ;;  %s174_s8 = int_to_ptr.vmem [resolvable:$true] %s173_s8 }
 0x1d4   :  { %s197_s27 = sshll.u32 %s19898_s3, 4  ;;  %s19123_s11 = scalar_lea.vmem %s174_s8, 512  ;;  %s198_s27 = int_to_ptr.vmem [resolvable:$true] %s197_s27 }
 0x1d5   :  { %p19124_p5 = scmp.ne.s32.totalorder %s174_s8, %s19123_s11  ;;  %p19128_p6 = scmp.lt.s32.totalorder %s174_s8, %s174_s8 }
 0x1d6   :  { %p19129_p7 = scmp.lt.s32.totalorder %s19123_s11, %s19123_s11 }
 0x1d8   :  { %791 = dma.hbm_to_vmem [thread:$0]  %s21964_s19, 16, %s789_s21, [#allocation90]  }
 0x1d9   :  { %p19130_p8 = por %p19129_p7, %p19128_p6 }
 0x1db   :  { %p19131_p9 = pnand %p19130_p8, %p19124_p5 }
 0x1dd   :  { %19134 = shalt.err (!%p19131_p9)
}
 0x1de   :  { %s21965_s25 = sld [smem:[#allocation124_spill]]  ;;  %s19143_s23 = scalar_lea.vmem %s198_s27, 512 }
 0x1df   :  { %p19144_p10 = scmp.ne.s32.totalorder %s198_s27, %s19143_s23  ;;  %p19148_p11 = scmp.lt.s32.totalorder %s198_s27, %s198_s27 }
 0x1e0   :  { %p19149_p12 = scmp.lt.s32.totalorder %s19143_s23, %s19143_s23 }
 0x1e2   :  { %p19150_p13 = por %p19149_p12, %p19148_p11 }
 0x1e4   :  { %179 = dma.hbm_to_vmem [thread:$0]  %s21965_s25, 512, %s174_s8, [#allocation3], %s19864_s16, %s19864_s16, %s19865_s18  }
 0x1e5   :  { %p19151_p0 = pnand %p19150_p13, %p19144_p10 }
 0x1e7   :  { %19154 = shalt.err (!%p19151_p0)
}
 0x1e8   :  { %s21966_s14 = sld [smem:[#allocation125_spill]]  ;;  %s19899_s26 = smov [#allocation10]  }
 0x1e9   :  { %s223_s29 = sshll.u32 %s19899_s26, 4  ;;  %s19900_s17 = smov [#allocation13]   ;;  %s224_s29 = int_to_ptr.vmem [resolvable:$true] %s223_s29 }
 0x1ea   :  { %s247_s28 = sshll.u32 %s19900_s17, 4  ;;  %s19163_s2 = scalar_lea.vmem %s224_s29, 8064  ;;  %s248_s28 = int_to_ptr.vmem [resolvable:$true] %s247_s28 }
 0x1eb   :  { %p19164_p1 = scmp.ne.s32.totalorder %s224_s29, %s19163_s2  ;;  %p19168_p2 = scmp.lt.s32.totalorder %s224_s29, %s224_s29 }
 0x1ec   :  { %p19169_p3 = scmp.lt.s32.totalorder %s19163_s2, %s19163_s2 }
 0x1ee   :  { %203 = dma.hbm_to_vmem [thread:$0]  %s21966_s14, 512, %s198_s27, [#allocation6], %s19864_s16, %s19864_s16, %s19865_s18  }
 0x1ef   :  { %p19170_p4 = por %p19169_p3, %p19168_p2 }
 0x1f1   :  { %p19171_p5 = pnand %p19170_p4, %p19164_p1 }
 0x1f3   :  { %19174 = shalt.err (!%p19171_p5)
}
 0x1f4   :  { %s21967_s9 = sld [smem:[#allocation128_spill]]  ;;  %s19183_s12 = scalar_lea.vmem %s248_s28, 2048 }
 0x1f5   :  { %p19184_p6 = scmp.ne.s32.totalorder %s248_s28, %s19183_s12  ;;  %p19188_p7 = scmp.lt.s32.totalorder %s248_s28, %s248_s28 }
 0x1f6   :  { %p19189_p8 = scmp.lt.s32.totalorder %s19183_s12, %s19183_s12 }
 0x1f8   :  { %p19190_p9 = por %p19189_p8, %p19188_p7 }
 0x1fa   :  { %229 = dma.hbm_to_vmem [thread:$0]  %s21967_s9, 8064, %s224_s29, [#allocation9], %s19864_s16, %s19864_s16, %s19865_s18  }
 0x1fb   :  { %p19191_p10 = pnand %p19190_p9, %p19184_p6 }
 0x1fd   :  { %19194 = shalt.err (!%p19191_p10)
}
 0x1fe   :  { %s21968_s20 = sld [smem:[#allocation129_spill]]  ;;  %s19901_s21 = smov [#allocation16]  }
 0x1ff   :  { %s270_s6 = sshll.u32 %s19901_s21, 4  ;;  %s19902_s0 = smov [#allocation19]   ;;  %s271_s6 = int_to_ptr.vmem [resolvable:$true] %s270_s6 }
 0x200   :  { %s292_s7 = sshll.u32 %s19902_s0, 4  ;;  %s19203_s10 = scalar_lea.vmem %s271_s6, 16  ;;  %s293_s7 = int_to_ptr.vmem [resolvable:$true] %s292_s7 }
 0x201   :  { %p19204_p11 = scmp.ne.s32.totalorder %s271_s6, %s19203_s10  ;;  %s19207_s15 = scalar_lea.vmem %s271_s6, 32 }
 0x202   :  { %p19208_p12 = scmp.lt.s32.totalorder %s271_s6, %s271_s6  ;;  %p19209_p13 = scmp.lt.s32.totalorder %s19207_s15, %s19203_s10 }
 0x204   :  { %253 = dma.hbm_to_vmem [thread:$0]  %s21968_s20, 2048, %s248_s28, [#allocation12], %s19864_s16, %s19864_s16, %s19865_s18  }
 0x205   :  { %p19210_p0 = por %p19209_p13, %p19208_p12 }
 0x207   :  { %p19211_p1 = pnand %p19210_p0, %p19204_p11 }
 0x209   :  { %19214 = shalt.err (!%p19211_p1)
}
 0x20a   :  { %s21969_s19 = sld [smem:[#allocation130_spill]]  ;;  %s19223_s22 = scalar_lea.vmem %s293_s7, 16 }
 0x20b   :  { %p19224_p2 = scmp.ne.s32.totalorder %s293_s7, %s19223_s22  ;;  %s19227_s8 = scalar_lea.vmem %s293_s7, 32 }
 0x20c   :  { %p19228_p3 = scmp.lt.s32.totalorder %s293_s7, %s293_s7  ;;  %p19229_p4 = scmp.lt.s32.totalorder %s19227_s8, %s19223_s22 }
 0x20e   :  { %p19230_p5 = por %p19229_p4, %p19228_p3 }
 0x210   :  { %273 = dma.hbm_to_vmem [thread:$0]  %s21969_s19, 16, %s271_s6, [#allocation15]  }
 0x211   :  { %p19231_p6 = pnand %p19230_p5, %p19224_p2 }
 0x213   :  { %19234 = shalt.err (!%p19231_p6)
}
 0x214   :  { %s21970_s16 = sld [smem:[#allocation132_spill]]  ;;  %s19903_s18 = smov [#allocation22]  }
 0x215   :  { %s312_s3 = sshll.u32 %s19903_s18, 4  ;;  %s19904_s27 = smov [#allocation25]   ;;  %s313_s3 = int_to_ptr.vmem [resolvable:$true] %s312_s3 }
 0x216   :  { %s334_s11 = sshll.u32 %s19904_s27, 4  ;;  %s19243_s25 = scalar_lea.vmem %s313_s3, 16  ;;  %s335_s11 = int_to_ptr.vmem [resolvable:$true] %s334_s11 }
 0x217   :  { %p19244_p7 = scmp.ne.s32.totalorder %s313_s3, %s19243_s25  ;;  %s19247_s23 = scalar_lea.vmem %s313_s3, 32 }
 0x218   :  { %p19248_p8 = scmp.lt.s32.totalorder %s313_s3, %s313_s3  ;;  %p19249_p9 = scmp.lt.s32.totalorder %s19247_s23, %s19243_s25 }
 0x21a   :  { %295 = dma.hbm_to_vmem [thread:$0]  %s21970_s16, 16, %s293_s7, [#allocation18]  }
 0x21b   :  { %p19250_p10 = por %p19249_p9, %p19248_p8 }
 0x21d   :  { %p19251_p11 = pnand %p19250_p10, %p19244_p7 }
 0x21f   :  { %19254 = shalt.err (!%p19251_p11)
}
 0x220   :  { %s21971_s14 = sld [smem:[#allocation133_spill]]  ;;  %s19263_s26 = scalar_lea.vmem %s335_s11, 16 }
 0x221   :  { %p19264_p12 = scmp.ne.s32.totalorder %s335_s11, %s19263_s26  ;;  %s19267_s29 = scalar_lea.vmem %s335_s11, 32 }
 0x222   :  { %p19268_p13 = scmp.lt.s32.totalorder %s335_s11, %s335_s11  ;;  %p19269_p0 = scmp.lt.s32.totalorder %s19267_s29, %s19263_s26 }
 0x224   :  { %p19270_p1 = por %p19269_p0, %p19268_p13 }
 0x226   :  { %315 = dma.hbm_to_vmem [thread:$0]  %s21971_s14, 16, %s313_s3, [#allocation21]  }
 0x227   :  { %p19271_p2 = pnand %p19270_p1, %p19264_p12 }
 0x229   :  { %19274 = shalt.err (!%p19271_p2)
}
 0x22a   :  { %s21972_s17 = sld [smem:[#allocation134_spill]]  ;;  %s19905_s28 = smov [#allocation28]  }
 0x22b   :  { %s354_s2 = sshll.u32 %s19905_s28, 4  ;;  %s19906_s9 = smov [#allocation31]   ;;  %s355_s2 = int_to_ptr.vmem [resolvable:$true] %s354_s2 }
 0x22c   :  { %s376_s12 = sshll.u32 %s19906_s9, 4  ;;  %s19283_s20 = scalar_lea.vmem %s355_s2, 16  ;;  %s377_s12 = int_to_ptr.vmem [resolvable:$true] %s376_s12 }
 0x22d   :  { %p19284_p3 = scmp.ne.s32.totalorder %s355_s2, %s19283_s20  ;;  %s19287_s21 = scalar_lea.vmem %s355_s2, 32 }
 0x22e   :  { %p19288_p4 = scmp.lt.s32.totalorder %s355_s2, %s355_s2  ;;  %p19289_p5 = scmp.lt.s32.totalorder %s19287_s21, %s19283_s20 }
 0x230   :  { %337 = dma.hbm_to_vmem [thread:$0]  %s21972_s17, 16, %s335_s11, [#allocation24]  }
 0x231   :  { %p19290_p6 = por %p19289_p5, %p19288_p4 }
 0x233   :  { %p19291_p7 = pnand %p19290_p6, %p19284_p3 }
 0x235   :  { %19294 = shalt.err (!%p19291_p7)
}
 0x236   :  { %s21973_s6 = sld [smem:[#allocation135_spill]]  ;;  %s19303_s0 = scalar_lea.vmem %s377_s12, 16 }
 0x237   :  { %p19304_p8 = scmp.ne.s32.totalorder %s377_s12, %s19303_s0  ;;  %s19307_s7 = scalar_lea.vmem %s377_s12, 32 }
 0x238   :  { %p19308_p9 = scmp.lt.s32.totalorder %s377_s12, %s377_s12  ;;  %p19309_p10 = scmp.lt.s32.totalorder %s19307_s7, %s19303_s0 }
 0x23a   :  { %p19310_p11 = por %p19309_p10, %p19308_p9 }
 0x23c   :  { %357 = dma.hbm_to_vmem [thread:$0]  %s21973_s6, 16, %s355_s2, [#allocation27]  }
 0x23d   :  { %p19311_p12 = pnand %p19310_p11, %p19304_p8 }
 0x23f   :  { %19314 = shalt.err (!%p19311_p12)
}
 0x240   :  { %s21974_s10 = sld [smem:[#allocation136_spill]]  ;;  %s19907_s15 = smov [#allocation34]  }
 0x241   :  { %s396_s19 = sshll.u32 %s19907_s15, 4  ;;  %s19908_s22 = smov [#allocation37]   ;;  %s397_s19 = int_to_ptr.vmem [resolvable:$true] %s396_s19 }
 0x242   :  { %s418_s8 = sshll.u32 %s19908_s22, 4  ;;  %s19323_s16 = scalar_lea.vmem %s397_s19, 16  ;;  %s419_s8 = int_to_ptr.vmem [resolvable:$true] %s418_s8 }
 0x243   :  { %p19324_p13 = scmp.ne.s32.totalorder %s397_s19, %s19323_s16  ;;  %s19327_s18 = scalar_lea.vmem %s397_s19, 32 }
 0x244   :  { %p19328_p0 = scmp.lt.s32.totalorder %s397_s19, %s397_s19  ;;  %p19329_p1 = scmp.lt.s32.totalorder %s19327_s18, %s19323_s16 }
 0x246   :  { %379 = dma.hbm_to_vmem [thread:$0]  %s21974_s10, 16, %s377_s12, [#allocation30]  }
 0x247   :  { %p19330_p2 = por %p19329_p1, %p19328_p0 }
 0x249   :  { %p19331_p3 = pnand %p19330_p2, %p19324_p13 }
 0x24b   :  { %19334 = shalt.err (!%p19331_p3)
}
 0x24c   :  { %s21975_s3 = sld [smem:[#allocation137_spill]]  ;;  %s19343_s27 = scalar_lea.vmem %s419_s8, 16 }
 0x24d   :  { %p19344_p4 = scmp.ne.s32.totalorder %s419_s8, %s19343_s27  ;;  %s19347_s11 = scalar_lea.vmem %s419_s8, 32 }
 0x24e   :  { %p19348_p5 = scmp.lt.s32.totalorder %s419_s8, %s419_s8  ;;  %p19349_p6 = scmp.lt.s32.totalorder %s19347_s11, %s19343_s27 }
 0x250   :  { %p19350_p7 = por %p19349_p6, %p19348_p5 }
 0x252   :  { %399 = dma.hbm_to_vmem [thread:$0]  %s21975_s3, 16, %s397_s19, [#allocation33]  }
 0x253   :  { %p19351_p8 = pnand %p19350_p7, %p19344_p4 }
 0x255   :  { %19354 = shalt.err (!%p19351_p8)
}
 0x256   :  { %s21976_s25 = sld [smem:[#allocation138_spill]]  ;;  %s19909_s23 = smov [#allocation40]  }
 0x257   :  { %s438_s14 = sshll.u32 %s19909_s23, 4  ;;  %s19910_s26 = smov [#allocation43]   ;;  %s439_s14 = int_to_ptr.vmem [resolvable:$true] %s438_s14 }
 0x258   :  { %s460_s29 = sshll.u32 %s19910_s26, 4  ;;  %s19363_s17 = scalar_lea.vmem %s439_s14, 16  ;;  %s461_s29 = int_to_ptr.vmem [resolvable:$true] %s460_s29 }
 0x259   :  { %p19364_p9 = scmp.ne.s32.totalorder %s439_s14, %s19363_s17  ;;  %s19367_s28 = scalar_lea.vmem %s439_s14, 32 }
 0x25a   :  { %p19368_p10 = scmp.lt.s32.totalorder %s439_s14, %s439_s14  ;;  %p19369_p11 = scmp.lt.s32.totalorder %s19367_s28, %s19363_s17 }
 0x25c   :  { %421 = dma.hbm_to_vmem [thread:$0]  %s21976_s25, 16, %s419_s8, [#allocation36]  }
 0x25d   :  { %p19370_p12 = por %p19369_p11, %p19368_p10 }
 0x25f   :  { %p19371_p13 = pnand %p19370_p12, %p19364_p9 }
 0x261   :  { %19374 = shalt.err (!%p19371_p13)
}
 0x262   :  { %s21977_s2 = sld [smem:[#allocation139_spill]]  ;;  %s19383_s9 = scalar_lea.vmem %s461_s29, 16 }
 0x263   :  { %p19384_p0 = scmp.ne.s32.totalorder %s461_s29, %s19383_s9  ;;  %s19387_s12 = scalar_lea.vmem %s461_s29, 32 }
 0x264   :  { %p19388_p1 = scmp.lt.s32.totalorder %s461_s29, %s461_s29  ;;  %p19389_p2 = scmp.lt.s32.totalorder %s19387_s12, %s19383_s9 }
 0x266   :  { %p19390_p3 = por %p19389_p2, %p19388_p1 }
 0x268   :  { %441 = dma.hbm_to_vmem [thread:$0]  %s21977_s2, 16, %s439_s14, [#allocation39]  }
 0x269   :  { %p19391_p4 = pnand %p19390_p3, %p19384_p0 }
 0x26b   :  { %19394 = shalt.err (!%p19391_p4)
}
 0x26c   :  { %s21978_s20 = sld [smem:[#allocation140_spill]]  ;;  %s19911_s21 = smov [#allocation46]  }
 0x26d   :  { %s480_s6 = sshll.u32 %s19911_s21, 4  ;;  %s19912_s0 = smov [#allocation49]   ;;  %s481_s6 = int_to_ptr.vmem [resolvable:$true] %s480_s6 }
 0x26e   :  { %s502_s7 = sshll.u32 %s19912_s0, 4  ;;  %s19403_s10 = scalar_lea.vmem %s481_s6, 16  ;;  %s503_s7 = int_to_ptr.vmem [resolvable:$true] %s502_s7 }
 0x26f   :  { %p19404_p5 = scmp.ne.s32.totalorder %s481_s6, %s19403_s10  ;;  %s19407_s15 = scalar_lea.vmem %s481_s6, 32 }
 0x270   :  { %p19408_p6 = scmp.lt.s32.totalorder %s481_s6, %s481_s6  ;;  %p19409_p7 = scmp.lt.s32.totalorder %s19407_s15, %s19403_s10 }
 0x272   :  { %463 = dma.hbm_to_vmem [thread:$0]  %s21978_s20, 16, %s461_s29, [#allocation42]  }
 0x273   :  { %p19410_p8 = por %p19409_p7, %p19408_p6 }
 0x275   :  { %p19411_p9 = pnand %p19410_p8, %p19404_p5 }
 0x277   :  { %19414 = shalt.err (!%p19411_p9)
}
 0x278   :  { %s21979_s19 = sld [smem:[#allocation141_spill]]  ;;  %s19423_s22 = scalar_lea.vmem %s503_s7, 16 }
 0x279   :  { %p19424_p10 = scmp.ne.s32.totalorder %s503_s7, %s19423_s22  ;;  %s19427_s8 = scalar_lea.vmem %s503_s7, 32 }
 0x27a   :  { %p19428_p11 = scmp.lt.s32.totalorder %s503_s7, %s503_s7  ;;  %p19429_p12 = scmp.lt.s32.totalorder %s19427_s8, %s19423_s22 }
 0x27c   :  { %p19430_p13 = por %p19429_p12, %p19428_p11 }
 0x27e   :  { %483 = dma.hbm_to_vmem [thread:$0]  %s21979_s19, 16, %s481_s6, [#allocation45]  }
 0x27f   :  { %p19431_p0 = pnand %p19430_p13, %p19424_p10 }
 0x281   :  { %19434 = shalt.err (!%p19431_p0)
}
 0x282   :  { %s21980_s16 = sld [smem:[#allocation143_spill]]  ;;  %s19913_s18 = smov [#allocation52]  }
 0x283   :  { %s522_s3 = sshll.u32 %s19913_s18, 4  ;;  %s19914_s27 = smov [#allocation55]   ;;  %s523_s3 = int_to_ptr.vmem [resolvable:$true] %s522_s3 }
 0x284   :  { %s544_s11 = sshll.u32 %s19914_s27, 4  ;;  %s19443_s25 = scalar_lea.vmem %s523_s3, 16  ;;  %s545_s11 = int_to_ptr.vmem [resolvable:$true] %s544_s11 }
 0x285   :  { %p19444_p1 = scmp.ne.s32.totalorder %s523_s3, %s19443_s25  ;;  %s19447_s23 = scalar_lea.vmem %s523_s3, 32 }
 0x286   :  { %p19448_p2 = scmp.lt.s32.totalorder %s523_s3, %s523_s3  ;;  %p19449_p3 = scmp.lt.s32.totalorder %s19447_s23, %s19443_s25 }
 0x288   :  { %505 = dma.hbm_to_vmem [thread:$0]  %s21980_s16, 16, %s503_s7, [#allocation48]  }
 0x289   :  { %p19450_p4 = por %p19449_p3, %p19448_p2 }
 0x28b   :  { %p19451_p5 = pnand %p19450_p4, %p19444_p1 }
 0x28d   :  { %19454 = shalt.err (!%p19451_p5)
}
 0x28e   :  { %s21981_s14 = sld [smem:[#allocation145_spill]]  ;;  %s19463_s26 = scalar_lea.vmem %s545_s11, 16 }
 0x28f   :  { %p19464_p6 = scmp.ne.s32.totalorder %s545_s11, %s19463_s26  ;;  %s19467_s29 = scalar_lea.vmem %s545_s11, 32 }
 0x290   :  { %p19468_p7 = scmp.lt.s32.totalorder %s545_s11, %s545_s11  ;;  %p19469_p8 = scmp.lt.s32.totalorder %s19467_s29, %s19463_s26 }
 0x292   :  { %p19470_p9 = por %p19469_p8, %p19468_p7 }
 0x294   :  { %525 = dma.hbm_to_vmem [thread:$0]  %s21981_s14, 16, %s523_s3, [#allocation51]  }
 0x295   :  { %p19471_p10 = pnand %p19470_p9, %p19464_p6 }
 0x297   :  { %19474 = shalt.err (!%p19471_p10)
}
 0x298   :  { %s21982_s17 = sld [smem:[#allocation147_spill]]  ;;  %s19915_s28 = smov [#allocation58]  }
 0x299   :  { %s564_s2 = sshll.u32 %s19915_s28, 4  ;;  %s19916_s9 = smov [#allocation61]   ;;  %s565_s2 = int_to_ptr.vmem [resolvable:$true] %s564_s2 }
 0x29a   :  { %s586_s12 = sshll.u32 %s19916_s9, 4  ;;  %s19483_s20 = scalar_lea.vmem %s565_s2, 16  ;;  %s587_s12 = int_to_ptr.vmem [resolvable:$true] %s586_s12 }
 0x29b   :  { %p19484_p11 = scmp.ne.s32.totalorder %s565_s2, %s19483_s20  ;;  %s19487_s21 = scalar_lea.vmem %s565_s2, 32 }
 0x29c   :  { %p19488_p12 = scmp.lt.s32.totalorder %s565_s2, %s565_s2  ;;  %p19489_p13 = scmp.lt.s32.totalorder %s19487_s21, %s19483_s20 }
 0x29e   :  { %547 = dma.hbm_to_vmem [thread:$0]  %s21982_s17, 16, %s545_s11, [#allocation54]  }
 0x29f   :  { %p19490_p0 = por %p19489_p13, %p19488_p12 }
 0x2a1   :  { %p19491_p1 = pnand %p19490_p0, %p19484_p11 }
 0x2a3   :  { %19494 = shalt.err (!%p19491_p1)
}
 0x2a4   :  { %s21983_s6 = sld [smem:[#allocation149_spill]]  ;;  %s19503_s0 = scalar_lea.vmem %s587_s12, 16 }
 0x2a5   :  { %p19504_p2 = scmp.ne.s32.totalorder %s587_s12, %s19503_s0  ;;  %s19507_s7 = scalar_lea.vmem %s587_s12, 32 }
 0x2a6   :  { %p19508_p3 = scmp.lt.s32.totalorder %s587_s12, %s587_s12  ;;  %p19509_p4 = scmp.lt.s32.totalorder %s19507_s7, %s19503_s0 }
 0x2a8   :  { %p19510_p5 = por %p19509_p4, %p19508_p3 }
 0x2aa   :  { %567 = dma.hbm_to_vmem [thread:$0]  %s21983_s6, 16, %s565_s2, [#allocation57]  }
 0x2ab   :  { %p19511_p6 = pnand %p19510_p5, %p19504_p2 }
 0x2ad   :  { %19514 = shalt.err (!%p19511_p6)
}
 0x2ae   :  { %s21984_s10 = sld [smem:[#allocation151_spill]]  ;;  %s19917_s15 = smov [#allocation64]  }
 0x2af   :  { %s606_s19 = sshll.u32 %s19917_s15, 4  ;;  %s19918_s22 = smov [#allocation67]   ;;  %s607_s19 = int_to_ptr.vmem [resolvable:$true] %s606_s19 }
 0x2b0   :  { %s628_s8 = sshll.u32 %s19918_s22, 4  ;;  %s19523_s16 = scalar_lea.vmem %s607_s19, 16  ;;  %s629_s8 = int_to_ptr.vmem [resolvable:$true] %s628_s8 }
 0x2b1   :  { %p19524_p7 = scmp.ne.s32.totalorder %s607_s19, %s19523_s16  ;;  %s19527_s18 = scalar_lea.vmem %s607_s19, 32 }
 0x2b2   :  { %p19528_p8 = scmp.lt.s32.totalorder %s607_s19, %s607_s19  ;;  %p19529_p9 = scmp.lt.s32.totalorder %s19527_s18, %s19523_s16 }
 0x2b4   :  { %589 = dma.hbm_to_vmem [thread:$0]  %s21984_s10, 16, %s587_s12, [#allocation60]  }
 0x2b5   :  { %p19530_p10 = por %p19529_p9, %p19528_p8 }
 0x2b7   :  { %p19531_p11 = pnand %p19530_p10, %p19524_p7 }
 0x2b9   :  { %19534 = shalt.err (!%p19531_p11)
}
 0x2ba   :  { %s21985_s3 = sld [smem:[#allocation153_spill]]  ;;  %s19543_s27 = scalar_lea.vmem %s629_s8, 16 }
 0x2bb   :  { %p19544_p12 = scmp.ne.s32.totalorder %s629_s8, %s19543_s27  ;;  %s19547_s11 = scalar_lea.vmem %s629_s8, 32 }
 0x2bc   :  { %p19548_p13 = scmp.lt.s32.totalorder %s629_s8, %s629_s8  ;;  %p19549_p0 = scmp.lt.s32.totalorder %s19547_s11, %s19543_s27 }
 0x2be   :  { %p19550_p1 = por %p19549_p0, %p19548_p13 }
 0x2c0   :  { %609 = dma.hbm_to_vmem [thread:$0]  %s21985_s3, 16, %s607_s19, [#allocation63]  }
 0x2c1   :  { %p19551_p2 = pnand %p19550_p1, %p19544_p12 }
 0x2c3   :  { %19554 = shalt.err (!%p19551_p2)
}
 0x2c4   :  { %s21986_s25 = sld [smem:[#allocation155_spill]]  ;;  %s19919_s23 = smov [#allocation70]  }
 0x2c5   :  { %s648_s14 = sshll.u32 %s19919_s23, 4  ;;  %s19920_s26 = smov [#allocation73]   ;;  %s649_s14 = int_to_ptr.vmem [resolvable:$true] %s648_s14 }
 0x2c6   :  { %s670_s29 = sshll.u32 %s19920_s26, 4  ;;  %s19563_s17 = scalar_lea.vmem %s649_s14, 16  ;;  %s671_s29 = int_to_ptr.vmem [resolvable:$true] %s670_s29 }
 0x2c7   :  { %p19564_p3 = scmp.ne.s32.totalorder %s649_s14, %s19563_s17  ;;  %s19567_s28 = scalar_lea.vmem %s649_s14, 32 }
 0x2c8   :  { %p19568_p4 = scmp.lt.s32.totalorder %s649_s14, %s649_s14  ;;  %p19569_p5 = scmp.lt.s32.totalorder %s19567_s28, %s19563_s17 }
 0x2ca   :  { %631 = dma.hbm_to_vmem [thread:$0]  %s21986_s25, 16, %s629_s8, [#allocation66]  }
 0x2cb   :  { %p19570_p6 = por %p19569_p5, %p19568_p4 }
 0x2cd   :  { %p19571_p7 = pnand %p19570_p6, %p19564_p3 }
 0x2cf   :  { %19574 = shalt.err (!%p19571_p7)
}
 0x2d0   :  { %s21987_s2 = sld [smem:[#allocation157_spill]]  ;;  %s19583_s9 = scalar_lea.vmem %s671_s29, 32 }
 0x2d1   :  { %p19584_p8 = scmp.ne.s32.totalorder %s671_s29, %s19583_s9  ;;  %p19588_p9 = scmp.lt.s32.totalorder %s671_s29, %s671_s29 }
 0x2d2   :  { %p19589_p10 = scmp.lt.s32.totalorder %s19583_s9, %s19583_s9 }
 0x2d4   :  { %p19590_p11 = por %p19589_p10, %p19588_p9 }
 0x2d6   :  { %651 = dma.hbm_to_vmem [thread:$0]  %s21987_s2, 16, %s649_s14, [#allocation69]  }
 0x2d7   :  { %p19591_p12 = pnand %p19590_p11, %p19584_p8 }
 0x2d9   :  { %19594 = shalt.err (!%p19591_p12)
}
 0x2da   :  { %s21988_s12 = sld [smem:[#allocation159_spill]]  ;;  %s19921_s20 = smov [#allocation76]  }
 0x2db   :  { %s690_s21 = sshll.u32 %s19921_s20, 4  ;;  %s19922_s6 = smov [#allocation79]   ;;  %s691_s21 = int_to_ptr.vmem [resolvable:$true] %s690_s21 }
 0x2dc   :  { %s712_s0 = sshll.u32 %s19922_s6, 4  ;;  %s19603_s7 = scalar_lea.vmem %s691_s21, 32  ;;  %s713_s0 = int_to_ptr.vmem [resolvable:$true] %s712_s0 }
 0x2dd   :  { %p19604_p13 = scmp.ne.s32.totalorder %s691_s21, %s19603_s7  ;;  %p19608_p0 = scmp.lt.s32.totalorder %s691_s21, %s691_s21 }
 0x2de   :  { %p19609_p1 = scmp.lt.s32.totalorder %s19603_s7, %s19603_s7 }
 0x2e0   :  { %673 = dma.hbm_to_vmem [thread:$0]  %s21988_s12, 32, %s671_s29, [#allocation72]  }
 0x2e1   :  { %p19610_p2 = por %p19609_p1, %p19608_p0 }
 0x2e3   :  { %p19611_p3 = pnand %p19610_p2, %p19604_p13 }
 0x2e5   :  { %19614 = shalt.err (!%p19611_p3)
}
 0x2e6   :  { %s21989_s10 = sld [smem:[#allocation161_spill]]  ;;  %s19623_s15 = scalar_lea.vmem %s713_s0, 32 }
 0x2e7   :  { %p19624_p4 = scmp.ne.s32.totalorder %s713_s0, %s19623_s15  ;;  %p19628_p5 = scmp.lt.s32.totalorder %s713_s0, %s713_s0 }
 0x2e8   :  { %p19629_p6 = scmp.lt.s32.totalorder %s19623_s15, %s19623_s15 }
 0x2ea   :  { %p19630_p7 = por %p19629_p6, %p19628_p5 }
 0x2ec   :  { %693 = dma.hbm_to_vmem [thread:$0]  %s21989_s10, 32, %s691_s21, [#allocation75]  }
 0x2ed   :  { %p19631_p8 = pnand %p19630_p7, %p19624_p4 }
 0x2ef   :  { %19634 = shalt.err (!%p19631_p8)
}
 0x2f0   :  { %s21990_s19 = sld [smem:[#allocation163_spill]]  ;;  %s19923_s22 = smov [#allocation82]  }
 0x2f1   :  { %s732_s8 = sshll.u32 %s19923_s22, 4  ;;  %s19924_s16 = smov [#allocation85]   ;;  %s733_s8 = int_to_ptr.vmem [resolvable:$true] %s732_s8 }
 0x2f2   :  { %s753_s18 = sshll.u32 %s19924_s16, 4  ;;  %s19643_s3 = scalar_lea.vmem %s733_s8, 32  ;;  %s754_s18 = int_to_ptr.vmem [resolvable:$true] %s753_s18 }
 0x2f3   :  { %p19644_p9 = scmp.ne.s32.totalorder %s733_s8, %s19643_s3  ;;  %p19648_p10 = scmp.lt.s32.totalorder %s733_s8, %s733_s8 }
 0x2f4   :  { %p19649_p11 = scmp.lt.s32.totalorder %s19643_s3, %s19643_s3 }
 0x2f6   :  { %715 = dma.hbm_to_vmem [thread:$0]  %s21990_s19, 32, %s713_s0, [#allocation78]  }
 0x2f7   :  { %p19650_p12 = por %p19649_p11, %p19648_p10 }
 0x2f9   :  { %p19651_p13 = pnand %p19650_p12, %p19644_p9 }
 0x2fb   :  { %19654 = shalt.err (!%p19651_p13)
}
 0x2fc   :  { %s21991_s27 = sld [smem:[#allocation165_spill]]  ;;  %s19663_s11 = scalar_lea.vmem %s754_s18, 1024 }
 0x2fd   :  { %p19664_p0 = scmp.ne.s32.totalorder %s754_s18, %s19663_s11  ;;  %p19668_p1 = scmp.lt.s32.totalorder %s754_s18, %s754_s18 }
 0x2fe   :  { %p19669_p2 = scmp.lt.s32.totalorder %s19663_s11, %s19663_s11 }
 0x300   :  { %p19670_p3 = por %p19669_p2, %p19668_p1 }
 0x302   :  { %735 = dma.hbm_to_vmem [thread:$0]  %s21991_s27, 32, %s733_s8, [#allocation81]  }
 0x303   :  { %p19671_p4 = pnand %p19670_p3, %p19664_p0 }
 0x305   :  { %19674 = shalt.err (!%p19671_p4)
}
 0x306   :  { %s21992_s25 = sld [smem:[#allocation168_spill]]  ;;  %s19925_s23 = smov [#allocation88]  }
 0x307   :  { %s775_s14 = sshll.u32 %s19925_s23, 4  ;;  %s776_s14 = int_to_ptr.vmem [resolvable:$true] %s775_s14 }
 0x308   :  { %s19683_s26 = scalar_lea.vmem %s776_s14, 4096  ;;  %p19688_p6 = scmp.lt.s32.totalorder %s776_s14, %s776_s14 }
 0x309   :  { %p19684_p5 = scmp.ne.s32.totalorder %s776_s14, %s19683_s26  ;;  %p19689_p7 = scmp.lt.s32.totalorder %s19683_s26, %s19683_s26 }
 0x30b   :  { %p19690_p8 = por %p19689_p7, %p19688_p6 }
 0x30c   :  { %759 = dma.hbm_to_vmem [thread:$0]  %s21992_s25, 1024, %s754_s18, [#allocation84], %s19871_s24, %s19871_s24, %s19872_s1  }
 0x30d   :  { %p19691_p9 = pnand %p19690_p8, %p19684_p5 }
 0x30f   :  { %19694 = shalt.err (!%p19691_p9)
}
 0x310   :  { %s19926_s29 = smov 256   ;;  %s21993_s17 = sld [smem:[#allocation170_spill]] }
 0x311   :  { %s19927_s28 = smov 16   ;;  %s19928_s2 = smov [#allocation91]  }
 0x312   :  { %s797_s9 = sshll.u32 %s19928_s2, 4  ;;  %s798_s9 = int_to_ptr.vmem [resolvable:$true] %s797_s9 }
 0x313   :  { %s19703_s12 = scalar_lea.vmem %s798_s9, 4096  ;;  %p19708_p11 = scmp.lt.s32.totalorder %s798_s9, %s798_s9 }
 0x314   :  { %p19704_p10 = scmp.ne.s32.totalorder %s798_s9, %s19703_s12  ;;  %p19709_p12 = scmp.lt.s32.totalorder %s19703_s12, %s19703_s12 }
 0x316   :  { %781 = dma.hbm_to_vmem [thread:$0]  %s21993_s17, 4096, %s776_s14, [#allocation87], %s19926_s29, %s19926_s29, %s19927_s28  }
 0x317   :  { %p19710_p13 = por %p19709_p12, %p19708_p11 }
 0x319   :  { %p19711_p0 = pnand %p19710_p13, %p19704_p10 }
 0x31b   :  { %19714 = shalt.err (!%p19711_p0)
}
 0x31c   :  { %803 = dma.hbm_to_vmem [thread:$0]  %s20251_s5, 4096, %s798_s9, [#allocation90], %s19926_s29, %s19926_s29, %s19927_s28  }
 0x31d   :  { %19735 = dma.done.wait [#allocation3], 512  }
 0x31e   :  { %19736 = vsyncadd [#allocation3], 4294966784 }
 0x31f   :  { %19737 = dma.done.wait [#allocation6], 1408  }
 0x320   :  { %19738 = vsyncadd [#allocation6], 4294965888 }
 0x321   :  { %19739 = dma.done.wait [#allocation9], 8192  }
 0x322   :  { %19740 = vsyncadd [#allocation9], 4294959104 }
 0x323   :  { %19741 = dma.done.wait [#allocation12], 2560  }
 0x324   :  { %19742 = vsyncadd [#allocation12], 4294964736 }
 0x325   :  { %19743 = dma.done.wait [#allocation15], 32  }
 0x326   :  { %19744 = vsyncadd [#allocation15], 4294967264 }
 0x327   :  { %19745 = dma.done.wait [#allocation18], 32  }
 0x328   :  { %19746 = vsyncadd [#allocation18], 4294967264 }
 0x329   :  { %19747 = dma.done.wait [#allocation21], 32  }
 0x32a   :  { %19748 = vsyncadd [#allocation21], 4294967264 }
 0x32b   :  { %19749 = dma.done.wait [#allocation24], 1040  }
 0x32c   :  { %19750 = vsyncadd [#allocation24], 4294966256 }
 0x32d   :  { %19751 = dma.done.wait [#allocation27], 32  }
 0x32e   :  { %19752 = vsyncadd [#allocation27], 4294967264 }
 0x32f   :  { %19753 = dma.done.wait [#allocation30], 18448  }
 0x330   :  { %19754 = vsyncadd [#allocation30], 4294948848 }
 0x331   :  { %19755 = dma.done.wait [#allocation33], 32  }
 0x332   :  { %19756 = vsyncadd [#allocation33], 4294967264 }
 0x333   :  { %19757 = dma.done.wait [#allocation36], 9232  }
 0x334   :  { %19758 = vsyncadd [#allocation36], 4294958064 }
 0x335   :  { %19759 = dma.done.wait [#allocation39], 32  }
 0x336   :  { %19760 = vsyncadd [#allocation39], 4294967264 }
 0x337   :  { %19761 = dma.done.wait [#allocation42], 18448  }
 0x338   :  { %19762 = vsyncadd [#allocation42], 4294948848 }
 0x339   :  { %19763 = dma.done.wait [#allocation45], 32  }
 0x33a   :  { %19764 = vsyncadd [#allocation45], 4294967264 }
 0x33b   :  { %19765 = dma.done.wait [#allocation48], 9232  }
 0x33c   :  { %19766 = vsyncadd [#allocation48], 4294958064 }
 0x33d   :  { %19767 = dma.done.wait [#allocation51], 32  }
 0x33e   :  { %19768 = vsyncadd [#allocation51], 4294967264 }
 0x33f   :  { %19769 = dma.done.wait [#allocation54], 9232  }
 0x340   :  { %19770 = vsyncadd [#allocation54], 4294958064 }
 0x341   :  { %19771 = dma.done.wait [#allocation57], 32  }
 0x342   :  { %19772 = vsyncadd [#allocation57], 4294967264 }
 0x343   :  { %19773 = dma.done.wait [#allocation60], 9232  }
 0x344   :  { %19774 = vsyncadd [#allocation60], 4294958064 }
 0x345   :  { %19775 = dma.done.wait [#allocation63], 32  }
 0x346   :  { %19776 = vsyncadd [#allocation63], 4294967264 }
 0x347   :  { %19777 = dma.done.wait [#allocation66], 9232  }
 0x348   :  { %19778 = vsyncadd [#allocation66], 4294958064 }
 0x349   :  { %19779 = dma.done.wait [#allocation69], 32  }
 0x34a   :  { %19780 = vsyncadd [#allocation69], 4294967264 }
 0x34b   :  { %19781 = dma.done.wait [#allocation72], 9248  }
 0x34c   :  { %19782 = vsyncadd [#allocation72], 4294958048 }
 0x34d   :  { %19783 = dma.done.wait [#allocation75], 64  }
 0x34e   :  { %19784 = vsyncadd [#allocation75], 4294967232 }
 0x34f   :  { %19785 = dma.done.wait [#allocation78], 2080  }
 0x350   :  { %19786 = vsyncadd [#allocation78], 4294965216 }
 0x351   :  { %19787 = dma.done.wait [#allocation81], 64  }
 0x352   :  { %19788 = vsyncadd [#allocation81], 4294967232 }
 0x353   :  { %19789 = dma.done.wait [#allocation84], 1040  }
 0x354   :  { %19790 = vsyncadd [#allocation84], 4294966256 }
 0x355   :  { %19791 = dma.done.wait [#allocation87], 4112  }
 0x356   :  { %19792 = vsyncadd [#allocation87], 4294963184 }
 0x357   :  { %19793 = dma.done.wait [#allocation90], 4112  }
 0x358   :  { %19794 = vsyncadd [#allocation90], 4294963184  ;;  %v19929_v0 = vmov 0   ;;  %v17189_v1 = vld [vmem:[#allocation53 + $0x1fc] ss:$36 sps:$4 sm:$0xff]   ;;  %v985_v31 = vld [vmem:[%s20256_s30 + $0x8] sm:$0xff] }
 0x359   :  { %1475 = vmatprep.mubr.bf16.mxu0 %v19929_v0  ;;  %1546 = vmatprep.mubr.bf16.mxu1 %v19929_v0  ;;  %v17191_v2 = vld [vmem:[#allocation53 + $0x1f8] ss:$36 sps:$4 sm:$0xff]   ;;  %v17194_v4 = vld [vmem:[#allocation53 + $0x1b0] ss:$36 sps:$4 sm:$0xff]   ;;  %v17200_v6 = vld [vmem:[#allocation53 + $0x204] ss:$36 sps:$4 sm:$0xff]  }
 0x35a   :  { %1443 = vmatprep.subr.bf16.mxu0 %v17189_v1  ;;  %v17192_v3 = vld [vmem:[#allocation53 + $0x1b4] ss:$36 sps:$4 sm:$0xff]   ;;  %v17195_v5 = vld [vmem:[#allocation53 + $0x16c] ss:$36 sps:$4 sm:$0xff]   ;;  %v17203_v7 = vld [vmem:[#allocation53 + $0x200] ss:$36 sps:$4 sm:$0xff]   ;;  %1514 = vmatprep.subr.bf16.mxu1 %v17200_v6 }
 0x35b   :  { %1444 = vmatpush1.bf16.msra.mxu0 %v17191_v2  ;;  %v17197_v8 = vld [vmem:[#allocation53 + $0x168] ss:$36 sps:$4 sm:$0xff]   ;;  %1515 = vmatpush1.bf16.msra.mxu1 %v17203_v7  ;;  %v17206_v10 = vld [vmem:[#allocation53 + $0x1bc] ss:$36 sps:$4 sm:$0xff]   ;;  %v17212_v14 = vld [vmem:[#allocation53 + $0x174] ss:$36 sps:$4 sm:$0xff]  }
 0x35c   :  { %1445 = vmatprep.subr.bf16.mxu0 %v17192_v3  ;;  %v17198_v9 = vld [vmem:[#allocation53 + $0x124] ss:$36 sps:$4 sm:$0xff]   ;;  %v17209_v11 = vld [vmem:[#allocation53 + $0x1b8] ss:$36 sps:$4 sm:$0xff]   ;;  %1516 = vmatprep.subr.bf16.mxu1 %v17206_v10  ;;  %v17215_v15 = vld [vmem:[#allocation53 + $0x170] ss:$36 sps:$4 sm:$0xff]  }
 0x35d   :  { %v17202_v12 = vld [vmem:[#allocation53 + $0x120] ss:$36 sps:$4 sm:$0xff]   ;;  %v17218_v16 = vld [vmem:[#allocation53 + $0x12c] ss:$36 sps:$4 sm:$0xff]   ;;  %v17208_v17 = vld [vmem:[#allocation53 + $0xd8] ss:$36 sps:$4 sm:$0xff]  }
 0x35e   :  { %v17204_v13 = vld [vmem:[#allocation53 + $0xdc] ss:$36 sps:$4 sm:$0xff]   ;;  %v17210_v18 = vld [vmem:[#allocation53 + $0x94] ss:$36 sps:$4 sm:$0xff]   ;;  %v17221_v19 = vld [vmem:[#allocation53 + $0x128] ss:$36 sps:$4 sm:$0xff]  }
 0x35f   :  { %1446 = vmatpush1.bf16.msra.mxu0 %v17194_v4  ;;  %1517 = vmatpush1.bf16.msra.mxu1 %v17209_v11  ;;  %v17224_v20 = vld [vmem:[#allocation53 + $0xe4] ss:$36 sps:$4 sm:$0xff]   ;;  %v17214_v21 = vld [vmem:[#allocation53 + $0x90] ss:$36 sps:$4 sm:$0xff]   ;;  %v17228_v24 = vld [vmem:[#allocation53 + $0x9c] ss:$36 sps:$4 sm:$0xff]  }
 0x360   :  { %1447 = vmatprep.subr.bf16.mxu0 %v17195_v5  ;;  %1518 = vmatprep.subr.bf16.mxu1 %v17212_v14  ;;  %v17216_v22 = vld [vmem:[#allocation53 + $0x4c] ss:$36 sps:$4 sm:$0xff]   ;;  %v17227_v23 = vld [vmem:[#allocation53 + $0xe0] ss:$36 sps:$4 sm:$0xff]   ;;  %v17230_v27 = vld [vmem:[#allocation53 + $0x98] ss:$36 sps:$4 sm:$0xff]  }
 0x361   :  { %v17220_v25 = vld [vmem:[#allocation53 + $0x48] ss:$36 sps:$4 sm:$0xff]   ;;  %v17231_v28 = vld [vmem:[#allocation53 + $0x54] ss:$36 sps:$4 sm:$0xff]   ;;  %v17226_v29 = vld [vmem:[#allocation53] ss:$36 sps:$4 sm:$0xff]  }
 0x362   :  { %v17222_v26 = vld [vmem:[#allocation53 + $0x4] ss:$36 sps:$4 sm:$0xff]   ;;  %v17233_v32 = vld [vmem:[#allocation53 + $0x50] ss:$36 sps:$4 sm:$0xff]   ;;  %v17245_v43 = vld [vmem:[#allocation53 + $0x17c] ss:$36 sps:$4 sm:$0xff]  }
 0x363   :  { %1448 = vmatpush1.bf16.msra.mxu0 %v17197_v8  ;;  %1519 = vmatpush1.bf16.msra.mxu1 %v17215_v15  ;;  %v984_v30 = vld [vmem:[%s20256_s30] sm:$0xff]  ;;  %v17236_v33 = vld [vmem:[#allocation53 + $0x20c] ss:$36 sps:$4 sm:$0xff]   ;;  %v987_v40 = vld [vmem:[%s20256_s30 + $0x18] sm:$0xff]  ;;  %vm19931_vm0 = vmmov 0   ;;  %vm1828_vm1 = vcmask 1041408  }
 0x364   :  { %1449 = vmatprep.subr.bf16.mxu0 %v17198_v9  ;;  %1520 = vmatprep.subr.bf16.mxu1 %v17218_v16  ;;  %v17237_v34 = vld [vmem:[#allocation53 + $0xc] ss:$36 sps:$4 sm:$0xff]   ;;  %v20382_v35 = vpack.c.bf16 %v985_v31, %v984_v30  ;;  %v17242_v38 = vld [vmem:[#allocation53 + $0x1c4] ss:$36 sps:$4 sm:$0xff]   ;;  %v17263_v42 = vld [vmem:[#allocation53 + $0x214] ss:$36 sps:$4 sm:$0xff]  }
 0x365   :  { %v17234_v36 = vld [vmem:[#allocation53 + $0x208] ss:$36 sps:$4 sm:$0xff]   ;;  %v17240_v41 = vld [vmem:[#allocation53 + $0x1c0] ss:$36 sps:$4 sm:$0xff]   ;;  %v17261_v44 = vld [vmem:[#allocation53 + $0x210] ss:$36 sps:$4 sm:$0xff]  }
 0x366   :  { %v17239_v37 = vld [vmem:[#allocation53 + $0x8] ss:$36 sps:$4 sm:$0xff]   ;;  %v17243_v47 = vld [vmem:[#allocation53 + $0x178] ss:$36 sps:$4 sm:$0xff]   ;;  %v17246_v53 = vld [vmem:[#allocation53 + $0x130] ss:$36 sps:$4 sm:$0xff]  }
 0x367   :  { %1450 = vmatpush1.bf16.msra.mxu0 %v17202_v12  ;;  %1521 = vmatpush1.bf16.msra.mxu1 %v17221_v19  ;;  %v986_v39 = vld [vmem:[%s20256_s30 + $0x10] sm:$0xff]  ;;  %v988_v49 = vld [vmem:[%s20256_s30 + $0x20] sm:$0xff]  ;;  %v989_v52 = vld [vmem:[%s20256_s30 + $0x28] sm:$0xff]  ;;  %vm1806_vm2 = vcmask 408576   ;;  %vm5972_vm3 = vcmask 588800   ;;  %s21994_s5 = sld [smem:[#allocation126_spill]] }
 0x368   :  { %1451 = vmatprep.subr.bf16.mxu0 %v17204_v13  ;;  %1522 = vmatprep.subr.bf16.mxu1 %v17224_v20  ;;  %v20388_v45 = vpack.c.bf16 %v987_v40, %v986_v39  ;;  %v17266_v46 = vld [vmem:[#allocation53 + $0x1cc] ss:$36 sps:$4 sm:$0xff]   ;;  %v17248_v48 = vld [vmem:[#allocation53 + $0x134] ss:$36 sps:$4 sm:$0xff]   ;;  %v17269_v51 = vld [vmem:[#allocation53 + $0x184] ss:$36 sps:$4 sm:$0xff]   ;;  %v20396_v56 = vpack.c.bf16 %v989_v52, %v988_v49 }
 0x369   :  { %v17264_v50 = vld [vmem:[#allocation53 + $0x1c8] ss:$36 sps:$4 sm:$0xff]   ;;  %v17267_v55 = vld [vmem:[#allocation53 + $0x180] ss:$36 sps:$4 sm:$0xff]   ;;  %v17270_v62 = vld [vmem:[#allocation53 + $0x138] ss:$36 sps:$4 sm:$0xff]  }
 0x36a   :  { %v17251_v54 = vld [vmem:[#allocation53 + $0xec] ss:$36 sps:$4 sm:$0xff]   ;;  %v17272_v57 = vld [vmem:[#allocation53 + $0x13c] ss:$36 sps:$4 sm:$0xff]   ;;  %v17254_v59 = vld [vmem:[#allocation53 + $0xa4] ss:$36 sps:$4 sm:$0xff]  }
 0x36b   :  { %1452 = vmatpush1.bf16.msra.mxu0 %v17208_v17  ;;  %1523 = vmatpush1.bf16.msra.mxu1 %v17227_v23  ;;  %v17249_v58 = vld [vmem:[#allocation53 + $0xe8] ss:$36 sps:$4 sm:$0xff]   ;;  %v17252_v61 = vld [vmem:[#allocation53 + $0xa0] ss:$36 sps:$4 sm:$0xff]   ;;  %v17275_v1 = vld [vmem:[#allocation53 + $0xf4] ss:$36 sps:$4 sm:$0xff]  }
 0x36c   :  { %1453 = vmatprep.subr.bf16.mxu0 %v17210_v18  ;;  %1524 = vmatprep.subr.bf16.mxu1 %v17228_v24  ;;  %v990_v60 = vld [vmem:[%s20256_s30 + $0x30] sm:$0x3]  ;;  %v17257_v63 = vld [vmem:[#allocation53 + $0x5c] ss:$36 sps:$4 sm:$0xff]   ;;  %v17273_v2 = vld [vmem:[#allocation53 + $0xf0] ss:$36 sps:$4 sm:$0xff]  }
 0x36d   :  { %v17278_v3 = vld [vmem:[#allocation53 + $0xac] ss:$36 sps:$4 sm:$0xff]   ;;  %v17255_v4 = vld [vmem:[#allocation53 + $0x58] ss:$36 sps:$4 sm:$0xff]   ;;  %v20403_v5 = vpack.c.bf16 %v990_v60, %v990_v60  ;;  %v17281_v8 = vld [vmem:[#allocation53 + $0x64] ss:$36 sps:$4 sm:$0xff]  }
 0x36e   :  { %v17260_v6 = vld [vmem:[#allocation53 + $0x14] ss:$36 sps:$4 sm:$0xff]   ;;  %v17276_v7 = vld [vmem:[#allocation53 + $0xa8] ss:$36 sps:$4 sm:$0xff]   ;;  %v17279_v11 = vld [vmem:[#allocation53 + $0x60] ss:$36 sps:$4 sm:$0xff]  }
 0x36f   :  { %1454 = vmatpush1.bf16.msra.mxu0 %v17214_v21  ;;  %1525 = vmatpush1.bf16.msra.mxu1 %v17230_v27  ;;  %v17258_v9 = vld [vmem:[#allocation53 + $0x10] ss:$36 sps:$4 sm:$0xff]   ;;  %v17285_v10 = vld [vmem:[#allocation53 + $0x218] ss:$36 sps:$4 sm:$0xff]   ;;  %v17287_v15 = vld [vmem:[#allocation53 + $0x188] ss:$36 sps:$4 sm:$0xff]  }
 0x370   :  { %1455 = vmatprep.subr.bf16.mxu0 %v17216_v22  ;;  %1526 = vmatprep.subr.bf16.mxu1 %v17231_v28  ;;  %v17284_v12 = vld [vmem:[#allocation53 + $0x1c] ss:$36 sps:$4 sm:$0xff]   ;;  %v17286_v13 = vld [vmem:[#allocation53 + $0x1d0] ss:$36 sps:$4 sm:$0xff]   ;;  %v17291_v19 = vld [vmem:[#allocation53 + $0x68] ss:$36 sps:$4 sm:$0xff]  }
 0x371   :  { %v17282_v14 = vld [vmem:[#allocation53 + $0x18] ss:$36 sps:$4 sm:$0xff]   ;;  %v17288_v16 = vld [vmem:[#allocation53 + $0x140] ss:$36 sps:$4 sm:$0xff]   ;;  %v17290_v18 = vld [vmem:[#allocation53 + $0xb0] ss:$36 sps:$4 sm:$0xff]  }
 0x372   :  { %v17289_v17 = vld [vmem:[#allocation53 + $0xf8] ss:$36 sps:$4 sm:$0xff]   ;;  %v17292_v20 = vld [vmem:[#allocation53 + $0x20] ss:$36 sps:$4 sm:$0xff]   ;;  %v19930_v21 = vmov 0.0   ;;  %vm6850_vm4 = vcmask 64512  }
 0x373   :  { %1456 = vmatpush1.bf16.msra.mxu0 %v17220_v25  ;;  %1527 = vmatpush1.bf16.msra.mxu1 %v17233_v32  ;;  %s21995_s30 = sld [smem:[#allocation166_spill]]  ;;  %vm8337_vm5 = vcmask 15360   ;;  %vm12619_vm6 = vcmask 261120   ;;  %s19932_s20 = smov [#allocation92]  }
 0x374   :  { %1457 = vmatprep.subr.bf16.mxu0 %v17222_v26  ;;  %1528 = vmatprep.subr.bf16.mxu1 %v17237_v34  ;;  %s21996_s24 = sld [smem:[#allocation131_spill]]  ;;  %s14101_s21 = sshll.u32 %s19932_s20, 4  ;;  %s14102_s21 = int_to_ptr.vmem [resolvable:$true] %s14101_s21 }
 0x375   :  { %s21997_s1 = sld [smem:[#allocation127_spill]]  ;;  %s19715_s6 = scalar_lea.vmem %s14102_s21, 32 }
 0x376   :  { %p19716_p1 = scmp.ne.s32.totalorder %s14102_s21, %s19715_s6  ;;  %p19720_p2 = scmp.lt.s32.totalorder %s14102_s21, %s14102_s21 }
 0x377   :  { %1458 = vmatpush1.bf16.msra.mxu0 %v17226_v29  ;;  %1529 = vmatpush1.bf16.msra.mxu1 %v17239_v37  ;;  %p19721_p3 = scmp.lt.s32.totalorder %s19715_s6, %s19715_s6 }
 0x378   :  { %1585 = vmatprep.subr.bf16.mxu0 %v17236_v33  ;;  %1656 = vmatprep.subr.bf16.mxu1 %v17263_v42 }
 0x379   :  { %p19722_p4 = por %p19721_p3, %p19720_p2 }
 0x37a   :  { %1476 = vmatmul.mubr.bf16.vlgmr.msra.gmra.mxu0 %v20382_v35  ;;  %1547 = vmatmul.mubr.bf16.vlgmr.msra.gmra.mxu1 %v20382_v35 }
 0x37b   :  { %1485 = vmatprep.mubr.bf16.mxu0 %v19929_v0  ;;  %1586 = vmatpush1.bf16.msra.mxu0 %v17234_v36  ;;  %p19723_p5 = pnand %p19722_p4, %p19716_p1 }
 0x37c   :  { %1587 = vmatprep.subr.bf16.mxu0 %v17242_v38  ;;  %1556 = vmatprep.mubr.bf16.mxu1 %v19929_v0 }
 0x37d   :  { %1657 = vmatpush1.bf16.msra.mxu1 %v17261_v44 }
 0x37e   :  { %1658 = vmatprep.subr.bf16.mxu1 %v17266_v46 }
 0x37f   :  { %1588 = vmatpush1.bf16.msra.mxu0 %v17240_v41 }
 0x380   :  { %1589 = vmatprep.subr.bf16.mxu0 %v17245_v43 }
 0x381   :  { %1659 = vmatpush1.bf16.msra.mxu1 %v17264_v50 }
 0x382   :  { %1486 = vmatmul.mubr.bf16.gmra.mxu0 %v20388_v45  ;;  %1660 = vmatprep.subr.bf16.mxu1 %v17269_v51 }
 0x383   :  { %1495 = vmatprep.mubr.bf16.mxu0 %v19929_v0  ;;  %1590 = vmatpush1.bf16.msra.mxu0 %v17243_v47 }
 0x384   :  { %1591 = vmatprep.subr.bf16.mxu0 %v17248_v48  ;;  %1557 = vmatmul.mubr.bf16.gmra.mxu1 %v20388_v45 }
 0x385   :  { %1566 = vmatprep.mubr.bf16.mxu1 %v19929_v0  ;;  %1661 = vmatpush1.bf16.msra.mxu1 %v17267_v55  ;;  %v1791_v55 = vld [vmem:[#allocation10] sm:$0xff] }
 0x386   :  { %1662 = vmatprep.subr.bf16.mxu1 %v17272_v57 }
 0x387   :  { %1592 = vmatpush1.bf16.msra.mxu0 %v17246_v53 }
 0x388   :  { %1593 = vmatprep.subr.bf16.mxu0 %v17251_v54 }
 0x389   :  { %1663 = vmatpush1.bf16.msra.mxu1 %v17270_v62 }
 0x38a   :  { %1496 = vmatmul.mubr.bf16.gmra.mxu0 %v20396_v56  ;;  %1664 = vmatprep.subr.bf16.mxu1 %v17275_v1  ;;  %v1800_v1 = vld [vmem:[#allocation10 + $0x40] sm:$0xff] }
 0x38b   :  { %1505 = vmatprep.mubr.bf16.mxu0 %v19929_v0  ;;  %1594 = vmatpush1.bf16.msra.mxu0 %v17249_v58  ;;  %v1799_v58 = vld [vmem:[#allocation10 + $0x38] sm:$0xff] }
 0x38c   :  { %1595 = vmatprep.subr.bf16.mxu0 %v17254_v59  ;;  %1567 = vmatmul.mubr.bf16.gmra.mxu1 %v20396_v56 }
 0x38d   :  { %1576 = vmatprep.mubr.bf16.mxu1 %v19929_v0  ;;  %1665 = vmatpush1.bf16.msra.mxu1 %v17273_v2 }
 0x38e   :  { %1666 = vmatprep.subr.bf16.mxu1 %v17278_v3 }
 0x38f   :  { %1596 = vmatpush1.bf16.msra.mxu0 %v17252_v61  ;;  %v1792_v61 = vld [vmem:[#allocation10 + $0x8] sm:$0xff] }
 0x390   :  { %1597 = vmatprep.subr.bf16.mxu0 %v17257_v63 }
 0x391   :  { %1667 = vmatpush1.bf16.msra.mxu1 %v17276_v7 }
 0x392   :  { %1506 = vmatmul.mubr.bf16.gmra.mxu0 %v20403_v5  ;;  %1668 = vmatprep.subr.bf16.mxu1 %v17281_v8 }
 0x393   :  { %1598 = vmatpush1.bf16.msra.mxu0 %v17255_v4  ;;  %1617 = vmatprep.mubr.bf16.mxu0 %v19929_v0 }
 0x394   :  { %1599 = vmatprep.subr.bf16.mxu0 %v17260_v6  ;;  %1577 = vmatmul.mubr.bf16.gmra.mxu1 %v20403_v5  ;;  %v1793_v6 = vld [vmem:[#allocation10 + $0x10] sm:$0xff] }
 0x395   :  { %1688 = vmatprep.mubr.bf16.mxu1 %v19929_v0  ;;  %1669 = vmatpush1.bf16.msra.mxu1 %v17279_v11 }
 0x396   :  { %1670 = vmatprep.subr.bf16.mxu1 %v17284_v12 }
 0x397   :  { %1600 = vmatpush1.bf16.msra.mxu0 %v17258_v9  ;;  %v1801_v9 = vld [vmem:[#allocation10 + $0x48] sm:$0xff] }
 0x398   :  { %15950 = vmatprep.subr.bf16.mxu0 %v17285_v10 }
 0x399   :  { %1671 = vmatpush1.bf16.msra.mxu1 %v17282_v14  ;;  %v1794_v14 = vld [vmem:[#allocation10 + $0x18] sm:$0xff] }
 0x39a   :  { %1618 = vmatmul.mubr.bf16.vlgmr.msra.gmra.mxu0 %v20382_v35  ;;  %15974 = vmatprep.subr.mxu1 %v19930_v21 }
 0x39b   :  { %1627 = vmatprep.mubr.bf16.mxu0 %v19929_v0  ;;  %15951 = vmatpush3.bf16.msra.mxu0 %v17285_v10 }
 0x39c   :  { %15952 = vmatprep.subr.bf16.mxu0 %v17286_v13  ;;  %1689 = vmatmul.mubr.bf16.vlgmr.msra.gmra.mxu1 %v20382_v35 }
 0x39d   :  { %1698 = vmatprep.mubr.bf16.mxu1 %v19929_v0 }
 0x39f   :  { %15953 = vmatpush3.bf16.msra.mxu0 %v17286_v13 }
 0x3a0   :  { %15954 = vmatprep.subr.bf16.mxu0 %v17287_v15 }
 0x3a2   :  { %1628 = vmatmul.mubr.bf16.gmra.mxu0 %v20388_v45 }
 0x3a3   :  { %1637 = vmatprep.mubr.bf16.mxu0 %v19929_v0  ;;  %15955 = vmatpush3.bf16.msra.mxu0 %v17287_v15 }
 0x3a4   :  { %15956 = vmatprep.subr.bf16.mxu0 %v17288_v16  ;;  %1699 = vmatmul.mubr.bf16.gmra.mxu1 %v20388_v45 }
 0x3a5   :  { %1708 = vmatprep.mubr.bf16.mxu1 %v19929_v0 }
 0x3a7   :  { %15957 = vmatpush3.bf16.msra.mxu0 %v17288_v16 }
 0x3a8   :  { %15958 = vmatprep.subr.bf16.mxu0 %v17289_v17 }
 0x3aa   :  { %1638 = vmatmul.mubr.bf16.gmra.mxu0 %v20396_v56 }
 0x3ab   :  { %1647 = vmatprep.mubr.bf16.mxu0 %v19929_v0  ;;  %15959 = vmatpush3.bf16.msra.mxu0 %v17289_v17  ;;  %v1802_v17 = vld [vmem:[#allocation10 + $0x50] sm:$0xff] }
 0x3ac   :  { %15960 = vmatprep.subr.bf16.mxu0 %v17290_v18  ;;  %1709 = vmatmul.mubr.bf16.gmra.mxu1 %v20396_v56 }
 0x3ad   :  { %1718 = vmatprep.mubr.bf16.mxu1 %v19929_v0 }
 0x3af   :  { %15961 = vmatpush3.bf16.msra.mxu0 %v17290_v18 }
 0x3b0   :  { %15962 = vmatprep.subr.bf16.mxu0 %v17291_v19 }
 0x3b2   :  { %1648 = vmatmul.mubr.bf16.gmra.mxu0 %v20403_v5 }
 0x3b3   :  { %15963 = vmatpush3.bf16.msra.mxu0 %v17291_v19  ;;  %15966 = vmatprep.mubr.bf16.mxu0 %v20382_v35 }
 0x3b4   :  { %15964 = vmatprep.subr.bf16.mxu0 %v17292_v20  ;;  %1719 = vmatmul.mubr.bf16.gmra.mxu1 %v20403_v5 }
 0x3b5   :  { %15988 = vmatprep.mubr.msk.f32.mxu1 %vm19931_vm0, %v19930_v21 }
 0x3b7   :  { %15965 = vmatpush3.bf16.msra.mxu0 %v17292_v20  ;;  %v1795_v20 = vld [vmem:[#allocation10 + $0x20] sm:$0xff] }
 0x3b8   :  { %16009 = vmatprep.subr.mxu0 %v19930_v21 }
 0x3ba   :  { %15967 = vmatmul.mubr.bf16.vlgmr.msra.gmra.mxu0 %v20388_v45 }
 0x3bb   :  { %15970 = vmatprep.mubr.bf16.mxu0 %v20396_v56 }
 0x3c2   :  { %15971 = vmatmul.mubr.bf16.gmra.mxu0 %v20403_v5 }
 0x3c3   :  { %16023 = vmatprep.mubr.msk.f32.mxu0 %vm19931_vm0, %v19930_v21 }
 0x43a   :  { %v1477_v22 = vpop.f32.mrf.mxu0  ;;  %v20437_v25 = vpop.f32.mrf.mxu1 }
 0x43c   :  { %v20435_v23 = vpop.f32.mrf.mxu0  ;;  %v20439_v27 = vpop.f32.mrf.mxu1 }
 0x43e   :  { %v1481_v24 = vpop.f32.mrf.mxu0  ;;  %v20441_v29 = vpop.f32.mrf.mxu1 }
 0x440   :  { %v1483_v26 = vpop.f32.mrf.mxu0  ;;  %v20443_v31 = vpop.f32.mrf.mxu1 }
 0x442   :  { %v1487_v28 = vpop.f32.mrf.mxu0 }
 0x444   :  { %v1489_v30 = vpop.f32.mrf.mxu0  ;;  %v20445_v33 = vpop.f32.mrf.mxu1 }
 0x446   :  { %v1491_v32 = vpop.f32.mrf.mxu0  ;;  %v20447_v35 = vpop.f32.mrf.mxu1 }
 0x448   :  { %v1493_v34 = vpop.f32.mrf.mxu0  ;;  %v20449_v37 = vpop.f32.mrf.mxu1 }
 0x44a   :  { %v1497_v36 = vpop.f32.mrf.mxu0  ;;  %v20451_v39 = vpop.f32.mrf.mxu1 }
 0x44c   :  { %v1499_v38 = vpop.f32.mrf.mxu0  ;;  %v20453_v41 = vpop.f32.mrf.mxu1 }
 0x44e   :  { %v1501_v40 = vpop.f32.mrf.mxu0  ;;  %v20455_v43 = vpop.f32.mrf.mxu1 }
 0x450   :  { %v1503_v42 = vpop.f32.mrf.mxu0  ;;  %v20458_v45 = vpop.f32.mrf.mxu1 }
 0x452   :  { %v1507_v44 = vpop.f32.mrf.mxu0  ;;  %v1574_v47 = vpop.f32.mrf.mxu1 }
 0x453   :  { %16010 = vmatpush3.msk.msra.mxu0 %vm1828_vm1, %v1507_v44  ;;  %v2197_v44 = vld [vmem:[#allocation10 + $0xb0] sm:$0xff] }
 0x454   :  { %v1509_v46 = vpop.f32.mrf.mxu0  ;;  %16011 = vmatprep.subr.mxu0 %v19930_v21  ;;  %v1578_v49 = vpop.f32.mrf.mxu1 }
 0x455   :  { %15975 = vmatpush3.msk.msra.mxu1 %vm1828_vm1, %v1509_v46  ;;  %16012 = vmatpush3.msra.mxu0 %v1501_v40 }
 0x456   :  { %v1511_v48 = vpop.f32.mrf.mxu0  ;;  %15976 = vmatprep.subr.mxu1 %v19930_v21  ;;  %16013 = vmatprep.subr.mxu0 %v19930_v21  ;;  %v1580_v51 = vpop.f32.mrf.mxu1 }
 0x457   :  { %15977 = vmatpush3.msra.mxu1 %v1503_v42  ;;  %16014 = vmatpush3.msra.mxu0 %v1497_v36  ;;  %v1805_v36 = vld [vmem:[#allocation10 + $0x68] sm:$0x3]  ;;  %v2057_v42 = vld [vmem:[#allocation10 + $0x70] sm:$0xff] }
 0x458   :  { %v1512_v50 = vpop.f32.mrf.mxu0  ;;  %15978 = vmatprep.subr.mxu1 %v19930_v21  ;;  %16015 = vmatprep.subr.mxu0 %v19930_v21  ;;  %v1582_v53 = vpop.f32.mrf.mxu1 }
 0x459   :  { %15979 = vmatpush3.msra.mxu1 %v1499_v38  ;;  %16016 = vmatpush3.msra.mxu0 %v1491_v32  ;;  %v2059_v50 = vld [vmem:[#allocation10 + $0x80] sm:$0xff]  ;;  %v2060_v53 = vld [vmem:[#allocation10 + $0x88] sm:$0xff] }
 0x45a   :  { %15980 = vmatprep.subr.mxu1 %v19930_v21  ;;  %16017 = vmatprep.subr.mxu0 %v19930_v21  ;;  %v20468_v52 = vpop.f32.mrf.mxu0  ;;  %v1583_v56 = vpop.f32.mrf.mxu1 }
 0x45b   :  { %15981 = vmatpush3.msra.mxu1 %v1493_v34  ;;  %16018 = vmatpush3.msra.mxu0 %v1487_v28  ;;  %v2061_v56 = vld [vmem:[#allocation10 + $0x90] sm:$0xff] }
 0x45c   :  { %15982 = vmatprep.subr.mxu1 %v19930_v21  ;;  %16019 = vmatprep.subr.mxu0 %v19930_v21  ;;  %v20472_v54 = vpop.f32.mrf.mxu0  ;;  %v20482_v60 = vpop.f32.mrf.mxu1 }
 0x45d   :  { %15983 = vmatpush3.msra.mxu1 %v1489_v30  ;;  %16020 = vmatpush3.msra.mxu0 %v1481_v24  ;;  %v1803_v24 = vld [vmem:[#allocation10 + $0x58] sm:$0xff]  ;;  %v1796_v30 = vld [vmem:[#allocation10 + $0x28] sm:$0xff] }
 0x45e   :  { %15984 = vmatprep.subr.mxu1 %v19930_v21  ;;  %16021 = vmatprep.subr.mxu0 %v19930_v21  ;;  %v20476_v57 = vpop.f32.mrf.mxu0  ;;  %v20490_v63 = vpop.f32.mrf.mxu1 }
 0x45f   :  { %15985 = vmatpush3.msra.mxu1 %v1483_v26  ;;  %16022 = vmatpush3.msra.mxu0 %v1477_v22 }
 0x460   :  { %15986 = vmatprep.subr.mxu1 %v19930_v21  ;;  %16024 = vmatmul.mubr.msk.f32.vlgmr.msra.gmra.mxu0 %vm1806_vm2, %v1791_v55  ;;  %v20480_v59 = vpop.f32.mrf.mxu0  ;;  %v20499_v3 = vpop.f32.mrf.mxu1  ;;  %v2200_v55 = vld [vmem:[#allocation10 + $0xc8] sm:$0xff] }
 0x461   :  { %16079 = vmatprep.subr.mxu0 %v19930_v21  ;;  %15987 = vmatpush3.msra.mxu1 %v20435_v23 }
 0x462   :  { %16080 = vmatpush3.msk.msra.mxu0 %vm1828_vm1, %v1580_v51  ;;  %15989 = vmatmul.mubr.msk.f32.vlgmr.msra.gmra.mxu1 %vm1806_vm2, %v1799_v58  ;;  %v20488_v62 = vpop.f32.mrf.mxu0  ;;  %v20506_v5 = vpop.f32.mrf.mxu1  ;;  %v2199_v51 = vld [vmem:[#allocation10 + $0xc0] sm:$0xff]  ;;  %v2201_v58 = vld [vmem:[#allocation10 + $0xd0] sm:$0xff] }
 0x463   :  { %16044 = vmatprep.subr.mxu1 %v19930_v21  ;;  %16081 = vmatprep.subr.mxu0 %v19930_v21 }
 0x464   :  { %16026 = vmatprep.mubr.msk.f32.mxu0 %vm19931_vm0, %v19930_v21  ;;  %16045 = vmatpush3.msk.msra.mxu1 %vm1828_vm1, %v1578_v49  ;;  %v20497_v2 = vpop.f32.mrf.mxu0  ;;  %v20515_v8 = vpop.f32.mrf.mxu1  ;;  %v2198_v49 = vld [vmem:[#allocation10 + $0xb8] sm:$0xff] }
 0x465   :  { %16082 = vmatpush3.msra.mxu0 %v1574_v47  ;;  %16046 = vmatprep.subr.mxu1 %v19930_v21  ;;  %v2058_v47 = vld [vmem:[#allocation10 + $0x78] sm:$0xff] }
 0x466   :  { %16027 = vmatmul.mubr.msk.f32.gmra.mxu0 %vm1806_vm2, %v1792_v61  ;;  %16083 = vmatprep.subr.mxu0 %v19930_v21  ;;  %v20504_v4 = vpop.f32.mrf.mxu0  ;;  %v20524_v11 = vpop.f32.mrf.mxu1  ;;  %v2335_v61 = vld [vmem:[#allocation10 + $0xe0] sm:$0xff] }
 0x467   :  { %15991 = vmatprep.mubr.msk.f32.mxu1 %vm19931_vm0, %v19930_v21  ;;  %16047 = vmatpush3.msra.mxu1 %v20458_v45 }
 0x468   :  { %16084 = vmatpush3.msra.mxu0 %v20455_v43  ;;  %15992 = vmatmul.mubr.msk.f32.gmra.mxu1 %vm1806_vm2, %v1800_v1  ;;  %v20513_v7 = vpop.f32.mrf.mxu0  ;;  %v20532_v13 = vpop.f32.mrf.mxu1  ;;  %v2475_v1 = vld [vmem:[#allocation10 + $0x120] sm:$0xff] }
 0x469   :  { %16048 = vmatprep.subr.mxu1 %v19930_v21  ;;  %16085 = vmatprep.subr.mxu0 %v19930_v21 }
 0x46a   :  { %16029 = vmatprep.mubr.msk.f32.mxu0 %vm19931_vm0, %v19930_v21  ;;  %16049 = vmatpush3.msra.mxu1 %v20453_v41  ;;  %v20522_v10 = vpop.f32.mrf.mxu0  ;;  %v20541_v16 = vpop.f32.mrf.mxu1 }
 0x46b   :  { %16086 = vmatpush3.msra.mxu0 %v20451_v39  ;;  %16050 = vmatprep.subr.mxu1 %v19930_v21  ;;  %v2196_v39 = vld [vmem:[#allocation10 + $0xa8] sm:$0xff] }
 0x46c   :  { %16030 = vmatmul.mubr.msk.f32.gmra.mxu0 %vm1806_vm2, %v1793_v6  ;;  %16087 = vmatprep.subr.mxu0 %v19930_v21  ;;  %v20530_v12 = vpop.f32.mrf.mxu0  ;;  %v20548_v19 = vpop.f32.mrf.mxu1  ;;  %v2338_v6 = vld [vmem:[#allocation10 + $0xf8] sm:$0xff] }
 0x46d   :  { %15994 = vmatprep.mubr.msk.f32.mxu1 %vm19931_vm0, %v19930_v21  ;;  %16051 = vmatpush3.msra.mxu1 %v20449_v37 }
 0x46e   :  { %16088 = vmatpush3.msra.mxu0 %v20447_v35  ;;  %15995 = vmatmul.mubr.msk.f32.gmra.mxu1 %vm1806_vm2, %v1801_v9  ;;  %v20539_v15 = vpop.f32.mrf.mxu0  ;;  %v20554_v23 = vpop.f32.mrf.mxu1  ;;  %v2480_v9 = vld [vmem:[#allocation10 + $0x148] sm:$0x3] }
 0x46f   :  { %16052 = vmatprep.subr.mxu1 %v19930_v21  ;;  %16089 = vmatprep.subr.mxu0 %v19930_v21 }
 0x470   :  { %16032 = vmatprep.mubr.msk.f32.mxu0 %vm19931_vm0, %v19930_v21  ;;  %16053 = vmatpush3.msra.mxu1 %v20445_v33  ;;  %v1645_v18 = vpop.f32.mrf.mxu0  ;;  %v20561_v28 = vpop.f32.mrf.mxu1 }
 0x471   :  { %16090 = vmatpush3.msra.mxu0 %v20443_v31  ;;  %16054 = vmatprep.subr.mxu1 %v19930_v21 }
 0x472   :  { %16033 = vmatmul.mubr.msk.f32.gmra.mxu0 %vm1806_vm2, %v1794_v14  ;;  %16091 = vmatprep.subr.mxu0 %v19930_v21  ;;  %v1649_v22 = vpop.f32.mrf.mxu0  ;;  %v2753_v14 = vld [vmem:[#allocation10 + $0x190] sm:$0xff] }
 0x473   :  { %15997 = vmatprep.mubr.msk.f32.mxu1 %vm19931_vm0, %v19930_v21  ;;  %16055 = vmatpush3.msra.mxu1 %v20441_v29  ;;  %v20568_v29 = vpop.f32.mrf.mxu1 }
 0x474   :  { %16092 = vmatpush3.msra.mxu0 %v20439_v27  ;;  %15998 = vmatmul.mubr.msk.f32.gmra.mxu1 %vm1806_vm2, %v1802_v17  ;;  %v1651_v26 = vpop.f32.mrf.mxu0  ;;  %v1804_v27 = vld [vmem:[#allocation10 + $0x60] sm:$0xff]  ;;  %v2616_v17 = vld [vmem:[#allocation10 + $0x168] sm:$0xff] }
 0x475   :  { %16056 = vmatprep.subr.mxu1 %v19930_v21  ;;  %16035 = vmatprep.mubr.msk.f32.mxu0 %vm19931_vm0, %v19930_v21  ;;  %v20576_v33 = vpop.f32.mrf.mxu1 }
 0x476   :  { %16057 = vmatpush3.msra.mxu1 %v20437_v25  ;;  %16036 = vmatmul.mubr.msk.f32.gmra.mxu0 %vm1806_vm2, %v1795_v20  ;;  %v1653_v31 = vpop.f32.mrf.mxu0  ;;  %v1797_v25 = vld [vmem:[#allocation10 + $0x30] sm:$0x3]  ;;  %v2756_v20 = vld [vmem:[#allocation10 + $0x1a8] sm:$0xff] }
 0x477   :  { %16000 = vmatprep.mubr.msk.f32.mxu1 %vm19931_vm0, %v19930_v21  ;;  %16038 = vmatprep.mubr.msk.f32.mxu0 %vm19931_vm0, %v19930_v21  ;;  %v20582_v34 = vpop.f32.mrf.mxu1  ;;  %v2893_v31 = vld [vmem:[#allocation10 + $0x1d0] sm:$0xff] }
 0x478   :  { %16001 = vmatmul.mubr.msk.f32.gmra.mxu1 %vm1806_vm2, %v1803_v24  ;;  %16149 = vmatprep.subr.mxu0 %v19930_v21  ;;  %v1654_v32 = vpop.f32.mrf.mxu0  ;;  %v2619_v24 = vld [vmem:[#allocation10 + $0x180] sm:$0x3] }
 0x479   :  { %16003 = vmatprep.mubr.msk.f32.mxu1 %vm19931_vm0, %v19930_v21  ;;  %16114 = vmatprep.subr.mxu1 %v19930_v21  ;;  %v1724_v37 = vpop.f32.mrf.mxu1  ;;  %v2896_v32 = vld [vmem:[#allocation10 + $0x1e8] sm:$0xff] }
 0x47a   :  { %16039 = vmatmul.mubr.msk.f32.gmra.mxu0 %vm1806_vm2, %v1796_v30  ;;  %v20584_v35 = vpop.f32.mrf.mxu0  ;;  %v2892_v30 = vld [vmem:[#allocation10 + $0x1c8] sm:$0xff] }
 0x47b   :  { %16041 = vmatprep.mubr.msk.f32.mxu0 %vm19931_vm0, %v19930_v21  ;;  %v1725_v40 = vpop.f32.mrf.mxu1 }
 0x47c   :  { %16004 = vmatmul.mubr.msk.f32.gmra.mxu1 %vm1806_vm2, %v1804_v27  ;;  %v20589_v38 = vpop.f32.mrf.mxu0  ;;  %v2895_v27 = vld [vmem:[#allocation10 + $0x1e0] sm:$0xff] }
 0x47d   :  { %16006 = vmatprep.mubr.msk.f32.mxu1 %vm19931_vm0, %v19930_v21 }
 0x47e   :  { %16042 = vmatmul.mubr.msk.f32.gmra.mxu0 %vm1806_vm2, %v1797_v25  ;;  %v20594_v41 = vpop.f32.mrf.mxu0 }
 0x47f   :  { %16093 = vmatprep.mubr.msk.f32.mxu0 %vm19931_vm0, %v19930_v21 }
 0x480   :  { %16007 = vmatmul.mubr.msk.f32.gmra.mxu1 %vm1806_vm2, %v1805_v36  ;;  %v20599_v43 = vpop.f32.mrf.mxu0 }
 0x481   :  { %16058 = vmatprep.mubr.msk.f32.mxu1 %vm19931_vm0, %v19930_v21 }
 0x482   :  { %16094 = vmatmul.mubr.msk.f32.vlgmr.msra.gmra.mxu0 %vm1806_vm2, %v2196_v39  ;;  %v20604_v45 = vpop.f32.mrf.mxu0 }
 0x483   :  { %16150 = vmatpush3.msk.msra.mxu0 %vm1828_vm1, %v1651_v26  ;;  %16096 = vmatprep.mubr.msk.f32.mxu0 %vm19931_vm0, %v19930_v21  ;;  %v2758_v26 = vld [vmem:[#allocation10 + $0x1b8] sm:$0x3] }
 0x484   :  { %16151 = vmatprep.subr.mxu0 %v19930_v21  ;;  %16059 = vmatmul.mubr.msk.f32.vlgmr.msra.gmra.mxu1 %vm1806_vm2, %v2057_v42  ;;  %v20611_v46 = vpop.f32.mrf.mxu0 }
 0x485   :  { %16115 = vmatpush3.msk.msra.mxu1 %vm1828_vm1, %v1649_v22  ;;  %16152 = vmatpush3.msra.mxu0 %v1645_v18  ;;  %v2755_v18 = vld [vmem:[#allocation10 + $0x1a0] sm:$0xff]  ;;  %v2618_v22 = vld [vmem:[#allocation10 + $0x178] sm:$0xff] }
 0x486   :  { %16116 = vmatprep.subr.mxu1 %v19930_v21  ;;  %16153 = vmatprep.subr.mxu0 %v19930_v21  ;;  %v15973_v48 = vpop.f32.mrf.mxu0 }
 0x487   :  { %16097 = vmatmul.mubr.msk.f32.gmra.mxu0 %vm1806_vm2, %v2197_v44  ;;  %16117 = vmatpush3.msra.mxu1 %v20539_v15  ;;  %v2615_v15 = vld [vmem:[#allocation10 + $0x160] sm:$0xff] }
 0x488   :  { %16154 = vmatpush3.msra.mxu0 %v20530_v12  ;;  %16061 = vmatprep.mubr.msk.f32.mxu1 %vm19931_vm0, %v19930_v21  ;;  %v2614_v12 = vld [vmem:[#allocation10 + $0x158] sm:$0xff] }
 0x489   :  { %16118 = vmatprep.subr.mxu1 %v19930_v21  ;;  %16155 = vmatprep.subr.mxu0 %v19930_v21 }
 0x48a   :  { %16062 = vmatmul.mubr.msk.f32.gmra.mxu1 %vm1806_vm2, %v2058_v47  ;;  %16156 = vmatpush3.msra.mxu0 %v20513_v7  ;;  %v2477_v7 = vld [vmem:[#allocation10 + $0x130] sm:$0xff] }
 0x48b   :  { %16119 = vmatpush3.msra.mxu1 %v20522_v10  ;;  %16099 = vmatprep.mubr.msk.f32.mxu0 %vm19931_vm0, %v19930_v21  ;;  %v2613_v10 = vld [vmem:[#allocation10 + $0x150] sm:$0xff] }
 0x48c   :  { %16120 = vmatprep.subr.mxu1 %v19930_v21  ;;  %16157 = vmatprep.subr.mxu0 %v19930_v21 }
 0x48d   :  { %16100 = vmatmul.mubr.msk.f32.gmra.mxu0 %vm1806_vm2, %v2198_v49  ;;  %16121 = vmatpush3.msra.mxu1 %v20504_v4  ;;  %v2476_v4 = vld [vmem:[#allocation10 + $0x128] sm:$0xff] }
 0x48e   :  { %16158 = vmatpush3.msra.mxu0 %v20497_v2  ;;  %16064 = vmatprep.mubr.msk.f32.mxu1 %vm19931_vm0, %v19930_v21  ;;  %v2337_v2 = vld [vmem:[#allocation10 + $0xf0] sm:$0xff] }
 0x48f   :  { %16122 = vmatprep.subr.mxu1 %v19930_v21  ;;  %16159 = vmatprep.subr.mxu0 %v19930_v21 }
 0x490   :  { %16065 = vmatmul.mubr.msk.f32.gmra.mxu1 %vm1806_vm2, %v2059_v50  ;;  %16160 = vmatpush3.msra.mxu0 %v20480_v59  ;;  %v2474_v59 = vld [vmem:[#allocation10 + $0x118] sm:$0xff] }
 0x491   :  { %16123 = vmatpush3.msra.mxu1 %v20488_v62  ;;  %16102 = vmatprep.mubr.msk.f32.mxu0 %vm19931_vm0, %v19930_v21  ;;  %v2336_v62 = vld [vmem:[#allocation10 + $0xe8] sm:$0xff] }
 0x492   :  { %16124 = vmatprep.subr.mxu1 %v19930_v21  ;;  %16161 = vmatprep.subr.mxu0 %v19930_v21 }
 0x493   :  { %16103 = vmatmul.mubr.msk.f32.gmra.mxu0 %vm1806_vm2, %v2199_v51  ;;  %16125 = vmatpush3.msra.mxu1 %v20476_v57  ;;  %v2063_v57 = vld [vmem:[#allocation10 + $0xa0] sm:$0x3] }
 0x494   :  { %16162 = vmatpush3.msra.mxu0 %v20472_v54  ;;  %16067 = vmatprep.mubr.msk.f32.mxu1 %vm19931_vm0, %v19930_v21  ;;  %v2062_v54 = vld [vmem:[#allocation10 + $0x98] sm:$0xff] }
 0x495   :  { %16126 = vmatprep.subr.mxu1 %v19930_v21  ;;  %16068 = vmatmul.mubr.msk.f32.gmra.mxu1 %vm1806_vm2, %v2060_v53 }
 0x496   :  { %16127 = vmatpush3.msra.mxu1 %v20468_v52  ;;  %16105 = vmatprep.mubr.msk.f32.mxu0 %vm19931_vm0, %v19930_v21  ;;  %v2202_v52 = vld [vmem:[#allocation10 + $0xd8] sm:$0x3] }
 0x497   :  { %16106 = vmatmul.mubr.msk.f32.gmra.mxu0 %vm1806_vm2, %v2200_v55  ;;  %16070 = vmatprep.mubr.msk.f32.mxu1 %vm19931_vm0, %v19930_v21 }
 0x498   :  { %16108 = vmatprep.mubr.msk.f32.mxu0 %vm19931_vm0, %v19930_v21  ;;  %16219 = vmatprep.subr.mxu0 %v19930_v21 }
 0x499   :  { %16071 = vmatmul.mubr.msk.f32.gmra.mxu1 %vm1806_vm2, %v2061_v56  ;;  %16184 = vmatprep.subr.mxu1 %v19930_v21 }
 0x49a   :  { %16073 = vmatprep.mubr.msk.f32.mxu1 %vm19931_vm0, %v19930_v21 }
 0x49b   :  { %16109 = vmatmul.mubr.msk.f32.gmra.mxu0 %vm1806_vm2, %v2201_v58 }
 0x49c   :  { %16111 = vmatprep.mubr.msk.f32.mxu0 %vm19931_vm0, %v19930_v21 }
 0x49d   :  { %16074 = vmatmul.mubr.msk.f32.gmra.mxu1 %vm1806_vm2, %v2062_v54 }
 0x49e   :  { %16076 = vmatprep.mubr.msk.f32.mxu1 %vm19931_vm0, %v19930_v21 }
 0x49f   :  { %16112 = vmatmul.mubr.msk.f32.gmra.mxu0 %vm1806_vm2, %v2202_v52 }
 0x4a0   :  { %16163 = vmatprep.mubr.msk.f32.mxu0 %vm19931_vm0, %v19930_v21 }
 0x4a1   :  { %16077 = vmatmul.mubr.msk.f32.gmra.mxu1 %vm1806_vm2, %v2063_v57 }
 0x4a2   :  { %16128 = vmatprep.mubr.msk.f32.mxu1 %vm19931_vm0, %v19930_v21 }
 0x4a3   :  { %16164 = vmatmul.mubr.msk.f32.vlgmr.msra.gmra.mxu0 %vm1806_vm2, %v2474_v59 }
 0x4a4   :  { %16220 = vmatpush3.msk.msra.mxu0 %vm1828_vm1, %v20582_v34  ;;  %16166 = vmatprep.mubr.msk.f32.mxu0 %vm19931_vm0, %v19930_v21 }
 0x4a5   :  { %16221 = vmatprep.subr.mxu0 %v19930_v21  ;;  %16129 = vmatmul.mubr.msk.f32.vlgmr.msra.gmra.mxu1 %vm1806_vm2, %v2335_v61 }
 0x4a6   :  { %16185 = vmatpush3.msk.msra.mxu1 %vm1828_vm1, %v20576_v33  ;;  %16222 = vmatpush3.msra.mxu0 %v20568_v29  ;;  %v2894_v29 = vld [vmem:[#allocation10 + $0x1d8] sm:$0xff]  ;;  %v2897_v33 = vld [vmem:[#allocation10 + $0x1f0] sm:$0x3] }
 0x4a7   :  { %16186 = vmatprep.subr.mxu1 %v19930_v21  ;;  %16223 = vmatprep.subr.mxu0 %v19930_v21 }
 0x4a8   :  { %16187 = vmatpush3.msra.mxu1 %v20561_v28  ;;  %16224 = vmatpush3.msra.mxu0 %v20554_v23  ;;  %v2757_v23 = vld [vmem:[#allocation10 + $0x1b0] sm:$0xff]  ;;  %v2891_v28 = vld [vmem:[#allocation10 + $0x1c0] sm:$0xff] }
 0x4a9   :  { %16131 = vmatprep.mubr.msk.f32.mxu1 %vm19931_vm0, %v19930_v21  ;;  %16188 = vmatprep.subr.mxu1 %v19930_v21 }
 0x4aa   :  { %16225 = vmatprep.subr.mxu0 %v19930_v21  ;;  %16132 = vmatmul.mubr.msk.f32.gmra.mxu1 %vm1806_vm2, %v2336_v62 }
 0x4ab   :  { %16189 = vmatpush3.msra.mxu1 %v20548_v19  ;;  %16226 = vmatpush3.msra.mxu0 %v20541_v16  ;;  %v2754_v16 = vld [vmem:[#allocation10 + $0x198] sm:$0xff]  ;;  %v2617_v19 = vld [vmem:[#allocation10 + $0x170] sm:$0xff] }
 0x4ac   :  { %16190 = vmatprep.subr.mxu1 %v19930_v21  ;;  %16227 = vmatprep.subr.mxu0 %v19930_v21 }
 0x4ad   :  { %16167 = vmatmul.mubr.msk.f32.gmra.mxu0 %vm1806_vm2, %v2475_v1  ;;  %16191 = vmatpush3.msra.mxu1 %v20532_v13  ;;  %v1780_v13 = vpop.f32.mrf.mxu0 }
 0x4ae   :  { %16228 = vmatpush3.msra.mxu0 %v20524_v11  ;;  %16134 = vmatprep.mubr.msk.f32.mxu1 %vm19931_vm0, %v19930_v21  ;;  %v2752_v11 = vld [vmem:[#allocation10 + $0x188] sm:$0xff] }
 0x4af   :  { %16192 = vmatprep.subr.mxu1 %v19930_v21  ;;  %16229 = vmatprep.subr.mxu0 %v19930_v21 }
 0x4b0   :  { %16135 = vmatmul.mubr.msk.f32.gmra.mxu1 %vm1806_vm2, %v2337_v2  ;;  %16230 = vmatpush3.msra.mxu0 %v20506_v5  ;;  %v2339_v5 = vld [vmem:[#allocation10 + $0x100] sm:$0xff] }
 0x4b1   :  { %16193 = vmatpush3.msra.mxu1 %v20515_v8  ;;  %16169 = vmatprep.mubr.msk.f32.mxu0 %vm19931_vm0, %v19930_v21  ;;  %v2478_v8 = vld [vmem:[#allocation10 + $0x138] sm:$0xff] }
 0x4b2   :  { %16194 = vmatprep.subr.mxu1 %v19930_v21  ;;  %16231 = vmatprep.subr.mxu0 %v19930_v21 }
 0x4b3   :  { %16170 = vmatmul.mubr.msk.f32.gmra.mxu0 %vm1806_vm2, %v2476_v4  ;;  %16195 = vmatpush3.msra.mxu1 %v20499_v3  ;;  %v2341_v3 = vld [vmem:[#allocation10 + $0x110] sm:$0x3] }
 0x4b4   :  { %16232 = vmatpush3.msra.mxu0 %v20490_v63  ;;  %16137 = vmatprep.mubr.msk.f32.mxu1 %vm19931_vm0, %v19930_v21  ;;  %v2340_v63 = vld [vmem:[#allocation10 + $0x108] sm:$0xff] }
 0x4b5   :  { %16196 = vmatprep.subr.mxu1 %v19930_v21  ;;  %16138 = vmatmul.mubr.msk.f32.gmra.mxu1 %vm1806_vm2, %v2338_v6 }
 0x4b6   :  { %16197 = vmatpush3.msra.mxu1 %v20482_v60  ;;  %16172 = vmatprep.mubr.msk.f32.mxu0 %vm19931_vm0, %v19930_v21  ;;  %v2479_v60 = vld [vmem:[#allocation10 + $0x140] sm:$0xff] }
 0x4b7   :  { %16173 = vmatmul.mubr.msk.f32.gmra.mxu0 %vm1806_vm2, %v2477_v7  ;;  %16140 = vmatprep.mubr.msk.f32.mxu1 %vm19931_vm0, %v19930_v21 }
 0x4b8   :  { %16175 = vmatprep.mubr.msk.f32.mxu0 %vm19931_vm0, %v19930_v21  ;;  %16254 = vmatprep.subr.mxu1 %v19930_v21 }
 0x4b9   :  { %16141 = vmatmul.mubr.msk.f32.gmra.mxu1 %vm1806_vm2, %v2339_v5 }
 0x4ba   :  { %16143 = vmatprep.mubr.msk.f32.mxu1 %vm19931_vm0, %v19930_v21 }
 0x4bb   :  { %16176 = vmatmul.mubr.msk.f32.gmra.mxu0 %vm1806_vm2, %v2478_v8 }
 0x4bc   :  { %16178 = vmatprep.mubr.msk.f32.mxu0 %vm19931_vm0, %v19930_v21 }
 0x4bd   :  { %16144 = vmatmul.mubr.msk.f32.gmra.mxu1 %vm1806_vm2, %v2340_v63 }
 0x4be   :  { %16146 = vmatprep.mubr.msk.f32.mxu1 %vm19931_vm0, %v19930_v21 }
 0x4bf   :  { %16179 = vmatmul.mubr.msk.f32.gmra.mxu0 %vm1806_vm2, %v2479_v60 }
 0x4c0   :  { %16181 = vmatprep.mubr.msk.f32.mxu0 %vm19931_vm0, %v19930_v21 }
 0x4c1   :  { %16147 = vmatmul.mubr.msk.f32.gmra.mxu1 %vm1806_vm2, %v2341_v3 }
 0x4c2   :  { %16198 = vmatprep.mubr.msk.f32.mxu1 %vm19931_vm0, %v19930_v21 }
 0x4c3   :  { %16182 = vmatmul.mubr.msk.f32.gmra.mxu0 %vm1806_vm2, %v2480_v9 }
 0x4c4   :  { %16233 = vmatprep.mubr.msk.f32.mxu0 %vm19931_vm0, %v19930_v21 }
 0x4c5   :  { %16199 = vmatmul.mubr.msk.f32.vlgmr.msra.gmra.mxu1 %vm1806_vm2, %v2613_v10 }
 0x4c6   :  { %16255 = vmatpush3.msk.msra.mxu1 %vm1828_vm1, %v20604_v45  ;;  %16201 = vmatprep.mubr.msk.f32.mxu1 %vm19931_vm0, %v19930_v21 }
 0x4c7   :  { %16256 = vmatprep.subr.mxu1 %v19930_v21  ;;  %16234 = vmatmul.mubr.msk.f32.vlgmr.msra.gmra.mxu0 %vm1806_vm2, %v2752_v11 }
 0x4c8   :  { %16257 = vmatpush3.msra.mxu1 %v1780_v13  ;;  %16236 = vmatprep.mubr.msk.f32.mxu0 %vm19931_vm0, %v19930_v21 }
 0x4c9   :  { %16258 = vmatprep.subr.mxu1 %v19930_v21  ;;  %16202 = vmatmul.mubr.msk.f32.gmra.mxu1 %vm1806_vm2, %v2614_v12 }
 0x4ca   :  { %16259 = vmatpush3.msra.mxu1 %v20611_v46  ;;  %16204 = vmatprep.mubr.msk.f32.mxu1 %vm19931_vm0, %v19930_v21 }
 0x4cb   :  { %16260 = vmatprep.subr.mxu1 %v19930_v21  ;;  %16237 = vmatmul.mubr.msk.f32.gmra.mxu0 %vm1806_vm2, %v2753_v14 }
 0x4cc   :  { %16261 = vmatpush3.msra.mxu1 %v20594_v41  ;;  %16239 = vmatprep.mubr.msk.f32.mxu0 %vm19931_vm0, %v19930_v21 }
 0x4cd   :  { %16262 = vmatprep.subr.mxu1 %v19930_v21  ;;  %16205 = vmatmul.mubr.msk.f32.gmra.mxu1 %vm1806_vm2, %v2615_v15 }
 0x4ce   :  { %16263 = vmatpush3.msra.mxu1 %v20584_v35  ;;  %16207 = vmatprep.mubr.msk.f32.mxu1 %vm19931_vm0, %v19930_v21 }
 0x4cf   :  { %16264 = vmatprep.subr.mxu1 %v19930_v21  ;;  %16240 = vmatmul.mubr.msk.f32.gmra.mxu0 %vm1806_vm2, %v2754_v16 }
 0x4d0   :  { %16265 = vmatpush3.msra.mxu1 %v20599_v43  ;;  %16242 = vmatprep.mubr.msk.f32.mxu0 %vm19931_vm0, %v19930_v21 }
 0x4d1   :  { %16266 = vmatprep.subr.mxu1 %v19930_v21  ;;  %16208 = vmatmul.mubr.msk.f32.gmra.mxu1 %vm1806_vm2, %v2616_v17 }
 0x4d2   :  { %16267 = vmatpush3.msra.mxu1 %v20589_v38  ;;  %16210 = vmatprep.mubr.msk.f32.mxu1 %vm19931_vm0, %v19930_v21 }
 0x4d3   :  { %16243 = vmatmul.mubr.msk.f32.gmra.mxu0 %vm1806_vm2, %v2755_v18 }
 0x4d4   :  { %16245 = vmatprep.mubr.msk.f32.mxu0 %vm19931_vm0, %v19930_v21 }
 0x4d5   :  { %16211 = vmatmul.mubr.msk.f32.gmra.mxu1 %vm1806_vm2, %v2617_v19 }
 0x4d6   :  { %16213 = vmatprep.mubr.msk.f32.mxu1 %vm19931_vm0, %v19930_v21 }
 0x4d7   :  { %16246 = vmatmul.mubr.msk.f32.gmra.mxu0 %vm1806_vm2, %v2756_v20 }
 0x4d8   :  { %16248 = vmatprep.mubr.msk.f32.mxu0 %vm19931_vm0, %v19930_v21 }
 0x4d9   :  { %16214 = vmatmul.mubr.msk.f32.gmra.mxu1 %vm1806_vm2, %v2618_v22 }
 0x4da   :  { %16216 = vmatprep.mubr.msk.f32.mxu1 %vm19931_vm0, %v19930_v21 }
 0x4db   :  { %16249 = vmatmul.mubr.msk.f32.gmra.mxu0 %vm1806_vm2, %v2757_v23 }
 0x4dc   :  { %16251 = vmatprep.mubr.msk.f32.mxu0 %vm19931_vm0, %v19930_v21 }
 0x4dd   :  { %16217 = vmatmul.mubr.msk.f32.gmra.mxu1 %vm1806_vm2, %v2619_v24 }
 0x4de   :  { %16268 = vmatprep.mubr.msk.f32.mxu1 %vm19931_vm0, %v19930_v21 }
 0x4df   :  { %16252 = vmatmul.mubr.msk.f32.gmra.mxu0 %vm1806_vm2, %v2758_v26 }
 0x4e0   :  { %3614 = vmatprep.mubr.bf16.mxu0 %v19929_v0 }
 0x4e1   :  { %16269 = vmatmul.mubr.msk.f32.vlgmr.msra.gmra.mxu1 %vm1806_vm2, %v2891_v28 }
 0x4e2   :  { %16271 = vmatprep.mubr.msk.f32.mxu1 %vm19931_vm0, %v19930_v21 }
 0x4e5   :  { %16272 = vmatmul.mubr.msk.f32.gmra.mxu1 %vm1806_vm2, %v2892_v30 }
 0x4e6   :  { %16274 = vmatprep.mubr.msk.f32.mxu1 %vm19931_vm0, %v19930_v21 }
 0x4e9   :  { %16275 = vmatmul.mubr.msk.f32.gmra.mxu1 %vm1806_vm2, %v2893_v31 }
 0x4ea   :  { %16277 = vmatprep.mubr.msk.f32.mxu1 %vm19931_vm0, %v19930_v21 }
 0x4ed   :  { %16278 = vmatmul.mubr.msk.f32.gmra.mxu1 %vm1806_vm2, %v2894_v29 }
 0x4ee   :  { %16280 = vmatprep.mubr.msk.f32.mxu1 %vm19931_vm0, %v19930_v21 }
 0x4f1   :  { %16281 = vmatmul.mubr.msk.f32.gmra.mxu1 %vm1806_vm2, %v2895_v27 }
 0x4f2   :  { %16283 = vmatprep.mubr.msk.f32.mxu1 %vm19931_vm0, %v19930_v21 }
 0x4f5   :  { %16284 = vmatmul.mubr.msk.f32.gmra.mxu1 %vm1806_vm2, %v2896_v32 }
 0x4f6   :  { %16286 = vmatprep.mubr.msk.f32.mxu1 %vm19931_vm0, %v19930_v21 }
 0x4f9   :  { %16287 = vmatmul.mubr.msk.f32.gmra.mxu1 %vm1806_vm2, %v2897_v33 }
 0x4fa   :  { %3685 = vmatprep.mubr.bf16.mxu1 %v19929_v0 }
 0x520   :  { %v2022_v25 = vpop.f32.mrf.mxu0 }
 0x522   :  { %v1898_v34 = vpop.f32.mrf.mxu1  ;;  %v16025_v35 = vpop.f32.mrf.mxu0 }
 0x523   :  { %v2023_v36 = vadd.f32 %v2022_v25, %v1898_v34 }
 0x524   :  { %v15990_v37 = vpop.f32.mrf.mxu1 }
 0x526   :  { %v2027_v38 = vpop.f32.mrf.mxu0 }
 0x528   :  { %v1903_v39 = vpop.f32.mrf.mxu1  ;;  %v16028_v40 = vpop.f32.mrf.mxu0 }
 0x529   :  { %v2028_v41 = vadd.f32 %v2027_v38, %v1903_v39 }
 0x52a   :  { %v15993_v42 = vpop.f32.mrf.mxu1 }
 0x52c   :  { %v2032_v43 = vpop.f32.mrf.mxu0 }
 0x52e   :  { %v1908_v44 = vpop.f32.mrf.mxu1  ;;  %v16031_v45 = vpop.f32.mrf.mxu0 }
 0x52f   :  { %v2033_v46 = vadd.f32 %v2032_v43, %v1908_v44 }
 0x530   :  { %v15996_v47 = vpop.f32.mrf.mxu1 }
 0x532   :  { %v2037_v48 = vpop.f32.mrf.mxu0 }
 0x534   :  { %v1913_v49 = vpop.f32.mrf.mxu1  ;;  %v16034_v50 = vpop.f32.mrf.mxu0 }
 0x535   :  { %v2038_v51 = vadd.f32 %v2037_v48, %v1913_v49 }
 0x536   :  { %v15999_v53 = vpop.f32.mrf.mxu1  ;;  %v2042_v55 = vpop.f32.mrf.mxu0 }
 0x537   :  { %v17295_v53 = vld [vmem:[#allocation59 + $0x1fc] ss:$36 sps:$4 sm:$0xff]  }
 0x538   :  { %v1918_v56 = vpop.f32.mrf.mxu1  ;;  %v16037_v58 = vpop.f32.mrf.mxu0  ;;  %3582 = vmatprep.subr.bf16.mxu0 %v17295_v53  ;;  %v17338_v53 = vld [vmem:[#allocation59 + $0x8] ss:$36 sps:$4 sm:$0xff]  }
 0x539   :  { %v2043_v54 = vadd.f32 %v2042_v55, %v1918_v56  ;;  %v17298_v55 = vld [vmem:[#allocation59 + $0x204] ss:$36 sps:$4 sm:$0xff]   ;;  %v17293_v58 = vld [vmem:[#allocation59 + $0x1f8] ss:$36 sps:$4 sm:$0xff]  }
 0x53a   :  { %v16002_v52 = vpop.f32.mrf.mxu1  ;;  %v2047_v57 = vpop.f32.mrf.mxu0  ;;  %3653 = vmatprep.subr.bf16.mxu1 %v17298_v55  ;;  %3583 = vmatpush1.bf16.msra.mxu0 %v17293_v58  ;;  %v17343_v58 = vld [vmem:[#allocation59 + $0x20c] ss:$36 sps:$4 sm:$0xff]  }
 0x53c   :  { %v1923_v59 = vpop.f32.mrf.mxu1  ;;  %v16040_v61 = vpop.f32.mrf.mxu0 }
 0x53d   :  { %v2048_v62 = vadd.f32 %v2047_v57, %v1923_v59  ;;  %v17301_v59 = vld [vmem:[#allocation59 + $0x1b4] ss:$36 sps:$4 sm:$0xff]   ;;  %v17304_v61 = vld [vmem:[#allocation59 + $0x1bc] ss:$36 sps:$4 sm:$0xff]  }
 0x53e   :  { %v16005_v1 = vpop.f32.mrf.mxu1  ;;  %v2052_v2 = vpop.f32.mrf.mxu0  ;;  %3584 = vmatprep.subr.bf16.mxu0 %v17301_v59 }
 0x53f   :  { %v17302_v1 = vld [vmem:[#allocation59 + $0x1b8] ss:$36 sps:$4 sm:$0xff]  }
 0x540   :  { %v1928_v4 = vpop.f32.mrf.mxu1  ;;  %v16043_v6 = vpop.f32.mrf.mxu0 }
 0x541   :  { %v2053_v7 = vadd.f32 %v2052_v2, %v1928_v4  ;;  %v17307_v6 = vld [vmem:[#allocation59 + $0x16c] ss:$36 sps:$4 sm:$0xff]  }
 0x542   :  { %v16008_v5 = vpop.f32.mrf.mxu1  ;;  %v2293_v8 = vpop.f32.mrf.mxu0 }
 0x544   :  { %v2154_v63 = vpop.f32.mrf.mxu1  ;;  %v16095_v60 = vpop.f32.mrf.mxu0 }
 0x545   :  { %v2188_v3 = vadd.f32 %v2154_v63, %v2023_v36  ;;  %v17308_v63 = vld [vmem:[#allocation59 + $0x170] ss:$36 sps:$4 sm:$0xff]  }
 0x546   :  { %v16060_v9 = vpop.f32.mrf.mxu1 }
 0x547   :  { %v2327_v10 = vadd.f32 %v2293_v8, %v2188_v3  ;;  %v2298_v11 = vpop.f32.mrf.mxu0  ;;  %v17305_v8 = vld [vmem:[#allocation59 + $0x168] ss:$36 sps:$4 sm:$0xff]  }
 0x548   :  { %v17313_v9 = vld [vmem:[#allocation59 + $0x124] ss:$36 sps:$4 sm:$0xff]  }
 0x549   :  { %v16098_v12 = vpop.f32.mrf.mxu0 }
 0x54a   :  { %v2159_v13 = vpop.f32.mrf.mxu1  ;;  %v17311_v12 = vld [vmem:[#allocation59 + $0x120] ss:$36 sps:$4 sm:$0xff]  }
 0x54b   :  { %v2189_v14 = vadd.f32 %v2159_v13, %v2028_v41  ;;  %v17314_v13 = vld [vmem:[#allocation59 + $0x128] ss:$36 sps:$4 sm:$0xff]  }
 0x54c   :  { %v16063_v15 = vpop.f32.mrf.mxu1 }
 0x54d   :  { %v20821_v16 = vadd.f32 %v2298_v11, %v2189_v14  ;;  %v2303_v17 = vpop.f32.mrf.mxu0 }
 0x54f   :  { %v16101_v18 = vpop.f32.mrf.mxu0 }
 0x550   :  { %v2164_v19 = vpop.f32.mrf.mxu1  ;;  %v17322_v18 = vld [vmem:[#allocation59 + $0xe4] ss:$36 sps:$4 sm:$0xff]  }
 0x551   :  { %v2190_v20 = vadd.f32 %v2164_v19, %v2033_v46 }
 0x552   :  { %v16066_v22 = vpop.f32.mrf.mxu1 }
 0x553   :  { %v20823_v23 = vadd.f32 %v2303_v17, %v2190_v20  ;;  %v2308_v24 = vpop.f32.mrf.mxu0  ;;  %v17319_v17 = vld [vmem:[#allocation59 + $0xdc] ss:$36 sps:$4 sm:$0xff]  }
 0x554   :  { %v17317_v22 = vld [vmem:[#allocation59 + $0xd8] ss:$36 sps:$4 sm:$0xff]  }
 0x555   :  { %v2169_v26 = vpop.f32.mrf.mxu1  ;;  %v16104_v28 = vpop.f32.mrf.mxu0 }
 0x556   :  { %v2191_v30 = vadd.f32 %v2169_v26, %v2038_v51 }
 0x557   :  { %v16069_v31 = vpop.f32.mrf.mxu1  ;;  %v2313_v29 = vpop.f32.mrf.mxu0 }
 0x558   :  { %v20825_v27 = vadd.f32 %v2308_v24, %v2191_v30  ;;  %v17320_v24 = vld [vmem:[#allocation59 + $0xe0] ss:$36 sps:$4 sm:$0xff]   ;;  %v17325_v30 = vld [vmem:[#allocation59 + $0x94] ss:$36 sps:$4 sm:$0xff]  }
 0x559   :  { %v2174_v32 = vpop.f32.mrf.mxu1  ;;  %v16107_v33 = vpop.f32.mrf.mxu0  ;;  %v17328_v31 = vld [vmem:[#allocation59 + $0x9c] ss:$36 sps:$4 sm:$0xff]  }
 0x55a   :  { %v2192_v25 = vadd.f32 %v2174_v32, %v2043_v54  ;;  %v17296_v54 = vld [vmem:[#allocation59 + $0x200] ss:$36 sps:$4 sm:$0xff]   ;;  %v17323_v33 = vld [vmem:[#allocation59 + $0x90] ss:$36 sps:$4 sm:$0xff]  }
 0x55b   :  { %v16072_v34 = vpop.f32.mrf.mxu1  ;;  %v2318_v35 = vpop.f32.mrf.mxu0  ;;  %3654 = vmatpush1.bf16.msra.mxu1 %v17296_v54  ;;  %v17346_v54 = vld [vmem:[#allocation59 + $0x214] ss:$36 sps:$4 sm:$0xff]  }
 0x55c   :  { %v20827_v36 = vadd.f32 %v2313_v29, %v2192_v25  ;;  %3655 = vmatprep.subr.bf16.mxu1 %v17304_v61  ;;  %v17326_v25 = vld [vmem:[#allocation59 + $0x98] ss:$36 sps:$4 sm:$0xff]  }
 0x55d   :  { %v2179_v37 = vpop.f32.mrf.mxu1  ;;  %v16110_v38 = vpop.f32.mrf.mxu0 }
 0x55e   :  { %v2193_v39 = vadd.f32 %v2179_v37, %v2048_v62  ;;  %v17299_v62 = vld [vmem:[#allocation59 + $0x1b0] ss:$36 sps:$4 sm:$0xff]  }
 0x55f   :  { %v16075_v40 = vpop.f32.mrf.mxu1  ;;  %v2323_v41 = vpop.f32.mrf.mxu0  ;;  %3585 = vmatpush1.bf16.msra.mxu0 %v17299_v62  ;;  %3656 = vmatpush1.bf16.msra.mxu1 %v17302_v1  ;;  %v17331_v37 = vld [vmem:[#allocation59 + $0x4c] ss:$36 sps:$4 sm:$0xff]   ;;  %v17334_v38 = vld [vmem:[#allocation59 + $0x54] ss:$36 sps:$4 sm:$0xff]  }
 0x560   :  { %v20829_v42 = vadd.f32 %v2318_v35, %v2193_v39  ;;  %3586 = vmatprep.subr.bf16.mxu0 %v17307_v6 }
 0x561   :  { %v2184_v43 = vpop.f32.mrf.mxu1  ;;  %v16113_v44 = vpop.f32.mrf.mxu0 }
 0x562   :  { %v2194_v45 = vadd.f32 %v2184_v43, %v2053_v7  ;;  %v17310_v7 = vld [vmem:[#allocation59 + $0x174] ss:$36 sps:$4 sm:$0xff]  }
 0x563   :  { %v16078_v46 = vpop.f32.mrf.mxu1  ;;  %v2571_v47 = vpop.f32.mrf.mxu0  ;;  %3657 = vmatprep.subr.bf16.mxu1 %v17310_v7  ;;  %3587 = vmatpush1.bf16.msra.mxu0 %v17305_v8  ;;  %v17332_v43 = vld [vmem:[#allocation59 + $0x50] ss:$36 sps:$4 sm:$0xff]  }
 0x564   :  { %v20831_v48 = vadd.f32 %v2323_v41, %v2194_v45  ;;  %3658 = vmatpush1.bf16.msra.mxu1 %v17308_v63  ;;  %3588 = vmatprep.subr.bf16.mxu0 %v17313_v9  ;;  %v17329_v41 = vld [vmem:[#allocation59 + $0x48] ss:$36 sps:$4 sm:$0xff]  }
 0x565   :  { %v2432_v49 = vpop.f32.mrf.mxu1  ;;  %v16165_v50 = vpop.f32.mrf.mxu0  ;;  %v17337_v46 = vld [vmem:[#allocation59 + $0x4] ss:$36 sps:$4 sm:$0xff]  }
 0x566   :  { %v2466_v51 = vadd.f32 %v2432_v49, %v2327_v10  ;;  %v17316_v10 = vld [vmem:[#allocation59 + $0x12c] ss:$36 sps:$4 sm:$0xff]  }
 0x567   :  { %v16130_v56 = vpop.f32.mrf.mxu1  ;;  %3659 = vmatprep.subr.bf16.mxu1 %v17316_v10  ;;  %3589 = vmatpush1.bf16.msra.mxu0 %v17311_v12 }
 0x568   :  { %v20833_v52 = vadd.f32 %v2571_v47, %v2466_v51  ;;  %3660 = vmatpush1.bf16.msra.mxu1 %v17314_v13  ;;  %3590 = vmatprep.subr.bf16.mxu0 %v17319_v17  ;;  %v17340_v47 = vld [vmem:[#allocation59 + $0xc] ss:$36 sps:$4 sm:$0xff]   ;;  %v17335_v51 = vld [vmem:[#allocation59] ss:$36 sps:$4 sm:$0xff]  }
 0x569   :  { %3661 = vmatprep.subr.bf16.mxu1 %v17322_v18 }
 0x56a   :  { %v20835_v57 = vpop.f32.mrf.mxu1 }
 0x56b   :  { %3591 = vmatpush1.bf16.msra.mxu0 %v17317_v22 }
 0x56c   :  { %v16133_v2 = vpop.f32.mrf.mxu1  ;;  %3662 = vmatpush1.bf16.msra.mxu1 %v17320_v24  ;;  %3592 = vmatprep.subr.bf16.mxu0 %v17325_v30  ;;  %v2467_v24 = vadd.f32 %v20835_v57, %v20821_v16 }
 0x56d   :  { %v20837_v4 = vpop.f32.mrf.mxu0  ;;  %3663 = vmatprep.subr.bf16.mxu1 %v17328_v31 }
 0x56f   :  { %v16168_v5 = vpop.f32.mrf.mxu0  ;;  %3593 = vmatpush1.bf16.msra.mxu0 %v17323_v33  ;;  %v2606_v33 = vadd.f32 %v20837_v4, %v2467_v24 }
 0x570   :  { %v20839_v60 = vpop.f32.mrf.mxu1  ;;  %3664 = vmatpush1.bf16.msra.mxu1 %v17326_v25  ;;  %3594 = vmatprep.subr.bf16.mxu0 %v17331_v37 }
 0x571   :  { %3665 = vmatprep.subr.bf16.mxu1 %v17334_v38  ;;  %v2468_v25 = vadd.f32 %v20839_v60, %v20823_v23 }
 0x572   :  { %v16136_v3 = vpop.f32.mrf.mxu1 }
 0x573   :  { %v20841_v11 = vpop.f32.mrf.mxu0  ;;  %3595 = vmatpush1.bf16.msra.mxu0 %v17329_v41 }
 0x574   :  { %3666 = vmatpush1.bf16.msra.mxu1 %v17332_v43  ;;  %3596 = vmatprep.subr.bf16.mxu0 %v17337_v46 }
 0x575   :  { %v20843_v14 = vpop.f32.mrf.mxu1  ;;  %v16171_v15 = vpop.f32.mrf.mxu0  ;;  %3667 = vmatprep.subr.bf16.mxu1 %v17340_v47 }
 0x576   :  { %v2469_v16 = vadd.f32 %v20843_v14, %v20825_v27 }
 0x577   :  { %v16139_v19 = vpop.f32.mrf.mxu1  ;;  %v20845_v20 = vpop.f32.mrf.mxu0  ;;  %3597 = vmatpush1.bf16.msra.mxu0 %v17335_v51  ;;  %v14350_v51 = vld [vmem:[#allocation49] ss:$0 sm:$0xff] }
 0x578   :  { %3668 = vmatpush1.bf16.msra.mxu1 %v17338_v53  ;;  %3724 = vmatprep.subr.bf16.mxu0 %v17343_v58  ;;  %v2608_v23 = vadd.f32 %v20845_v20, %v2469_v16 }
 0x579   :  { %v20847_v26 = vpop.f32.mrf.mxu1  ;;  %v16174_v28 = vpop.f32.mrf.mxu0  ;;  %3795 = vmatprep.subr.bf16.mxu1 %v17346_v54 }
 0x57b   :  { %v16142_v29 = vpop.f32.mrf.mxu1  ;;  %v20849_v32 = vpop.f32.mrf.mxu0 }
 0x57d   :  { %v20851_v34 = vpop.f32.mrf.mxu1  ;;  %v16177_v35 = vpop.f32.mrf.mxu0 }
 0x57e   :  { %v2471_v14 = vadd.f32 %v20851_v34, %v20829_v42 }
 0x57f   :  { %v16145_v39 = vpop.f32.mrf.mxu1  ;;  %v20853_v40 = vpop.f32.mrf.mxu0 }
 0x581   :  { %v20855_v44 = vpop.f32.mrf.mxu1  ;;  %v16180_v45 = vpop.f32.mrf.mxu0 }
 0x582   :  { %v2607_v45 = vadd.f32 %v20841_v11, %v2468_v25 }
 0x583   :  { %v16148_v49 = vpop.f32.mrf.mxu1  ;;  %v20857_v50 = vpop.f32.mrf.mxu0 }
 0x585   :  { %v16183_v55 = vpop.f32.mrf.mxu0  ;;  %v2710_v56 = vpop.f32.mrf.mxu1 }
 0x586   :  { %v2744_v35 = vadd.f32 %v2710_v56, %v20833_v52  ;;  %v2470_v52 = vadd.f32 %v20847_v26, %v20827_v36  ;;  %v2610_v36 = vadd.f32 %v20853_v40, %v2471_v14  ;;  %v2472_v26 = vadd.f32 %v20855_v44, %v20831_v48 }
 0x587   :  { %v16200_v59 = vpop.f32.mrf.mxu1  ;;  %v2849_v61 = vpop.f32.mrf.mxu0 }
 0x588   :  { %v2883_v57 = vadd.f32 %v2849_v61, %v2744_v35  ;;  %v2609_v27 = vadd.f32 %v20849_v32, %v2470_v52  ;;  %v2611_v42 = vadd.f32 %v20857_v50, %v2472_v26 }
 0x589   :  { %v2715_v62 = vpop.f32.mrf.mxu1  ;;  %v16235_v1 = vpop.f32.mrf.mxu0 }
 0x58a   :  { %v2745_v39 = vadd.f32 %v2715_v62, %v2606_v33 }
 0x58b   :  { %v16203_v2 = vpop.f32.mrf.mxu1  ;;  %v2854_v6 = vpop.f32.mrf.mxu0 }
 0x58c   :  { %v2884_v47 = vadd.f32 %v2854_v6, %v2745_v39 }
 0x58d   :  { %v2720_v7 = vpop.f32.mrf.mxu1  ;;  %v16238_v5 = vpop.f32.mrf.mxu0 }
 0x58e   :  { %v2746_v49 = vadd.f32 %v2720_v7, %v2607_v45 }
 0x58f   :  { %v16206_v8 = vpop.f32.mrf.mxu1  ;;  %v2859_v63 = vpop.f32.mrf.mxu0 }
 0x590   :  { %v2885_v56 = vadd.f32 %v2859_v63, %v2746_v49 }
 0x591   :  { %v2725_v3 = vpop.f32.mrf.mxu1  ;;  %v16241_v9 = vpop.f32.mrf.mxu0 }
 0x592   :  { %v2747_v58 = vadd.f32 %v2725_v3, %v2608_v23 }
 0x593   :  { %v16209_v10 = vpop.f32.mrf.mxu1  ;;  %v2864_v12 = vpop.f32.mrf.mxu0 }
 0x594   :  { %v2886_v2 = vadd.f32 %v2864_v12, %v2747_v58 }
 0x595   :  { %v2730_v13 = vpop.f32.mrf.mxu1  ;;  %v16244_v15 = vpop.f32.mrf.mxu0 }
 0x596   :  { %v2748_v20 = vadd.f32 %v2730_v13, %v2609_v27 }
 0x597   :  { %v16212_v17 = vpop.f32.mrf.mxu1  ;;  %v2869_v18 = vpop.f32.mrf.mxu0 }
 0x598   :  { %v2887_v3 = vadd.f32 %v2869_v18, %v2748_v20 }
 0x599   :  { %v2735_v19 = vpop.f32.mrf.mxu1  ;;  %v16247_v22 = vpop.f32.mrf.mxu0 }
 0x59a   :  { %v2749_v32 = vadd.f32 %v2735_v19, %v2610_v36 }
 0x59b   :  { %v16215_v28 = vpop.f32.mrf.mxu1  ;;  %v2874_v30 = vpop.f32.mrf.mxu0 }
 0x59c   :  { %v2888_v13 = vadd.f32 %v2874_v30, %v2749_v32 }
 0x59d   :  { %v2740_v31 = vpop.f32.mrf.mxu1  ;;  %v16250_v29 = vpop.f32.mrf.mxu0 }
 0x59e   :  { %v2750_v17 = vadd.f32 %v2740_v31, %v2611_v42  ;;  %v20880_v42 = vld [vmem:[#allocation50] ss:$0 sm:$0xff] }
 0x59f   :  { %v16218_v37 = vpop.f32.mrf.mxu1  ;;  %v2879_v38 = vpop.f32.mrf.mxu0 }
 0x5a0   :  { %v2889_v48 = vadd.f32 %v2879_v38, %v2750_v17 }
 0x5a1   :  { %v2988_v41 = vpop.f32.mrf.mxu1  ;;  %v16253_v43 = vpop.f32.mrf.mxu0 }
 0x5a2   :  { %v3022_v4 = vadd.f32 %v2988_v41, %v2883_v57 }
 0x5a3   :  { %v16270_v46 = vpop.f32.mrf.mxu1 }
 0x5a4   :  { %v3036_v11 = vadd.f32 %v14350_v51, %v3022_v4 }
 0x5a5   :  { %v2993_v53 = vpop.f32.mrf.mxu1 }
 0x5a6   :  { %v3023_v60 = vadd.f32 %v2993_v53, %v2884_v47 }
 0x5a7   :  { %v16273_v55 = vpop.f32.mrf.mxu1 }
 0x5a8   :  { %v3037_v54 = vadd.f32 %v14350_v51, %v3023_v60 }
 0x5a9   :  { %v2998_v59 = vpop.f32.mrf.mxu1 }
 0x5aa   :  { %v3043_v61 = vadd.f32 %v3037_v54, %v3036_v11  ;;  %v3024_v62 = vadd.f32 %v2998_v59, %v2885_v56 }
 0x5ab   :  { %v16276_v1 = vpop.f32.mrf.mxu1 }
 0x5ac   :  { %v3038_v6 = vadd.f32 %v14350_v51, %v3024_v62 }
 0x5ad   :  { %v3003_v7 = vpop.f32.mrf.mxu1 }
 0x5ae   :  { %v3044_v5 = vadd.f32 %v3043_v61, %v3038_v6  ;;  %v3025_v8 = vadd.f32 %v3003_v7, %v2886_v2 }
 0x5af   :  { %v16279_v63 = vpop.f32.mrf.mxu1 }
 0x5b0   :  { %v3039_v9 = vadd.f32 %v14350_v51, %v3025_v8  ;;  %v14351_v63 = vld [vmem:[#allocation52] ss:$0 sm:$0xff] }
 0x5b1   :  { %v3008_v10 = vpop.f32.mrf.mxu1 }
 0x5b2   :  { %v3045_v34 = vadd.f32 %v3044_v5, %v3039_v9  ;;  %v3026_v15 = vadd.f32 %v3008_v10, %v2887_v3 }
 0x5b3   :  { %v16282_v12 = vpop.f32.mrf.mxu1 }
 0x5b4   :  { %v3040_v22 = vadd.f32 %v14350_v51, %v3026_v15 }
 0x5b5   :  { %v3013_v24 = vpop.f32.mrf.mxu1 }
 0x5b6   :  { %v3046_v40 = vadd.f32 %v3045_v34, %v3040_v22  ;;  %v3027_v28 = vadd.f32 %v3013_v24, %v2888_v13 }
 0x5b7   :  { %v16285_v29 = vpop.f32.mrf.mxu1 }
 0x5b8   :  { %v3041_v44 = vadd.f32 %v14350_v51, %v3027_v28 }
 0x5b9   :  { %v3018_v33 = vpop.f32.mrf.mxu1 }
 0x5ba   :  { %v3047_v25 = vadd.f32 %v3046_v40, %v3041_v44  ;;  %v3028_v18 = vadd.f32 %v3018_v33, %v2889_v48 }
 0x5bb   :  { %v16288_v19 = vpop.f32.mrf.mxu1 }
 0x5bc   :  { %v3042_v35 = vadd.f32 %v14350_v51, %v3028_v18 }
 0x5be   :  { %v3048_v37 = vsel %vm1828_vm1, %v3042_v35, 0.0 }
 0x5bf   :  { %v3049_v50 = vadd.f32 %v3048_v37, %v3047_v25  ;;  %v17341_v37 = vld [vmem:[#allocation59 + $0x208] ss:$36 sps:$4 sm:$0xff]  }
 0x5c1   :  { %v3050_v39 = vrot.slane %v3049_v50, 4 }
 0x5c3   :  { %v3051_v41 = vadd.f32 %v3050_v39, %v3049_v50  ;;  %v17344_v39 = vld [vmem:[#allocation59 + $0x210] ss:$36 sps:$4 sm:$0xff]  }
 0x5c5   :  { %v3052_v43 = vrot.slane %v3051_v41, 2 }
 0x5c7   :  { %v3053_v30 = vadd.f32 %v3052_v43, %v3051_v41 }
 0x5c9   :  { %v3054_v31 = vrot.slane %v3053_v30, 1 }
 0x5cb   :  { %v3055_v45 = vadd.f32 %v3054_v31, %v3053_v30 }
 0x5cd   :  { %v3057_v16 = vmul.f32 0.02, %v3055_v45  ;;  %v17349_v45 = vld [vmem:[#allocation59 + $0x1c4] ss:$36 sps:$4 sm:$0xff]  }
 0x5cf   :  { %v3058_v57 = vsub.f32 %v3036_v11, %v3057_v16  ;;  %v3059_v46 = vsub.f32 %v3037_v54, %v3057_v16  ;;  %v3060_v47 = vsub.f32 %v3038_v6, %v3057_v16  ;;  %v3061_v38 = vsub.f32 %v3039_v9, %v3057_v16 }
 0x5d0   :  { %v3062_v49 = vsub.f32 %v3040_v22, %v3057_v16  ;;  %v3063_v4 = vsub.f32 %v3041_v44, %v3057_v16  ;;  %v3064_v53 = vsub.f32 %v3042_v35, %v3057_v16  ;;  %v17352_v16 = vld [vmem:[#allocation59 + $0x1cc] ss:$36 sps:$4 sm:$0xff]  }
 0x5d1   :  { %v3065_v23 = vmul.f32 %v3058_v57, %v3058_v57  ;;  %v3066_v52 = vmul.f32 %v3059_v46, %v3059_v46  ;;  %v3067_v51 = vmul.f32 %v3060_v47, %v3060_v47  ;;  %v3068_v55 = vmul.f32 %v3061_v38, %v3061_v38 }
 0x5d2   :  { %v3069_v58 = vmul.f32 %v3062_v49, %v3062_v49  ;;  %v3071_v27 = vmul.f32 %v3064_v53, %v3064_v53  ;;  %v3070_v14 = vmul.f32 %v3063_v4, %v3063_v4 }
 0x5d3   :  { %v3072_v60 = vadd.f32 %v3066_v52, %v3065_v23  ;;  %v17356_v23 = vld [vmem:[#allocation59 + $0x180] ss:$36 sps:$4 sm:$0xff]   ;;  %v17361_v52 = vld [vmem:[#allocation59 + $0x134] ss:$36 sps:$4 sm:$0xff]  }
 0x5d4   :  { %v3077_v11 = vsel %vm1828_vm1, %v3071_v27, 0.0  ;;  %v17365_v27 = vld [vmem:[#allocation59 + $0xe8] ss:$36 sps:$4 sm:$0xff]  }
 0x5d5   :  { %v3073_v56 = vadd.f32 %v3072_v60, %v3067_v51  ;;  %v17364_v51 = vld [vmem:[#allocation59 + $0x13c] ss:$36 sps:$4 sm:$0xff]   ;;  %v17359_v60 = vld [vmem:[#allocation59 + $0x130] ss:$36 sps:$4 sm:$0xff]  }
 0x5d7   :  { %v3074_v59 = vadd.f32 %v3073_v56, %v3068_v55  ;;  %v17362_v55 = vld [vmem:[#allocation59 + $0x138] ss:$36 sps:$4 sm:$0xff]  }
 0x5d9   :  { %v3075_v61 = vadd.f32 %v3074_v59, %v3069_v58  ;;  %v17367_v58 = vld [vmem:[#allocation59 + $0xec] ss:$36 sps:$4 sm:$0xff]   ;;  %v17370_v59 = vld [vmem:[#allocation59 + $0xf4] ss:$36 sps:$4 sm:$0xff]  }
 0x5db   :  { %v3076_v62 = vadd.f32 %v3075_v61, %v3070_v14  ;;  %v17368_v14 = vld [vmem:[#allocation59 + $0xf0] ss:$36 sps:$4 sm:$0xff]  }
 0x5dd   :  { %v3078_v54 = vadd.f32 %v3077_v11, %v3076_v62  ;;  %v17373_v62 = vld [vmem:[#allocation59 + $0xa4] ss:$36 sps:$4 sm:$0xff]   ;;  %v17376_v11 = vld [vmem:[#allocation59 + $0xac] ss:$36 sps:$4 sm:$0xff]  }
 0x5df   :  { %v3079_v1 = vrot.slane %v3078_v54, 4 }
 0x5e1   :  { %v3080_v2 = vadd.f32 %v3079_v1, %v3078_v54  ;;  %v17371_v54 = vld [vmem:[#allocation59 + $0xa0] ss:$36 sps:$4 sm:$0xff]   ;;  %v17374_v1 = vld [vmem:[#allocation59 + $0xa8] ss:$36 sps:$4 sm:$0xff]  }
 0x5e3   :  { %v3081_v20 = vrot.slane %v3080_v2, 2 }
 0x5e5   :  { %v3082_v6 = vadd.f32 %v3081_v20, %v3080_v2  ;;  %v17379_v20 = vld [vmem:[#allocation59 + $0x5c] ss:$36 sps:$4 sm:$0xff]  }
 0x5e7   :  { %v3083_v7 = vrot.slane %v3082_v6, 1 }
 0x5e9   :  { %v3084_v36 = vadd.f32 %v3083_v7, %v3082_v6  ;;  %v17382_v6 = vld [vmem:[#allocation59 + $0x64] ss:$36 sps:$4 sm:$0xff]   ;;  %v17377_v7 = vld [vmem:[#allocation59 + $0x58] ss:$36 sps:$4 sm:$0xff]  }
 0x5eb   :  { %v3085_v26 = vmul.f32 0.02, %v3084_v36  ;;  %v17380_v36 = vld [vmem:[#allocation59 + $0x60] ss:$36 sps:$4 sm:$0xff]  }
 0x5ed   :  { %v3086_v5 = vadd.f32 1e-05, %v3085_v26 }
 0x5ef   :  { %18429 = vrsqrt.f32 %v3086_v5  ;;  %v17385_v5 = vld [vmem:[#allocation59 + $0x14] ss:$36 sps:$4 sm:$0xff]  }
 0x5fc   :  { %v18430_v8 = vpop.eup %18429 }
 0x5fd   :  { %v3093_v3 = vmul.f32 %v18430_v8, %v3063_v4  ;;  %v3094_v32 = vmul.f32 %v18430_v8, %v3064_v53  ;;  %v3088_v9 = vmul.f32 %v18430_v8, %v3058_v57  ;;  %v3089_v10 = vmul.f32 %v18430_v8, %v3059_v46  ;;  %v17358_v4 = vld [vmem:[#allocation59 + $0x184] ss:$36 sps:$4 sm:$0xff]   ;;  %v17353_v53 = vld [vmem:[#allocation59 + $0x178] ss:$36 sps:$4 sm:$0xff]  }
 0x5fe   :  { %v3090_v34 = vmul.f32 %v18430_v8, %v3060_v47  ;;  %v3091_v15 = vmul.f32 %v18430_v8, %v3061_v38  ;;  %v3092_v12 = vmul.f32 %v18430_v8, %v3062_v49  ;;  %v17347_v47 = vld [vmem:[#allocation59 + $0x1c0] ss:$36 sps:$4 sm:$0xff]   ;;  %v17350_v38 = vld [vmem:[#allocation59 + $0x1c8] ss:$36 sps:$4 sm:$0xff]  }
 0x5ff   :  { %v3102_v13 = vmul.f32 %v14351_v63, %v3088_v9  ;;  %v3103_v17 = vmul.f32 %v14351_v63, %v3089_v10  ;;  %v3107_v22 = vmul.f32 %v14351_v63, %v3093_v3  ;;  %v17355_v49 = vld [vmem:[#allocation59 + $0x17c] ss:$36 sps:$4 sm:$0xff]   ;;  %v3108_v56 = vmul.f32 %v14351_v63, %v3094_v32  ;;  %v17390_v9 = vld [vmem:[#allocation59 + $0x1d0] ss:$36 sps:$4 sm:$0xff]   ;;  %v17391_v10 = vld [vmem:[#allocation59 + $0x188] ss:$36 sps:$4 sm:$0xff]  }
 0x600   :  { %v3104_v24 = vmul.f32 %v14351_v63, %v3090_v34  ;;  %v3105_v40 = vmul.f32 %v14351_v63, %v3091_v15  ;;  %v3106_v28 = vmul.f32 %v14351_v63, %v3092_v12  ;;  %v17388_v8 = vld [vmem:[#allocation59 + $0x1c] ss:$36 sps:$4 sm:$0xff]   ;;  %v17383_v63 = vld [vmem:[#allocation59 + $0x10] ss:$36 sps:$4 sm:$0xff]   ;;  %v17395_v12 = vld [vmem:[#allocation59 + $0x68] ss:$36 sps:$4 sm:$0xff]  }
 0x601   :  { %v3116_v29 = vadd.f32 %v20880_v42, %v3102_v13  ;;  %v3117_v48 = vadd.f32 %v20880_v42, %v3103_v17  ;;  %v3121_v44 = vadd.f32 %v20880_v42, %v3107_v22  ;;  %v3122_v61 = vadd.f32 %v20880_v42, %v3108_v56  ;;  %v17386_v3 = vld [vmem:[#allocation59 + $0x18] ss:$36 sps:$4 sm:$0xff]   ;;  %v17394_v15 = vld [vmem:[#allocation59 + $0xb0] ss:$36 sps:$4 sm:$0xff]   ;;  %v17396_v13 = vld [vmem:[#allocation59 + $0x20] ss:$36 sps:$4 sm:$0xff]  }
 0x602   :  { %v3118_v33 = vadd.f32 %v20880_v42, %v3104_v24  ;;  %v3119_v25 = vadd.f32 %v20880_v42, %v3105_v40  ;;  %v3120_v18 = vadd.f32 %v20880_v42, %v3106_v28  ;;  %v17389_v32 = vld [vmem:[#allocation59 + $0x218] ss:$36 sps:$4 sm:$0xff]   ;;  %v17392_v42 = vld [vmem:[#allocation59 + $0x140] ss:$36 sps:$4 sm:$0xff]  }
 0x603   :  { %v3123_v19 = vmax.f32 %v3116_v29, 0.0  ;;  %v3124_v35 = vmax.f32 %v3117_v48, 0.0  ;;  %v3128_v50 = vmax.f32 %v3121_v44, 0.0  ;;  %v3129_v2 = vmax.f32 %v3122_v61, 0.0  ;;  %v17393_v34 = vld [vmem:[#allocation59 + $0xf8] ss:$36 sps:$4 sm:$0xff]  }
 0x604   :  { %v3125_v41 = vmax.f32 %v3118_v33, 0.0  ;;  %v3126_v43 = vmax.f32 %v3119_v25, 0.0  ;;  %v3127_v30 = vmax.f32 %v3120_v18, 0.0 }
 0x605   :  { %v20888_v31 = vpack.c.bf16 %v3124_v35, %v3123_v19  ;;  %v3213_v26 = vpack.c.bf16 %v3129_v2, %v3129_v2 }
 0x606   :  { %v20890_v57 = vpack.c.bf16 %v3126_v43, %v3125_v41  ;;  %v20892_v46 = vpack.c.bf16 %v3128_v50, %v3127_v30 }
 0x607   :  { %3615 = vmatmul.mubr.bf16.vlgmr.msra.gmra.mxu0 %v20888_v31  ;;  %3686 = vmatmul.mubr.bf16.vlgmr.msra.gmra.mxu1 %v20888_v31 }
 0x608   :  { %3725 = vmatpush1.bf16.msra.mxu0 %v17341_v37  ;;  %3796 = vmatpush1.bf16.msra.mxu1 %v17344_v39 }
 0x609   :  { %3726 = vmatprep.subr.bf16.mxu0 %v17349_v45  ;;  %3797 = vmatprep.subr.bf16.mxu1 %v17352_v16 }
 0x60a   :  { %3624 = vmatprep.mubr.bf16.mxu0 %v19929_v0  ;;  %3695 = vmatprep.mubr.bf16.mxu1 %v19929_v0 }
 0x60c   :  { %3727 = vmatpush1.bf16.msra.mxu0 %v17347_v47  ;;  %3798 = vmatpush1.bf16.msra.mxu1 %v17350_v38 }
 0x60d   :  { %3728 = vmatprep.subr.bf16.mxu0 %v17355_v49  ;;  %3799 = vmatprep.subr.bf16.mxu1 %v17358_v4 }
 0x60f   :  { %3625 = vmatmul.mubr.bf16.gmra.mxu0 %v20890_v57  ;;  %3696 = vmatmul.mubr.bf16.gmra.mxu1 %v20890_v57 }
 0x610   :  { %3729 = vmatpush1.bf16.msra.mxu0 %v17353_v53  ;;  %3800 = vmatpush1.bf16.msra.mxu1 %v17356_v23 }
 0x611   :  { %3730 = vmatprep.subr.bf16.mxu0 %v17361_v52  ;;  %3801 = vmatprep.subr.bf16.mxu1 %v17364_v51 }
 0x612   :  { %3634 = vmatprep.mubr.bf16.mxu0 %v19929_v0  ;;  %3705 = vmatprep.mubr.bf16.mxu1 %v19929_v0 }
 0x614   :  { %3731 = vmatpush1.bf16.msra.mxu0 %v17359_v60  ;;  %3802 = vmatpush1.bf16.msra.mxu1 %v17362_v55 }
 0x615   :  { %3732 = vmatprep.subr.bf16.mxu0 %v17367_v58  ;;  %3803 = vmatprep.subr.bf16.mxu1 %v17370_v59 }
 0x617   :  { %3635 = vmatmul.mubr.bf16.gmra.mxu0 %v20892_v46  ;;  %3706 = vmatmul.mubr.bf16.gmra.mxu1 %v20892_v46 }
 0x618   :  { %3733 = vmatpush1.bf16.msra.mxu0 %v17365_v27  ;;  %3804 = vmatpush1.bf16.msra.mxu1 %v17368_v14 }
 0x619   :  { %3734 = vmatprep.subr.bf16.mxu0 %v17373_v62  ;;  %3805 = vmatprep.subr.bf16.mxu1 %v17376_v11  ;;  %v18471_v62 = vld [vmem:[#allocation10] sm:$0xff] }
 0x61a   :  { %3644 = vmatprep.mubr.bf16.mxu0 %v19929_v0  ;;  %3715 = vmatprep.mubr.bf16.mxu1 %v19929_v0 }
 0x61c   :  { %3735 = vmatpush1.bf16.msra.mxu0 %v17371_v54  ;;  %3806 = vmatpush1.bf16.msra.mxu1 %v17374_v1  ;;  %v18472_v1 = vld [vmem:[#allocation10 + $0x38] sm:$0xff] }
 0x61d   :  { %3736 = vmatprep.subr.bf16.mxu0 %v17379_v20  ;;  %3807 = vmatprep.subr.bf16.mxu1 %v17382_v6  ;;  %v18473_v6 = vld [vmem:[#allocation10 + $0x8] sm:$0xff] }
 0x61f   :  { %3645 = vmatmul.mubr.bf16.gmra.mxu0 %v3213_v26  ;;  %3716 = vmatmul.mubr.bf16.gmra.mxu1 %v3213_v26 }
 0x620   :  { %3737 = vmatpush1.bf16.msra.mxu0 %v17377_v7  ;;  %3808 = vmatpush1.bf16.msra.mxu1 %v17380_v36 }
 0x621   :  { %3738 = vmatprep.subr.bf16.mxu0 %v17385_v5  ;;  %3809 = vmatprep.subr.bf16.mxu1 %v17388_v8 }
 0x622   :  { %3756 = vmatprep.mubr.bf16.mxu0 %v19929_v0  ;;  %3827 = vmatprep.mubr.bf16.mxu1 %v19929_v0 }
 0x624   :  { %3739 = vmatpush1.bf16.msra.mxu0 %v17383_v63  ;;  %3810 = vmatpush1.bf16.msra.mxu1 %v17386_v3 }
 0x625   :  { %16289 = vmatprep.subr.bf16.mxu0 %v17389_v32  ;;  %16313 = vmatprep.subr.mxu1 %v19930_v21 }
 0x627   :  { %3757 = vmatmul.mubr.bf16.vlgmr.msra.gmra.mxu0 %v20888_v31  ;;  %3828 = vmatmul.mubr.bf16.vlgmr.msra.gmra.mxu1 %v20888_v31 }
 0x628   :  { %16290 = vmatpush3.bf16.msra.mxu0 %v17389_v32  ;;  %3766 = vmatprep.mubr.bf16.mxu0 %v19929_v0  ;;  %v18475_v32 = vld [vmem:[#allocation10 + $0x10] sm:$0xff] }
 0x629   :  { %16291 = vmatprep.subr.bf16.mxu0 %v17390_v9  ;;  %3837 = vmatprep.mubr.bf16.mxu1 %v19929_v0 }
 0x62c   :  { %16292 = vmatpush3.bf16.msra.mxu0 %v17390_v9 }
 0x62d   :  { %16293 = vmatprep.subr.bf16.mxu0 %v17391_v10 }
 0x62f   :  { %3767 = vmatmul.mubr.bf16.gmra.mxu0 %v20890_v57  ;;  %3838 = vmatmul.mubr.bf16.gmra.mxu1 %v20890_v57 }
 0x630   :  { %16294 = vmatpush3.bf16.msra.mxu0 %v17391_v10  ;;  %3776 = vmatprep.mubr.bf16.mxu0 %v19929_v0 }
 0x631   :  { %16295 = vmatprep.subr.bf16.mxu0 %v17392_v42  ;;  %3847 = vmatprep.mubr.bf16.mxu1 %v19929_v0 }
 0x634   :  { %16296 = vmatpush3.bf16.msra.mxu0 %v17392_v42  ;;  %v18476_v42 = vld [vmem:[#allocation10 + $0x48] sm:$0xff] }
 0x635   :  { %16297 = vmatprep.subr.bf16.mxu0 %v17393_v34 }
 0x637   :  { %3777 = vmatmul.mubr.bf16.gmra.mxu0 %v20892_v46  ;;  %3848 = vmatmul.mubr.bf16.gmra.mxu1 %v20892_v46 }
 0x638   :  { %16298 = vmatpush3.bf16.msra.mxu0 %v17393_v34  ;;  %3786 = vmatprep.mubr.bf16.mxu0 %v19929_v0 }
 0x639   :  { %16299 = vmatprep.subr.bf16.mxu0 %v17394_v15  ;;  %3857 = vmatprep.mubr.bf16.mxu1 %v19929_v0 }
 0x63c   :  { %16300 = vmatpush3.bf16.msra.mxu0 %v17394_v15 }
 0x63d   :  { %16301 = vmatprep.subr.bf16.mxu0 %v17395_v12 }
 0x63f   :  { %3787 = vmatmul.mubr.bf16.gmra.mxu0 %v3213_v26  ;;  %3858 = vmatmul.mubr.bf16.gmra.mxu1 %v3213_v26 }
 0x640   :  { %16302 = vmatpush3.bf16.msra.mxu0 %v17395_v12  ;;  %16305 = vmatprep.mubr.bf16.mxu0 %v20888_v31 }
 0x641   :  { %16303 = vmatprep.subr.bf16.mxu0 %v17396_v13  ;;  %16327 = vmatprep.mubr.msk.f32.mxu1 %vm19931_vm0, %v19930_v21 }
 0x644   :  { %16304 = vmatpush3.bf16.msra.mxu0 %v17396_v13 }
 0x645   :  { %16348 = vmatprep.subr.mxu0 %v19930_v21 }
 0x647   :  { %16306 = vmatmul.mubr.bf16.vlgmr.msra.gmra.mxu0 %v20890_v57 }
 0x648   :  { %16309 = vmatprep.mubr.bf16.mxu0 %v20892_v46 }
 0x64f   :  { %16310 = vmatmul.mubr.bf16.gmra.mxu0 %v3213_v26  ;;  %v18474_v26 = vld [vmem:[#allocation10 + $0x40] sm:$0xff] }
 0x650   :  { %16362 = vmatprep.mubr.msk.f32.mxu0 %vm19931_vm0, %v19930_v21 }
 0x6c7   :  { %v3616_v17 = vpop.f32.mrf.mxu0  ;;  %v20930_v22 = vpop.f32.mrf.mxu1 }
 0x6c9   :  { %v20932_v24 = vpop.f32.mrf.mxu0  ;;  %v20934_v40 = vpop.f32.mrf.mxu1 }
 0x6cb   :  { %v3620_v28 = vpop.f32.mrf.mxu0  ;;  %v20936_v29 = vpop.f32.mrf.mxu1 }
 0x6cd   :  { %v3622_v48 = vpop.f32.mrf.mxu0  ;;  %v20938_v44 = vpop.f32.mrf.mxu1 }
 0x6cf   :  { %v3626_v33 = vpop.f32.mrf.mxu0  ;;  %v20940_v25 = vpop.f32.mrf.mxu1 }
 0x6d1   :  { %v3628_v18 = vpop.f32.mrf.mxu0  ;;  %v20942_v19 = vpop.f32.mrf.mxu1 }
 0x6d3   :  { %v3630_v35 = vpop.f32.mrf.mxu0  ;;  %v20944_v37 = vpop.f32.mrf.mxu1 }
 0x6d5   :  { %v3632_v50 = vpop.f32.mrf.mxu0  ;;  %v20946_v39 = vpop.f32.mrf.mxu1 }
 0x6d7   :  { %v3636_v41 = vpop.f32.mrf.mxu0  ;;  %v20948_v43 = vpop.f32.mrf.mxu1 }
 0x6d9   :  { %v3638_v30 = vpop.f32.mrf.mxu0  ;;  %v20950_v31 = vpop.f32.mrf.mxu1 }
 0x6db   :  { %v3640_v45 = vpop.f32.mrf.mxu0  ;;  %v20952_v16 = vpop.f32.mrf.mxu1 }
 0x6dd   :  { %v3642_v57 = vpop.f32.mrf.mxu0  ;;  %v3713_v46 = vpop.f32.mrf.mxu1 }
 0x6df   :  { %v3646_v47 = vpop.f32.mrf.mxu0  ;;  %v3717_v38 = vpop.f32.mrf.mxu1 }
 0x6e0   :  { %16349 = vmatpush3.msk.msra.mxu0 %vm1828_vm1, %v3646_v47 }
 0x6e1   :  { %v3648_v49 = vpop.f32.mrf.mxu0  ;;  %v3719_v4 = vpop.f32.mrf.mxu1  ;;  %16350 = vmatprep.subr.mxu0 %v19930_v21 }
 0x6e2   :  { %16314 = vmatpush3.msk.msra.mxu1 %vm1828_vm1, %v3648_v49  ;;  %16351 = vmatpush3.msra.mxu0 %v3640_v45  ;;  %v18485_v45 = vld [vmem:[#allocation10 + $0xa8] sm:$0xff]  ;;  %v18488_v49 = vld [vmem:[#allocation10 + $0x78] sm:$0xff] }
 0x6e3   :  { %v3650_v53 = vpop.f32.mrf.mxu0  ;;  %v3721_v23 = vpop.f32.mrf.mxu1  ;;  %16315 = vmatprep.subr.mxu1 %v19930_v21  ;;  %16352 = vmatprep.subr.mxu0 %v19930_v21 }
 0x6e4   :  { %16316 = vmatpush3.msra.mxu1 %v3642_v57  ;;  %16353 = vmatpush3.msra.mxu0 %v3636_v41  ;;  %v18483_v41 = vld [vmem:[#allocation10 + $0x30] sm:$0x3]  ;;  %v18490_v53 = vld [vmem:[#allocation10 + $0x80] sm:$0xff] }
 0x6e5   :  { %v3651_v52 = vpop.f32.mrf.mxu0  ;;  %v3722_v51 = vpop.f32.mrf.mxu1  ;;  %16317 = vmatprep.subr.mxu1 %v19930_v21  ;;  %16354 = vmatprep.subr.mxu0 %v19930_v21  ;;  %v18486_v57 = vld [vmem:[#allocation10 + $0x70] sm:$0xff]  ;;  %v18491_v23 = vld [vmem:[#allocation10 + $0xc0] sm:$0xff] }
 0x6e6   :  { %16318 = vmatpush3.msra.mxu1 %v3638_v30  ;;  %16355 = vmatpush3.msra.mxu0 %v3630_v35  ;;  %v18484_v30 = vld [vmem:[#allocation10 + $0x68] sm:$0x3] }
 0x6e7   :  { %v20961_v60 = vpop.f32.mrf.mxu0  ;;  %v20963_v55 = vpop.f32.mrf.mxu1  ;;  %16319 = vmatprep.subr.mxu1 %v19930_v21  ;;  %16356 = vmatprep.subr.mxu0 %v19930_v21  ;;  %v18492_v52 = vld [vmem:[#allocation10 + $0x88] sm:$0xff] }
 0x6e8   :  { %16320 = vmatpush3.msra.mxu1 %v3632_v50  ;;  %16357 = vmatpush3.msra.mxu0 %v3626_v33  ;;  %v18482_v50 = vld [vmem:[#allocation10 + $0x60] sm:$0xff]  ;;  %v18493_v51 = vld [vmem:[#allocation10 + $0xc8] sm:$0xff] }
 0x6e9   :  { %v20967_v56 = vpop.f32.mrf.mxu0  ;;  %v20969_v58 = vpop.f32.mrf.mxu1  ;;  %16321 = vmatprep.subr.mxu1 %v19930_v21  ;;  %16358 = vmatprep.subr.mxu0 %v19930_v21 }
 0x6ea   :  { %16322 = vmatpush3.msra.mxu1 %v3628_v18  ;;  %16359 = vmatpush3.msra.mxu0 %v3620_v28 }
 0x6eb   :  { %v20973_v59 = vpop.f32.mrf.mxu0  ;;  %v20975_v27 = vpop.f32.mrf.mxu1  ;;  %16323 = vmatprep.subr.mxu1 %v19930_v21  ;;  %16360 = vmatprep.subr.mxu0 %v19930_v21 }
 0x6ec   :  { %16324 = vmatpush3.msra.mxu1 %v3622_v48  ;;  %16361 = vmatpush3.msra.mxu0 %v3616_v17  ;;  %v18477_v17 = vld [vmem:[#allocation10 + $0x18] sm:$0xff]  ;;  %v18478_v48 = vld [vmem:[#allocation10 + $0x50] sm:$0xff] }
 0x6ed   :  { %v20979_v14 = vpop.f32.mrf.mxu0  ;;  %v20981_v61 = vpop.f32.mrf.mxu1  ;;  %16325 = vmatprep.subr.mxu1 %v19930_v21  ;;  %16363 = vmatmul.mubr.msk.f32.vlgmr.msra.gmra.mxu0 %vm1806_vm2, %v18471_v62  ;;  %v18498_v62 = vld [vmem:[#allocation10 + $0xa0] sm:$0x3] }
 0x6ee   :  { %16418 = vmatprep.subr.mxu0 %v19930_v21  ;;  %16326 = vmatpush3.msra.mxu1 %v20932_v24 }
 0x6ef   :  { %16419 = vmatpush3.msk.msra.mxu0 %vm1828_vm1, %v3719_v4  ;;  %v20988_v11 = vpop.f32.mrf.mxu0  ;;  %v20990_v54 = vpop.f32.mrf.mxu1  ;;  %16328 = vmatmul.mubr.msk.f32.vlgmr.msra.gmra.mxu1 %vm1806_vm2, %v18472_v1  ;;  %v18489_v4 = vld [vmem:[#allocation10 + $0xb8] sm:$0xff]  ;;  %v18500_v1 = vld [vmem:[#allocation10 + $0xe0] sm:$0xff] }
 0x6f0   :  { %16383 = vmatprep.subr.mxu1 %v19930_v21  ;;  %16420 = vmatprep.subr.mxu0 %v19930_v21 }
 0x6f1   :  { %16365 = vmatprep.mubr.msk.f32.mxu0 %vm19931_vm0, %v19930_v21  ;;  %16384 = vmatpush3.msk.msra.mxu1 %vm1828_vm1, %v3717_v38  ;;  %v20998_v2 = vpop.f32.mrf.mxu0  ;;  %v21000_v20 = vpop.f32.mrf.mxu1  ;;  %v18487_v38 = vld [vmem:[#allocation10 + $0xb0] sm:$0xff] }
 0x6f2   :  { %16421 = vmatpush3.msra.mxu0 %v3713_v46  ;;  %16385 = vmatprep.subr.mxu1 %v19930_v21 }
 0x6f3   :  { %16366 = vmatmul.mubr.msk.f32.gmra.mxu0 %vm1806_vm2, %v18473_v6  ;;  %16422 = vmatprep.subr.mxu0 %v19930_v21  ;;  %v21005_v7 = vpop.f32.mrf.mxu0  ;;  %v21007_v36 = vpop.f32.mrf.mxu1  ;;  %v18502_v6 = vld [vmem:[#allocation10 + $0x120] sm:$0xff] }
 0x6f4   :  { %16330 = vmatprep.mubr.msk.f32.mxu1 %vm19931_vm0, %v19930_v21  ;;  %16386 = vmatpush3.msra.mxu1 %v20952_v16 }
 0x6f5   :  { %16423 = vmatpush3.msra.mxu0 %v20950_v31  ;;  %16331 = vmatmul.mubr.msk.f32.gmra.mxu1 %vm1806_vm2, %v18474_v26  ;;  %v21014_v5 = vpop.f32.mrf.mxu0  ;;  %v21016_v8 = vpop.f32.mrf.mxu1  ;;  %v18511_v26 = vld [vmem:[#allocation10 + $0x110] sm:$0x3] }
 0x6f6   :  { %16387 = vmatprep.subr.mxu1 %v19930_v21  ;;  %16424 = vmatprep.subr.mxu0 %v19930_v21 }
 0x6f7   :  { %16368 = vmatprep.mubr.msk.f32.mxu0 %vm19931_vm0, %v19930_v21  ;;  %16388 = vmatpush3.msra.mxu1 %v20948_v43  ;;  %v21023_v63 = vpop.f32.mrf.mxu0  ;;  %v21025_v3 = vpop.f32.mrf.mxu1 }
 0x6f8   :  { %16425 = vmatpush3.msra.mxu0 %v20946_v39  ;;  %16389 = vmatprep.subr.mxu1 %v19930_v21 }
 0x6f9   :  { %16369 = vmatmul.mubr.msk.f32.gmra.mxu0 %vm1806_vm2, %v18475_v32  ;;  %16426 = vmatprep.subr.mxu0 %v19930_v21  ;;  %v21031_v9 = vpop.f32.mrf.mxu0  ;;  %v21033_v10 = vpop.f32.mrf.mxu1  ;;  %v18515_v32 = vld [vmem:[#allocation10 + $0x158] sm:$0xff] }
 0x6fa   :  { %16333 = vmatprep.mubr.msk.f32.mxu1 %vm19931_vm0, %v19930_v21  ;;  %16390 = vmatpush3.msra.mxu1 %v20944_v37 }
 0x6fb   :  { %16427 = vmatpush3.msra.mxu0 %v20942_v19  ;;  %16334 = vmatmul.mubr.msk.f32.gmra.mxu1 %vm1806_vm2, %v18476_v42  ;;  %v21040_v34 = vpop.f32.mrf.mxu0  ;;  %v21042_v15 = vpop.f32.mrf.mxu1  ;;  %v18518_v42 = vld [vmem:[#allocation10 + $0x198] sm:$0xff] }
 0x6fc   :  { %16391 = vmatprep.subr.mxu1 %v19930_v21  ;;  %16428 = vmatprep.subr.mxu0 %v19930_v21 }
 0x6fd   :  { %16371 = vmatprep.mubr.msk.f32.mxu0 %vm19931_vm0, %v19930_v21  ;;  %16392 = vmatpush3.msra.mxu1 %v20940_v25  ;;  %v3784_v12 = vpop.f32.mrf.mxu0  ;;  %v21049_v13 = vpop.f32.mrf.mxu1  ;;  %v18479_v25 = vld [vmem:[#allocation10 + $0x20] sm:$0xff] }
 0x6fe   :  { %16429 = vmatpush3.msra.mxu0 %v20938_v44  ;;  %16393 = vmatprep.subr.mxu1 %v19930_v21 }
 0x6ff   :  { %16372 = vmatmul.mubr.msk.f32.gmra.mxu0 %vm1806_vm2, %v18477_v17  ;;  %16430 = vmatprep.subr.mxu0 %v19930_v21  ;;  %v3788_v24 = vpop.f32.mrf.mxu0  ;;  %v21055_v28 = vpop.f32.mrf.mxu1  ;;  %v18523_v17 = vld [vmem:[#allocation10 + $0x178] sm:$0xff] }
 0x700   :  { %16336 = vmatprep.mubr.msk.f32.mxu1 %vm19931_vm0, %v19930_v21  ;;  %16394 = vmatpush3.msra.mxu1 %v20936_v29 }
 0x701   :  { %16431 = vmatpush3.msra.mxu0 %v20934_v40  ;;  %16337 = vmatmul.mubr.msk.f32.gmra.mxu1 %vm1806_vm2, %v18478_v48  ;;  %v3790_v44 = vpop.f32.mrf.mxu0  ;;  %v21062_v33 = vpop.f32.mrf.mxu1  ;;  %v18480_v40 = vld [vmem:[#allocation10 + $0x58] sm:$0xff] }
 0x702   :  { %16395 = vmatprep.subr.mxu1 %v19930_v21  ;;  %16374 = vmatprep.mubr.msk.f32.mxu0 %vm19931_vm0, %v19930_v21  ;;  %v18526_v48 = vld [vmem:[#allocation10 + $0x1b8] sm:$0x3] }
 0x703   :  { %16396 = vmatpush3.msra.mxu1 %v20930_v22  ;;  %16375 = vmatmul.mubr.msk.f32.gmra.mxu0 %vm1806_vm2, %v18479_v25  ;;  %v3792_v18 = vpop.f32.mrf.mxu0  ;;  %v3863_v29 = vpop.f32.mrf.mxu1  ;;  %v18481_v22 = vld [vmem:[#allocation10 + $0x28] sm:$0xff]  ;;  %v18529_v25 = vld [vmem:[#allocation10 + $0x1d0] sm:$0xff] }
 0x704   :  { %16339 = vmatprep.mubr.msk.f32.mxu1 %vm19931_vm0, %v19930_v21  ;;  %16377 = vmatprep.mubr.msk.f32.mxu0 %vm19931_vm0, %v19930_v21  ;;  %v18530_v18 = vld [vmem:[#allocation10 + $0x1d8] sm:$0xff]  ;;  %v18531_v29 = vld [vmem:[#allocation10 + $0x1e0] sm:$0xff] }
 0x705   :  { %16340 = vmatmul.mubr.msk.f32.gmra.mxu1 %vm1806_vm2, %v18480_v40  ;;  %v3793_v19 = vpop.f32.mrf.mxu0  ;;  %v3864_v35 = vpop.f32.mrf.mxu1  ;;  %16488 = vmatprep.subr.mxu0 %v19930_v21  ;;  %v18532_v40 = vld [vmem:[#allocation10 + $0x1e8] sm:$0xff] }
 0x706   :  { %16342 = vmatprep.mubr.msk.f32.mxu1 %vm19931_vm0, %v19930_v21  ;;  %16453 = vmatprep.subr.mxu1 %v19930_v21  ;;  %v18533_v19 = vld [vmem:[#allocation10 + $0x1f0] sm:$0x3] }
 0x707   :  { %16378 = vmatmul.mubr.msk.f32.gmra.mxu0 %vm1806_vm2, %v18481_v22  ;;  %v21079_v37 = vpop.f32.mrf.mxu0 }
 0x708   :  { %16380 = vmatprep.mubr.msk.f32.mxu0 %vm19931_vm0, %v19930_v21 }
 0x709   :  { %16343 = vmatmul.mubr.msk.f32.gmra.mxu1 %vm1806_vm2, %v18482_v50  ;;  %v21084_v39 = vpop.f32.mrf.mxu0 }
 0x70a   :  { %16345 = vmatprep.mubr.msk.f32.mxu1 %vm19931_vm0, %v19930_v21 }
 0x70b   :  { %16381 = vmatmul.mubr.msk.f32.gmra.mxu0 %vm1806_vm2, %v18483_v41  ;;  %v21089_v43 = vpop.f32.mrf.mxu0 }
 0x70c   :  { %16432 = vmatprep.mubr.msk.f32.mxu0 %vm19931_vm0, %v19930_v21 }
 0x70d   :  { %16346 = vmatmul.mubr.msk.f32.gmra.mxu1 %vm1806_vm2, %v18484_v30  ;;  %v21094_v31 = vpop.f32.mrf.mxu0 }
 0x70e   :  { %16397 = vmatprep.mubr.msk.f32.mxu1 %vm19931_vm0, %v19930_v21 }
 0x70f   :  { %16433 = vmatmul.mubr.msk.f32.vlgmr.msra.gmra.mxu0 %vm1806_vm2, %v18485_v45  ;;  %v21099_v16 = vpop.f32.mrf.mxu0 }
 0x710   :  { %16489 = vmatpush3.msk.msra.mxu0 %vm1828_vm1, %v3790_v44  ;;  %16435 = vmatprep.mubr.msk.f32.mxu0 %vm19931_vm0, %v19930_v21  ;;  %v18527_v44 = vld [vmem:[#allocation10 + $0x1c0] sm:$0xff] }
 0x711   :  { %16490 = vmatprep.subr.mxu0 %v19930_v21  ;;  %16398 = vmatmul.mubr.msk.f32.vlgmr.msra.gmra.mxu1 %vm1806_vm2, %v18486_v57  ;;  %v21106_v46 = vpop.f32.mrf.mxu0 }
 0x712   :  { %16454 = vmatpush3.msk.msra.mxu1 %vm1828_vm1, %v3788_v24  ;;  %16491 = vmatpush3.msra.mxu0 %v3784_v12  ;;  %v18521_v12 = vld [vmem:[#allocation10 + $0x170] sm:$0xff] }
 0x713   :  { %16455 = vmatprep.subr.mxu1 %v19930_v21  ;;  %16492 = vmatprep.subr.mxu0 %v19930_v21  ;;  %v16312_v47 = vpop.f32.mrf.mxu0  ;;  %v18524_v24 = vld [vmem:[#allocation10 + $0x1b0] sm:$0xff] }
 0x714   :  { %16436 = vmatmul.mubr.msk.f32.gmra.mxu0 %vm1806_vm2, %v18487_v38  ;;  %16456 = vmatpush3.msra.mxu1 %v21040_v34  ;;  %v18519_v34 = vld [vmem:[#allocation10 + $0x168] sm:$0xff] }
 0x715   :  { %16493 = vmatpush3.msra.mxu0 %v21031_v9  ;;  %16400 = vmatprep.mubr.msk.f32.mxu1 %vm19931_vm0, %v19930_v21  ;;  %v18516_v9 = vld [vmem:[#allocation10 + $0x190] sm:$0xff] }
 0x716   :  { %16457 = vmatprep.subr.mxu1 %v19930_v21  ;;  %16494 = vmatprep.subr.mxu0 %v19930_v21 }
 0x717   :  { %16401 = vmatmul.mubr.msk.f32.gmra.mxu1 %vm1806_vm2, %v18488_v49  ;;  %16495 = vmatpush3.msra.mxu0 %v21014_v5  ;;  %v18512_v5 = vld [vmem:[#allocation10 + $0x148] sm:$0x3] }
 0x718   :  { %16458 = vmatpush3.msra.mxu1 %v21023_v63  ;;  %16438 = vmatprep.mubr.msk.f32.mxu0 %vm19931_vm0, %v19930_v21  ;;  %v3919_v63 = vpop.f32.mrf.mxu0 }
 0x719   :  { %16459 = vmatprep.subr.mxu1 %v19930_v21  ;;  %16496 = vmatprep.subr.mxu0 %v19930_v21 }
 0x71a   :  { %16439 = vmatmul.mubr.msk.f32.gmra.mxu0 %vm1806_vm2, %v18489_v4  ;;  %16460 = vmatpush3.msra.mxu1 %v21005_v7  ;;  %v18503_v7 = vld [vmem:[#allocation10 + $0xf0] sm:$0xff] }
 0x71b   :  { %16497 = vmatpush3.msra.mxu0 %v20998_v2  ;;  %16403 = vmatprep.mubr.msk.f32.mxu1 %vm19931_vm0, %v19930_v21  ;;  %v18501_v2 = vld [vmem:[#allocation10 + $0xe8] sm:$0xff] }
 0x71c   :  { %16461 = vmatprep.subr.mxu1 %v19930_v21  ;;  %16498 = vmatprep.subr.mxu0 %v19930_v21 }
 0x71d   :  { %16404 = vmatmul.mubr.msk.f32.gmra.mxu1 %vm1806_vm2, %v18490_v53  ;;  %16499 = vmatpush3.msra.mxu0 %v20979_v14  ;;  %v18497_v14 = vld [vmem:[#allocation10 + $0xd8] sm:$0x3] }
 0x71e   :  { %16462 = vmatpush3.msra.mxu1 %v20988_v11  ;;  %16441 = vmatprep.mubr.msk.f32.mxu0 %vm19931_vm0, %v19930_v21  ;;  %v18499_v11 = vld [vmem:[#allocation10 + $0x118] sm:$0xff] }
 0x71f   :  { %16463 = vmatprep.subr.mxu1 %v19930_v21  ;;  %16500 = vmatprep.subr.mxu0 %v19930_v21 }
 0x720   :  { %16442 = vmatmul.mubr.msk.f32.gmra.mxu0 %vm1806_vm2, %v18491_v23  ;;  %16464 = vmatpush3.msra.mxu1 %v20973_v59  ;;  %v18496_v59 = vld [vmem:[#allocation10 + $0x98] sm:$0xff] }
 0x721   :  { %16501 = vmatpush3.msra.mxu0 %v20967_v56  ;;  %16406 = vmatprep.mubr.msk.f32.mxu1 %vm19931_vm0, %v19930_v21  ;;  %v18494_v56 = vld [vmem:[#allocation10 + $0x90] sm:$0xff] }
 0x722   :  { %16465 = vmatprep.subr.mxu1 %v19930_v21  ;;  %16407 = vmatmul.mubr.msk.f32.gmra.mxu1 %vm1806_vm2, %v18492_v52 }
 0x723   :  { %16466 = vmatpush3.msra.mxu1 %v20961_v60  ;;  %16444 = vmatprep.mubr.msk.f32.mxu0 %vm19931_vm0, %v19930_v21  ;;  %v18495_v60 = vld [vmem:[#allocation10 + $0xd0] sm:$0xff] }
 0x724   :  { %16445 = vmatmul.mubr.msk.f32.gmra.mxu0 %vm1806_vm2, %v18493_v51  ;;  %16409 = vmatprep.mubr.msk.f32.mxu1 %vm19931_vm0, %v19930_v21 }
 0x725   :  { %16447 = vmatprep.mubr.msk.f32.mxu0 %vm19931_vm0, %v19930_v21  ;;  %16558 = vmatprep.subr.mxu0 %v19930_v21 }
 0x726   :  { %16410 = vmatmul.mubr.msk.f32.gmra.mxu1 %vm1806_vm2, %v18494_v56  ;;  %16523 = vmatprep.subr.mxu1 %v19930_v21 }
 0x727   :  { %16412 = vmatprep.mubr.msk.f32.mxu1 %vm19931_vm0, %v19930_v21 }
 0x728   :  { %16448 = vmatmul.mubr.msk.f32.gmra.mxu0 %vm1806_vm2, %v18495_v60 }
 0x729   :  { %16450 = vmatprep.mubr.msk.f32.mxu0 %vm19931_vm0, %v19930_v21 }
 0x72a   :  { %16413 = vmatmul.mubr.msk.f32.gmra.mxu1 %vm1806_vm2, %v18496_v59 }
 0x72b   :  { %16415 = vmatprep.mubr.msk.f32.mxu1 %vm19931_vm0, %v19930_v21 }
 0x72c   :  { %16451 = vmatmul.mubr.msk.f32.gmra.mxu0 %vm1806_vm2, %v18497_v14 }
 0x72d   :  { %16502 = vmatprep.mubr.msk.f32.mxu0 %vm19931_vm0, %v19930_v21 }
 0x72e   :  { %16416 = vmatmul.mubr.msk.f32.gmra.mxu1 %vm1806_vm2, %v18498_v62 }
 0x72f   :  { %16467 = vmatprep.mubr.msk.f32.mxu1 %vm19931_vm0, %v19930_v21 }
 0x730   :  { %16503 = vmatmul.mubr.msk.f32.vlgmr.msra.gmra.mxu0 %vm1806_vm2, %v18499_v11 }
 0x731   :  { %16559 = vmatpush3.msk.msra.mxu0 %vm1828_vm1, %v21062_v33  ;;  %16505 = vmatprep.mubr.msk.f32.mxu0 %vm19931_vm0, %v19930_v21  ;;  %v18528_v33 = vld [vmem:[#allocation10 + $0x1c8] sm:$0xff] }
 0x732   :  { %16560 = vmatprep.subr.mxu0 %v19930_v21  ;;  %16468 = vmatmul.mubr.msk.f32.vlgmr.msra.gmra.mxu1 %vm1806_vm2, %v18500_v1 }
 0x733   :  { %16524 = vmatpush3.msk.msra.mxu1 %vm1828_vm1, %v21055_v28  ;;  %16561 = vmatpush3.msra.mxu0 %v21049_v13  ;;  %v18522_v13 = vld [vmem:[#allocation10 + $0x1a8] sm:$0xff]  ;;  %v18525_v28 = vld [vmem:[#allocation10 + $0x180] sm:$0x3] }
 0x734   :  { %16525 = vmatprep.subr.mxu1 %v19930_v21  ;;  %16562 = vmatprep.subr.mxu0 %v19930_v21 }
 0x735   :  { %16526 = vmatpush3.msra.mxu1 %v21042_v15  ;;  %16563 = vmatpush3.msra.mxu0 %v21033_v10  ;;  %v18517_v10 = vld [vmem:[#allocation10 + $0x160] sm:$0xff] }
 0x736   :  { %16470 = vmatprep.mubr.msk.f32.mxu1 %vm19931_vm0, %v19930_v21  ;;  %16527 = vmatprep.subr.mxu1 %v19930_v21  ;;  %v18520_v15 = vld [vmem:[#allocation10 + $0x1a0] sm:$0xff] }
 0x737   :  { %16564 = vmatprep.subr.mxu0 %v19930_v21  ;;  %16471 = vmatmul.mubr.msk.f32.gmra.mxu1 %vm1806_vm2, %v18501_v2 }
 0x738   :  { %16528 = vmatpush3.msra.mxu1 %v21025_v3  ;;  %16565 = vmatpush3.msra.mxu0 %v21016_v8  ;;  %v18513_v8 = vld [vmem:[#allocation10 + $0x150] sm:$0xff]  ;;  %v18514_v3 = vld [vmem:[#allocation10 + $0x188] sm:$0xff] }
 0x739   :  { %16529 = vmatprep.subr.mxu1 %v19930_v21  ;;  %16566 = vmatprep.subr.mxu0 %v19930_v21 }
 0x73a   :  { %16506 = vmatmul.mubr.msk.f32.gmra.mxu0 %vm1806_vm2, %v18502_v6  ;;  %16530 = vmatpush3.msra.mxu1 %v21007_v36  ;;  %v18510_v36 = vld [vmem:[#allocation10 + $0x140] sm:$0xff] }
 0x73b   :  { %16567 = vmatpush3.msra.mxu0 %v21000_v20  ;;  %16473 = vmatprep.mubr.msk.f32.mxu1 %vm19931_vm0, %v19930_v21  ;;  %v18504_v20 = vld [vmem:[#allocation10 + $0x128] sm:$0xff] }
 0x73c   :  { %16531 = vmatprep.subr.mxu1 %v19930_v21  ;;  %16568 = vmatprep.subr.mxu0 %v19930_v21 }
 0x73d   :  { %16474 = vmatmul.mubr.msk.f32.gmra.mxu1 %vm1806_vm2, %v18503_v7  ;;  %16569 = vmatpush3.msra.mxu0 %v20981_v61  ;;  %v18505_v61 = vld [vmem:[#allocation10 + $0xf8] sm:$0xff] }
 0x73e   :  { %16532 = vmatpush3.msra.mxu1 %v20990_v54  ;;  %16508 = vmatprep.mubr.msk.f32.mxu0 %vm19931_vm0, %v19930_v21  ;;  %v18506_v54 = vld [vmem:[#allocation10 + $0x130] sm:$0xff] }
 0x73f   :  { %16533 = vmatprep.subr.mxu1 %v19930_v21  ;;  %16570 = vmatprep.subr.mxu0 %v19930_v21 }
 0x740   :  { %16509 = vmatmul.mubr.msk.f32.gmra.mxu0 %vm1806_vm2, %v18504_v20  ;;  %16534 = vmatpush3.msra.mxu1 %v20975_v27  ;;  %v18509_v27 = vld [vmem:[#allocation10 + $0x108] sm:$0xff] }
 0x741   :  { %16571 = vmatpush3.msra.mxu0 %v20969_v58  ;;  %16476 = vmatprep.mubr.msk.f32.mxu1 %vm19931_vm0, %v19930_v21  ;;  %v18507_v58 = vld [vmem:[#allocation10 + $0x100] sm:$0xff] }
 0x742   :  { %16535 = vmatprep.subr.mxu1 %v19930_v21  ;;  %16477 = vmatmul.mubr.msk.f32.gmra.mxu1 %vm1806_vm2, %v18505_v61 }
 0x743   :  { %16536 = vmatpush3.msra.mxu1 %v20963_v55  ;;  %16511 = vmatprep.mubr.msk.f32.mxu0 %vm19931_vm0, %v19930_v21  ;;  %v18508_v55 = vld [vmem:[#allocation10 + $0x138] sm:$0xff] }
 0x744   :  { %16512 = vmatmul.mubr.msk.f32.gmra.mxu0 %vm1806_vm2, %v18506_v54  ;;  %16479 = vmatprep.mubr.msk.f32.mxu1 %vm19931_vm0, %v19930_v21 }
 0x745   :  { %16514 = vmatprep.mubr.msk.f32.mxu0 %vm19931_vm0, %v19930_v21  ;;  %16593 = vmatprep.subr.mxu1 %v19930_v21 }
 0x746   :  { %16480 = vmatmul.mubr.msk.f32.gmra.mxu1 %vm1806_vm2, %v18507_v58  ;;  %16628 = vmatprep.subr.mxu0 %v19930_v21 }
 0x747   :  { %16482 = vmatprep.mubr.msk.f32.mxu1 %vm19931_vm0, %v19930_v21 }
 0x748   :  { %16515 = vmatmul.mubr.msk.f32.gmra.mxu0 %vm1806_vm2, %v18508_v55 }
 0x749   :  { %16517 = vmatprep.mubr.msk.f32.mxu0 %vm19931_vm0, %v19930_v21 }
 0x74a   :  { %16483 = vmatmul.mubr.msk.f32.gmra.mxu1 %vm1806_vm2, %v18509_v27 }
 0x74b   :  { %16485 = vmatprep.mubr.msk.f32.mxu1 %vm19931_vm0, %v19930_v21 }
 0x74c   :  { %16518 = vmatmul.mubr.msk.f32.gmra.mxu0 %vm1806_vm2, %v18510_v36 }
 0x74d   :  { %16520 = vmatprep.mubr.msk.f32.mxu0 %vm19931_vm0, %v19930_v21 }
 0x74e   :  { %16486 = vmatmul.mubr.msk.f32.gmra.mxu1 %vm1806_vm2, %v18511_v26 }
 0x74f   :  { %16537 = vmatprep.mubr.msk.f32.mxu1 %vm19931_vm0, %v19930_v21 }
 0x750   :  { %16521 = vmatmul.mubr.msk.f32.gmra.mxu0 %vm1806_vm2, %v18512_v5 }
 0x751   :  { %16572 = vmatprep.mubr.msk.f32.mxu0 %vm19931_vm0, %v19930_v21 }
 0x752   :  { %16538 = vmatmul.mubr.msk.f32.vlgmr.msra.gmra.mxu1 %vm1806_vm2, %v18513_v8 }
 0x753   :  { %16594 = vmatpush3.msk.msra.mxu1 %vm1828_vm1, %v21099_v16  ;;  %16540 = vmatprep.mubr.msk.f32.mxu1 %vm19931_vm0, %v19930_v21 }
 0x754   :  { %16595 = vmatprep.subr.mxu1 %v19930_v21  ;;  %16573 = vmatmul.mubr.msk.f32.vlgmr.msra.gmra.mxu0 %vm1806_vm2, %v18514_v3 }
 0x755   :  { %16596 = vmatpush3.msra.mxu1 %v3919_v63  ;;  %16575 = vmatprep.mubr.msk.f32.mxu0 %vm19931_vm0, %v19930_v21 }
 0x756   :  { %16597 = vmatprep.subr.mxu1 %v19930_v21  ;;  %16541 = vmatmul.mubr.msk.f32.gmra.mxu1 %vm1806_vm2, %v18515_v32 }
 0x757   :  { %16598 = vmatpush3.msra.mxu1 %v21106_v46  ;;  %16543 = vmatprep.mubr.msk.f32.mxu1 %vm19931_vm0, %v19930_v21 }
 0x758   :  { %16599 = vmatprep.subr.mxu1 %v19930_v21  ;;  %16576 = vmatmul.mubr.msk.f32.gmra.mxu0 %vm1806_vm2, %v18516_v9 }
 0x759   :  { %16600 = vmatpush3.msra.mxu1 %v21089_v43  ;;  %16578 = vmatprep.mubr.msk.f32.mxu0 %vm19931_vm0, %v19930_v21 }
 0x75a   :  { %16601 = vmatprep.subr.mxu1 %v19930_v21  ;;  %16544 = vmatmul.mubr.msk.f32.gmra.mxu1 %vm1806_vm2, %v18517_v10 }
 0x75b   :  { %16602 = vmatpush3.msra.mxu1 %v21079_v37  ;;  %16546 = vmatprep.mubr.msk.f32.mxu1 %vm19931_vm0, %v19930_v21 }
 0x75c   :  { %16603 = vmatprep.subr.mxu1 %v19930_v21  ;;  %16579 = vmatmul.mubr.msk.f32.gmra.mxu0 %vm1806_vm2, %v18518_v42 }
 0x75d   :  { %16604 = vmatpush3.msra.mxu1 %v21094_v31  ;;  %16581 = vmatprep.mubr.msk.f32.mxu0 %vm19931_vm0, %v19930_v21 }
 0x75e   :  { %16605 = vmatprep.subr.mxu1 %v19930_v21  ;;  %16547 = vmatmul.mubr.msk.f32.gmra.mxu1 %vm1806_vm2, %v18519_v34 }
 0x75f   :  { %16606 = vmatpush3.msra.mxu1 %v21084_v39  ;;  %16549 = vmatprep.mubr.msk.f32.mxu1 %vm19931_vm0, %v19930_v21 }
 0x760   :  { %16582 = vmatmul.mubr.msk.f32.gmra.mxu0 %vm1806_vm2, %v18520_v15  ;;  %16662 = vmatprep.subr.mxu1 %v19930_v21 }
 0x761   :  { %16584 = vmatprep.mubr.msk.f32.mxu0 %vm19931_vm0, %v19930_v21 }
 0x762   :  { %16550 = vmatmul.mubr.msk.f32.gmra.mxu1 %vm1806_vm2, %v18521_v12 }
 0x763   :  { %16552 = vmatprep.mubr.msk.f32.mxu1 %vm19931_vm0, %v19930_v21 }
 0x764   :  { %16585 = vmatmul.mubr.msk.f32.gmra.mxu0 %vm1806_vm2, %v18522_v13 }
 0x765   :  { %16587 = vmatprep.mubr.msk.f32.mxu0 %vm19931_vm0, %v19930_v21 }
 0x766   :  { %16553 = vmatmul.mubr.msk.f32.gmra.mxu1 %vm1806_vm2, %v18523_v17 }
 0x767   :  { %16555 = vmatprep.mubr.msk.f32.mxu1 %vm19931_vm0, %v19930_v21 }
 0x768   :  { %16588 = vmatmul.mubr.msk.f32.gmra.mxu0 %vm1806_vm2, %v18524_v24 }
 0x769   :  { %16590 = vmatprep.mubr.msk.f32.mxu0 %vm19931_vm0, %v19930_v21 }
 0x76a   :  { %16556 = vmatmul.mubr.msk.f32.gmra.mxu1 %vm1806_vm2, %v18525_v28 }
 0x76b   :  { %16607 = vmatprep.mubr.msk.f32.mxu1 %vm19931_vm0, %v19930_v21 }
 0x76c   :  { %16591 = vmatmul.mubr.msk.f32.gmra.mxu0 %vm1806_vm2, %v18526_v48 }
 0x76d   :  { %16642 = vmatprep.mubr.msk.f32.mxu0 %vm19931_vm0, %v19930_v21 }
 0x76e   :  { %16608 = vmatmul.mubr.msk.f32.vlgmr.msra.gmra.mxu1 %vm1806_vm2, %v18527_v44 }
 0x76f   :  { %16610 = vmatprep.mubr.msk.f32.mxu1 %vm19931_vm0, %v19930_v21 }
 0x772   :  { %16611 = vmatmul.mubr.msk.f32.gmra.mxu1 %vm1806_vm2, %v18528_v33 }
 0x773   :  { %16613 = vmatprep.mubr.msk.f32.mxu1 %vm19931_vm0, %v19930_v21 }
 0x776   :  { %16614 = vmatmul.mubr.msk.f32.gmra.mxu1 %vm1806_vm2, %v18529_v25 }
 0x777   :  { %16616 = vmatprep.mubr.msk.f32.mxu1 %vm19931_vm0, %v19930_v21 }
 0x77a   :  { %16617 = vmatmul.mubr.msk.f32.gmra.mxu1 %vm1806_vm2, %v18530_v18 }
 0x77b   :  { %16619 = vmatprep.mubr.msk.f32.mxu1 %vm19931_vm0, %v19930_v21 }
 0x77e   :  { %16620 = vmatmul.mubr.msk.f32.gmra.mxu1 %vm1806_vm2, %v18531_v29 }
 0x77f   :  { %16622 = vmatprep.mubr.msk.f32.mxu1 %vm19931_vm0, %v19930_v21 }
 0x782   :  { %16623 = vmatmul.mubr.msk.f32.gmra.mxu1 %vm1806_vm2, %v18532_v40 }
 0x783   :  { %16625 = vmatprep.mubr.msk.f32.mxu1 %vm19931_vm0, %v19930_v21 }
 0x786   :  { %16626 = vmatmul.mubr.msk.f32.gmra.mxu1 %vm1806_vm2, %v18533_v19 }
 0x787   :  { %16676 = vmatprep.mubr.msk.f32.mxu1 %vm19931_vm0, %v19930_v21 }
 0x7ad   :  { %v4102_v35 = vpop.f32.mrf.mxu0 }
 0x7af   :  { %v3999_v22 = vpop.f32.mrf.mxu1  ;;  %v16364_v37 = vpop.f32.mrf.mxu0 }
 0x7b0   :  { %v4103_v50 = vadd.f32 %v4102_v35, %v3999_v22 }
 0x7b1   :  { %v16329_v39 = vpop.f32.mrf.mxu1 }
 0x7b3   :  { %v4107_v41 = vpop.f32.mrf.mxu0 }
 0x7b5   :  { %v4004_v43 = vpop.f32.mrf.mxu1  ;;  %v16367_v30 = vpop.f32.mrf.mxu0 }
 0x7b6   :  { %v4108_v31 = vadd.f32 %v4107_v41, %v4004_v43 }
 0x7b7   :  { %v16332_v45 = vpop.f32.mrf.mxu1 }
 0x7b9   :  { %v4112_v16 = vpop.f32.mrf.mxu0 }
 0x7bb   :  { %v4009_v57 = vpop.f32.mrf.mxu1  ;;  %v16370_v46 = vpop.f32.mrf.mxu0 }
 0x7bc   :  { %v4113_v47 = vadd.f32 %v4112_v16, %v4009_v57 }
 0x7bd   :  { %v16335_v38 = vpop.f32.mrf.mxu1 }
 0x7bf   :  { %v4117_v49 = vpop.f32.mrf.mxu0 }
 0x7c1   :  { %v4014_v4 = vpop.f32.mrf.mxu1  ;;  %v16373_v53 = vpop.f32.mrf.mxu0 }
 0x7c2   :  { %v4118_v23 = vadd.f32 %v4117_v49, %v4014_v4 }
 0x7c3   :  { %v16338_v52 = vpop.f32.mrf.mxu1  ;;  %v4122_v51 = vpop.f32.mrf.mxu0 }
 0x7c5   :  { %v4019_v56 = vpop.f32.mrf.mxu1  ;;  %v16376_v60 = vpop.f32.mrf.mxu0 }
 0x7c6   :  { %v4123_v59 = vadd.f32 %v4122_v51, %v4019_v56 }
 0x7c7   :  { %v16341_v14 = vpop.f32.mrf.mxu1  ;;  %v4127_v62 = vpop.f32.mrf.mxu0 }
 0x7c9   :  { %v4024_v11 = vpop.f32.mrf.mxu1  ;;  %v16379_v1 = vpop.f32.mrf.mxu0 }
 0x7ca   :  { %v4128_v2 = vadd.f32 %v4127_v62, %v4024_v11 }
 0x7cb   :  { %v16344_v6 = vpop.f32.mrf.mxu1  ;;  %v4132_v7 = vpop.f32.mrf.mxu0 }
 0x7cd   :  { %v4029_v20 = vpop.f32.mrf.mxu1  ;;  %v16382_v61 = vpop.f32.mrf.mxu0 }
 0x7ce   :  { %v4133_v54 = vadd.f32 %v4132_v7, %v4029_v20 }
 0x7cf   :  { %v16347_v58 = vpop.f32.mrf.mxu1  ;;  %v4315_v55 = vpop.f32.mrf.mxu0 }
 0x7d1   :  { %v4205_v27 = vpop.f32.mrf.mxu1  ;;  %v16434_v36 = vpop.f32.mrf.mxu0 }
 0x7d2   :  { %v4239_v26 = vadd.f32 %v4205_v27, %v4103_v50 }
 0x7d3   :  { %v16399_v5 = vpop.f32.mrf.mxu1 }
 0x7d4   :  { %v4349_v8 = vadd.f32 %v4315_v55, %v4239_v26  ;;  %v4320_v63 = vpop.f32.mrf.mxu0 }
 0x7d6   :  { %v16437_v3 = vpop.f32.mrf.mxu0 }
 0x7d7   :  { %v4210_v32 = vpop.f32.mrf.mxu1 }
 0x7d8   :  { %v4240_v9 = vadd.f32 %v4210_v32, %v4108_v31 }
 0x7d9   :  { %v16402_v10 = vpop.f32.mrf.mxu1 }
 0x7da   :  { %v21320_v42 = vadd.f32 %v4320_v63, %v4240_v9  ;;  %v4325_v34 = vpop.f32.mrf.mxu0 }
 0x7dc   :  { %v16440_v15 = vpop.f32.mrf.mxu0 }
 0x7dd   :  { %v4215_v12 = vpop.f32.mrf.mxu1 }
 0x7de   :  { %v4241_v13 = vadd.f32 %v4215_v12, %v4113_v47 }
 0x7df   :  { %v16405_v17 = vpop.f32.mrf.mxu1 }
 0x7e0   :  { %v21322_v24 = vadd.f32 %v4325_v34, %v4241_v13  ;;  %v4330_v28 = vpop.f32.mrf.mxu0 }
 0x7e2   :  { %v4220_v48 = vpop.f32.mrf.mxu1  ;;  %v16443_v44 = vpop.f32.mrf.mxu0 }
 0x7e3   :  { %v4242_v33 = vadd.f32 %v4220_v48, %v4118_v23 }
 0x7e4   :  { %v16408_v25 = vpop.f32.mrf.mxu1  ;;  %v4335_v18 = vpop.f32.mrf.mxu0 }
 0x7e5   :  { %v21324_v29 = vadd.f32 %v4330_v28, %v4242_v33 }
 0x7e6   :  { %v4225_v40 = vpop.f32.mrf.mxu1  ;;  %v16446_v19 = vpop.f32.mrf.mxu0 }
 0x7e7   :  { %v4243_v35 = vadd.f32 %v4225_v40, %v4123_v59 }
 0x7e8   :  { %v16411_v22 = vpop.f32.mrf.mxu1  ;;  %v4340_v37 = vpop.f32.mrf.mxu0 }
 0x7e9   :  { %v21326_v50 = vadd.f32 %v4335_v18, %v4243_v35 }
 0x7ea   :  { %v4230_v39 = vpop.f32.mrf.mxu1  ;;  %v16449_v41 = vpop.f32.mrf.mxu0 }
 0x7eb   :  { %v4244_v43 = vadd.f32 %v4230_v39, %v4128_v2 }
 0x7ec   :  { %v16414_v30 = vpop.f32.mrf.mxu1  ;;  %v4345_v31 = vpop.f32.mrf.mxu0 }
 0x7ed   :  { %v21328_v45 = vadd.f32 %v4340_v37, %v4244_v43 }
 0x7ee   :  { %v4235_v16 = vpop.f32.mrf.mxu1  ;;  %v16452_v57 = vpop.f32.mrf.mxu0 }
 0x7ef   :  { %v4245_v46 = vadd.f32 %v4235_v16, %v4133_v54 }
 0x7f0   :  { %v16417_v47 = vpop.f32.mrf.mxu1  ;;  %v4535_v38 = vpop.f32.mrf.mxu0 }
 0x7f1   :  { %v21330_v49 = vadd.f32 %v4345_v31, %v4245_v46 }
 0x7f2   :  { %v4425_v4 = vpop.f32.mrf.mxu1  ;;  %v16504_v53 = vpop.f32.mrf.mxu0 }
 0x7f3   :  { %v4459_v23 = vadd.f32 %v4425_v4, %v4349_v8 }
 0x7f4   :  { %v16469_v52 = vpop.f32.mrf.mxu1 }
 0x7f5   :  { %v4569_v51 = vadd.f32 %v4535_v38, %v4459_v23 }
 0x7f7   :  { %v4430_v56 = vpop.f32.mrf.mxu1 }
 0x7f8   :  { %v4460_v31 = vadd.f32 %v4430_v56, %v21320_v42 }
 0x7f9   :  { %v16472_v60 = vpop.f32.mrf.mxu1 }
 0x7fa   :  { %v4540_v59 = vpop.f32.mrf.mxu0 }
 0x7fb   :  { %v4570_v38 = vadd.f32 %v4540_v59, %v4460_v31 }
 0x7fc   :  { %v16507_v14 = vpop.f32.mrf.mxu0 }
 0x7fd   :  { %v4435_v62 = vpop.f32.mrf.mxu1 }
 0x7fe   :  { %v4461_v4 = vadd.f32 %v4435_v62, %v21322_v24 }
 0x7ff   :  { %v16475_v11 = vpop.f32.mrf.mxu1 }
 0x800   :  { %v4545_v1 = vpop.f32.mrf.mxu0 }
 0x802   :  { %v4440_v2 = vpop.f32.mrf.mxu1  ;;  %v16510_v6 = vpop.f32.mrf.mxu0 }
 0x803   :  { %v4571_v6 = vadd.f32 %v4545_v1, %v4461_v4 }
 0x804   :  { %v16478_v7 = vpop.f32.mrf.mxu1  ;;  %v4550_v20 = vpop.f32.mrf.mxu0 }
 0x805   :  { %v4462_v7 = vadd.f32 %v4440_v2, %v21324_v29 }
 0x806   :  { %v4445_v61 = vpop.f32.mrf.mxu1  ;;  %v16513_v54 = vpop.f32.mrf.mxu0 }
 0x807   :  { %v4463_v59 = vadd.f32 %v4445_v61, %v21326_v50 }
 0x808   :  { %v16481_v58 = vpop.f32.mrf.mxu1  ;;  %v4555_v55 = vpop.f32.mrf.mxu0 }
 0x809   :  { %v4573_v1 = vadd.f32 %v4555_v55, %v4463_v59 }
 0x80a   :  { %v4450_v27 = vpop.f32.mrf.mxu1  ;;  %v16516_v36 = vpop.f32.mrf.mxu0 }
 0x80b   :  { %v4464_v29 = vadd.f32 %v4450_v27, %v21328_v45 }
 0x80c   :  { %v16484_v26 = vpop.f32.mrf.mxu1  ;;  %v21332_v5 = vpop.f32.mrf.mxu0 }
 0x80d   :  { %v14497_v26 = vld [vmem:[#allocation55] ss:$0 sm:$0xff] }
 0x80e   :  { %v21334_v8 = vpop.f32.mrf.mxu1  ;;  %v16519_v63 = vpop.f32.mrf.mxu0 }
 0x80f   :  { %v4465_v50 = vadd.f32 %v21334_v8, %v21330_v49 }
 0x810   :  { %v16487_v3 = vpop.f32.mrf.mxu1  ;;  %v21336_v32 = vpop.f32.mrf.mxu0 }
 0x811   :  { %v4572_v3 = vadd.f32 %v4550_v20, %v4462_v7  ;;  %v4574_v20 = vadd.f32 %v21332_v5, %v4464_v29  ;;  %v4575_v45 = vadd.f32 %v21336_v32, %v4465_v50 }
 0x812   :  { %v16522_v9 = vpop.f32.mrf.mxu0  ;;  %v4645_v10 = vpop.f32.mrf.mxu1 }
 0x813   :  { %v4679_v53 = vadd.f32 %v4645_v10, %v4569_v51 }
 0x814   :  { %v16539_v34 = vpop.f32.mrf.mxu1  ;;  %v4755_v15 = vpop.f32.mrf.mxu0 }
 0x815   :  { %v4789_v54 = vadd.f32 %v4755_v15, %v4679_v53 }
 0x816   :  { %v4650_v12 = vpop.f32.mrf.mxu1  ;;  %v16574_v13 = vpop.f32.mrf.mxu0 }
 0x817   :  { %v4680_v60 = vadd.f32 %v4650_v12, %v4570_v38 }
 0x818   :  { %v16542_v17 = vpop.f32.mrf.mxu1  ;;  %v4760_v28 = vpop.f32.mrf.mxu0 }
 0x819   :  { %v4790_v36 = vadd.f32 %v4760_v28, %v4680_v60 }
 0x81a   :  { %v4655_v48 = vpop.f32.mrf.mxu1  ;;  %v16577_v44 = vpop.f32.mrf.mxu0 }
 0x81b   :  { %v4681_v42 = vadd.f32 %v4655_v48, %v4571_v6 }
 0x81c   :  { %v16545_v33 = vpop.f32.mrf.mxu1  ;;  %v4765_v25 = vpop.f32.mrf.mxu0 }
 0x81d   :  { %v4791_v62 = vadd.f32 %v4765_v25, %v4681_v42 }
 0x81e   :  { %v4660_v18 = vpop.f32.mrf.mxu1  ;;  %v16580_v40 = vpop.f32.mrf.mxu0 }
 0x81f   :  { %v4682_v9 = vadd.f32 %v4660_v18, %v4572_v3 }
 0x820   :  { %v16548_v19 = vpop.f32.mrf.mxu1  ;;  %v4770_v35 = vpop.f32.mrf.mxu0 }
 0x821   :  { %v4792_v17 = vadd.f32 %v4770_v35, %v4682_v9 }
 0x822   :  { %v4665_v22 = vpop.f32.mrf.mxu1  ;;  %v16583_v37 = vpop.f32.mrf.mxu0 }
 0x823   :  { %v4683_v28 = vadd.f32 %v4665_v22, %v4573_v1 }
 0x824   :  { %v16551_v39 = vpop.f32.mrf.mxu1  ;;  %v4775_v41 = vpop.f32.mrf.mxu0 }
 0x825   :  { %v4793_v18 = vadd.f32 %v4775_v41, %v4683_v28 }
 0x826   :  { %v4670_v43 = vpop.f32.mrf.mxu1  ;;  %v16586_v30 = vpop.f32.mrf.mxu0 }
 0x827   :  { %v4684_v40 = vadd.f32 %v4670_v43, %v4574_v20 }
 0x828   :  { %v16554_v16 = vpop.f32.mrf.mxu1  ;;  %v4780_v57 = vpop.f32.mrf.mxu0 }
 0x829   :  { %v4794_v22 = vadd.f32 %v4780_v57, %v4684_v40 }
 0x82a   :  { %v4675_v46 = vpop.f32.mrf.mxu1  ;;  %v16589_v47 = vpop.f32.mrf.mxu0 }
 0x82b   :  { %v4685_v39 = vadd.f32 %v4675_v46, %v4575_v45  ;;  %v14499_v45 = vld [vmem:[#allocation56] ss:$0 sm:$0xff] }
 0x82c   :  { %v16557_v23 = vpop.f32.mrf.mxu1  ;;  %v4785_v52 = vpop.f32.mrf.mxu0 }
 0x82d   :  { %v4795_v49 = vadd.f32 %v4785_v52, %v4685_v39 }
 0x82e   :  { %v4865_v14 = vpop.f32.mrf.mxu1  ;;  %v16592_v11 = vpop.f32.mrf.mxu0 }
 0x82f   :  { %v4899_v56 = vadd.f32 %v4865_v14, %v4789_v54 }
 0x830   :  { %v16609_v58 = vpop.f32.mrf.mxu1 }
 0x831   :  { %v4913_v10 = vadd.f32 %v14497_v26, %v4899_v56 }
 0x832   :  { %v4870_v63 = vpop.f32.mrf.mxu1 }
 0x833   :  { %v4900_v24 = vadd.f32 %v4870_v63, %v4790_v36 }
 0x834   :  { %v16612_v51 = vpop.f32.mrf.mxu1 }
 0x835   :  { %v4914_v34 = vadd.f32 %v14497_v26, %v4900_v24 }
 0x836   :  { %v4875_v12 = vpop.f32.mrf.mxu1 }
 0x837   :  { %v4920_v2 = vadd.f32 %v4914_v34, %v4913_v10  ;;  %v4901_v15 = vadd.f32 %v4875_v12, %v4791_v62 }
 0x838   :  { %v16615_v13 = vpop.f32.mrf.mxu1 }
 0x839   :  { %v4915_v48 = vadd.f32 %v14497_v26, %v4901_v15 }
 0x83a   :  { %v4880_v44 = vpop.f32.mrf.mxu1 }
 0x83b   :  { %v4921_v61 = vadd.f32 %v4920_v2, %v4915_v48  ;;  %v4902_v33 = vadd.f32 %v4880_v44, %v4792_v17 }
 0x83c   :  { %v16618_v25 = vpop.f32.mrf.mxu1 }
 0x83d   :  { %v4916_v55 = vadd.f32 %v14497_v26, %v4902_v33  ;;  %v14498_v25 = vld [vmem:[#allocation58] ss:$0 sm:$0xff] }
 0x83e   :  { %v4885_v19 = vpop.f32.mrf.mxu1 }
 0x83f   :  { %v4922_v27 = vadd.f32 %v4921_v61, %v4916_v55  ;;  %v4903_v37 = vadd.f32 %v4885_v19, %v4793_v18 }
 0x840   :  { %v16621_v35 = vpop.f32.mrf.mxu1 }
 0x841   :  { %v4917_v30 = vadd.f32 %v14497_v26, %v4903_v37 }
 0x842   :  { %v4890_v31 = vpop.f32.mrf.mxu1 }
 0x843   :  { %v4923_v5 = vadd.f32 %v4922_v27, %v4917_v30  ;;  %v4904_v16 = vadd.f32 %v4890_v31, %v4794_v22 }
 0x844   :  { %v16624_v47 = vpop.f32.mrf.mxu1 }
 0x845   :  { %v4918_v8 = vadd.f32 %v14497_v26, %v4904_v16 }
 0x846   :  { %v4895_v38 = vpop.f32.mrf.mxu1 }
 0x847   :  { %v4924_v4 = vadd.f32 %v4923_v5, %v4918_v8  ;;  %v4905_v41 = vadd.f32 %v4895_v38, %v4795_v49 }
 0x848   :  { %v16627_v43 = vpop.f32.mrf.mxu1 }
 0x849   :  { %v4919_v53 = vadd.f32 %v14497_v26, %v4905_v41 }
 0x84b   :  { %v4925_v23 = vsel %vm1828_vm1, %v4919_v53, 0.0 }
 0x84c   :  { %v4926_v32 = vadd.f32 %v4925_v23, %v4924_v4 }
 0x84e   :  { %v4927_v60 = vrot.slane %v4926_v32, 4 }
 0x850   :  { %v4928_v14 = vadd.f32 %v4927_v60, %v4926_v32 }
 0x852   :  { %v4929_v11 = vrot.slane %v4928_v14, 2 }
 0x854   :  { %v4930_v57 = vadd.f32 %v4929_v11, %v4928_v14 }
 0x856   :  { %v4931_v46 = vrot.slane %v4930_v57, 1 }
 0x858   :  { %v4932_v6 = vadd.f32 %v4931_v46, %v4930_v57 }
 0x85a   :  { %v4933_v7 = vmul.f32 0.02, %v4932_v6  ;;  %v5006_v6 = vld [vmem:[#allocation7] sm:$0xff] }
 0x85c   :  { %v4934_v54 = vsub.f32 %v4913_v10, %v4933_v7  ;;  %v4935_v58 = vsub.f32 %v4914_v34, %v4933_v7  ;;  %v4936_v36 = vsub.f32 %v4915_v48, %v4933_v7  ;;  %v4937_v52 = vsub.f32 %v4916_v55, %v4933_v7 }
 0x85d   :  { %v4938_v42 = vsub.f32 %v4917_v30, %v4933_v7  ;;  %v4939_v56 = vsub.f32 %v4918_v8, %v4933_v7  ;;  %v4940_v63 = vsub.f32 %v4919_v53, %v4933_v7  ;;  %v5160_v7 = vld [vmem:[#allocation7 + $0x10] sm:$0xff] }
 0x85e   :  { %v4941_v3 = vmul.f32 %v4934_v54, %v4934_v54  ;;  %v4942_v59 = vmul.f32 %v4935_v58, %v4935_v58  ;;  %v4943_v26 = vmul.f32 %v4936_v36, %v4936_v36  ;;  %v4944_v51 = vmul.f32 %v4937_v52, %v4937_v52 }
 0x85f   :  { %v4945_v9 = vmul.f32 %v4938_v42, %v4938_v42  ;;  %v4947_v1 = vmul.f32 %v4940_v63, %v4940_v63  ;;  %v4946_v29 = vmul.f32 %v4939_v56, %v4939_v56 }
 0x860   :  { %v4948_v24 = vadd.f32 %v4942_v59, %v4941_v3  ;;  %v17402_v3 = vld [vmem:[#allocation65 + $0x204] ss:$36 sps:$4 sm:$0xff]  }
 0x861   :  { %v4953_v10 = vsel %vm1828_vm1, %v4947_v1, 0.0  ;;  %v5236_v59 = vld [vmem:[#allocation7 + $0x18] sm:$0xff] }
 0x862   :  { %v4949_v62 = vadd.f32 %v4948_v24, %v4943_v26  ;;  %v17400_v26 = vld [vmem:[#allocation65 + $0x200] ss:$36 sps:$4 sm:$0xff]  }
 0x863   :  { %v17408_v24 = vld [vmem:[#allocation65 + $0x1bc] ss:$36 sps:$4 sm:$0xff]   ;;  %v17417_v1 = vld [vmem:[#allocation65 + $0x124] ss:$36 sps:$4 sm:$0xff]  }
 0x864   :  { %v4950_v12 = vadd.f32 %v4949_v62, %v4944_v51  ;;  %v17406_v51 = vld [vmem:[#allocation65 + $0x1b8] ss:$36 sps:$4 sm:$0xff]  }
 0x865   :  { %v17414_v62 = vld [vmem:[#allocation65 + $0x174] ss:$36 sps:$4 sm:$0xff]  }
 0x866   :  { %v4951_v2 = vadd.f32 %v4950_v12, %v4945_v9  ;;  %v17412_v9 = vld [vmem:[#allocation65 + $0x170] ss:$36 sps:$4 sm:$0xff]   ;;  %v17415_v12 = vld [vmem:[#allocation65 + $0x120] ss:$36 sps:$4 sm:$0xff]  }
 0x868   :  { %v4952_v15 = vadd.f32 %v4951_v2, %v4946_v29  ;;  %v17418_v29 = vld [vmem:[#allocation65 + $0x128] ss:$36 sps:$4 sm:$0xff]  }
 0x869   :  { %v17420_v2 = vld [vmem:[#allocation65 + $0x12c] ss:$36 sps:$4 sm:$0xff]  }
 0x86a   :  { %v4954_v34 = vadd.f32 %v4953_v10, %v4952_v15  ;;  %v17423_v15 = vld [vmem:[#allocation65 + $0xdc] ss:$36 sps:$4 sm:$0xff]   ;;  %v17426_v10 = vld [vmem:[#allocation65 + $0xe4] ss:$36 sps:$4 sm:$0xff]  }
 0x86c   :  { %v4955_v13 = vrot.slane %v4954_v34, 4 }
 0x86e   :  { %v4956_v17 = vadd.f32 %v4955_v13, %v4954_v34  ;;  %v17421_v34 = vld [vmem:[#allocation65 + $0xd8] ss:$36 sps:$4 sm:$0xff]   ;;  %v17424_v13 = vld [vmem:[#allocation65 + $0xe0] ss:$36 sps:$4 sm:$0xff]  }
 0x870   :  { %v4957_v28 = vrot.slane %v4956_v17, 2 }
 0x872   :  { %v4958_v48 = vadd.f32 %v4957_v28, %v4956_v17  ;;  %v17429_v17 = vld [vmem:[#allocation65 + $0x94] ss:$36 sps:$4 sm:$0xff]  }
 0x873   :  { %v17427_v28 = vld [vmem:[#allocation65 + $0x90] ss:$36 sps:$4 sm:$0xff]  }
 0x874   :  { %v4959_v44 = vrot.slane %v4958_v48, 1 }
 0x876   :  { %v4960_v20 = vadd.f32 %v4959_v44, %v4958_v48  ;;  %v17430_v48 = vld [vmem:[#allocation65 + $0x98] ss:$36 sps:$4 sm:$0xff]  }
 0x877   :  { %v17432_v44 = vld [vmem:[#allocation65 + $0x9c] ss:$36 sps:$4 sm:$0xff]  }
 0x878   :  { %v4961_v50 = vmul.f32 0.02, %v4960_v20  ;;  %v17435_v20 = vld [vmem:[#allocation65 + $0x4c] ss:$36 sps:$4 sm:$0xff]  }
 0x87a   :  { %v4962_v61 = vadd.f32 1e-05, %v4961_v50  ;;  %v17438_v50 = vld [vmem:[#allocation65 + $0x54] ss:$36 sps:$4 sm:$0xff]  }
 0x87c   :  { %18431 = vrsqrt.f32 %v4962_v61  ;;  %v17433_v61 = vld [vmem:[#allocation65 + $0x48] ss:$36 sps:$4 sm:$0xff]  }
 0x889   :  { %v18432_v33 = vpop.eup %18431 }
 0x88a   :  { %v4967_v18 = vmul.f32 %v18432_v33, %v4937_v52  ;;  %v4968_v40 = vmul.f32 %v18432_v33, %v4938_v42  ;;  %v4969_v55 = vmul.f32 %v18432_v33, %v4939_v56  ;;  %v4970_v19 = vmul.f32 %v18432_v33, %v4940_v63  ;;  %v17403_v52 = vld [vmem:[#allocation65 + $0x1b0] ss:$36 sps:$4 sm:$0xff]   ;;  %v17409_v56 = vld [vmem:[#allocation65 + $0x168] ss:$36 sps:$4 sm:$0xff]  }
 0x88b   :  { %v4966_v27 = vmul.f32 %v18432_v33, %v4936_v36  ;;  %v4965_v37 = vmul.f32 %v18432_v33, %v4935_v58  ;;  %v4964_v35 = vmul.f32 %v18432_v33, %v4934_v54  ;;  %v17399_v54 = vld [vmem:[#allocation65 + $0x1fc] ss:$36 sps:$4 sm:$0xff]   ;;  %v17405_v36 = vld [vmem:[#allocation65 + $0x1b4] ss:$36 sps:$4 sm:$0xff]   ;;  %v17411_v42 = vld [vmem:[#allocation65 + $0x16c] ss:$36 sps:$4 sm:$0xff]  }
 0x88c   :  { %v4983_v22 = vmul.f32 %v14498_v25, %v4969_v55  ;;  %v4984_v39 = vmul.f32 %v14498_v25, %v4970_v19  ;;  %v4982_v30 = vmul.f32 %v14498_v25, %v4968_v40  ;;  %v4981_v16 = vmul.f32 %v14498_v25, %v4967_v18  ;;  %v17397_v58 = vld [vmem:[#allocation65 + $0x1f8] ss:$36 sps:$4 sm:$0xff]   ;;  %v17436_v33 = vld [vmem:[#allocation65 + $0x50] ss:$36 sps:$4 sm:$0xff]   ;;  %v17439_v40 = vld [vmem:[#allocation65] ss:$36 sps:$4 sm:$0xff]  }
 0x88d   :  { %v4980_v8 = vmul.f32 %v14498_v25, %v4966_v27  ;;  %v4979_v41 = vmul.f32 %v14498_v25, %v4965_v37  ;;  %v4978_v23 = vmul.f32 %v14498_v25, %v4964_v35  ;;  %v5084_v63 = vld [vmem:[#allocation7 + $0x8] sm:$0xff]  ;;  %v17441_v25 = vld [vmem:[#allocation65 + $0x4] ss:$36 sps:$4 sm:$0xff]  }
 0x88e   :  { %v4998_v31 = vadd.f32 %v14499_v45, %v4984_v39  ;;  %v4997_v5 = vadd.f32 %v14499_v45, %v4983_v22  ;;  %v4996_v49 = vadd.f32 %v14499_v45, %v4982_v30  ;;  %v4995_v4 = vadd.f32 %v14499_v45, %v4981_v16  ;;  %v17444_v18 = vld [vmem:[#allocation65 + $0xc] ss:$36 sps:$4 sm:$0xff]  }
 0x88f   :  { %v4994_v53 = vadd.f32 %v14499_v45, %v4980_v8  ;;  %v4993_v60 = vadd.f32 %v14499_v45, %v4979_v41  ;;  %v4992_v11 = vadd.f32 %v14499_v45, %v4978_v23  ;;  %v17442_v55 = vld [vmem:[#allocation65 + $0x8] ss:$36 sps:$4 sm:$0xff]   ;;  %v17450_v45 = vld [vmem:[#allocation65 + $0x214] ss:$36 sps:$4 sm:$0xff]  }
 0x890   :  { %v21349_v47 = vmax.f32 %v4998_v31, 0.0  ;;  %v21355_v38 = vmax.f32 %v4997_v5, 0.0  ;;  %v21361_v43 = vmax.f32 %v4996_v49, 0.0  ;;  %v21367_v32 = vmax.f32 %v4995_v4, 0.0  ;;  %v17447_v19 = vld [vmem:[#allocation65 + $0x20c] ss:$36 sps:$4 sm:$0xff]  }
 0x891   :  { %v21373_v14 = vmax.f32 %v4994_v53, 0.0  ;;  %v21379_v57 = vmax.f32 %v4993_v60, 0.0  ;;  %v21385_v46 = vmax.f32 %v4992_v11, 0.0  ;;  %v17445_v8 = vld [vmem:[#allocation65 + $0x208] ss:$36 sps:$4 sm:$0xff]  }
 0x892   :  { %16629 = vmatpush3.msk.msra.mxu0 %vm1828_vm1, %v21349_v47  ;;  %16663 = vmatpush3.msk.msra.mxu1 %vm1828_vm1, %v21349_v47  ;;  %v17448_v4 = vld [vmem:[#allocation65 + $0x210] ss:$36 sps:$4 sm:$0xff]   ;;  %v17453_v23 = vld [vmem:[#allocation65 + $0x1c4] ss:$36 sps:$4 sm:$0xff]  }
 0x893   :  { %16630 = vmatprep.subr.mxu0 %v19930_v21  ;;  %16664 = vmatprep.subr.mxu1 %v19930_v21  ;;  %v17456_v60 = vld [vmem:[#allocation65 + $0x1cc] ss:$36 sps:$4 sm:$0xff]   ;;  %v17451_v11 = vld [vmem:[#allocation65 + $0x1c0] ss:$36 sps:$4 sm:$0xff]  }
 0x894   :  { %16631 = vmatpush3.msra.mxu0 %v21355_v38  ;;  %16665 = vmatpush3.msra.mxu1 %v21355_v38 }
 0x895   :  { %16632 = vmatprep.subr.mxu0 %v19930_v21  ;;  %16666 = vmatprep.subr.mxu1 %v19930_v21 }
 0x896   :  { %16633 = vmatpush3.msra.mxu0 %v21361_v43  ;;  %16667 = vmatpush3.msra.mxu1 %v21361_v43 }
 0x897   :  { %16634 = vmatprep.subr.mxu0 %v19930_v21  ;;  %16668 = vmatprep.subr.mxu1 %v19930_v21 }
 0x898   :  { %16635 = vmatpush3.msra.mxu0 %v21367_v32  ;;  %16669 = vmatpush3.msra.mxu1 %v21367_v32 }
 0x899   :  { %16636 = vmatprep.subr.mxu0 %v19930_v21  ;;  %16670 = vmatprep.subr.mxu1 %v19930_v21 }
 0x89a   :  { %16637 = vmatpush3.msra.mxu0 %v21373_v14  ;;  %16671 = vmatpush3.msra.mxu1 %v21373_v14 }
 0x89b   :  { %16638 = vmatprep.subr.mxu0 %v19930_v21  ;;  %16672 = vmatprep.subr.mxu1 %v19930_v21 }
 0x89c   :  { %16639 = vmatpush3.msra.mxu0 %v21379_v57  ;;  %16673 = vmatpush3.msra.mxu1 %v21379_v57 }
 0x89d   :  { %16640 = vmatprep.subr.mxu0 %v19930_v21  ;;  %16674 = vmatprep.subr.mxu1 %v19930_v21 }
 0x89e   :  { %16641 = vmatpush3.msra.mxu0 %v21385_v46  ;;  %16675 = vmatpush3.msra.mxu1 %v21385_v46 }
 0x89f   :  { %16645 = vmatprep.subr.mxu0 %v19930_v21  ;;  %16643 = vmatmul.mubr.msk.f32.vlgmr.msra.gmra.mxu0 %vm1806_vm2, %v5006_v6  ;;  %v17454_v6 = vld [vmem:[#allocation65 + $0x1c8] ss:$36 sps:$4 sm:$0xff]  }
 0x8a0   :  { %16646 = vmatpush3.msk.msra.mxu0 %vm1828_vm1, %v21349_v47  ;;  %16659 = vmatprep.mubr.msk.f32.mxu0 %vm19931_vm0, %v19930_v21 }
 0x8a1   :  { %16647 = vmatprep.subr.mxu0 %v19930_v21  ;;  %16677 = vmatmul.mubr.msk.f32.vlgmr.msra.gmra.mxu1 %vm1806_vm2, %v5160_v7  ;;  %v17459_v7 = vld [vmem:[#allocation65 + $0x17c] ss:$36 sps:$4 sm:$0xff]  }
 0x8a2   :  { %16648 = vmatpush3.msra.mxu0 %v21355_v38  ;;  %5760 = vmatprep.subr.bf16.mxu1 %v17399_v54  ;;  %v17462_v54 = vld [vmem:[#allocation65 + $0x184] ss:$36 sps:$4 sm:$0xff]  }
 0x8a3   :  { %16649 = vmatprep.subr.mxu0 %v19930_v21  ;;  %5761 = vmatpush1.bf16.msra.mxu1 %v17397_v58  ;;  %v17457_v58 = vld [vmem:[#allocation65 + $0x178] ss:$36 sps:$4 sm:$0xff]  }
 0x8a4   :  { %16650 = vmatpush3.msra.mxu0 %v21361_v43  ;;  %5762 = vmatprep.subr.bf16.mxu1 %v17405_v36  ;;  %v17460_v36 = vld [vmem:[#allocation65 + $0x180] ss:$36 sps:$4 sm:$0xff]  }
 0x8a5   :  { %16651 = vmatprep.subr.mxu0 %v19930_v21  ;;  %5792 = vmatprep.mubr.bf16.mxu1 %v19929_v0 }
 0x8a6   :  { %16652 = vmatpush3.msra.mxu0 %v21367_v32 }
 0x8a7   :  { %16653 = vmatprep.subr.mxu0 %v19930_v21  ;;  %5763 = vmatpush1.bf16.msra.mxu1 %v17403_v52  ;;  %v17465_v52 = vld [vmem:[#allocation65 + $0x134] ss:$36 sps:$4 sm:$0xff]  }
 0x8a8   :  { %16654 = vmatpush3.msra.mxu0 %v21373_v14  ;;  %5764 = vmatprep.subr.bf16.mxu1 %v17411_v42  ;;  %v17468_v42 = vld [vmem:[#allocation65 + $0x13c] ss:$36 sps:$4 sm:$0xff]  }
 0x8a9   :  { %16655 = vmatprep.subr.mxu0 %v19930_v21 }
 0x8aa   :  { %16656 = vmatpush3.msra.mxu0 %v21379_v57 }
 0x8ab   :  { %16657 = vmatprep.subr.mxu0 %v19930_v21  ;;  %5765 = vmatpush1.bf16.msra.mxu1 %v17409_v56  ;;  %v17463_v56 = vld [vmem:[#allocation65 + $0x130] ss:$36 sps:$4 sm:$0xff]  }
 0x8ac   :  { %16658 = vmatpush3.msra.mxu0 %v21385_v46  ;;  %5766 = vmatprep.subr.bf16.mxu1 %v17417_v1  ;;  %v17483_v1 = vld [vmem:[#allocation65 + $0x5c] ss:$36 sps:$4 sm:$0xff]  }
 0x8ad   :  { %16660 = vmatmul.mubr.msk.f32.vlgmr.msra.gmra.mxu0 %vm1806_vm2, %v5084_v63  ;;  %16679 = vmatprep.subr.mxu0 %v19930_v21  ;;  %v17466_v63 = vld [vmem:[#allocation65 + $0x138] ss:$36 sps:$4 sm:$0xff]  }
 0x8ae   :  { %16680 = vmatpush3.msk.msra.mxu0 %vm1828_vm1, %v21349_v47  ;;  %16693 = vmatprep.mubr.msk.f32.mxu0 %vm19931_vm0, %v19930_v21 }
 0x8af   :  { %16681 = vmatprep.subr.mxu0 %v19930_v21  ;;  %5767 = vmatpush1.bf16.msra.mxu1 %v17415_v12  ;;  %v17478_v12 = vld [vmem:[#allocation65 + $0xa8] ss:$36 sps:$4 sm:$0xff]  }
 0x8b0   :  { %16682 = vmatpush3.msra.mxu0 %v21355_v38  ;;  %5768 = vmatprep.subr.bf16.mxu1 %v17423_v15  ;;  %v17484_v15 = vld [vmem:[#allocation65 + $0x60] ss:$36 sps:$4 sm:$0xff]  }
 0x8b1   :  { %16683 = vmatprep.subr.mxu0 %v19930_v21 }
 0x8b2   :  { %16684 = vmatpush3.msra.mxu0 %v21361_v43 }
 0x8b3   :  { %16685 = vmatprep.subr.mxu0 %v19930_v21  ;;  %5769 = vmatpush1.bf16.msra.mxu1 %v17421_v34  ;;  %v17492_v34 = vld [vmem:[#allocation65 + $0x1c] ss:$36 sps:$4 sm:$0xff]  }
 0x8b4   :  { %16686 = vmatpush3.msra.mxu0 %v21367_v32  ;;  %5770 = vmatprep.subr.bf16.mxu1 %v17429_v17  ;;  %v17490_v17 = vld [vmem:[#allocation65 + $0x18] ss:$36 sps:$4 sm:$0xff]  }
 0x8b5   :  { %16687 = vmatprep.subr.mxu0 %v19930_v21 }
 0x8b6   :  { %16688 = vmatpush3.msra.mxu0 %v21373_v14 }
 0x8b7   :  { %16689 = vmatprep.subr.mxu0 %v19930_v21  ;;  %5771 = vmatpush1.bf16.msra.mxu1 %v17427_v28  ;;  %v17493_v28 = vld [vmem:[#allocation65 + $0x218] ss:$36 sps:$4 sm:$0xff]  }
 0x8b8   :  { %16690 = vmatpush3.msra.mxu0 %v21379_v57  ;;  %5772 = vmatprep.subr.bf16.mxu1 %v17435_v20  ;;  %v17496_v20 = vld [vmem:[#allocation65 + $0x140] ss:$36 sps:$4 sm:$0xff]  }
 0x8b9   :  { %16691 = vmatprep.subr.mxu0 %v19930_v21 }
 0x8ba   :  { %16692 = vmatpush3.msra.mxu0 %v21385_v46 }
 0x8bb   :  { %16694 = vmatmul.mubr.msk.f32.vlgmr.msra.gmra.mxu0 %vm1806_vm2, %v5236_v59  ;;  %5801 = vmatprep.subr.bf16.mxu0 %v17402_v3  ;;  %v17471_v3 = vld [vmem:[#allocation65 + $0xec] ss:$36 sps:$4 sm:$0xff]   ;;  %v17474_v59 = vld [vmem:[#allocation65 + $0xf4] ss:$36 sps:$4 sm:$0xff]  }
 0x8bc   :  { %5802 = vmatpush1.bf16.msra.mxu0 %v17400_v26  ;;  %5833 = vmatprep.mubr.bf16.mxu0 %v19929_v0  ;;  %v17469_v26 = vld [vmem:[#allocation65 + $0xe8] ss:$36 sps:$4 sm:$0xff]  }
 0x8bd   :  { %5803 = vmatprep.subr.bf16.mxu0 %v17408_v24  ;;  %5773 = vmatpush1.bf16.msra.mxu1 %v17433_v61  ;;  %v17472_v24 = vld [vmem:[#allocation65 + $0xf0] ss:$36 sps:$4 sm:$0xff]  }
 0x8be   :  { %5774 = vmatprep.subr.bf16.mxu1 %v17441_v25  ;;  %v17498_v61 = vld [vmem:[#allocation65 + $0xb0] ss:$36 sps:$4 sm:$0xff]   ;;  %v17500_v25 = vld [vmem:[#allocation65 + $0x20] ss:$36 sps:$4 sm:$0xff]  }
 0x8c0   :  { %5804 = vmatpush1.bf16.msra.mxu0 %v17406_v51  ;;  %v17477_v51 = vld [vmem:[#allocation65 + $0xa4] ss:$36 sps:$4 sm:$0xff]  }
 0x8c1   :  { %5805 = vmatprep.subr.bf16.mxu0 %v17414_v62  ;;  %5775 = vmatpush1.bf16.msra.mxu1 %v17439_v40  ;;  %v17480_v62 = vld [vmem:[#allocation65 + $0xac] ss:$36 sps:$4 sm:$0xff]  }
 0x8c2   :  { %5842 = vmatprep.subr.bf16.mxu1 %v17447_v19 }
 0x8c4   :  { %5806 = vmatpush1.bf16.msra.mxu0 %v17412_v9  ;;  %v17475_v9 = vld [vmem:[#allocation65 + $0xa0] ss:$36 sps:$4 sm:$0xff]  }
 0x8c5   :  { %5807 = vmatprep.subr.bf16.mxu0 %v17420_v2  ;;  %v17481_v2 = vld [vmem:[#allocation65 + $0x58] ss:$36 sps:$4 sm:$0xff]  }
 0x8c8   :  { %5808 = vmatpush1.bf16.msra.mxu0 %v17418_v29  ;;  %v17486_v29 = vld [vmem:[#allocation65 + $0x64] ss:$36 sps:$4 sm:$0xff]  }
 0x8c9   :  { %5809 = vmatprep.subr.bf16.mxu0 %v17426_v10  ;;  %v17489_v10 = vld [vmem:[#allocation65 + $0x14] ss:$36 sps:$4 sm:$0xff]  }
 0x8cc   :  { %5810 = vmatpush1.bf16.msra.mxu0 %v17424_v13  ;;  %v17487_v13 = vld [vmem:[#allocation65 + $0x10] ss:$36 sps:$4 sm:$0xff]  }
 0x8cd   :  { %5811 = vmatprep.subr.bf16.mxu0 %v17432_v44  ;;  %v17495_v44 = vld [vmem:[#allocation65 + $0x188] ss:$36 sps:$4 sm:$0xff]  }
 0x8d0   :  { %5812 = vmatpush1.bf16.msra.mxu0 %v17430_v48  ;;  %v17494_v48 = vld [vmem:[#allocation65 + $0x1d0] ss:$36 sps:$4 sm:$0xff]  }
 0x8d1   :  { %5813 = vmatprep.subr.bf16.mxu0 %v17438_v50  ;;  %v17497_v50 = vld [vmem:[#allocation65 + $0xf8] ss:$36 sps:$4 sm:$0xff]  }
 0x8d4   :  { %5814 = vmatpush1.bf16.msra.mxu0 %v17436_v33  ;;  %v17499_v33 = vld [vmem:[#allocation65 + $0x68] ss:$36 sps:$4 sm:$0xff]  }
 0x8d5   :  { %5815 = vmatprep.subr.bf16.mxu0 %v17444_v18 }
 0x8d8   :  { %5816 = vmatpush1.bf16.msra.mxu0 %v17442_v55 }
 0x8d9   :  { %5883 = vmatprep.subr.bf16.mxu0 %v17450_v45 }
 0x95f   :  { %v5079_v27 = vpop.f32.mrf.mxu0 }
 0x961   :  { %v16644_v37 = vpop.f32.mrf.mxu0  ;;  %v5230_v35 = vpop.f32.mrf.mxu1 }
 0x963   :  { %v16678_v22 = vpop.f32.mrf.mxu1 }
 0x96d   :  { %v5154_v39 = vpop.f32.mrf.mxu0 }
 0x96e   :  { %v5158_v31 = vmax.f32 %v5079_v27, %v5154_v39 }
 0x96f   :  { %v16661_v30 = vpop.f32.mrf.mxu0 }
 0x970   :  { %v5234_v5 = vmax.f32 %v5158_v31, %v5230_v35 }
 0x97b   :  { %v5306_v16 = vpop.f32.mrf.mxu0 }
 0x97c   :  { %v5310_v49 = vmax.f32 %v5234_v5, %v5306_v16 }
 0x97d   :  { %v16695_v41 = vpop.f32.mrf.mxu0 }
 0x97e   :  { %v21431_v53 = vpack.c.bf16 %v5310_v49, %v5310_v49 }
 0x980   :  { %5793 = vmatmul.mubr.bf16.vlgmr.msra.gmra.mxu1 %v21431_v53  ;;  %5834 = vmatmul.mubr.bf16.vlgmr.msra.gmra.mxu0 %v21431_v53 }
 0x981   :  { %5843 = vmatpush1.bf16.msra.mxu1 %v17445_v8  ;;  %5884 = vmatpush1.bf16.msra.mxu0 %v17448_v4 }
 0x982   :  { %5844 = vmatprep.subr.bf16.mxu1 %v17453_v23  ;;  %5885 = vmatprep.subr.bf16.mxu0 %v17456_v60  ;;  %v21461_v60 = vld [vmem:[#allocation8] sm:$0xff] }
 0x983   :  { %5874 = vmatprep.mubr.bf16.mxu1 %v19929_v0  ;;  %5915 = vmatprep.mubr.bf16.mxu0 %v19929_v0 }
 0x985   :  { %5845 = vmatpush1.bf16.msra.mxu1 %v17451_v11  ;;  %5886 = vmatpush1.bf16.msra.mxu0 %v17454_v6  ;;  %v17503_v11 = vld [vmem:[#allocation71 + $0x1fc] ss:$36 sps:$4 sm:$0xff]   ;;  %v17506_v6 = vld [vmem:[#allocation71 + $0x204] ss:$36 sps:$4 sm:$0xff]  }
 0x986   :  { %5846 = vmatprep.subr.bf16.mxu1 %v17459_v7  ;;  %5887 = vmatprep.subr.bf16.mxu0 %v17462_v54  ;;  %v17501_v7 = vld [vmem:[#allocation71 + $0x1f8] ss:$36 sps:$4 sm:$0xff]   ;;  %v17504_v54 = vld [vmem:[#allocation71 + $0x200] ss:$36 sps:$4 sm:$0xff]  }
 0x989   :  { %5847 = vmatpush1.bf16.msra.mxu1 %v17457_v58  ;;  %5888 = vmatpush1.bf16.msra.mxu0 %v17460_v36  ;;  %v17509_v58 = vld [vmem:[#allocation71 + $0x1b4] ss:$36 sps:$4 sm:$0xff]   ;;  %v17512_v36 = vld [vmem:[#allocation71 + $0x1bc] ss:$36 sps:$4 sm:$0xff]  }
 0x98a   :  { %5848 = vmatprep.subr.bf16.mxu1 %v17465_v52  ;;  %5889 = vmatprep.subr.bf16.mxu0 %v17468_v42  ;;  %v17507_v52 = vld [vmem:[#allocation71 + $0x1b0] ss:$36 sps:$4 sm:$0xff]   ;;  %v17510_v42 = vld [vmem:[#allocation71 + $0x1b8] ss:$36 sps:$4 sm:$0xff]  }
 0x98d   :  { %5849 = vmatpush1.bf16.msra.mxu1 %v17463_v56  ;;  %5890 = vmatpush1.bf16.msra.mxu0 %v17466_v63  ;;  %v17515_v56 = vld [vmem:[#allocation71 + $0x16c] ss:$36 sps:$4 sm:$0xff]   ;;  %v17518_v63 = vld [vmem:[#allocation71 + $0x174] ss:$36 sps:$4 sm:$0xff]  }
 0x98e   :  { %5850 = vmatprep.subr.bf16.mxu1 %v17471_v3  ;;  %5891 = vmatprep.subr.bf16.mxu0 %v17474_v59  ;;  %v17513_v3 = vld [vmem:[#allocation71 + $0x168] ss:$36 sps:$4 sm:$0xff]   ;;  %v17516_v59 = vld [vmem:[#allocation71 + $0x170] ss:$36 sps:$4 sm:$0xff]  }
 0x991   :  { %5851 = vmatpush1.bf16.msra.mxu1 %v17469_v26  ;;  %5892 = vmatpush1.bf16.msra.mxu0 %v17472_v24  ;;  %v17521_v26 = vld [vmem:[#allocation71 + $0x124] ss:$36 sps:$4 sm:$0xff]   ;;  %v17524_v24 = vld [vmem:[#allocation71 + $0x12c] ss:$36 sps:$4 sm:$0xff]  }
 0x992   :  { %5852 = vmatprep.subr.bf16.mxu1 %v17477_v51  ;;  %5893 = vmatprep.subr.bf16.mxu0 %v17480_v62  ;;  %v17519_v51 = vld [vmem:[#allocation71 + $0x120] ss:$36 sps:$4 sm:$0xff]   ;;  %v17522_v62 = vld [vmem:[#allocation71 + $0x128] ss:$36 sps:$4 sm:$0xff]  }
 0x995   :  { %5853 = vmatpush1.bf16.msra.mxu1 %v17475_v9  ;;  %5894 = vmatpush1.bf16.msra.mxu0 %v17478_v12  ;;  %v17527_v9 = vld [vmem:[#allocation71 + $0xdc] ss:$36 sps:$4 sm:$0xff]   ;;  %v17530_v12 = vld [vmem:[#allocation71 + $0xe4] ss:$36 sps:$4 sm:$0xff]  }
 0x996   :  { %5854 = vmatprep.subr.bf16.mxu1 %v17483_v1  ;;  %5895 = vmatprep.subr.bf16.mxu0 %v17486_v29  ;;  %v17525_v1 = vld [vmem:[#allocation71 + $0xd8] ss:$36 sps:$4 sm:$0xff]   ;;  %v17528_v29 = vld [vmem:[#allocation71 + $0xe0] ss:$36 sps:$4 sm:$0xff]  }
 0x999   :  { %5855 = vmatpush1.bf16.msra.mxu1 %v17481_v2  ;;  %5896 = vmatpush1.bf16.msra.mxu0 %v17484_v15  ;;  %v17533_v2 = vld [vmem:[#allocation71 + $0x94] ss:$36 sps:$4 sm:$0xff]   ;;  %v17536_v15 = vld [vmem:[#allocation71 + $0x9c] ss:$36 sps:$4 sm:$0xff]  }
 0x99a   :  { %5856 = vmatprep.subr.bf16.mxu1 %v17489_v10  ;;  %5897 = vmatprep.subr.bf16.mxu0 %v17492_v34  ;;  %v17531_v10 = vld [vmem:[#allocation71 + $0x90] ss:$36 sps:$4 sm:$0xff]   ;;  %v17534_v34 = vld [vmem:[#allocation71 + $0x98] ss:$36 sps:$4 sm:$0xff]  }
 0x99d   :  { %5857 = vmatpush1.bf16.msra.mxu1 %v17487_v13  ;;  %5898 = vmatpush1.bf16.msra.mxu0 %v17490_v17  ;;  %v17539_v13 = vld [vmem:[#allocation71 + $0x4c] ss:$36 sps:$4 sm:$0xff]   ;;  %v17542_v17 = vld [vmem:[#allocation71 + $0x54] ss:$36 sps:$4 sm:$0xff]  }
 0x99e   :  { %16696 = vmatprep.subr.bf16.mxu1 %v19930_v21  ;;  %16716 = vmatprep.subr.mxu0 %v19930_v21 }
 0x9a0   :  { %5875 = vmatmul.mubr.bf16.vlgmr.msra.gmra.mxu1 %v21431_v53  ;;  %5916 = vmatmul.mubr.bf16.vlgmr.msra.gmra.mxu0 %v21431_v53 }
 0x9a1   :  { %16697 = vmatpush3.bf16.msra.mxu1 %v17493_v28  ;;  %16712 = vmatprep.mubr.msk.bf16.mxu1 %vm19931_vm0, %v19930_v21  ;;  %v17537_v28 = vld [vmem:[#allocation71 + $0x48] ss:$36 sps:$4 sm:$0xff]  }
 0x9a2   :  { %16698 = vmatprep.subr.bf16.mxu1 %v19930_v21  ;;  %16734 = vmatprep.mubr.msk.f32.mxu0 %vm19931_vm0, %v19930_v21 }
 0x9a5   :  { %16699 = vmatpush3.bf16.msra.mxu1 %v17494_v48  ;;  %v17540_v48 = vld [vmem:[#allocation71 + $0x50] ss:$36 sps:$4 sm:$0xff]  }
 0x9a6   :  { %16700 = vmatprep.subr.bf16.mxu1 %v19930_v21 }
 0x9a9   :  { %16701 = vmatpush3.bf16.msra.mxu1 %v17495_v44  ;;  %v17545_v44 = vld [vmem:[#allocation71 + $0x4] ss:$36 sps:$4 sm:$0xff]  }
 0x9aa   :  { %16702 = vmatprep.subr.bf16.mxu1 %v19930_v21 }
 0x9ad   :  { %16703 = vmatpush3.bf16.msra.mxu1 %v17496_v20  ;;  %v17548_v20 = vld [vmem:[#allocation71 + $0xc] ss:$36 sps:$4 sm:$0xff]  }
 0x9ae   :  { %16704 = vmatprep.subr.bf16.mxu1 %v19930_v21 }
 0x9b1   :  { %16705 = vmatpush3.bf16.msra.mxu1 %v17497_v50  ;;  %v17543_v50 = vld [vmem:[#allocation71] ss:$36 sps:$4 sm:$0xff]  }
 0x9b2   :  { %16706 = vmatprep.subr.bf16.mxu1 %v19930_v21 }
 0x9b5   :  { %16707 = vmatpush3.bf16.msra.mxu1 %v17498_v61  ;;  %v17546_v61 = vld [vmem:[#allocation71 + $0x8] ss:$36 sps:$4 sm:$0xff]  }
 0x9b6   :  { %16708 = vmatprep.subr.bf16.mxu1 %v19930_v21 }
 0x9b9   :  { %16709 = vmatpush3.bf16.msra.mxu1 %v17499_v33  ;;  %v17551_v33 = vld [vmem:[#allocation71 + $0x20c] ss:$36 sps:$4 sm:$0xff]  }
 0x9ba   :  { %16710 = vmatprep.subr.bf16.mxu1 %v19930_v21 }
 0x9bd   :  { %16711 = vmatpush3.bf16.msra.mxu1 %v17500_v25  ;;  %v17554_v25 = vld [vmem:[#allocation71 + $0x214] ss:$36 sps:$4 sm:$0xff]  }
 0x9be   :  { %6573 = vmatprep.subr.bf16.mxu1 %v17506_v6 }
 0x9c0   :  { %16713 = vmatmul.mubr.bf16.vlgmr.msra.gmra.mxu1 %v21431_v53 }
 0x9c1   :  { %6605 = vmatprep.mubr.bf16.mxu1 %v19929_v0  ;;  %6574 = vmatpush1.bf16.msra.mxu1 %v17504_v54 }
 0x9c2   :  { %6575 = vmatprep.subr.bf16.mxu1 %v17512_v36 }
 0x9c5   :  { %6576 = vmatpush1.bf16.msra.mxu1 %v17510_v42 }
 0x9c6   :  { %6577 = vmatprep.subr.bf16.mxu1 %v17518_v63  ;;  %v17552_v63 = vld [vmem:[#allocation71 + $0x210] ss:$36 sps:$4 sm:$0xff]  }
 0x9c9   :  { %6578 = vmatpush1.bf16.msra.mxu1 %v17516_v59  ;;  %v17557_v59 = vld [vmem:[#allocation71 + $0x1c4] ss:$36 sps:$4 sm:$0xff]  }
 0x9ca   :  { %6579 = vmatprep.subr.bf16.mxu1 %v17524_v24  ;;  %v17555_v24 = vld [vmem:[#allocation71 + $0x1c0] ss:$36 sps:$4 sm:$0xff]  }
 0x9cd   :  { %6580 = vmatpush1.bf16.msra.mxu1 %v17522_v62  ;;  %v17563_v62 = vld [vmem:[#allocation71 + $0x17c] ss:$36 sps:$4 sm:$0xff]  }
 0x9ce   :  { %6581 = vmatprep.subr.bf16.mxu1 %v17530_v12  ;;  %v17561_v12 = vld [vmem:[#allocation71 + $0x178] ss:$36 sps:$4 sm:$0xff]  }
 0x9d1   :  { %6582 = vmatpush1.bf16.msra.mxu1 %v17528_v29  ;;  %v17569_v29 = vld [vmem:[#allocation71 + $0x134] ss:$36 sps:$4 sm:$0xff]  }
 0x9d2   :  { %6583 = vmatprep.subr.bf16.mxu1 %v17536_v15  ;;  %v17567_v15 = vld [vmem:[#allocation71 + $0x130] ss:$36 sps:$4 sm:$0xff]  }
 0x9d5   :  { %6584 = vmatpush1.bf16.msra.mxu1 %v17534_v34  ;;  %v17575_v34 = vld [vmem:[#allocation71 + $0xec] ss:$36 sps:$4 sm:$0xff]  }
 0x9d6   :  { %6585 = vmatprep.subr.bf16.mxu1 %v17542_v17  ;;  %v17573_v17 = vld [vmem:[#allocation71 + $0xe8] ss:$36 sps:$4 sm:$0xff]  }
 0x9d9   :  { %6586 = vmatpush1.bf16.msra.mxu1 %v17540_v48  ;;  %v17581_v48 = vld [vmem:[#allocation71 + $0xa4] ss:$36 sps:$4 sm:$0xff]  }
 0x9da   :  { %6587 = vmatprep.subr.bf16.mxu1 %v17548_v20  ;;  %v17579_v20 = vld [vmem:[#allocation71 + $0xa0] ss:$36 sps:$4 sm:$0xff]  }
 0x9dd   :  { %6588 = vmatpush1.bf16.msra.mxu1 %v17546_v61  ;;  %v17587_v61 = vld [vmem:[#allocation71 + $0x5c] ss:$36 sps:$4 sm:$0xff]  }
 0x9de   :  { %6655 = vmatprep.subr.bf16.mxu1 %v17554_v25  ;;  %v17585_v25 = vld [vmem:[#allocation71 + $0x58] ss:$36 sps:$4 sm:$0xff]  }
 0xa40   :  { %v5794_v18 = vpop.f32.mrf.mxu1  ;;  %v5835_v40 = vpop.f32.mrf.mxu0 }
 0xa42   :  { %v5796_v55 = vpop.f32.mrf.mxu1  ;;  %v5837_v19 = vpop.f32.mrf.mxu0 }
 0xa44   :  { %v5798_v45 = vpop.f32.mrf.mxu1  ;;  %v5839_v27 = vpop.f32.mrf.mxu0 }
 0xa46   :  { %v5799_v37 = vpop.f32.mrf.mxu1  ;;  %v5840_v35 = vpop.f32.mrf.mxu0 }
 0xa60   :  { %v5876_v22 = vpop.f32.mrf.mxu1  ;;  %v5917_v39 = vpop.f32.mrf.mxu0 }
 0xa62   :  { %v5878_v30 = vpop.f32.mrf.mxu1  ;;  %v5919_v31 = vpop.f32.mrf.mxu0 }
 0xa64   :  { %v5880_v5 = vpop.f32.mrf.mxu1  ;;  %v5921_v16 = vpop.f32.mrf.mxu0 }
 0xa66   :  { %v5881_v49 = vpop.f32.mrf.mxu1  ;;  %v5922_v8 = vpop.f32.mrf.mxu0 }
 0xa80   :  { %v5958_v4 = vpop.f32.mrf.mxu1 }
 0xa81   :  { %16717 = vmatpush3.msra.mxu0 %v5958_v4 }
 0xa82   :  { %v16714_v41 = vpop.f32.mrf.mxu1  ;;  %16718 = vmatprep.subr.mxu0 %v19930_v21 }
 0xa83   :  { %16719 = vmatpush3.msra.mxu0 %v5919_v31 }
 0xa84   :  { %v5961_v53 = vpop.f32.mrf.mxu1  ;;  %16720 = vmatprep.subr.mxu0 %v19930_v21 }
 0xa85   :  { %16721 = vmatpush3.msra.mxu0 %v5917_v39 }
 0xa86   :  { %v16715_v23 = vpop.f32.mrf.mxu1  ;;  %16722 = vmatprep.subr.mxu0 %v19930_v21 }
 0xa87   :  { %16723 = vmatpush3.msra.mxu0 %v5878_v30 }
 0xa88   :  { %16724 = vmatprep.subr.mxu0 %v19930_v21 }
 0xa89   :  { %16725 = vmatpush3.msra.mxu0 %v5876_v22 }
 0xa8a   :  { %16726 = vmatprep.subr.mxu0 %v19930_v21 }
 0xa8b   :  { %16727 = vmatpush3.msra.mxu0 %v5837_v19 }
 0xa8c   :  { %16728 = vmatprep.subr.mxu0 %v19930_v21 }
 0xa8d   :  { %16729 = vmatpush3.msra.mxu0 %v5835_v40 }
 0xa8e   :  { %16730 = vmatprep.subr.mxu0 %v19930_v21 }
 0xa8f   :  { %16731 = vmatpush3.msra.mxu0 %v5796_v55 }
 0xa90   :  { %16732 = vmatprep.subr.mxu0 %v19930_v21 }
 0xa91   :  { %16733 = vmatpush3.msra.mxu0 %v5794_v18  ;;  %v14580_v18 = vld [vmem:[#allocation61] ss:$0 sm:$0xff] }
 0xa92   :  { %16735 = vmatmul.mubr.msk.f32.vlgmr.msra.gmra.mxu0 %vm5972_vm3, %v21461_v60  ;;  %6532 = vmatprep.subr.bf16.mxu0 %v17503_v11 }
 0xa93   :  { %6564 = vmatprep.mubr.bf16.mxu0 %v19929_v0  ;;  %6533 = vmatpush1.bf16.msra.mxu0 %v17501_v7  ;;  %v14582_v7 = vld [vmem:[#allocation64] ss:$0 sm:$0xff] }
 0xa94   :  { %6534 = vmatprep.subr.bf16.mxu0 %v17509_v58  ;;  %v14583_v58 = vld [vmem:[#allocation62] ss:$0 sm:$0xff] }
 0xa97   :  { %6535 = vmatpush1.bf16.msra.mxu0 %v17507_v52 }
 0xa98   :  { %6536 = vmatprep.subr.bf16.mxu0 %v17515_v56  ;;  %v17549_v56 = vld [vmem:[#allocation71 + $0x208] ss:$36 sps:$4 sm:$0xff]  }
 0xa9b   :  { %6537 = vmatpush1.bf16.msra.mxu0 %v17513_v3 }
 0xa9c   :  { %6538 = vmatprep.subr.bf16.mxu0 %v17521_v26  ;;  %v17560_v26 = vld [vmem:[#allocation71 + $0x1cc] ss:$36 sps:$4 sm:$0xff]  }
 0xa9f   :  { %6539 = vmatpush1.bf16.msra.mxu0 %v17519_v51  ;;  %v17558_v51 = vld [vmem:[#allocation71 + $0x1c8] ss:$36 sps:$4 sm:$0xff]  }
 0xaa0   :  { %6540 = vmatprep.subr.bf16.mxu0 %v17527_v9  ;;  %v17566_v9 = vld [vmem:[#allocation71 + $0x184] ss:$36 sps:$4 sm:$0xff]  }
 0xaa3   :  { %6541 = vmatpush1.bf16.msra.mxu0 %v17525_v1  ;;  %v17564_v1 = vld [vmem:[#allocation71 + $0x180] ss:$36 sps:$4 sm:$0xff]  }
 0xaa4   :  { %6542 = vmatprep.subr.bf16.mxu0 %v17533_v2  ;;  %v17572_v2 = vld [vmem:[#allocation71 + $0x13c] ss:$36 sps:$4 sm:$0xff]  }
 0xaa7   :  { %6543 = vmatpush1.bf16.msra.mxu0 %v17531_v10  ;;  %v17570_v10 = vld [vmem:[#allocation71 + $0x138] ss:$36 sps:$4 sm:$0xff]  }
 0xaa8   :  { %6544 = vmatprep.subr.bf16.mxu0 %v17539_v13  ;;  %v17578_v13 = vld [vmem:[#allocation71 + $0xf4] ss:$36 sps:$4 sm:$0xff]  }
 0xaab   :  { %6545 = vmatpush1.bf16.msra.mxu0 %v17537_v28  ;;  %v17576_v28 = vld [vmem:[#allocation71 + $0xf0] ss:$36 sps:$4 sm:$0xff]  }
 0xaac   :  { %6546 = vmatprep.subr.bf16.mxu0 %v17545_v44  ;;  %v17584_v44 = vld [vmem:[#allocation71 + $0xac] ss:$36 sps:$4 sm:$0xff]  }
 0xaaf   :  { %6547 = vmatpush1.bf16.msra.mxu0 %v17543_v50  ;;  %v17582_v50 = vld [vmem:[#allocation71 + $0xa8] ss:$36 sps:$4 sm:$0xff]  }
 0xab0   :  { %6614 = vmatprep.subr.bf16.mxu0 %v17551_v33  ;;  %v17590_v33 = vld [vmem:[#allocation71 + $0x64] ss:$36 sps:$4 sm:$0xff]  }
 0xb52   :  { %v6042_v40 = vpop.f32.mrf.mxu0 }
 0xb53   :  { %v6043_v55 = vadd.f32 %v14580_v18, %v6042_v40  ;;  %v17588_v18 = vld [vmem:[#allocation71 + $0x60] ss:$36 sps:$4 sm:$0xff]   ;;  %v17593_v40 = vld [vmem:[#allocation71 + $0x14] ss:$36 sps:$4 sm:$0xff]  }
 0xb54   :  { %v16736_v19 = vpop.f32.mrf.mxu0 }
 0xb55   :  { %v6046_v45 = vrot.slane %v6043_v55, 4  ;;  %v17591_v19 = vld [vmem:[#allocation71 + $0x10] ss:$36 sps:$4 sm:$0xff]  }
 0xb57   :  { %v6047_v27 = vadd.f32 %v6046_v45, %v6043_v55  ;;  %v17594_v45 = vld [vmem:[#allocation71 + $0x18] ss:$36 sps:$4 sm:$0xff]  }
 0xb59   :  { %v6048_v37 = vrot.slane %v6047_v27, 2 }
 0xb5b   :  { %v6049_v35 = vadd.f32 %v6048_v37, %v6047_v27  ;;  %v17597_v27 = vld [vmem:[#allocation71 + $0x218] ss:$36 sps:$4 sm:$0xff]   ;;  %v17598_v37 = vld [vmem:[#allocation71 + $0x1d0] ss:$36 sps:$4 sm:$0xff]  }
 0xb5d   :  { %v6050_v22 = vrot.slane %v6049_v35, 1 }
 0xb5f   :  { %v6051_v39 = vadd.f32 %v6050_v22, %v6049_v35  ;;  %v17599_v35 = vld [vmem:[#allocation71 + $0x188] ss:$36 sps:$4 sm:$0xff]   ;;  %v17600_v22 = vld [vmem:[#allocation71 + $0x140] ss:$36 sps:$4 sm:$0xff]  }
 0xb61   :  { %v6053_v30 = vmul.f32 0.125, %v6051_v39  ;;  %v17601_v39 = vld [vmem:[#allocation71 + $0xf8] ss:$36 sps:$4 sm:$0xff]  }
 0xb63   :  { %v6054_v31 = vsub.f32 %v6043_v55, %v6053_v30  ;;  %v17596_v55 = vld [vmem:[#allocation71 + $0x1c] ss:$36 sps:$4 sm:$0xff]   ;;  %v17602_v30 = vld [vmem:[#allocation71 + $0xb0] ss:$36 sps:$4 sm:$0xff]  }
 0xb65   :  { %v6055_v5 = vmul.f32 %v6054_v31, %v6054_v31 }
 0xb67   :  { %v6056_v16 = vrot.slane %v6055_v5, 4 }
 0xb69   :  { %v6057_v49 = vadd.f32 %v6056_v16, %v6055_v5  ;;  %v17604_v5 = vld [vmem:[#allocation71 + $0x20] ss:$36 sps:$4 sm:$0xff]  }
 0xb6b   :  { %v6058_v8 = vrot.slane %v6057_v49, 2 }
 0xb6d   :  { %v6059_v4 = vadd.f32 %v6058_v8, %v6057_v49 }
 0xb6f   :  { %v6060_v41 = vrot.slane %v6059_v4, 1 }
 0xb71   :  { %v6061_v53 = vadd.f32 %v6060_v41, %v6059_v4 }
 0xb73   :  { %v6062_v23 = vmul.f32 0.125, %v6061_v53 }
 0xb75   :  { %v6063_v11 = vadd.f32 1e-05, %v6062_v23 }
 0xb77   :  { %18433 = vrsqrt.f32 %v6063_v11 }
 0xb84   :  { %v18434_v6 = vpop.eup %18433 }
 0xb85   :  { %v6065_v54 = vmul.f32 %v18434_v6, %v6054_v31  ;;  %v17603_v31 = vld [vmem:[#allocation71 + $0x68] ss:$36 sps:$4 sm:$0xff]  }
 0xb87   :  { %v6073_v36 = vmul.f32 %v14582_v7, %v6065_v54 }
 0xb89   :  { %v6081_v52 = vadd.f32 %v14583_v58, %v6073_v36 }
 0xb8b   :  { %v6082_v42 = vmax.f32 %v6081_v52, 0.0 }
 0xb8d   :  { %v21467_v3 = vpack.c.bf16 %v6082_v42, %v6082_v42 }
 0xb8f   :  { %6565 = vmatmul.mubr.bf16.vlgmr.msra.gmra.mxu0 %v21467_v3  ;;  %6606 = vmatmul.mubr.bf16.vlgmr.msra.gmra.mxu1 %v21467_v3 }
 0xb90   :  { %6615 = vmatpush1.bf16.msra.mxu0 %v17549_v56  ;;  %6656 = vmatpush1.bf16.msra.mxu1 %v17552_v63 }
 0xb91   :  { %6616 = vmatprep.subr.bf16.mxu0 %v17557_v59  ;;  %6657 = vmatprep.subr.bf16.mxu1 %v17560_v26 }
 0xb92   :  { %6646 = vmatprep.mubr.bf16.mxu0 %v19929_v0  ;;  %6687 = vmatprep.mubr.bf16.mxu1 %v19929_v0 }
 0xb94   :  { %6617 = vmatpush1.bf16.msra.mxu0 %v17555_v24  ;;  %6658 = vmatpush1.bf16.msra.mxu1 %v17558_v51  ;;  %v14656_v24 = vld [vmem:[#allocation67] ss:$0 sm:$0xff] }
 0xb95   :  { %6618 = vmatprep.subr.bf16.mxu0 %v17563_v62  ;;  %6659 = vmatprep.subr.bf16.mxu1 %v17566_v9 }
 0xb98   :  { %6619 = vmatpush1.bf16.msra.mxu0 %v17561_v12  ;;  %6660 = vmatpush1.bf16.msra.mxu1 %v17564_v1 }
 0xb99   :  { %6620 = vmatprep.subr.bf16.mxu0 %v17569_v29  ;;  %6661 = vmatprep.subr.bf16.mxu1 %v17572_v2 }
 0xb9c   :  { %6621 = vmatpush1.bf16.msra.mxu0 %v17567_v15  ;;  %6662 = vmatpush1.bf16.msra.mxu1 %v17570_v10 }
 0xb9d   :  { %6622 = vmatprep.subr.bf16.mxu0 %v17575_v34  ;;  %6663 = vmatprep.subr.bf16.mxu1 %v17578_v13 }
 0xba0   :  { %6623 = vmatpush1.bf16.msra.mxu0 %v17573_v17  ;;  %6664 = vmatpush1.bf16.msra.mxu1 %v17576_v28 }
 0xba1   :  { %6624 = vmatprep.subr.bf16.mxu0 %v17581_v48  ;;  %6665 = vmatprep.subr.bf16.mxu1 %v17584_v44 }
 0xba4   :  { %6625 = vmatpush1.bf16.msra.mxu0 %v17579_v20  ;;  %6666 = vmatpush1.bf16.msra.mxu1 %v17582_v50 }
 0xba5   :  { %6626 = vmatprep.subr.bf16.mxu0 %v17587_v61  ;;  %6667 = vmatprep.subr.bf16.mxu1 %v17590_v33 }
 0xba8   :  { %6627 = vmatpush1.bf16.msra.mxu0 %v17585_v25  ;;  %6668 = vmatpush1.bf16.msra.mxu1 %v17588_v18  ;;  %v14658_v18 = vld [vmem:[#allocation70] ss:$0 sm:$0xff] }
 0xba9   :  { %6628 = vmatprep.subr.bf16.mxu0 %v17593_v40  ;;  %6669 = vmatprep.subr.bf16.mxu1 %v17596_v55  ;;  %v14659_v55 = vld [vmem:[#allocation68] ss:$0 sm:$0xff] }
 0xbac   :  { %6629 = vmatpush1.bf16.msra.mxu0 %v17591_v19  ;;  %6670 = vmatpush1.bf16.msra.mxu1 %v17594_v45 }
 0xbad   :  { %16737 = vmatprep.subr.bf16.mxu0 %v19930_v21  ;;  %16757 = vmatprep.subr.mxu1 %v19930_v21 }
 0xbaf   :  { %6647 = vmatmul.mubr.bf16.vlgmr.msra.gmra.mxu0 %v21467_v3  ;;  %6688 = vmatmul.mubr.bf16.vlgmr.msra.gmra.mxu1 %v21467_v3 }
 0xbb0   :  { %16738 = vmatpush3.bf16.msra.mxu0 %v17597_v27  ;;  %16753 = vmatprep.mubr.msk.bf16.mxu0 %vm19931_vm0, %v19930_v21 }
 0xbb1   :  { %16739 = vmatprep.subr.bf16.mxu0 %v19930_v21  ;;  %16775 = vmatprep.mubr.msk.f32.mxu1 %vm19931_vm0, %v19930_v21 }
 0xbb4   :  { %16740 = vmatpush3.bf16.msra.mxu0 %v17598_v37  ;;  %v6849_v37 = vld [vmem:[%s21994_s5] sm:$0x3] }
 0xbb5   :  { %16741 = vmatprep.subr.bf16.mxu0 %v19930_v21 }
 0xbb8   :  { %16742 = vmatpush3.bf16.msra.mxu0 %v17599_v35  ;;  %v14661_v35 = vld [vmem:[%s21994_s5 + $0x2] sm:$0x3] }
 0xbb9   :  { %16743 = vmatprep.subr.bf16.mxu0 %v19930_v21 }
 0xbbc   :  { %16744 = vmatpush3.bf16.msra.mxu0 %v17600_v22  ;;  %v17607_v22 = vld [vmem:[#allocation77 + $0x74] ss:$8 sps:$4 sm:$0xff]  }
 0xbbd   :  { %16745 = vmatprep.subr.bf16.mxu0 %v19930_v21 }
 0xbc0   :  { %16746 = vmatpush3.bf16.msra.mxu0 %v17601_v39  ;;  %v14663_v39 = vld [vmem:[%s21994_s5 + $0x4] sm:$0x3] }
 0xbc1   :  { %16747 = vmatprep.subr.bf16.mxu0 %v19930_v21 }
 0xbc4   :  { %16748 = vmatpush3.bf16.msra.mxu0 %v17602_v30  ;;  %v17605_v30 = vld [vmem:[#allocation77 + $0x70] ss:$8 sps:$4 sm:$0xff]  }
 0xbc5   :  { %16749 = vmatprep.subr.bf16.mxu0 %v19930_v21 }
 0xbc8   :  { %16750 = vmatpush3.bf16.msra.mxu0 %v17603_v31  ;;  %v14665_v31 = vld [vmem:[%s21994_s5 + $0x6] sm:$0x3] }
 0xbc9   :  { %16751 = vmatprep.subr.bf16.mxu0 %v19930_v21 }
 0xbcc   :  { %16752 = vmatpush3.bf16.msra.mxu0 %v17604_v5  ;;  %v17610_v5 = vld [vmem:[#allocation77 + $0x64] ss:$8 sps:$4 sm:$0xff]  }
 0xbcd   :  { %16778 = vmatprep.subr.mxu0 %v19930_v21 }
 0xbcf   :  { %16754 = vmatmul.mubr.bf16.vlgmr.msra.gmra.mxu0 %v21467_v3 }
 0xbd0   :  { %16780 = vmatprep.mubr.msk.f32.mxu0 %vm19931_vm0, %v19930_v21 }
 0xc4f   :  { %v6566_v16 = vpop.f32.mrf.mxu0  ;;  %v6607_v49 = vpop.f32.mrf.mxu1 }
 0xc51   :  { %v6568_v8 = vpop.f32.mrf.mxu0  ;;  %v6609_v4 = vpop.f32.mrf.mxu1 }
 0xc53   :  { %v6570_v41 = vpop.f32.mrf.mxu0  ;;  %v6611_v53 = vpop.f32.mrf.mxu1 }
 0xc54   :  { %v17614_v41 = vld [vmem:[#allocation77 + $0x40] ss:$8 sps:$4 sm:$0xff]   ;;  %v17619_v53 = vld [vmem:[#allocation77 + $0x34] ss:$8 sps:$4 sm:$0xff]  }
 0xc55   :  { %v6571_v23 = vpop.f32.mrf.mxu0  ;;  %v6612_v11 = vpop.f32.mrf.mxu1 }
 0xc56   :  { %v17617_v23 = vld [vmem:[#allocation77 + $0x30] ss:$8 sps:$4 sm:$0xff]   ;;  %v17622_v11 = vld [vmem:[#allocation77 + $0x24] ss:$8 sps:$4 sm:$0xff]  }
 0xc6f   :  { %v6648_v6 = vpop.f32.mrf.mxu0  ;;  %v6689_v7 = vpop.f32.mrf.mxu1 }
 0xc71   :  { %v6650_v54 = vpop.f32.mrf.mxu0  ;;  %v6691_v58 = vpop.f32.mrf.mxu1 }
 0xc73   :  { %v6652_v36 = vpop.f32.mrf.mxu0  ;;  %v6693_v52 = vpop.f32.mrf.mxu1 }
 0xc74   :  { %v17626_v36 = vld [vmem:[#allocation77] ss:$8 sps:$4 sm:$0xff]  }
 0xc75   :  { %v6653_v42 = vpop.f32.mrf.mxu0  ;;  %v6694_v56 = vpop.f32.mrf.mxu1 }
 0xc8f   :  { %v6730_v63 = vpop.f32.mrf.mxu0 }
 0xc90   :  { %16758 = vmatpush3.msra.mxu1 %v6730_v63 }
 0xc91   :  { %v16755_v3 = vpop.f32.mrf.mxu0  ;;  %16759 = vmatprep.subr.mxu1 %v19930_v21 }
 0xc92   :  { %16760 = vmatpush3.msra.mxu1 %v6691_v58  ;;  %v17628_v58 = vld [vmem:[#allocation77 + $0x4] ss:$8 sps:$4 sm:$0xff]  }
 0xc93   :  { %v6733_v59 = vpop.f32.mrf.mxu0  ;;  %16761 = vmatprep.subr.mxu1 %v19930_v21 }
 0xc94   :  { %16762 = vmatpush3.msra.mxu1 %v6689_v7  ;;  %v17623_v7 = vld [vmem:[#allocation77 + $0x10] ss:$8 sps:$4 sm:$0xff]  }
 0xc95   :  { %v16756_v26 = vpop.f32.mrf.mxu0  ;;  %16763 = vmatprep.subr.mxu1 %v19930_v21 }
 0xc96   :  { %16764 = vmatpush3.msra.mxu1 %v6650_v54  ;;  %v17625_v54 = vld [vmem:[#allocation77 + $0x14] ss:$8 sps:$4 sm:$0xff]  }
 0xc97   :  { %16765 = vmatprep.subr.mxu1 %v19930_v21 }
 0xc98   :  { %16766 = vmatpush3.msra.mxu1 %v6648_v6  ;;  %v17620_v6 = vld [vmem:[#allocation77 + $0x20] ss:$8 sps:$4 sm:$0xff]  }
 0xc99   :  { %16767 = vmatprep.subr.mxu1 %v19930_v21 }
 0xc9a   :  { %16768 = vmatpush3.msra.mxu1 %v6609_v4  ;;  %v17616_v4 = vld [vmem:[#allocation77 + $0x44] ss:$8 sps:$4 sm:$0xff]  }
 0xc9b   :  { %16769 = vmatprep.subr.mxu1 %v19930_v21 }
 0xc9c   :  { %16770 = vmatpush3.msra.mxu1 %v6607_v49  ;;  %v17613_v49 = vld [vmem:[#allocation77 + $0x54] ss:$8 sps:$4 sm:$0xff]  }
 0xc9d   :  { %16771 = vmatprep.subr.mxu1 %v19930_v21 }
 0xc9e   :  { %16772 = vmatpush3.msra.mxu1 %v6568_v8  ;;  %v17611_v8 = vld [vmem:[#allocation77 + $0x50] ss:$8 sps:$4 sm:$0xff]  }
 0xc9f   :  { %16773 = vmatprep.subr.mxu1 %v19930_v21 }
 0xca0   :  { %16774 = vmatpush3.msra.mxu1 %v6566_v16  ;;  %v17608_v16 = vld [vmem:[#allocation77 + $0x60] ss:$8 sps:$4 sm:$0xff]  }
 0xca1   :  { %16776 = vmatmul.mubr.msk.f32.vlgmr.msra.gmra.mxu1 %vm5972_vm3, %v21461_v60  ;;  %16783 = vmatprep.subr.mxu1 %v19930_v21 }
 0xca2   :  { %16785 = vmatprep.mubr.msk.f32.mxu1 %vm19931_vm0, %v19930_v21 }
 0xd61   :  { %v6809_v51 = vpop.f32.mrf.mxu1 }
 0xd62   :  { %v6810_v62 = vadd.f32 %v14656_v24, %v6809_v51 }
 0xd63   :  { %v16777_v9 = vpop.f32.mrf.mxu1 }
 0xd64   :  { %v6813_v12 = vrot.slane %v6810_v62, 4 }
 0xd66   :  { %v6814_v1 = vadd.f32 %v6813_v12, %v6810_v62 }
 0xd68   :  { %v6815_v29 = vrot.slane %v6814_v1, 2 }
 0xd6a   :  { %v6816_v2 = vadd.f32 %v6815_v29, %v6814_v1  ;;  %v17631_v1 = vld [vmem:[%s21995_s30 + $0x74] ss:$8 sps:$4 sm:$0xff]   ;;  %v17629_v29 = vld [vmem:[%s21995_s30 + $0x70] ss:$8 sps:$4 sm:$0xff]  }
 0xd6c   :  { %v6817_v15 = vrot.slane %v6816_v2, 1 }
 0xd6e   :  { %v6818_v10 = vadd.f32 %v6817_v15, %v6816_v2  ;;  %v17634_v2 = vld [vmem:[%s21995_s30 + $0x64] ss:$8 sps:$4 sm:$0xff]   ;;  %v17632_v15 = vld [vmem:[%s21995_s30 + $0x60] ss:$8 sps:$4 sm:$0xff]  }
 0xd70   :  { %v6819_v34 = vmul.f32 0.125, %v6818_v10  ;;  %v17637_v10 = vld [vmem:[%s21995_s30 + $0x54] ss:$8 sps:$4 sm:$0xff]  }
 0xd72   :  { %v6820_v13 = vsub.f32 %v6810_v62, %v6819_v34  ;;  %v17635_v34 = vld [vmem:[%s21995_s30 + $0x50] ss:$8 sps:$4 sm:$0xff]  }
 0xd74   :  { %v6821_v17 = vmul.f32 %v6820_v13, %v6820_v13 }
 0xd76   :  { %v6822_v28 = vrot.slane %v6821_v17, 4 }
 0xd78   :  { %v6823_v60 = vadd.f32 %v6822_v28, %v6821_v17  ;;  %v17638_v17 = vld [vmem:[%s21995_s30 + $0x40] ss:$8 sps:$4 sm:$0xff]   ;;  %v17643_v28 = vld [vmem:[%s21995_s30 + $0x34] ss:$8 sps:$4 sm:$0xff]  }
 0xd7a   :  { %v6824_v48 = vrot.slane %v6823_v60, 2 }
 0xd7c   :  { %v6825_v44 = vadd.f32 %v6824_v48, %v6823_v60  ;;  %v17641_v60 = vld [vmem:[%s21995_s30 + $0x30] ss:$8 sps:$4 sm:$0xff]   ;;  %v17646_v48 = vld [vmem:[%s21995_s30 + $0x24] ss:$8 sps:$4 sm:$0xff]  }
 0xd7e   :  { %v6826_v20 = vrot.slane %v6825_v44, 1 }
 0xd80   :  { %v6827_v50 = vadd.f32 %v6826_v20, %v6825_v44  ;;  %v17644_v44 = vld [vmem:[%s21995_s30 + $0x20] ss:$8 sps:$4 sm:$0xff]   ;;  %v17649_v20 = vld [vmem:[%s21995_s30 + $0x14] ss:$8 sps:$4 sm:$0xff]  }
 0xd82   :  { %v6828_v61 = vmul.f32 0.125, %v6827_v50  ;;  %v17647_v50 = vld [vmem:[%s21995_s30 + $0x10] ss:$8 sps:$4 sm:$0xff]  }
 0xd84   :  { %v6829_v33 = vadd.f32 1e-05, %v6828_v61  ;;  %v17652_v61 = vld [vmem:[%s21995_s30 + $0x4] ss:$8 sps:$4 sm:$0xff]  }
 0xd86   :  { %18435 = vrsqrt.f32 %v6829_v33  ;;  %v17650_v33 = vld [vmem:[%s21995_s30] ss:$8 sps:$4 sm:$0xff]  }
 0xd93   :  { %v18436_v25 = vpop.eup %18435 }
 0xd94   :  { %v6831_v40 = vmul.f32 %v18436_v25, %v6820_v13  ;;  %v17640_v13 = vld [vmem:[%s21995_s30 + $0x44] ss:$8 sps:$4 sm:$0xff]   ;;  %v17655_v25 = vld [vmem:[%s21995_s30 + $0xf4] ss:$8 sps:$4 sm:$0xff]  }
 0xd96   :  { %v6839_v19 = vmul.f32 %v14658_v18, %v6831_v40  ;;  %v17653_v18 = vld [vmem:[%s21995_s30 + $0xf0] ss:$8 sps:$4 sm:$0xff]   ;;  %v17658_v40 = vld [vmem:[%s21995_s30 + $0xe4] ss:$8 sps:$4 sm:$0xff]  }
 0xd98   :  { %v6847_v45 = vadd.f32 %v14659_v55, %v6839_v19  ;;  %v17656_v55 = vld [vmem:[%s21995_s30 + $0xe0] ss:$8 sps:$4 sm:$0xff]   ;;  %v17661_v19 = vld [vmem:[%s21995_s30 + $0xd4] ss:$8 sps:$4 sm:$0xff]  }
 0xd9a   :  { %v21505_v27 = vmax.f32 %v6847_v45, 0.0  ;;  %v17659_v45 = vld [vmem:[%s21995_s30 + $0xd0] ss:$8 sps:$4 sm:$0xff]  }
 0xd9c   :  { %16779 = vmatpush3.msra.mxu0 %v21505_v27  ;;  %16784 = vmatpush3.msra.mxu1 %v21505_v27 }
 0xd9d   :  { %16781 = vmatmul.mubr.msk.f32.vlgmr.msra.gmra.mxu0 %vm6850_vm4, %v6849_v37  ;;  %16788 = vmatprep.subr.mxu0 %v19930_v21  ;;  %v17664_v37 = vld [vmem:[%s21995_s30 + $0xc4] ss:$8 sps:$4 sm:$0xff]  }
 0xd9e   :  { %16793 = vmatprep.subr.mxu1 %v19930_v21  ;;  %16786 = vmatmul.mubr.msk.f32.vlgmr.msra.gmra.mxu1 %vm6850_vm4, %v14661_v35  ;;  %v17662_v35 = vld [vmem:[%s21995_s30 + $0xc0] ss:$8 sps:$4 sm:$0xff]  }
 0xd9f   :  { %16789 = vmatpush3.msra.mxu0 %v21505_v27  ;;  %16794 = vmatpush3.msra.mxu1 %v21505_v27 }
 0xda0   :  { %16790 = vmatprep.mubr.msk.f32.mxu0 %vm19931_vm0, %v19930_v21  ;;  %16795 = vmatprep.mubr.msk.f32.mxu1 %vm19931_vm0, %v19930_v21 }
 0xda1   :  { %16791 = vmatmul.mubr.msk.f32.vlgmr.msra.gmra.mxu0 %vm6850_vm4, %v14663_v39  ;;  %7261 = vmatprep.subr.bf16.mxu0 %v17607_v22  ;;  %v17667_v22 = vld [vmem:[%s21995_s30 + $0xb4] ss:$8 sps:$4 sm:$0xff]   ;;  %v17665_v39 = vld [vmem:[%s21995_s30 + $0xb0] ss:$8 sps:$4 sm:$0xff]  }
 0xda2   :  { %16796 = vmatmul.mubr.msk.f32.vlgmr.msra.gmra.mxu1 %vm6850_vm4, %v14665_v31  ;;  %7262 = vmatpush1.bf16.msra.mxu0 %v17605_v30  ;;  %v17670_v30 = vld [vmem:[%s21995_s30 + $0xa4] ss:$8 sps:$4 sm:$0xff]   ;;  %v17668_v31 = vld [vmem:[%s21995_s30 + $0xa0] ss:$8 sps:$4 sm:$0xff]  }
 0xda3   :  { %7263 = vmatprep.subr.bf16.mxu0 %v17610_v5  ;;  %7293 = vmatprep.mubr.bf16.mxu0 %v19929_v0  ;;  %v17671_v5 = vld [vmem:[%s21995_s30 + $0x90] ss:$8 sps:$4 sm:$0xff]  }
 0xda4   :  { %7581 = vmatprep.subr.bf16.mxu1 %v17631_v1 }
 0xda5   :  { %7582 = vmatpush1.bf16.msra.mxu1 %v17629_v29 }
 0xda6   :  { %7264 = vmatpush1.bf16.msra.mxu0 %v17608_v16  ;;  %7583 = vmatprep.subr.bf16.mxu1 %v17634_v2  ;;  %v17673_v16 = vld [vmem:[%s21995_s30 + $0x94] ss:$8 sps:$4 sm:$0xff]  }
 0xda7   :  { %7265 = vmatprep.subr.bf16.mxu0 %v17613_v49  ;;  %v17676_v49 = vld [vmem:[%s21995_s30 + $0x84] ss:$8 sps:$4 sm:$0xff]  }
 0xda9   :  { %7584 = vmatpush1.bf16.msra.mxu1 %v17632_v15 }
 0xdaa   :  { %7266 = vmatpush1.bf16.msra.mxu0 %v17611_v8  ;;  %7585 = vmatprep.subr.bf16.mxu1 %v17637_v10  ;;  %v17674_v8 = vld [vmem:[%s21995_s30 + $0x80] ss:$8 sps:$4 sm:$0xff]  }
 0xdab   :  { %7267 = vmatprep.subr.bf16.mxu0 %v17616_v4  ;;  %v7171_v4 = vlaneseq }
 0xdad   :  { %7586 = vmatpush1.bf16.msra.mxu1 %v17635_v34 }
 0xdae   :  { %7268 = vmatpush1.bf16.msra.mxu0 %v17614_v41  ;;  %7587 = vmatprep.subr.bf16.mxu1 %v17640_v13  ;;  %v7172_v41 = vshrl.u32 %v7171_v4, 7 }
 0xdaf   :  { %7269 = vmatprep.subr.bf16.mxu0 %v17619_v53 }
 0xdb0   :  { %v21558_v53 = vsub.s32 0, %v7172_v41 }
 0xdb1   :  { %7588 = vmatpush1.bf16.msra.mxu1 %v17638_v17 }
 0xdb2   :  { %7270 = vmatpush1.bf16.msra.mxu0 %v17617_v23  ;;  %7589 = vmatprep.subr.bf16.mxu1 %v17643_v28  ;;  %v7169_v23 = vld [vmem:[#allocation73] sm:$0x3] }
 0xdb3   :  { %7271 = vmatprep.subr.bf16.mxu0 %v17622_v11  ;;  %v21560_v11 = vsub.s32 1, %v7172_v41 }
 0xdb5   :  { %7590 = vmatpush1.bf16.msra.mxu1 %v17641_v60 }
 0xdb6   :  { %7272 = vmatpush1.bf16.msra.mxu0 %v17620_v6  ;;  %7591 = vmatprep.subr.bf16.mxu1 %v17646_v48  ;;  %v7174_v6 = vrot.slane %v7169_v23, %v21558_v53 }
 0xdb7   :  { %7273 = vmatprep.subr.bf16.mxu0 %v17625_v54 }
 0xdb9   :  { %7592 = vmatpush1.bf16.msra.mxu1 %v17644_v44 }
 0xdba   :  { %7274 = vmatpush1.bf16.msra.mxu0 %v17623_v7  ;;  %7593 = vmatprep.subr.bf16.mxu1 %v17649_v20  ;;  %v7178_v7 = vrot.slane %v7169_v23, %v21560_v11 }
 0xdbb   :  { %7275 = vmatprep.subr.bf16.mxu0 %v17628_v58 }
 0xdbd   :  { %7594 = vmatpush1.bf16.msra.mxu1 %v17647_v50 }
 0xdbe   :  { %7276 = vmatpush1.bf16.msra.mxu0 %v17626_v36  ;;  %7595 = vmatprep.subr.bf16.mxu1 %v17652_v61 }
 0xdc1   :  { %7596 = vmatpush1.bf16.msra.mxu1 %v17650_v33 }
 0xdc2   :  { %7597 = vmatprep.subr.bf16.mxu1 %v17655_v25 }
 0xdc5   :  { %7598 = vmatpush2.bf16.msra.mxu1 %v17653_v18 }
 0xdc6   :  { %7599 = vmatprep.subr.bf16.mxu1 %v17658_v40 }
 0xdc9   :  { %7600 = vmatpush2.bf16.msra.mxu1 %v17656_v55 }
 0xdca   :  { %7601 = vmatprep.subr.bf16.mxu1 %v17661_v19 }
 0xdcd   :  { %7602 = vmatpush2.bf16.msra.mxu1 %v17659_v45 }
 0xdce   :  { %7603 = vmatprep.subr.bf16.mxu1 %v17664_v37 }
 0xdd1   :  { %7604 = vmatpush2.bf16.msra.mxu1 %v17662_v35 }
 0xdd2   :  { %7605 = vmatprep.subr.bf16.mxu1 %v17667_v22 }
 0xdd5   :  { %7606 = vmatpush2.bf16.msra.mxu1 %v17665_v39 }
 0xdd6   :  { %7607 = vmatprep.subr.bf16.mxu1 %v17670_v30 }
 0xdd9   :  { %7608 = vmatpush2.bf16.msra.mxu1 %v17668_v31 }
 0xdda   :  { %7609 = vmatprep.subr.bf16.mxu1 %v17673_v16  ;;  %v7345_v16 = vld [vmem:[#allocation76] sm:$0x3] }
 0xddb   :  { %v7354_v23 = vrot.slane %v7345_v16, %v21560_v11 }
 0xddd   :  { %7610 = vmatpush2.bf16.msra.mxu1 %v17671_v5 }
 0xdde   :  { %7611 = vmatprep.subr.bf16.mxu1 %v17676_v49  ;;  %v7359_v49 = vld [vmem:[#allocation74] sm:$0x3] }
 0xde1   :  { %7612 = vmatpush2.bf16.msra.mxu1 %v17674_v8  ;;  %v7350_v8 = vrot.slane %v7345_v16, %v21558_v53 }
 0xe5d   :  { %v6920_v52 = vpop.f32.mrf.mxu0 }
 0xe5e   :  { %v6995_v42 = vpop.f32.mrf.mxu1 }
 0xe5f   :  { %v16782_v56 = vpop.f32.mrf.mxu0  ;;  %v6999_v63 = vmax.f32 %v6920_v52, %v6995_v42 }
 0xe60   :  { %v16787_v3 = vpop.f32.mrf.mxu1 }
 0xe61   :  { %v7071_v59 = vpop.f32.mrf.mxu0 }
 0xe62   :  { %v7075_v26 = vmax.f32 %v6999_v63, %v7071_v59  ;;  %v7147_v24 = vpop.f32.mrf.mxu1 }
 0xe63   :  { %v16792_v51 = vpop.f32.mrf.mxu0 }
 0xe64   :  { %v7151_v62 = vmax.f32 %v7075_v26, %v7147_v24  ;;  %v16797_v9 = vpop.f32.mrf.mxu1 }
 0xe66   :  { %v7152_v12 = vpack.c.bf16 %v7151_v62, %v7151_v62 }
 0xe68   :  { %7294 = vmatmul.mubr.bf16.vlgmr.msra.gmra.mxu0 %v7152_v12 }
 0xf28   :  { %v7295_v54 = vpop.f32.mrf.mxu0 }
 0xf29   :  { %v7296_v58 = vadd.f32 %v7295_v54, %v7174_v6  ;;  %v7364_v6 = vrot.slane %v7359_v49, %v21558_v53 }
 0xf2a   :  { %v7297_v36 = vpop.f32.mrf.mxu0 }
 0xf2b   :  { %v7302_v52 = vsel %vm1828_vm1, %v7296_v58, 0.0  ;;  %v7298_v42 = vadd.f32 %v7297_v36, %v7178_v7  ;;  %v7368_v36 = vrot.slane %v7359_v49, %v21560_v11 }
 0xf2c   :  { %v7303_v56 = vrot.slane %v7302_v52, 4  ;;  %v7299_v63 = vpop.f32.mrf.mxu0 }
 0xf2d   :  { %v7309_v3 = vsel %vm1828_vm1, %v7298_v42, 0.0 }
 0xf2e   :  { %v7304_v59 = vadd.f32 %v7303_v56, %v7302_v52  ;;  %v7310_v26 = vrot.slane %v7309_v3, 4  ;;  %v7300_v24 = vpop.f32.mrf.mxu0 }
 0xf2f   :  { %v17677_v24 = vld [vmem:[%s21996_s24 + $0x78] sm:$0xff]  }
 0xf30   :  { %v7305_v51 = vrot.slane %v7304_v59, 2  ;;  %v7311_v62 = vadd.f32 %v7310_v26, %v7309_v3  ;;  %15664 = vmatprep.subr.bf16.mxu0 %v17677_v24 }
 0xf32   :  { %v7306_v9 = vadd.f32 %v7305_v51, %v7304_v59  ;;  %v7312_v12 = vrot.slane %v7311_v62, 2  ;;  %v17678_v51 = vld [vmem:[%s21996_s24 + $0x38] sm:$0xff]  }
 0xf33   :  { %15665 = vmatpush3.bf16.msra.mxu0 %v17678_v51 }
 0xf34   :  { %v7307_v1 = vrot.slane %v7306_v9, 1  ;;  %v7313_v29 = vadd.f32 %v7312_v12, %v7311_v62  ;;  %v17679_v62 = vld [vmem:[%s21996_s24 + $0x70] sm:$0xff]   ;;  %v17681_v12 = vld [vmem:[%s21996_s24 + $0x68] sm:$0xff]  }
 0xf35   :  { %15666 = vmatprep.subr.bf16.mxu0 %v17679_v62 }
 0xf36   :  { %v7308_v2 = vadd.f32 %v7307_v1, %v7306_v9  ;;  %v7314_v15 = vrot.slane %v7313_v29, 1  ;;  %v17680_v9 = vld [vmem:[%s21996_s24 + $0x30] sm:$0xff]   ;;  %v17682_v1 = vld [vmem:[%s21996_s24 + $0x28] sm:$0xff]  }
 0xf37   :  { %15667 = vmatpush3.bf16.msra.mxu0 %v17680_v9 }
 0xf38   :  { %v7317_v10 = vmul.f32 0.5, %v7308_v2  ;;  %v7315_v34 = vadd.f32 %v7314_v15, %v7313_v29  ;;  %15668 = vmatprep.subr.bf16.mxu0 %v17681_v12  ;;  %v17683_v29 = vld [vmem:[%s21996_s24 + $0x60] sm:$0xff]   ;;  %v17685_v15 = vld [vmem:[%s21996_s24 + $0x58] sm:$0xff]  }
 0xf39   :  { %v17684_v2 = vld [vmem:[%s21996_s24 + $0x20] sm:$0xff]  }
 0xf3a   :  { %v7319_v13 = vsub.f32 %v7296_v58, %v7317_v10  ;;  %v7318_v17 = vmul.f32 0.5, %v7315_v34  ;;  %v17686_v10 = vld [vmem:[%s21996_s24 + $0x18] sm:$0xff]   ;;  %v17687_v34 = vld [vmem:[%s21996_s24 + $0x50] sm:$0xff]  }
 0xf3b   :  { %15669 = vmatpush3.bf16.msra.mxu0 %v17682_v1 }
 0xf3c   :  { %v7321_v28 = vmul.f32 %v7319_v13, %v7319_v13  ;;  %v7320_v60 = vsub.f32 %v7298_v42, %v7318_v17  ;;  %15670 = vmatprep.subr.bf16.mxu0 %v17683_v29  ;;  %v17689_v17 = vld [vmem:[%s21996_s24 + $0x48] sm:$0xff]  }
 0xf3e   :  { %v7323_v48 = vsel %vm1828_vm1, %v7321_v28, 0.0  ;;  %v7322_v44 = vmul.f32 %v7320_v60, %v7320_v60  ;;  %v17690_v28 = vld [vmem:[%s21996_s24 + $0x8] sm:$0xff]  }
 0xf3f   :  { %v7324_v20 = vrot.slane %v7323_v48, 4  ;;  %15671 = vmatpush3.bf16.msra.mxu0 %v17684_v2 }
 0xf40   :  { %v7330_v50 = vsel %vm1828_vm1, %v7322_v44, 0.0  ;;  %15672 = vmatprep.subr.bf16.mxu0 %v17685_v15  ;;  %v7409_v44 = vld [vmem:[#allocation79] sm:$0x3] }
 0xf41   :  { %v7325_v61 = vadd.f32 %v7324_v20, %v7323_v48  ;;  %v7331_v33 = vrot.slane %v7330_v50, 4  ;;  %v17692_v48 = vld [vmem:[%s21996_s24] sm:$0xff]   ;;  %v7414_v20 = vrot.slane %v7409_v44, %v21558_v53 }
 0xf43   :  { %v7326_v25 = vrot.slane %v7325_v61, 2  ;;  %v7332_v18 = vadd.f32 %v7331_v33, %v7330_v50  ;;  %15673 = vmatpush3.bf16.msra.mxu0 %v17686_v10  ;;  %v7418_v50 = vrot.slane %v7409_v44, %v21560_v11 }
 0xf44   :  { %15674 = vmatprep.subr.bf16.mxu0 %v17687_v34 }
 0xf45   :  { %v7327_v40 = vadd.f32 %v7326_v25, %v7325_v61  ;;  %v7333_v55 = vrot.slane %v7332_v18, 2 }
 0xf47   :  { %v7328_v19 = vrot.slane %v7327_v40, 1  ;;  %v7334_v45 = vadd.f32 %v7333_v55, %v7332_v18 }
 0xf49   :  { %v7329_v37 = vadd.f32 %v7328_v19, %v7327_v40  ;;  %v7335_v35 = vrot.slane %v7334_v45, 1 }
 0xf4b   :  { %v7337_v22 = vmul.f32 0.5, %v7329_v37  ;;  %v7336_v39 = vadd.f32 %v7335_v35, %v7334_v45 }
 0xf4d   :  { %v7339_v30 = vadd.f32 1e-05, %v7337_v22  ;;  %v7338_v31 = vmul.f32 0.5, %v7336_v39 }
 0xf4f   :  { %18437 = vrsqrt.f32 %v7339_v30  ;;  %v7340_v5 = vadd.f32 1e-05, %v7338_v31 }
 0xf51   :  { %18439 = vrsqrt.f32 %v7340_v5 }
 0xf5c   :  { %v18438_v4 = vpop.eup %18437 }
 0xf5d   :  { %v7343_v41 = vmul.f32 %v18438_v4, %v7319_v13  ;;  %v17688_v13 = vld [vmem:[%s21996_s24 + $0x10] sm:$0xff]  }
 0xf5e   :  { %v18440_v7 = vpop.eup %18439  ;;  %15675 = vmatpush3.bf16.msra.mxu0 %v17688_v13  ;;  %v7664_v13 = vld [vmem:[#allocation82] sm:$0x3] }
 0xf5f   :  { %v7357_v54 = vmul.f32 %v7350_v8, %v7343_v41  ;;  %v7344_v58 = vmul.f32 %v18440_v7, %v7320_v60  ;;  %15676 = vmatprep.subr.bf16.mxu0 %v17689_v17  ;;  %v17691_v60 = vld [vmem:[%s21996_s24 + $0x40] sm:$0xff]   ;;  %v7678_v17 = vld [vmem:[#allocation80] sm:$0x3]  ;;  %v7673_v44 = vrot.slane %v7664_v13, %v21560_v11 }
 0xf61   :  { %v7358_v52 = vmul.f32 %v7354_v23, %v7344_v58  ;;  %v7371_v42 = vadd.f32 %v7364_v6, %v7357_v54 }
 0xf62   :  { %15677 = vmatpush3.bf16.msra.mxu0 %v17690_v28  ;;  %v7669_v28 = vrot.slane %v7664_v13, %v21558_v53 }
 0xf63   :  { %v7372_v56 = vadd.f32 %v7368_v36, %v7358_v52  ;;  %v7373_v63 = vmax.f32 %v7371_v42, 0.0  ;;  %15678 = vmatprep.subr.bf16.mxu0 %v17691_v60 }
 0xf65   :  { %v7374_v3 = vmax.f32 %v7372_v56, 0.0  ;;  %v7375_v26 = vpack.c.bf16 %v7373_v63, %v7373_v63 }
 0xf66   :  { %15679 = vmatpush3.bf16.msra.mxu0 %v17692_v48 }
 0xf67   :  { %v7376_v59 = vpack.c.bf16 %v7374_v3, %v7374_v3  ;;  %16798 = vmatprep.subr.bf16.mxu0 %v19930_v21 }
 0xf69   :  { %7613 = vmatprep.mubr.bf16.mxu1 %v7376_v59 }
 0xf6a   :  { %7614 = vmatmul.mubr.bf16.vlgmr.msra.gmra.mxu1 %v7375_v26 }
 0xf6b   :  { %8284 = vmatprep.mubr.bf16.mxu1 %v19929_v0 }
0x102a   :  { %v7615_v61 = vpop.f32.mrf.mxu1 }
0x102b   :  { %v7616_v33 = vadd.f32 %v7615_v61, %v7414_v20  ;;  %v7683_v20 = vrot.slane %v7678_v17, %v21558_v53  ;;  %v17694_v53 = vld [vmem:[#allocation23 + $0x30] sm:$0xff]  }
0x102c   :  { %v7617_v25 = vpop.f32.mrf.mxu1 }
0x102d   :  { %v7622_v18 = vsel %vm1828_vm1, %v7616_v33, 0.0  ;;  %v7618_v40 = vadd.f32 %v7617_v25, %v7418_v50  ;;  %v7687_v25 = vrot.slane %v7678_v17, %v21560_v11  ;;  %v17695_v11 = vld [vmem:[#allocation23 + $0x28] sm:$0xff]   ;;  %v14733_v17 = vld [vmem:[#allocation16] ss:$0 sm:$0xff] }
0x102e   :  { %v7623_v55 = vrot.slane %v7622_v18, 4  ;;  %v7619_v19 = vpop.f32.mrf.mxu1 }
0x102f   :  { %v7629_v45 = vsel %vm1828_vm1, %v7618_v40, 0.0 }
0x1030   :  { %v7624_v37 = vadd.f32 %v7623_v55, %v7622_v18  ;;  %v7630_v35 = vrot.slane %v7629_v45, 4  ;;  %v7620_v22 = vpop.f32.mrf.mxu1 }
0x1031   :  { %v17693_v22 = vld [vmem:[#allocation23 + $0x38] sm:$0xff]  }
0x1032   :  { %v7625_v39 = vrot.slane %v7624_v37, 2  ;;  %v7631_v30 = vadd.f32 %v7630_v35, %v7629_v45 }
0x1034   :  { %v7626_v31 = vadd.f32 %v7625_v39, %v7624_v37  ;;  %v7632_v5 = vrot.slane %v7631_v30, 2  ;;  %v17696_v39 = vld [vmem:[#allocation23 + $0x20] sm:$0xff]  }
0x1036   :  { %v7627_v16 = vrot.slane %v7626_v31, 1  ;;  %v7633_v49 = vadd.f32 %v7632_v5, %v7631_v30  ;;  %v17697_v30 = vld [vmem:[#allocation23 + $0x18] sm:$0xff]   ;;  %v17699_v5 = vld [vmem:[#allocation23 + $0x8] sm:$0xff]  }
0x1038   :  { %v7628_v8 = vadd.f32 %v7627_v16, %v7626_v31  ;;  %v7634_v4 = vrot.slane %v7633_v49, 1  ;;  %v17698_v31 = vld [vmem:[#allocation23 + $0x10] sm:$0xff]   ;;  %v17700_v16 = vld [vmem:[#allocation23] sm:$0xff]  }
0x103a   :  { %v7636_v41 = vmul.f32 0.5, %v7628_v8  ;;  %v7635_v23 = vadd.f32 %v7634_v4, %v7633_v49  ;;  %v14715_v8 = vld [vmem:[#allocation14] ss:$0 sm:$0xff] }
0x103c   :  { %v7638_v6 = vsub.f32 %v7616_v33, %v7636_v41  ;;  %v7637_v7 = vmul.f32 0.5, %v7635_v23 }
0x103e   :  { %v7640_v54 = vmul.f32 %v7638_v6, %v7638_v6  ;;  %v7639_v58 = vsub.f32 %v7618_v40, %v7637_v7 }
0x1040   :  { %v7642_v36 = vsel %vm1828_vm1, %v7640_v54, 0.0  ;;  %v7641_v52 = vmul.f32 %v7639_v58, %v7639_v58 }
0x1041   :  { %v7643_v42 = vrot.slane %v7642_v36, 4 }
0x1042   :  { %v7649_v56 = vsel %vm1828_vm1, %v7641_v52, 0.0 }
0x1043   :  { %v7644_v63 = vadd.f32 %v7643_v42, %v7642_v36  ;;  %v7650_v3 = vrot.slane %v7649_v56, 4 }
0x1045   :  { %v7645_v59 = vrot.slane %v7644_v63, 2  ;;  %v7651_v26 = vadd.f32 %v7650_v3, %v7649_v56 }
0x1047   :  { %v7646_v24 = vadd.f32 %v7645_v59, %v7644_v63  ;;  %v7652_v51 = vrot.slane %v7651_v26, 2 }
0x1049   :  { %v7647_v62 = vrot.slane %v7646_v24, 1  ;;  %v7653_v9 = vadd.f32 %v7652_v51, %v7651_v26 }
0x104b   :  { %v7648_v12 = vadd.f32 %v7647_v62, %v7646_v24  ;;  %v7654_v1 = vrot.slane %v7653_v9, 1 }
0x104d   :  { %v7656_v29 = vmul.f32 0.5, %v7648_v12  ;;  %v7655_v2 = vadd.f32 %v7654_v1, %v7653_v9 }
0x104f   :  { %v7658_v15 = vadd.f32 1e-05, %v7656_v29  ;;  %v7657_v10 = vmul.f32 0.5, %v7655_v2 }
0x1051   :  { %18441 = vrsqrt.f32 %v7658_v15  ;;  %v7659_v34 = vadd.f32 1e-05, %v7657_v10 }
0x1053   :  { %18443 = vrsqrt.f32 %v7659_v34  ;;  %v14732_v34 = vld [vmem:[#allocation17] ss:$0 sm:$0xff] }
0x105e   :  { %v18442_v60 = vpop.eup %18441 }
0x105f   :  { %v7662_v48 = vmul.f32 %v18442_v60, %v7638_v6 }
0x1060   :  { %v18444_v50 = vpop.eup %18443 }
0x1061   :  { %v7676_v61 = vmul.f32 %v7669_v28, %v7662_v48  ;;  %v7663_v33 = vmul.f32 %v18444_v50, %v7639_v58  ;;  %v17706_v50 = vld [vmem:[#allocation88 + $0xec] ss:$16 sps:$4 sm:$0xff]  }
0x1063   :  { %v7677_v18 = vmul.f32 %v7673_v44, %v7663_v33  ;;  %v7690_v40 = vadd.f32 %v7683_v20, %v7676_v61  ;;  %v17703_v20 = vld [vmem:[#allocation88 + $0xe4] ss:$16 sps:$4 sm:$0xff]   ;;  %v17701_v61 = vld [vmem:[#allocation88 + $0xe0] ss:$16 sps:$4 sm:$0xff]   ;;  %v17704_v33 = vld [vmem:[#allocation88 + $0xe8] ss:$16 sps:$4 sm:$0xff]  }
0x1064   :  { %8252 = vmatprep.subr.bf16.mxu1 %v17703_v20 }
0x1065   :  { %v7691_v55 = vadd.f32 %v7687_v25, %v7677_v18  ;;  %v7692_v19 = vmax.f32 %v7690_v40, 0.0  ;;  %8253 = vmatpush1.bf16.msra.mxu1 %v17701_v61  ;;  %v17709_v25 = vld [vmem:[#allocation88 + $0xc4] ss:$16 sps:$4 sm:$0xff]   ;;  %v17712_v18 = vld [vmem:[#allocation88 + $0xcc] ss:$16 sps:$4 sm:$0xff]  }
0x1066   :  { %v17707_v40 = vld [vmem:[#allocation88 + $0xc0] ss:$16 sps:$4 sm:$0xff]   ;;  %8254 = vmatprep.subr.bf16.mxu1 %v17709_v25  ;;  %v14743_v25 = vld [vmem:[#allocation22] ss:$0 sm:$0xff] }
0x1067   :  { %v7693_v45 = vmax.f32 %v7691_v55, 0.0  ;;  %v7694_v35 = vpack.c.bf16 %v7692_v19, %v7692_v19  ;;  %v17710_v55 = vld [vmem:[#allocation88 + $0xc8] ss:$16 sps:$4 sm:$0xff]   ;;  %v17715_v19 = vld [vmem:[#allocation88 + $0xa4] ss:$16 sps:$4 sm:$0xff]  }
0x1069   :  { %v7695_v37 = vpack.c.bf16 %v7693_v45, %v7693_v45  ;;  %8255 = vmatpush1.bf16.msra.mxu1 %v17707_v40  ;;  %v17718_v45 = vld [vmem:[#allocation88 + $0xac] ss:$16 sps:$4 sm:$0xff]  }
0x106a   :  { %8256 = vmatprep.subr.bf16.mxu1 %v17715_v19  ;;  %v14744_v40 = vld [vmem:[#allocation20] ss:$0 sm:$0xff] }
0x106b   :  { %7863 = vmatprep.mubr.bf16.mxu0 %v7695_v37  ;;  %v17713_v37 = vld [vmem:[#allocation88 + $0xa0] ss:$16 sps:$4 sm:$0xff]  }
0x106c   :  { %7864 = vmatmul.mubr.bf16.vlgmr.msra.gmra.mxu0 %v7694_v35  ;;  %v17716_v35 = vld [vmem:[#allocation88 + $0xa8] ss:$16 sps:$4 sm:$0xff]  }
0x106d   :  { %16814 = vmatprep.mubr.msk.bf16.mxu0 %vm19931_vm0, %v19930_v21  ;;  %16799 = vmatpush3.bf16.msra.mxu0 %v17693_v22  ;;  %v17721_v22 = vld [vmem:[#allocation88 + $0x84] ss:$16 sps:$4 sm:$0xff]  }
0x106e   :  { %16800 = vmatprep.subr.bf16.mxu0 %v19930_v21  ;;  %8257 = vmatpush1.bf16.msra.mxu1 %v17713_v37 }
0x106f   :  { %8258 = vmatprep.subr.bf16.mxu1 %v17721_v22  ;;  %v17752_v22 = vld [vmem:[#allocation29 + $0x200] ss:$36 sps:$4 sm:$0xff]  }
0x1071   :  { %16801 = vmatpush3.bf16.msra.mxu0 %v17694_v53  ;;  %v17724_v53 = vld [vmem:[#allocation88 + $0x8c] ss:$16 sps:$4 sm:$0xff]  }
0x1072   :  { %16802 = vmatprep.subr.bf16.mxu0 %v19930_v21 }
0x1075   :  { %16803 = vmatpush3.bf16.msra.mxu0 %v17695_v11  ;;  %v17719_v11 = vld [vmem:[#allocation88 + $0x80] ss:$16 sps:$4 sm:$0xff]  }
0x1076   :  { %16804 = vmatprep.subr.bf16.mxu0 %v19930_v21  ;;  %8259 = vmatpush1.bf16.msra.mxu1 %v17719_v11  ;;  %v17760_v11 = vld [vmem:[#allocation29 + $0x1bc] ss:$36 sps:$4 sm:$0xff]  }
0x1079   :  { %16805 = vmatpush3.bf16.msra.mxu0 %v17696_v39  ;;  %v17722_v39 = vld [vmem:[#allocation88 + $0x88] ss:$16 sps:$4 sm:$0xff]  }
0x107a   :  { %16806 = vmatprep.subr.bf16.mxu0 %v19930_v21 }
0x107d   :  { %16807 = vmatpush3.bf16.msra.mxu0 %v17697_v30  ;;  %v17727_v30 = vld [vmem:[#allocation88 + $0x64] ss:$16 sps:$4 sm:$0xff]  }
0x107e   :  { %16808 = vmatprep.subr.bf16.mxu0 %v19930_v21  ;;  %8260 = vmatprep.subr.bf16.mxu1 %v17727_v30  ;;  %v17766_v30 = vld [vmem:[#allocation29 + $0x174] ss:$36 sps:$4 sm:$0xff]  }
0x1081   :  { %16809 = vmatpush3.bf16.msra.mxu0 %v17698_v31  ;;  %v17730_v31 = vld [vmem:[#allocation88 + $0x6c] ss:$16 sps:$4 sm:$0xff]  }
0x1082   :  { %16810 = vmatprep.subr.bf16.mxu0 %v19930_v21 }
0x1085   :  { %16811 = vmatpush3.bf16.msra.mxu0 %v17699_v5  ;;  %v17725_v5 = vld [vmem:[#allocation88 + $0x60] ss:$16 sps:$4 sm:$0xff]  }
0x1086   :  { %16812 = vmatprep.subr.bf16.mxu0 %v19930_v21  ;;  %8261 = vmatpush1.bf16.msra.mxu1 %v17725_v5  ;;  %v17770_v5 = vld [vmem:[#allocation29 + $0x128] ss:$36 sps:$4 sm:$0xff]  }
0x1089   :  { %16813 = vmatpush3.bf16.msra.mxu0 %v17700_v16  ;;  %v17728_v16 = vld [vmem:[#allocation88 + $0x68] ss:$16 sps:$4 sm:$0xff]  }
0x108a   :  { %8293 = vmatprep.subr.bf16.mxu0 %v17706_v50 }
0x112c   :  { %v15680_v49 = vpop.f32.mrf.mxu0 }
0x112e   :  { %v15681_v4 = vpop.f32.mrf.mxu0 }
0x112f   :  { %v15682_v41 = vadd.f32 %v15681_v4, %v15680_v49  ;;  %v17733_v49 = vld [vmem:[#allocation88 + $0x44] ss:$16 sps:$4 sm:$0xff]   ;;  %v17731_v4 = vld [vmem:[#allocation88 + $0x40] ss:$16 sps:$4 sm:$0xff]  }
0x1130   :  { %v15683_v23 = vpop.f32.mrf.mxu0  ;;  %8262 = vmatprep.subr.bf16.mxu1 %v17733_v49  ;;  %v17776_v49 = vld [vmem:[#allocation29 + $0xe0] ss:$36 sps:$4 sm:$0xff]  }
0x1131   :  { %v7866_v6 = vadd.f32 %v15682_v41, %v14715_v8  ;;  %v17736_v8 = vld [vmem:[#allocation88 + $0x4c] ss:$16 sps:$4 sm:$0xff]   ;;  %v17734_v41 = vld [vmem:[#allocation88 + $0x48] ss:$16 sps:$4 sm:$0xff]   ;;  %8263 = vmatpush1.bf16.msra.mxu1 %v17731_v4  ;;  %v17739_v23 = vld [vmem:[#allocation88 + $0x24] ss:$16 sps:$4 sm:$0xff]  }
0x1132   :  { %v15684_v7 = vpop.f32.mrf.mxu0  ;;  %8264 = vmatprep.subr.bf16.mxu1 %v17739_v23  ;;  %v17782_v4 = vld [vmem:[#allocation29 + $0x98] ss:$36 sps:$4 sm:$0xff]   ;;  %v17788_v23 = vld [vmem:[#allocation29 + $0x50] ss:$36 sps:$4 sm:$0xff]  }
0x1133   :  { %v7871_v54 = vsel %vm1828_vm1, %v7866_v6, 0.0  ;;  %v17737_v7 = vld [vmem:[#allocation88 + $0x20] ss:$16 sps:$4 sm:$0xff]  }
0x1134   :  { %v7872_v58 = vrot.slane %v7871_v54, 4 }
0x1135   :  { %8265 = vmatpush1.bf16.msra.mxu1 %v17737_v7  ;;  %v17794_v7 = vld [vmem:[#allocation29 + $0x8] ss:$36 sps:$4 sm:$0xff]  }
0x1136   :  { %v7873_v36 = vadd.f32 %v7872_v58, %v7871_v54  ;;  %v17740_v54 = vld [vmem:[#allocation88 + $0x28] ss:$16 sps:$4 sm:$0xff]   ;;  %v17745_v58 = vld [vmem:[#allocation88 + $0x4] ss:$16 sps:$4 sm:$0xff]  }
0x1137   :  { %8266 = vmatprep.subr.bf16.mxu1 %v17745_v58  ;;  %v17800_v58 = vld [vmem:[#allocation29 + $0x440] ss:$36 sps:$4 sm:$0xff]  }
0x1138   :  { %v7874_v52 = vrot.slane %v7873_v36, 2 }
0x113a   :  { %v7875_v42 = vadd.f32 %v7874_v52, %v7873_v36  ;;  %v17748_v36 = vld [vmem:[#allocation88 + $0xc] ss:$16 sps:$4 sm:$0xff]   ;;  %v17743_v52 = vld [vmem:[#allocation88] ss:$16 sps:$4 sm:$0xff]  }
0x113b   :  { %8267 = vmatpush1.bf16.msra.mxu1 %v17743_v52  ;;  %v17806_v52 = vld [vmem:[#allocation29 + $0x3f8] ss:$36 sps:$4 sm:$0xff]  }
0x113c   :  { %v7876_v56 = vrot.slane %v7875_v42, 1  ;;  %16818 = vmatprep.subr.mxu1 %v19930_v21 }
0x113e   :  { %v7877_v63 = vadd.f32 %v7876_v56, %v7875_v42  ;;  %v17746_v42 = vld [vmem:[#allocation88 + $0x8] ss:$16 sps:$4 sm:$0xff]  }
0x113f   :  { %v14734_v56 = vld [vmem:[#allocation19] ss:$0 sm:$0xff] }
0x1140   :  { %v7878_v3 = vmul.f32 0.5, %v7877_v63 }
0x1142   :  { %v7879_v59 = vsub.f32 %v7866_v6, %v7878_v3  ;;  %v17742_v6 = vld [vmem:[#allocation88 + $0x2c] ss:$16 sps:$4 sm:$0xff]  }
0x1144   :  { %v7880_v26 = vmul.f32 %v7879_v59, %v7879_v59 }
0x1146   :  { %v7881_v24 = vsel %vm1828_vm1, %v7880_v26, 0.0 }
0x1147   :  { %v7882_v51 = vrot.slane %v7881_v24, 4 }
0x1149   :  { %v7883_v62 = vadd.f32 %v7882_v51, %v7881_v24 }
0x114b   :  { %v7884_v9 = vrot.slane %v7883_v62, 2 }
0x114d   :  { %v7885_v12 = vadd.f32 %v7884_v9, %v7883_v62 }
0x114f   :  { %v7886_v1 = vrot.slane %v7885_v12, 1 }
0x1151   :  { %v7887_v29 = vadd.f32 %v7886_v1, %v7885_v12 }
0x1153   :  { %v7888_v2 = vmul.f32 0.5, %v7887_v29 }
0x1155   :  { %v7889_v15 = vadd.f32 1e-05, %v7888_v2 }
0x1157   :  { %18445 = vrsqrt.f32 %v7889_v15 }
0x1164   :  { %v18446_v10 = vpop.eup %18445 }
0x1165   :  { %v7891_v13 = vmul.f32 %v18446_v10, %v7879_v59 }
0x1167   :  { %v7899_v28 = vmul.f32 %v14732_v34, %v7891_v13 }
0x1169   :  { %v7907_v60 = vadd.f32 %v14733_v17, %v7899_v28 }
0x116b   :  { %v7908_v48 = vmax.f32 %v7907_v60, 0.0 }
0x116d   :  { %v7909_v44 = vpack.c.bf16 %v7908_v48, %v7908_v48 }
0x116f   :  { %16815 = vmatmul.mubr.bf16.vlgmr.msra.gmra.mxu0 %v7909_v44 }
0x1170   :  { %8325 = vmatprep.mubr.bf16.mxu0 %v19929_v0  ;;  %8294 = vmatpush1.bf16.msra.mxu0 %v17704_v33 }
0x1171   :  { %8295 = vmatprep.subr.bf16.mxu0 %v17712_v18 }
0x1174   :  { %8296 = vmatpush1.bf16.msra.mxu0 %v17710_v55 }
0x1175   :  { %8297 = vmatprep.subr.bf16.mxu0 %v17718_v45 }
0x1178   :  { %8298 = vmatpush1.bf16.msra.mxu0 %v17716_v35  ;;  %v21617_v35 = vpack.c.bf16 %v21505_v27, %v21505_v27  ;;  %v17772_v27 = vld [vmem:[#allocation29 + $0x12c] ss:$36 sps:$4 sm:$0xff]  }
0x1179   :  { %8299 = vmatprep.subr.bf16.mxu0 %v17724_v53  ;;  %v17754_v53 = vld [vmem:[#allocation29 + $0x204] ss:$36 sps:$4 sm:$0xff]  }
0x117c   :  { %8300 = vmatpush1.bf16.msra.mxu0 %v17722_v39  ;;  %v17758_v39 = vld [vmem:[#allocation29 + $0x1b8] ss:$36 sps:$4 sm:$0xff]  }
0x117d   :  { %8301 = vmatprep.subr.bf16.mxu0 %v17730_v31  ;;  %v17764_v31 = vld [vmem:[#allocation29 + $0x170] ss:$36 sps:$4 sm:$0xff]  }
0x1180   :  { %8302 = vmatpush1.bf16.msra.mxu0 %v17728_v16  ;;  %v17778_v16 = vld [vmem:[#allocation29 + $0xe4] ss:$36 sps:$4 sm:$0xff]  }
0x1181   :  { %8303 = vmatprep.subr.bf16.mxu0 %v17736_v8  ;;  %v17784_v8 = vld [vmem:[#allocation29 + $0x9c] ss:$36 sps:$4 sm:$0xff]  }
0x1184   :  { %8304 = vmatpush1.bf16.msra.mxu0 %v17734_v41  ;;  %v17790_v41 = vld [vmem:[#allocation29 + $0x54] ss:$36 sps:$4 sm:$0xff]  }
0x1185   :  { %8305 = vmatprep.subr.bf16.mxu0 %v17742_v6  ;;  %v17796_v6 = vld [vmem:[#allocation29 + $0xc] ss:$36 sps:$4 sm:$0xff]  }
0x1188   :  { %8306 = vmatpush1.bf16.msra.mxu0 %v17740_v54  ;;  %v17802_v54 = vld [vmem:[#allocation29 + $0x444] ss:$36 sps:$4 sm:$0xff]  }
0x1189   :  { %8307 = vmatprep.subr.bf16.mxu0 %v17748_v36  ;;  %v17808_v36 = vld [vmem:[#allocation29 + $0x3fc] ss:$36 sps:$4 sm:$0xff]  }
0x118c   :  { %8308 = vmatpush1.bf16.msra.mxu0 %v17746_v42  ;;  %v17814_v42 = vld [vmem:[#allocation29 + $0x3b4] ss:$36 sps:$4 sm:$0xff]  }
0x118d   :  { %9595 = vmatprep.subr.bf16.mxu0 %v17754_v53  ;;  %v17803_v53 = vld [vmem:[#allocation29 + $0x3f0] ss:$36 sps:$4 sm:$0xff]  }
0x122f   :  { %v8015_v63 = vpop.f32.mrf.mxu0 }
0x1230   :  { %v8016_v3 = vadd.f32 %v14734_v56, %v8015_v63  ;;  %v17812_v56 = vld [vmem:[#allocation29 + $0x3b0] ss:$36 sps:$4 sm:$0xff]  }
0x1231   :  { %v16816_v59 = vpop.f32.mrf.mxu0  ;;  %v17820_v63 = vld [vmem:[#allocation29 + $0x36c] ss:$36 sps:$4 sm:$0xff]  }
0x1232   :  { %v8021_v26 = vsel %vm1828_vm1, %v8016_v3, 0.0 }
0x1233   :  { %v8022_v24 = vrot.slane %v8021_v26, 4  ;;  %v8018_v51 = vpop.f32.mrf.mxu0 }
0x1235   :  { %v8023_v62 = vadd.f32 %v8022_v24, %v8021_v26  ;;  %v16817_v9 = vpop.f32.mrf.mxu0  ;;  %v8336_v24 = vld [vmem:[#allocation11 + $0x8] sm:$0xff] }
0x1237   :  { %v8024_v12 = vrot.slane %v8023_v62, 2 }
0x1239   :  { %v8025_v1 = vadd.f32 %v8024_v12, %v8023_v62 }
0x123b   :  { %v8026_v29 = vrot.slane %v8025_v1, 1 }
0x123d   :  { %v8027_v2 = vadd.f32 %v8026_v29, %v8025_v1  ;;  %v8334_v1 = vld [vmem:[#allocation11] sm:$0xff] }
0x123f   :  { %v8028_v15 = vmul.f32 0.5, %v8027_v2 }
0x1241   :  { %v8029_v10 = vsub.f32 %v8016_v3, %v8028_v15  ;;  %v17818_v3 = vld [vmem:[#allocation29 + $0x368] ss:$36 sps:$4 sm:$0xff]   ;;  %v8491_v15 = vld [vmem:[#allocation11 + $0x10] sm:$0xff] }
0x1243   :  { %v8030_v34 = vmul.f32 %v8029_v10, %v8029_v10 }
0x1245   :  { %v8031_v13 = vsel %vm1828_vm1, %v8030_v34, 0.0  ;;  %v8570_v34 = vld [vmem:[#allocation11 + $0x18] sm:$0xff] }
0x1246   :  { %v8032_v17 = vrot.slane %v8031_v13, 4 }
0x1248   :  { %v8033_v28 = vadd.f32 %v8032_v17, %v8031_v13  ;;  %v17749_v13 = vld [vmem:[#allocation29 + $0x1f8] ss:$36 sps:$4 sm:$0xff]  }
0x1249   :  { %v17757_v17 = vld [vmem:[#allocation29 + $0x1b4] ss:$36 sps:$4 sm:$0xff]  }
0x124a   :  { %v8034_v60 = vrot.slane %v8033_v28, 2 }
0x124c   :  { %v8035_v48 = vadd.f32 %v8034_v60, %v8033_v28  ;;  %v17755_v28 = vld [vmem:[#allocation29 + $0x1b0] ss:$36 sps:$4 sm:$0xff]  }
0x124d   :  { %v17763_v60 = vld [vmem:[#allocation29 + $0x16c] ss:$36 sps:$4 sm:$0xff]  }
0x124e   :  { %v8036_v44 = vrot.slane %v8035_v48, 1 }
0x1250   :  { %v8037_v20 = vadd.f32 %v8036_v44, %v8035_v48  ;;  %v17761_v48 = vld [vmem:[#allocation29 + $0x168] ss:$36 sps:$4 sm:$0xff]  }
0x1251   :  { %v17769_v44 = vld [vmem:[#allocation29 + $0x124] ss:$36 sps:$4 sm:$0xff]  }
0x1252   :  { %v8038_v50 = vmul.f32 0.5, %v8037_v20  ;;  %v17767_v20 = vld [vmem:[#allocation29 + $0x120] ss:$36 sps:$4 sm:$0xff]  }
0x1254   :  { %v8039_v61 = vadd.f32 1e-05, %v8038_v50  ;;  %v17775_v50 = vld [vmem:[#allocation29 + $0xdc] ss:$36 sps:$4 sm:$0xff]  }
0x1256   :  { %18447 = vrsqrt.f32 %v8039_v61  ;;  %v17773_v61 = vld [vmem:[#allocation29 + $0xd8] ss:$36 sps:$4 sm:$0xff]  }
0x1263   :  { %v18448_v33 = vpop.eup %18447 }
0x1264   :  { %v8041_v18 = vmul.f32 %v18448_v33, %v8029_v10  ;;  %v17751_v10 = vld [vmem:[#allocation29 + $0x1fc] ss:$36 sps:$4 sm:$0xff]   ;;  %v17781_v33 = vld [vmem:[#allocation29 + $0x94] ss:$36 sps:$4 sm:$0xff]  }
0x1266   :  { %v8049_v55 = vmul.f32 %v14743_v25, %v8041_v18  ;;  %v17779_v25 = vld [vmem:[#allocation29 + $0x90] ss:$36 sps:$4 sm:$0xff]  }
0x1267   :  { %v17787_v18 = vld [vmem:[#allocation29 + $0x4c] ss:$36 sps:$4 sm:$0xff]  }
0x1268   :  { %v8057_v19 = vadd.f32 %v14744_v40, %v8049_v55  ;;  %v17785_v40 = vld [vmem:[#allocation29 + $0x48] ss:$36 sps:$4 sm:$0xff]  }
0x1269   :  { %v17793_v55 = vld [vmem:[#allocation29 + $0x4] ss:$36 sps:$4 sm:$0xff]  }
0x126a   :  { %v8058_v45 = vmax.f32 %v8057_v19, 0.0  ;;  %v17791_v19 = vld [vmem:[#allocation29] ss:$36 sps:$4 sm:$0xff]  }
0x126c   :  { %v8091_v37 = vpack.c.bf16 %v8058_v45, %v8058_v45  ;;  %14092 = vst [vmem:[#allocation92] sm:$0x3] %v8058_v45  ;;  %v17799_v45 = vld [vmem:[#allocation29 + $0x43c] ss:$36 sps:$4 sm:$0xff]  }
0x126e   :  { %8285 = vmatmul.mubr.bf16.vlgmr.msra.gmra.mxu1 %v8091_v37  ;;  %8326 = vmatmul.mubr.bf16.vlgmr.msra.gmra.mxu0 %v8091_v37  ;;  %v17797_v37 = vld [vmem:[#allocation29 + $0x438] ss:$36 sps:$4 sm:$0xff]  }
0x126f   :  { %9627 = vmatprep.mubr.bf16.mxu0 %v21617_v35  ;;  %16820 = vmatprep.mubr.msk.f32.mxu1 %vm19931_vm0, %v19930_v21 }
0x1270   :  { %9596 = vmatpush1.bf16.msra.mxu0 %v17752_v22  ;;  %v17805_v22 = vld [vmem:[#allocation29 + $0x3f4] ss:$36 sps:$4 sm:$0xff]  }
0x1271   :  { %9597 = vmatprep.subr.bf16.mxu0 %v17760_v11  ;;  %v17811_v11 = vld [vmem:[#allocation29 + $0x3ac] ss:$36 sps:$4 sm:$0xff]  }
0x1274   :  { %9598 = vmatpush1.bf16.msra.mxu0 %v17758_v39  ;;  %v17809_v39 = vld [vmem:[#allocation29 + $0x3a8] ss:$36 sps:$4 sm:$0xff]  }
0x1275   :  { %9599 = vmatprep.subr.bf16.mxu0 %v17766_v30  ;;  %v17817_v30 = vld [vmem:[#allocation29 + $0x364] ss:$36 sps:$4 sm:$0xff]  }
0x1278   :  { %9600 = vmatpush1.bf16.msra.mxu0 %v17764_v31  ;;  %v17815_v31 = vld [vmem:[#allocation29 + $0x360] ss:$36 sps:$4 sm:$0xff]  }
0x1279   :  { %9601 = vmatprep.subr.bf16.mxu0 %v17772_v27  ;;  %v17823_v27 = vld [vmem:[#allocation29 + $0x31c] ss:$36 sps:$4 sm:$0xff]  }
0x127c   :  { %9602 = vmatpush1.bf16.msra.mxu0 %v17770_v5  ;;  %v17826_v5 = vld [vmem:[#allocation29 + $0x324] ss:$36 sps:$4 sm:$0xff]  }
0x127d   :  { %9603 = vmatprep.subr.bf16.mxu0 %v17778_v16  ;;  %v17821_v16 = vld [vmem:[#allocation29 + $0x318] ss:$36 sps:$4 sm:$0xff]  }
0x1280   :  { %9604 = vmatpush1.bf16.msra.mxu0 %v17776_v49  ;;  %v17824_v49 = vld [vmem:[#allocation29 + $0x320] ss:$36 sps:$4 sm:$0xff]  }
0x1281   :  { %9605 = vmatprep.subr.bf16.mxu0 %v17784_v8  ;;  %v17829_v8 = vld [vmem:[#allocation29 + $0x2d4] ss:$36 sps:$4 sm:$0xff]  }
0x1284   :  { %9606 = vmatpush1.bf16.msra.mxu0 %v17782_v4  ;;  %v17832_v4 = vld [vmem:[#allocation29 + $0x2dc] ss:$36 sps:$4 sm:$0xff]  }
0x1285   :  { %9607 = vmatprep.subr.bf16.mxu0 %v17790_v41  ;;  %v17827_v41 = vld [vmem:[#allocation29 + $0x2d0] ss:$36 sps:$4 sm:$0xff]  }
0x1288   :  { %9608 = vmatpush1.bf16.msra.mxu0 %v17788_v23  ;;  %v17830_v23 = vld [vmem:[#allocation29 + $0x2d8] ss:$36 sps:$4 sm:$0xff]  }
0x1289   :  { %9609 = vmatprep.subr.bf16.mxu0 %v17796_v6  ;;  %v17835_v6 = vld [vmem:[#allocation29 + $0x28c] ss:$36 sps:$4 sm:$0xff]  }
0x128c   :  { %9610 = vmatpush1.bf16.msra.mxu0 %v17794_v7  ;;  %v17838_v7 = vld [vmem:[#allocation29 + $0x294] ss:$36 sps:$4 sm:$0xff]  }
0x128d   :  { %9611 = vmatprep.subr.bf16.mxu0 %v17802_v54  ;;  %v17833_v54 = vld [vmem:[#allocation29 + $0x288] ss:$36 sps:$4 sm:$0xff]  }
0x1290   :  { %9612 = vmatpush2.bf16.msra.mxu0 %v17800_v58  ;;  %v17836_v58 = vld [vmem:[#allocation29 + $0x290] ss:$36 sps:$4 sm:$0xff]  }
0x1291   :  { %9613 = vmatprep.subr.bf16.mxu0 %v17808_v36  ;;  %v17841_v36 = vld [vmem:[#allocation29 + $0x244] ss:$36 sps:$4 sm:$0xff]  }
0x1294   :  { %9614 = vmatpush2.bf16.msra.mxu0 %v17806_v52  ;;  %v17844_v52 = vld [vmem:[#allocation29 + $0x24c] ss:$36 sps:$4 sm:$0xff]  }
0x1295   :  { %9615 = vmatprep.subr.bf16.mxu0 %v17814_v42  ;;  %v17839_v42 = vld [vmem:[#allocation29 + $0x240] ss:$36 sps:$4 sm:$0xff]  }
0x1298   :  { %9616 = vmatpush2.bf16.msra.mxu0 %v17812_v56  ;;  %v17842_v56 = vld [vmem:[#allocation29 + $0x248] ss:$36 sps:$4 sm:$0xff]  }
0x1299   :  { %9617 = vmatprep.subr.bf16.mxu0 %v17820_v63  ;;  %v17847_v63 = vld [vmem:[#allocation29 + $0x20c] ss:$36 sps:$4 sm:$0xff]  }
0x129c   :  { %9618 = vmatpush2.bf16.msra.mxu0 %v17818_v3  ;;  %v17850_v3 = vld [vmem:[#allocation29 + $0x214] ss:$36 sps:$4 sm:$0xff]  }
0x129d   :  { %9619 = vmatprep.subr.bf16.mxu0 %v17826_v5  ;;  %v17886_v5 = vld [vmem:[#allocation29 + $0x64] ss:$36 sps:$4 sm:$0xff]  }
0x12a0   :  { %9620 = vmatpush2.bf16.msra.mxu0 %v17824_v49  ;;  %v17884_v49 = vld [vmem:[#allocation29 + $0x60] ss:$36 sps:$4 sm:$0xff]  }
0x12a1   :  { %9621 = vmatprep.subr.bf16.mxu0 %v17832_v4  ;;  %v17892_v4 = vld [vmem:[#allocation29 + $0x1c] ss:$36 sps:$4 sm:$0xff]  }
0x12a4   :  { %9622 = vmatpush2.bf16.msra.mxu0 %v17830_v23  ;;  %v17890_v23 = vld [vmem:[#allocation29 + $0x18] ss:$36 sps:$4 sm:$0xff]  }
0x12a5   :  { %9623 = vmatprep.subr.bf16.mxu0 %v17838_v7  ;;  %v17898_v7 = vld [vmem:[#allocation29 + $0x454] ss:$36 sps:$4 sm:$0xff]  }
0x12a8   :  { %9624 = vmatpush2.bf16.msra.mxu0 %v17836_v58  ;;  %v17896_v58 = vld [vmem:[#allocation29 + $0x450] ss:$36 sps:$4 sm:$0xff]  }
0x12a9   :  { %9625 = vmatprep.subr.bf16.mxu0 %v17844_v52  ;;  %v17904_v52 = vld [vmem:[#allocation29 + $0x40c] ss:$36 sps:$4 sm:$0xff]  }
0x12ac   :  { %9626 = vmatpush2.bf16.msra.mxu0 %v17842_v56  ;;  %v17902_v56 = vld [vmem:[#allocation29 + $0x408] ss:$36 sps:$4 sm:$0xff]  }
0x12ad   :  { %9677 = vmatprep.subr.bf16.mxu0 %v17850_v3  ;;  %v17910_v3 = vld [vmem:[#allocation29 + $0x3c4] ss:$36 sps:$4 sm:$0xff]  }
0x132e   :  { %v8286_v59 = vpop.f32.mrf.mxu1  ;;  %v8327_v26 = vpop.f32.mrf.mxu0 }
0x1330   :  { %v8288_v51 = vpop.f32.mrf.mxu1  ;;  %v8329_v62 = vpop.f32.mrf.mxu0 }
0x1331   :  { %16819 = vmatpush3.msk.msra.mxu1 %vm1828_vm1, %v8288_v51 }
0x1332   :  { %v8290_v9 = vpop.f32.mrf.mxu1  ;;  %v8331_v12 = vpop.f32.mrf.mxu0  ;;  %16821 = vmatmul.mubr.msk.f32.vlgmr.msra.gmra.mxu1 %vm8337_vm5, %v8336_v24  ;;  %16823 = vmatprep.subr.mxu1 %v19930_v21 }
0x1333   :  { %16824 = vmatpush3.msk.msra.mxu1 %vm1828_vm1, %v8286_v59  ;;  %16825 = vmatprep.mubr.msk.f32.mxu1 %vm19931_vm0, %v19930_v21 }
0x1334   :  { %v8291_v29 = vpop.f32.mrf.mxu1  ;;  %v8332_v2 = vpop.f32.mrf.mxu0  ;;  %16828 = vmatprep.subr.mxu1 %v19930_v21 }
0x1335   :  { %v14785_v2 = vld [vmem:[#allocation86] ss:$0 sm:$0xff] }
0x1336   :  { %16826 = vmatmul.mubr.msk.f32.vlgmr.msra.gmra.mxu1 %vm8337_vm5, %v8334_v1 }
0x1337   :  { %16829 = vmatpush3.msk.msra.mxu1 %vm1828_vm1, %v8327_v26  ;;  %16830 = vmatprep.mubr.msk.f32.mxu1 %vm19931_vm0, %v19930_v21 }
0x1338   :  { %16833 = vmatprep.subr.mxu1 %v19930_v21 }
0x133a   :  { %16831 = vmatmul.mubr.msk.f32.vlgmr.msra.gmra.mxu1 %vm8337_vm5, %v8491_v15 }
0x133b   :  { %16834 = vmatpush3.msk.msra.mxu1 %vm1828_vm1, %v8329_v62  ;;  %16835 = vmatprep.mubr.msk.f32.mxu1 %vm19931_vm0, %v19930_v21 }
0x133c   :  { %9554 = vmatprep.subr.bf16.mxu1 %v17751_v10 }
0x133e   :  { %16836 = vmatmul.mubr.msk.f32.vlgmr.msra.gmra.mxu1 %vm8337_vm5, %v8570_v34 }
0x133f   :  { %9586 = vmatprep.mubr.bf16.mxu1 %v21617_v35  ;;  %9555 = vmatpush1.bf16.msra.mxu1 %v17749_v13  ;;  %v17845_v13 = vld [vmem:[#allocation29 + $0x208] ss:$36 sps:$4 sm:$0xff]  }
0x1340   :  { %9556 = vmatprep.subr.bf16.mxu1 %v17757_v17  ;;  %v17848_v17 = vld [vmem:[#allocation29 + $0x210] ss:$36 sps:$4 sm:$0xff]  }
0x1343   :  { %9557 = vmatpush1.bf16.msra.mxu1 %v17755_v28 }
0x1344   :  { %9558 = vmatprep.subr.bf16.mxu1 %v17763_v60  ;;  %v17853_v60 = vld [vmem:[#allocation29 + $0x1c4] ss:$36 sps:$4 sm:$0xff]  }
0x1347   :  { %9559 = vmatpush1.bf16.msra.mxu1 %v17761_v48  ;;  %v17856_v48 = vld [vmem:[#allocation29 + $0x1cc] ss:$36 sps:$4 sm:$0xff]  }
0x1348   :  { %9560 = vmatprep.subr.bf16.mxu1 %v17769_v44  ;;  %v17851_v44 = vld [vmem:[#allocation29 + $0x1c0] ss:$36 sps:$4 sm:$0xff]  }
0x134b   :  { %9561 = vmatpush1.bf16.msra.mxu1 %v17767_v20  ;;  %v17854_v20 = vld [vmem:[#allocation29 + $0x1c8] ss:$36 sps:$4 sm:$0xff]  }
0x134c   :  { %9562 = vmatprep.subr.bf16.mxu1 %v17775_v50  ;;  %v17859_v50 = vld [vmem:[#allocation29 + $0x17c] ss:$36 sps:$4 sm:$0xff]  }
0x134f   :  { %9563 = vmatpush1.bf16.msra.mxu1 %v17773_v61  ;;  %v17862_v61 = vld [vmem:[#allocation29 + $0x184] ss:$36 sps:$4 sm:$0xff]  }
0x1350   :  { %9564 = vmatprep.subr.bf16.mxu1 %v17781_v33  ;;  %v17857_v33 = vld [vmem:[#allocation29 + $0x178] ss:$36 sps:$4 sm:$0xff]  }
0x1353   :  { %9565 = vmatpush1.bf16.msra.mxu1 %v17779_v25  ;;  %v17860_v25 = vld [vmem:[#allocation29 + $0x180] ss:$36 sps:$4 sm:$0xff]  }
0x1354   :  { %9566 = vmatprep.subr.bf16.mxu1 %v17787_v18  ;;  %v17865_v18 = vld [vmem:[#allocation29 + $0x134] ss:$36 sps:$4 sm:$0xff]  }
0x1357   :  { %9567 = vmatpush1.bf16.msra.mxu1 %v17785_v40  ;;  %v17868_v40 = vld [vmem:[#allocation29 + $0x13c] ss:$36 sps:$4 sm:$0xff]  }
0x1358   :  { %9568 = vmatprep.subr.bf16.mxu1 %v17793_v55  ;;  %v17863_v55 = vld [vmem:[#allocation29 + $0x130] ss:$36 sps:$4 sm:$0xff]  }
0x135b   :  { %9569 = vmatpush1.bf16.msra.mxu1 %v17791_v19  ;;  %v17866_v19 = vld [vmem:[#allocation29 + $0x138] ss:$36 sps:$4 sm:$0xff]  }
0x135c   :  { %9570 = vmatprep.subr.bf16.mxu1 %v17799_v45  ;;  %v17871_v45 = vld [vmem:[#allocation29 + $0xec] ss:$36 sps:$4 sm:$0xff]  }
0x135f   :  { %9571 = vmatpush2.bf16.msra.mxu1 %v17797_v37  ;;  %v17874_v37 = vld [vmem:[#allocation29 + $0xf4] ss:$36 sps:$4 sm:$0xff]  }
0x1360   :  { %9572 = vmatprep.subr.bf16.mxu1 %v17805_v22  ;;  %v17869_v22 = vld [vmem:[#allocation29 + $0xe8] ss:$36 sps:$4 sm:$0xff]  }
0x1363   :  { %9573 = vmatpush2.bf16.msra.mxu1 %v17803_v53  ;;  %v17872_v53 = vld [vmem:[#allocation29 + $0xf0] ss:$36 sps:$4 sm:$0xff]  }
0x1364   :  { %9574 = vmatprep.subr.bf16.mxu1 %v17811_v11  ;;  %v17877_v11 = vld [vmem:[#allocation29 + $0xa4] ss:$36 sps:$4 sm:$0xff]  }
0x1367   :  { %9575 = vmatpush2.bf16.msra.mxu1 %v17809_v39  ;;  %v17880_v39 = vld [vmem:[#allocation29 + $0xac] ss:$36 sps:$4 sm:$0xff]  }
0x1368   :  { %9576 = vmatprep.subr.bf16.mxu1 %v17817_v30  ;;  %v17875_v30 = vld [vmem:[#allocation29 + $0xa0] ss:$36 sps:$4 sm:$0xff]  }
0x136b   :  { %9577 = vmatpush2.bf16.msra.mxu1 %v17815_v31  ;;  %v17878_v31 = vld [vmem:[#allocation29 + $0xa8] ss:$36 sps:$4 sm:$0xff]  }
0x136c   :  { %9578 = vmatprep.subr.bf16.mxu1 %v17823_v27  ;;  %v17883_v27 = vld [vmem:[#allocation29 + $0x5c] ss:$36 sps:$4 sm:$0xff]  }
0x136f   :  { %9579 = vmatpush2.bf16.msra.mxu1 %v17821_v16  ;;  %v17881_v16 = vld [vmem:[#allocation29 + $0x58] ss:$36 sps:$4 sm:$0xff]  }
0x1370   :  { %9580 = vmatprep.subr.bf16.mxu1 %v17829_v8  ;;  %v17889_v8 = vld [vmem:[#allocation29 + $0x14] ss:$36 sps:$4 sm:$0xff]  }
0x1373   :  { %9581 = vmatpush2.bf16.msra.mxu1 %v17827_v41  ;;  %v17887_v41 = vld [vmem:[#allocation29 + $0x10] ss:$36 sps:$4 sm:$0xff]  }
0x1374   :  { %9582 = vmatprep.subr.bf16.mxu1 %v17835_v6  ;;  %v17895_v6 = vld [vmem:[#allocation29 + $0x44c] ss:$36 sps:$4 sm:$0xff]  }
0x1377   :  { %9583 = vmatpush2.bf16.msra.mxu1 %v17833_v54  ;;  %v17893_v54 = vld [vmem:[#allocation29 + $0x448] ss:$36 sps:$4 sm:$0xff]  }
0x1378   :  { %9584 = vmatprep.subr.bf16.mxu1 %v17841_v36  ;;  %v17901_v36 = vld [vmem:[#allocation29 + $0x404] ss:$36 sps:$4 sm:$0xff]  }
0x137b   :  { %9585 = vmatpush2.bf16.msra.mxu1 %v17839_v42  ;;  %v17899_v42 = vld [vmem:[#allocation29 + $0x400] ss:$36 sps:$4 sm:$0xff]  }
0x137c   :  { %9636 = vmatprep.subr.bf16.mxu1 %v17847_v63  ;;  %v17907_v63 = vld [vmem:[#allocation29 + $0x3bc] ss:$36 sps:$4 sm:$0xff]  }
0x13f2   :  { %v8410_v59 = vpop.f32.mrf.mxu1 }
0x13f4   :  { %v16822_v26 = vpop.f32.mrf.mxu1 }
0x13f5   :  { %v17908_v26 = vld [vmem:[#allocation29 + $0x3c0] ss:$36 sps:$4 sm:$0xff]  }
0x13f6   :  { %v8486_v24 = vpop.f32.mrf.mxu1 }
0x13f7   :  { %v8487_v9 = vadd.f32 %v8486_v24, %v8410_v59  ;;  %v17905_v59 = vld [vmem:[#allocation29 + $0x3b8] ss:$36 sps:$4 sm:$0xff]  }
0x13f8   :  { %v16827_v51 = vpop.f32.mrf.mxu1  ;;  %v17913_v24 = vld [vmem:[#allocation29 + $0x374] ss:$36 sps:$4 sm:$0xff]  }
0x13f9   :  { %v17916_v51 = vld [vmem:[#allocation29 + $0x37c] ss:$36 sps:$4 sm:$0xff]  }
0x13fa   :  { %v8564_v62 = vpop.f32.mrf.mxu1 }
0x13fb   :  { %v8568_v1 = vadd.f32 %v8564_v62, %v8487_v9  ;;  %v17911_v62 = vld [vmem:[#allocation29 + $0x370] ss:$36 sps:$4 sm:$0xff]   ;;  %v17914_v9 = vld [vmem:[#allocation29 + $0x378] ss:$36 sps:$4 sm:$0xff]  }
0x13fc   :  { %v16832_v12 = vpop.f32.mrf.mxu1 }
0x13fd   :  { %v17919_v12 = vld [vmem:[#allocation29 + $0x32c] ss:$36 sps:$4 sm:$0xff]  }
0x13fe   :  { %v8643_v29 = vpop.f32.mrf.mxu1 }
0x13ff   :  { %v8647_v15 = vadd.f32 %v8643_v29, %v8568_v1  ;;  %v17922_v1 = vld [vmem:[#allocation29 + $0x334] ss:$36 sps:$4 sm:$0xff]   ;;  %v17917_v29 = vld [vmem:[#allocation29 + $0x328] ss:$36 sps:$4 sm:$0xff]  }
0x1400   :  { %v16837_v10 = vpop.f32.mrf.mxu1 }
0x1401   :  { %v8655_v34 = vadd.f32 %v14785_v2, %v8647_v15  ;;  %v17920_v2 = vld [vmem:[#allocation29 + $0x330] ss:$36 sps:$4 sm:$0xff]   ;;  %v17925_v15 = vld [vmem:[#allocation29 + $0x2e4] ss:$36 sps:$4 sm:$0xff]  }
0x1402   :  { %v17928_v10 = vld [vmem:[#allocation29 + $0x2ec] ss:$36 sps:$4 sm:$0xff]  }
0x1403   :  { %v21640_v28 = vpack.c.bf16 %v8655_v34, %v8655_v34  ;;  %v17923_v34 = vld [vmem:[#allocation29 + $0x2e0] ss:$36 sps:$4 sm:$0xff]  }
0x1405   :  { %9587 = vmatmul.mubr.bf16.vlgmr.msra.gmra.mxu1 %v21640_v28  ;;  %9628 = vmatmul.mubr.bf16.vlgmr.msra.gmra.mxu0 %v21640_v28 }
0x1406   :  { %9637 = vmatpush1.bf16.msra.mxu1 %v17845_v13  ;;  %9678 = vmatpush1.bf16.msra.mxu0 %v17848_v17  ;;  %v17926_v13 = vld [vmem:[#allocation29 + $0x2e8] ss:$36 sps:$4 sm:$0xff]   ;;  %v17931_v17 = vld [vmem:[#allocation29 + $0x29c] ss:$36 sps:$4 sm:$0xff]  }
0x1407   :  { %9668 = vmatprep.mubr.bf16.mxu1 %v21617_v35  ;;  %9709 = vmatprep.mubr.bf16.mxu0 %v21617_v35 }
0x1408   :  { %9638 = vmatprep.subr.bf16.mxu1 %v17853_v60  ;;  %9679 = vmatprep.subr.bf16.mxu0 %v17856_v48  ;;  %v17934_v60 = vld [vmem:[#allocation29 + $0x2a4] ss:$36 sps:$4 sm:$0xff]   ;;  %v17929_v48 = vld [vmem:[#allocation29 + $0x298] ss:$36 sps:$4 sm:$0xff]  }
0x140a   :  { %9639 = vmatpush1.bf16.msra.mxu1 %v17851_v44  ;;  %9680 = vmatpush1.bf16.msra.mxu0 %v17854_v20  ;;  %v17932_v44 = vld [vmem:[#allocation29 + $0x2a0] ss:$36 sps:$4 sm:$0xff]   ;;  %v17937_v20 = vld [vmem:[#allocation29 + $0x254] ss:$36 sps:$4 sm:$0xff]  }
0x140b   :  { %9640 = vmatprep.subr.bf16.mxu1 %v17859_v50  ;;  %9681 = vmatprep.subr.bf16.mxu0 %v17862_v61  ;;  %v17940_v50 = vld [vmem:[#allocation29 + $0x25c] ss:$36 sps:$4 sm:$0xff]   ;;  %v17935_v61 = vld [vmem:[#allocation29 + $0x250] ss:$36 sps:$4 sm:$0xff]  }
0x140e   :  { %9641 = vmatpush1.bf16.msra.mxu1 %v17857_v33  ;;  %9682 = vmatpush1.bf16.msra.mxu0 %v17860_v25  ;;  %v17938_v33 = vld [vmem:[#allocation29 + $0x258] ss:$36 sps:$4 sm:$0xff]  }
0x140f   :  { %9642 = vmatprep.subr.bf16.mxu1 %v17865_v18  ;;  %9683 = vmatprep.subr.bf16.mxu0 %v17868_v40  ;;  %v17941_v25 = vld [vmem:[#allocation29 + $0x458] ss:$36 sps:$4 sm:$0xff]   ;;  %v17943_v40 = vld [vmem:[#allocation29 + $0x410] ss:$36 sps:$4 sm:$0xff]  }
0x1410   :  { %v17942_v18 = vld [vmem:[#allocation29 + $0x218] ss:$36 sps:$4 sm:$0xff]  }
0x1412   :  { %9643 = vmatpush1.bf16.msra.mxu1 %v17863_v55  ;;  %9684 = vmatpush1.bf16.msra.mxu0 %v17866_v19  ;;  %v17944_v55 = vld [vmem:[#allocation29 + $0x1d0] ss:$36 sps:$4 sm:$0xff]   ;;  %v17945_v19 = vld [vmem:[#allocation29 + $0x3c8] ss:$36 sps:$4 sm:$0xff]  }
0x1413   :  { %9644 = vmatprep.subr.bf16.mxu1 %v17871_v45  ;;  %9685 = vmatprep.subr.bf16.mxu0 %v17874_v37  ;;  %v17946_v45 = vld [vmem:[#allocation29 + $0x188] ss:$36 sps:$4 sm:$0xff]   ;;  %v17947_v37 = vld [vmem:[#allocation29 + $0x380] ss:$36 sps:$4 sm:$0xff]  }
0x1416   :  { %9645 = vmatpush1.bf16.msra.mxu1 %v17869_v22  ;;  %9686 = vmatpush1.bf16.msra.mxu0 %v17872_v53  ;;  %v17948_v22 = vld [vmem:[#allocation29 + $0x140] ss:$36 sps:$4 sm:$0xff]   ;;  %v17949_v53 = vld [vmem:[#allocation29 + $0x338] ss:$36 sps:$4 sm:$0xff]  }
0x1417   :  { %9646 = vmatprep.subr.bf16.mxu1 %v17877_v11  ;;  %9687 = vmatprep.subr.bf16.mxu0 %v17880_v39  ;;  %v17950_v11 = vld [vmem:[#allocation29 + $0xf8] ss:$36 sps:$4 sm:$0xff]   ;;  %v17951_v39 = vld [vmem:[#allocation29 + $0x2f0] ss:$36 sps:$4 sm:$0xff]  }
0x141a   :  { %9647 = vmatpush1.bf16.msra.mxu1 %v17875_v30  ;;  %9688 = vmatpush1.bf16.msra.mxu0 %v17878_v31  ;;  %v17953_v30 = vld [vmem:[#allocation29 + $0x2a8] ss:$36 sps:$4 sm:$0xff]  }
0x141b   :  { %9648 = vmatprep.subr.bf16.mxu1 %v17883_v27  ;;  %9689 = vmatprep.subr.bf16.mxu0 %v17886_v5  ;;  %v17954_v31 = vld [vmem:[#allocation29 + $0x68] ss:$36 sps:$4 sm:$0xff]   ;;  %v17955_v27 = vld [vmem:[#allocation29 + $0x260] ss:$36 sps:$4 sm:$0xff]  }
0x141c   :  { %v17956_v5 = vld [vmem:[#allocation29 + $0x20] ss:$36 sps:$4 sm:$0xff]  }
0x141e   :  { %9649 = vmatpush1.bf16.msra.mxu1 %v17881_v16  ;;  %9690 = vmatpush1.bf16.msra.mxu0 %v17884_v49 }
0x141f   :  { %9650 = vmatprep.subr.bf16.mxu1 %v17889_v8  ;;  %9691 = vmatprep.subr.bf16.mxu0 %v17892_v4 }
0x1422   :  { %9651 = vmatpush1.bf16.msra.mxu1 %v17887_v41  ;;  %9692 = vmatpush1.bf16.msra.mxu0 %v17890_v23 }
0x1423   :  { %9652 = vmatprep.subr.bf16.mxu1 %v17895_v6  ;;  %9693 = vmatprep.subr.bf16.mxu0 %v17898_v7 }
0x1426   :  { %9653 = vmatpush2.bf16.msra.mxu1 %v17893_v54  ;;  %9694 = vmatpush2.bf16.msra.mxu0 %v17896_v58 }
0x1427   :  { %9654 = vmatprep.subr.bf16.mxu1 %v17901_v36  ;;  %9695 = vmatprep.subr.bf16.mxu0 %v17904_v52 }
0x142a   :  { %9655 = vmatpush2.bf16.msra.mxu1 %v17899_v42  ;;  %9696 = vmatpush2.bf16.msra.mxu0 %v17902_v56 }
0x142b   :  { %9656 = vmatprep.subr.bf16.mxu1 %v17907_v63  ;;  %9697 = vmatprep.subr.bf16.mxu0 %v17910_v3 }
0x142e   :  { %9657 = vmatpush2.bf16.msra.mxu1 %v17905_v59  ;;  %9698 = vmatpush2.bf16.msra.mxu0 %v17908_v26 }
0x142f   :  { %9658 = vmatprep.subr.bf16.mxu1 %v17913_v24  ;;  %9699 = vmatprep.subr.bf16.mxu0 %v17916_v51 }
0x1432   :  { %9659 = vmatpush2.bf16.msra.mxu1 %v17911_v62  ;;  %9700 = vmatpush2.bf16.msra.mxu0 %v17914_v9  ;;  %v21662_v62 = vld [vmem:[#allocation8] sm:$0xff]  ;;  %v17959_v9 = vld [vmem:[#allocation35 + $0x1fc] ss:$36 sps:$4 sm:$0xff]  }
0x1433   :  { %9660 = vmatprep.subr.bf16.mxu1 %v17919_v12  ;;  %9701 = vmatprep.subr.bf16.mxu0 %v17922_v1  ;;  %v17962_v12 = vld [vmem:[#allocation35 + $0x204] ss:$36 sps:$4 sm:$0xff]   ;;  %v17957_v1 = vld [vmem:[#allocation35 + $0x1f8] ss:$36 sps:$4 sm:$0xff]  }
0x1436   :  { %9661 = vmatpush2.bf16.msra.mxu1 %v17917_v29  ;;  %9702 = vmatpush2.bf16.msra.mxu0 %v17920_v2  ;;  %v17960_v29 = vld [vmem:[#allocation35 + $0x200] ss:$36 sps:$4 sm:$0xff]   ;;  %v17965_v2 = vld [vmem:[#allocation35 + $0x1b4] ss:$36 sps:$4 sm:$0xff]  }
0x1437   :  { %9662 = vmatprep.subr.bf16.mxu1 %v17925_v15  ;;  %9703 = vmatprep.subr.bf16.mxu0 %v17928_v10  ;;  %v17968_v15 = vld [vmem:[#allocation35 + $0x1bc] ss:$36 sps:$4 sm:$0xff]   ;;  %v17963_v10 = vld [vmem:[#allocation35 + $0x1b0] ss:$36 sps:$4 sm:$0xff]  }
0x143a   :  { %9663 = vmatpush2.bf16.msra.mxu1 %v17923_v34  ;;  %9704 = vmatpush2.bf16.msra.mxu0 %v17926_v13  ;;  %v17966_v34 = vld [vmem:[#allocation35 + $0x1b8] ss:$36 sps:$4 sm:$0xff]   ;;  %v17971_v13 = vld [vmem:[#allocation35 + $0x16c] ss:$36 sps:$4 sm:$0xff]  }
0x143b   :  { %9664 = vmatprep.subr.bf16.mxu1 %v17931_v17  ;;  %9705 = vmatprep.subr.bf16.mxu0 %v17934_v60  ;;  %v17974_v17 = vld [vmem:[#allocation35 + $0x174] ss:$36 sps:$4 sm:$0xff]   ;;  %v17969_v60 = vld [vmem:[#allocation35 + $0x168] ss:$36 sps:$4 sm:$0xff]  }
0x143e   :  { %9665 = vmatpush2.bf16.msra.mxu1 %v17929_v48  ;;  %9706 = vmatpush2.bf16.msra.mxu0 %v17932_v44  ;;  %v17972_v48 = vld [vmem:[#allocation35 + $0x170] ss:$36 sps:$4 sm:$0xff]   ;;  %v17977_v44 = vld [vmem:[#allocation35 + $0x124] ss:$36 sps:$4 sm:$0xff]  }
0x143f   :  { %9666 = vmatprep.subr.bf16.mxu1 %v17937_v20  ;;  %9707 = vmatprep.subr.bf16.mxu0 %v17940_v50  ;;  %v17980_v20 = vld [vmem:[#allocation35 + $0x12c] ss:$36 sps:$4 sm:$0xff]   ;;  %v17975_v50 = vld [vmem:[#allocation35 + $0x120] ss:$36 sps:$4 sm:$0xff]  }
0x1442   :  { %9667 = vmatpush2.bf16.msra.mxu1 %v17935_v61  ;;  %9708 = vmatpush2.bf16.msra.mxu0 %v17938_v33  ;;  %v17978_v61 = vld [vmem:[#allocation35 + $0x128] ss:$36 sps:$4 sm:$0xff]   ;;  %v17983_v33 = vld [vmem:[#allocation35 + $0xdc] ss:$36 sps:$4 sm:$0xff]  }
0x1443   :  { %15703 = vmatprep.subr.bf16.mxu1 %v17941_v25  ;;  %16838 = vmatprep.subr.mxu0 %v19930_v21  ;;  %v17986_v25 = vld [vmem:[#allocation35 + $0xe4] ss:$36 sps:$4 sm:$0xff]  }
0x1445   :  { %9669 = vmatmul.mubr.bf16.vlgmr.msra.gmra.mxu1 %v21640_v28  ;;  %9710 = vmatmul.mubr.bf16.vlgmr.msra.gmra.mxu0 %v21640_v28 }
0x1446   :  { %15704 = vmatpush3.bf16.msra.mxu1 %v17942_v18  ;;  %9750 = vmatprep.mubr.bf16.mxu1 %v21617_v35  ;;  %v17952_v35 = vld [vmem:[#allocation29 + $0xb0] ss:$36 sps:$4 sm:$0xff]   ;;  %v17981_v18 = vld [vmem:[#allocation35 + $0xd8] ss:$36 sps:$4 sm:$0xff]  }
0x1447   :  { %15705 = vmatprep.subr.bf16.mxu1 %v17943_v40  ;;  %16856 = vmatprep.mubr.msk.f32.mxu0 %vm19931_vm0, %v19930_v21  ;;  %v17984_v40 = vld [vmem:[#allocation35 + $0xe0] ss:$36 sps:$4 sm:$0xff]  }
0x144a   :  { %15706 = vmatpush3.bf16.msra.mxu1 %v17944_v55  ;;  %v17989_v55 = vld [vmem:[#allocation35 + $0x94] ss:$36 sps:$4 sm:$0xff]  }
0x144b   :  { %15707 = vmatprep.subr.bf16.mxu1 %v17945_v19  ;;  %v17992_v19 = vld [vmem:[#allocation35 + $0x9c] ss:$36 sps:$4 sm:$0xff]  }
0x144e   :  { %15708 = vmatpush3.bf16.msra.mxu1 %v17946_v45  ;;  %v17987_v45 = vld [vmem:[#allocation35 + $0x90] ss:$36 sps:$4 sm:$0xff]  }
0x144f   :  { %15709 = vmatprep.subr.bf16.mxu1 %v17947_v37  ;;  %v17990_v37 = vld [vmem:[#allocation35 + $0x98] ss:$36 sps:$4 sm:$0xff]  }
0x1452   :  { %15710 = vmatpush3.bf16.msra.mxu1 %v17948_v22  ;;  %v17995_v22 = vld [vmem:[#allocation35 + $0x4c] ss:$36 sps:$4 sm:$0xff]  }
0x1453   :  { %15711 = vmatprep.subr.bf16.mxu1 %v17949_v53  ;;  %v17998_v53 = vld [vmem:[#allocation35 + $0x54] ss:$36 sps:$4 sm:$0xff]  }
0x1456   :  { %15712 = vmatpush3.bf16.msra.mxu1 %v17950_v11  ;;  %v17993_v11 = vld [vmem:[#allocation35 + $0x48] ss:$36 sps:$4 sm:$0xff]  }
0x1457   :  { %15713 = vmatprep.subr.bf16.mxu1 %v17951_v39  ;;  %v17996_v39 = vld [vmem:[#allocation35 + $0x50] ss:$36 sps:$4 sm:$0xff]  }
0x145a   :  { %15714 = vmatpush3.bf16.msra.mxu1 %v17952_v35  ;;  %v18001_v35 = vld [vmem:[#allocation35 + $0x4] ss:$36 sps:$4 sm:$0xff]  }
0x145b   :  { %15715 = vmatprep.subr.bf16.mxu1 %v17953_v30  ;;  %v18004_v30 = vld [vmem:[#allocation35 + $0xc] ss:$36 sps:$4 sm:$0xff]  }
0x145e   :  { %15716 = vmatpush3.bf16.msra.mxu1 %v17954_v31  ;;  %v17999_v31 = vld [vmem:[#allocation35] ss:$36 sps:$4 sm:$0xff]  }
0x145f   :  { %15717 = vmatprep.subr.bf16.mxu1 %v17955_v27  ;;  %v18002_v27 = vld [vmem:[#allocation35 + $0x8] ss:$36 sps:$4 sm:$0xff]  }
0x1462   :  { %15718 = vmatpush3.bf16.msra.mxu1 %v17956_v5  ;;  %v18007_v5 = vld [vmem:[#allocation35 + $0x20c] ss:$36 sps:$4 sm:$0xff]  }
0x1463   :  { %10361 = vmatprep.subr.bf16.mxu1 %v17962_v12 }
0x1465   :  { %9751 = vmatmul.mubr.bf16.vlgmr.msra.gmra.mxu1 %v21640_v28 }
0x1466   :  { %10393 = vmatprep.mubr.bf16.mxu1 %v19929_v0  ;;  %10362 = vmatpush1.bf16.msra.mxu1 %v17960_v29 }
0x1467   :  { %10363 = vmatprep.subr.bf16.mxu1 %v17968_v15 }
0x146a   :  { %10364 = vmatpush1.bf16.msra.mxu1 %v17966_v34 }
0x146b   :  { %10365 = vmatprep.subr.bf16.mxu1 %v17974_v17  ;;  %v18008_v17 = vld [vmem:[#allocation35 + $0x210] ss:$36 sps:$4 sm:$0xff]  }
0x146e   :  { %10366 = vmatpush1.bf16.msra.mxu1 %v17972_v48  ;;  %v18013_v48 = vld [vmem:[#allocation35 + $0x1c4] ss:$36 sps:$4 sm:$0xff]  }
0x146f   :  { %10367 = vmatprep.subr.bf16.mxu1 %v17980_v20  ;;  %v18011_v20 = vld [vmem:[#allocation35 + $0x1c0] ss:$36 sps:$4 sm:$0xff]  }
0x1472   :  { %10368 = vmatpush1.bf16.msra.mxu1 %v17978_v61  ;;  %v18019_v61 = vld [vmem:[#allocation35 + $0x17c] ss:$36 sps:$4 sm:$0xff]  }
0x1473   :  { %10369 = vmatprep.subr.bf16.mxu1 %v17986_v25  ;;  %v18017_v25 = vld [vmem:[#allocation35 + $0x178] ss:$36 sps:$4 sm:$0xff]  }
0x1476   :  { %10370 = vmatpush1.bf16.msra.mxu1 %v17984_v40  ;;  %v18025_v40 = vld [vmem:[#allocation35 + $0x134] ss:$36 sps:$4 sm:$0xff]  }
0x1477   :  { %10371 = vmatprep.subr.bf16.mxu1 %v17992_v19  ;;  %v18023_v19 = vld [vmem:[#allocation35 + $0x130] ss:$36 sps:$4 sm:$0xff]  }
0x147a   :  { %10372 = vmatpush1.bf16.msra.mxu1 %v17990_v37  ;;  %v18031_v37 = vld [vmem:[#allocation35 + $0xec] ss:$36 sps:$4 sm:$0xff]  }
0x147b   :  { %10373 = vmatprep.subr.bf16.mxu1 %v17998_v53  ;;  %v18029_v53 = vld [vmem:[#allocation35 + $0xe8] ss:$36 sps:$4 sm:$0xff]  }
0x147e   :  { %10374 = vmatpush1.bf16.msra.mxu1 %v17996_v39  ;;  %v18037_v39 = vld [vmem:[#allocation35 + $0xa4] ss:$36 sps:$4 sm:$0xff]  }
0x147f   :  { %10375 = vmatprep.subr.bf16.mxu1 %v18004_v30  ;;  %v18035_v30 = vld [vmem:[#allocation35 + $0xa0] ss:$36 sps:$4 sm:$0xff]  }
0x1482   :  { %10376 = vmatpush1.bf16.msra.mxu1 %v18002_v27  ;;  %v18043_v27 = vld [vmem:[#allocation35 + $0x5c] ss:$36 sps:$4 sm:$0xff]  }
0x14c5   :  { %v9588_v16 = vpop.f32.mrf.mxu1  ;;  %v9629_v49 = vpop.f32.mrf.mxu0 }
0x14c7   :  { %v9590_v8 = vpop.f32.mrf.mxu1  ;;  %v9631_v4 = vpop.f32.mrf.mxu0 }
0x14c9   :  { %v9592_v41 = vpop.f32.mrf.mxu1  ;;  %v9633_v23 = vpop.f32.mrf.mxu0 }
0x14cb   :  { %v9593_v6 = vpop.f32.mrf.mxu1  ;;  %v9634_v7 = vpop.f32.mrf.mxu0 }
0x1505   :  { %v9670_v54 = vpop.f32.mrf.mxu1  ;;  %v9711_v58 = vpop.f32.mrf.mxu0 }
0x1507   :  { %v9672_v36 = vpop.f32.mrf.mxu1  ;;  %v9713_v52 = vpop.f32.mrf.mxu0 }
0x1509   :  { %v9674_v42 = vpop.f32.mrf.mxu1  ;;  %v9715_v56 = vpop.f32.mrf.mxu0 }
0x150b   :  { %v9675_v63 = vpop.f32.mrf.mxu1  ;;  %v9716_v3 = vpop.f32.mrf.mxu0 }
0x1525   :  { %v15719_v59 = vpop.f32.mrf.mxu1 }
0x1527   :  { %v15720_v28 = vpop.f32.mrf.mxu1 }
0x1528   :  { %v15721_v26 = vadd.f32 %v15720_v28, %v15719_v59 }
0x1529   :  { %v15722_v24 = vpop.f32.mrf.mxu1 }
0x152a   :  { %16839 = vmatpush3.msra.mxu0 %v15721_v26 }
0x152b   :  { %v15723_v51 = vpop.f32.mrf.mxu1  ;;  %16840 = vmatprep.subr.mxu0 %v19930_v21 }
0x152c   :  { %16841 = vmatpush3.msra.mxu0 %v9713_v52 }
0x152d   :  { %16842 = vmatprep.subr.mxu0 %v19930_v21 }
0x152e   :  { %16843 = vmatpush3.msra.mxu0 %v9711_v58 }
0x152f   :  { %16844 = vmatprep.subr.mxu0 %v19930_v21 }
0x1530   :  { %16845 = vmatpush3.msra.mxu0 %v9672_v36 }
0x1531   :  { %16846 = vmatprep.subr.mxu0 %v19930_v21 }
0x1532   :  { %16847 = vmatpush3.msra.mxu0 %v9670_v54 }
0x1533   :  { %16848 = vmatprep.subr.mxu0 %v19930_v21 }
0x1534   :  { %16849 = vmatpush3.msra.mxu0 %v9631_v4 }
0x1535   :  { %16850 = vmatprep.subr.mxu0 %v19930_v21 }
0x1536   :  { %16851 = vmatpush3.msra.mxu0 %v9629_v49  ;;  %v14930_v49 = vld [vmem:[#allocation25] ss:$0 sm:$0xff] }
0x1537   :  { %16852 = vmatprep.subr.mxu0 %v19930_v21 }
0x1538   :  { %16853 = vmatpush3.msra.mxu0 %v9590_v8 }
0x1539   :  { %16854 = vmatprep.subr.mxu0 %v19930_v21 }
0x153a   :  { %16855 = vmatpush3.msra.mxu0 %v9588_v16  ;;  %v18010_v16 = vld [vmem:[#allocation35 + $0x214] ss:$36 sps:$4 sm:$0xff]  }
0x153b   :  { %16857 = vmatmul.mubr.msk.f32.vlgmr.msra.gmra.mxu0 %vm5972_vm3, %v21662_v62  ;;  %10320 = vmatprep.subr.bf16.mxu0 %v17959_v9 }
0x153c   :  { %10352 = vmatprep.mubr.bf16.mxu0 %v19929_v0  ;;  %10321 = vmatpush1.bf16.msra.mxu0 %v17957_v1  ;;  %v14932_v1 = vld [vmem:[#allocation28] ss:$0 sm:$0xff] }
0x153d   :  { %10322 = vmatprep.subr.bf16.mxu0 %v17965_v2  ;;  %10443 = vmatprep.subr.bf16.mxu1 %v18010_v16  ;;  %v14933_v2 = vld [vmem:[#allocation26] ss:$0 sm:$0xff]  ;;  %v18041_v16 = vld [vmem:[#allocation35 + $0x58] ss:$36 sps:$4 sm:$0xff]  }
0x1540   :  { %10323 = vmatpush1.bf16.msra.mxu0 %v17963_v10 }
0x1541   :  { %10324 = vmatprep.subr.bf16.mxu0 %v17971_v13  ;;  %v18005_v13 = vld [vmem:[#allocation35 + $0x208] ss:$36 sps:$4 sm:$0xff]  }
0x1544   :  { %10325 = vmatpush1.bf16.msra.mxu0 %v17969_v60 }
0x1545   :  { %10326 = vmatprep.subr.bf16.mxu0 %v17977_v44  ;;  %v18016_v44 = vld [vmem:[#allocation35 + $0x1cc] ss:$36 sps:$4 sm:$0xff]  }
0x1548   :  { %10327 = vmatpush1.bf16.msra.mxu0 %v17975_v50  ;;  %v18014_v50 = vld [vmem:[#allocation35 + $0x1c8] ss:$36 sps:$4 sm:$0xff]  }
0x1549   :  { %10328 = vmatprep.subr.bf16.mxu0 %v17983_v33  ;;  %v18022_v33 = vld [vmem:[#allocation35 + $0x184] ss:$36 sps:$4 sm:$0xff]  }
0x154c   :  { %10329 = vmatpush1.bf16.msra.mxu0 %v17981_v18  ;;  %v18020_v18 = vld [vmem:[#allocation35 + $0x180] ss:$36 sps:$4 sm:$0xff]  }
0x154d   :  { %10330 = vmatprep.subr.bf16.mxu0 %v17989_v55  ;;  %v18028_v55 = vld [vmem:[#allocation35 + $0x13c] ss:$36 sps:$4 sm:$0xff]  }
0x1550   :  { %10331 = vmatpush1.bf16.msra.mxu0 %v17987_v45  ;;  %v18026_v45 = vld [vmem:[#allocation35 + $0x138] ss:$36 sps:$4 sm:$0xff]  }
0x1551   :  { %10332 = vmatprep.subr.bf16.mxu0 %v17995_v22  ;;  %v18034_v22 = vld [vmem:[#allocation35 + $0xf4] ss:$36 sps:$4 sm:$0xff]  }
0x1554   :  { %10333 = vmatpush1.bf16.msra.mxu0 %v17993_v11  ;;  %v18032_v11 = vld [vmem:[#allocation35 + $0xf0] ss:$36 sps:$4 sm:$0xff]  }
0x1555   :  { %10334 = vmatprep.subr.bf16.mxu0 %v18001_v35  ;;  %v18040_v35 = vld [vmem:[#allocation35 + $0xac] ss:$36 sps:$4 sm:$0xff]  }
0x1558   :  { %10335 = vmatpush1.bf16.msra.mxu0 %v17999_v31  ;;  %v18038_v31 = vld [vmem:[#allocation35 + $0xa8] ss:$36 sps:$4 sm:$0xff]  }
0x1559   :  { %10402 = vmatprep.subr.bf16.mxu0 %v18007_v5  ;;  %v18046_v5 = vld [vmem:[#allocation35 + $0x64] ss:$36 sps:$4 sm:$0xff]  }
0x15fb   :  { %v9831_v8 = vpop.f32.mrf.mxu0 }
0x15fc   :  { %v9832_v4 = vadd.f32 %v14930_v49, %v9831_v8  ;;  %v18044_v49 = vld [vmem:[#allocation35 + $0x60] ss:$36 sps:$4 sm:$0xff]   ;;  %v18049_v8 = vld [vmem:[#allocation35 + $0x14] ss:$36 sps:$4 sm:$0xff]  }
0x15fd   :  { %v16858_v41 = vpop.f32.mrf.mxu0 }
0x15fe   :  { %v9835_v23 = vrot.slane %v9832_v4, 4  ;;  %v18047_v41 = vld [vmem:[#allocation35 + $0x10] ss:$36 sps:$4 sm:$0xff]  }
0x1600   :  { %v9836_v6 = vadd.f32 %v9835_v23, %v9832_v4  ;;  %v18050_v23 = vld [vmem:[#allocation35 + $0x18] ss:$36 sps:$4 sm:$0xff]  }
0x1602   :  { %v9837_v7 = vrot.slane %v9836_v6, 2 }
0x1604   :  { %v9838_v54 = vadd.f32 %v9837_v7, %v9836_v6  ;;  %v18053_v6 = vld [vmem:[#allocation35 + $0x218] ss:$36 sps:$4 sm:$0xff]   ;;  %v18054_v7 = vld [vmem:[#allocation35 + $0x1d0] ss:$36 sps:$4 sm:$0xff]  }
0x1606   :  { %v9839_v58 = vrot.slane %v9838_v54, 1 }
0x1608   :  { %v9840_v36 = vadd.f32 %v9839_v58, %v9838_v54  ;;  %v18055_v54 = vld [vmem:[#allocation35 + $0x188] ss:$36 sps:$4 sm:$0xff]   ;;  %v18056_v58 = vld [vmem:[#allocation35 + $0x140] ss:$36 sps:$4 sm:$0xff]  }
0x160a   :  { %v9841_v52 = vmul.f32 0.125, %v9840_v36  ;;  %v18057_v36 = vld [vmem:[#allocation35 + $0xf8] ss:$36 sps:$4 sm:$0xff]  }
0x160c   :  { %v9842_v42 = vsub.f32 %v9832_v4, %v9841_v52  ;;  %v18052_v4 = vld [vmem:[#allocation35 + $0x1c] ss:$36 sps:$4 sm:$0xff]   ;;  %v18058_v52 = vld [vmem:[#allocation35 + $0xb0] ss:$36 sps:$4 sm:$0xff]  }
0x160e   :  { %v9843_v56 = vmul.f32 %v9842_v42, %v9842_v42 }
0x1610   :  { %v9844_v63 = vrot.slane %v9843_v56, 4 }
0x1612   :  { %v9845_v3 = vadd.f32 %v9844_v63, %v9843_v56  ;;  %v18060_v56 = vld [vmem:[#allocation35 + $0x20] ss:$36 sps:$4 sm:$0xff]  }
0x1614   :  { %v9846_v59 = vrot.slane %v9845_v3, 2 }
0x1616   :  { %v9847_v28 = vadd.f32 %v9846_v59, %v9845_v3 }
0x1618   :  { %v9848_v26 = vrot.slane %v9847_v28, 1 }
0x161a   :  { %v9849_v24 = vadd.f32 %v9848_v26, %v9847_v28 }
0x161c   :  { %v9850_v51 = vmul.f32 0.125, %v9849_v24 }
0x161e   :  { %v9851_v9 = vadd.f32 1e-05, %v9850_v51 }
0x1620   :  { %18449 = vrsqrt.f32 %v9851_v9 }
0x162d   :  { %v18450_v12 = vpop.eup %18449 }
0x162e   :  { %v9853_v29 = vmul.f32 %v18450_v12, %v9842_v42  ;;  %v18059_v42 = vld [vmem:[#allocation35 + $0x68] ss:$36 sps:$4 sm:$0xff]  }
0x1630   :  { %v9861_v15 = vmul.f32 %v14932_v1, %v9853_v29 }
0x1632   :  { %v9869_v10 = vadd.f32 %v14933_v2, %v9861_v15 }
0x1634   :  { %v9870_v34 = vmax.f32 %v9869_v10, 0.0 }
0x1636   :  { %v21667_v60 = vpack.c.bf16 %v9870_v34, %v9870_v34 }
0x1638   :  { %10353 = vmatmul.mubr.bf16.vlgmr.msra.gmra.mxu0 %v21667_v60  ;;  %10394 = vmatmul.mubr.bf16.vlgmr.msra.gmra.mxu1 %v21667_v60 }
0x1639   :  { %10403 = vmatpush1.bf16.msra.mxu0 %v18005_v13  ;;  %10444 = vmatpush1.bf16.msra.mxu1 %v18008_v17 }
0x163a   :  { %10404 = vmatprep.subr.bf16.mxu0 %v18013_v48  ;;  %10445 = vmatprep.subr.bf16.mxu1 %v18016_v44 }
0x163b   :  { %10434 = vmatprep.mubr.bf16.mxu0 %v19929_v0  ;;  %10475 = vmatprep.mubr.bf16.mxu1 %v19929_v0 }
0x163d   :  { %10405 = vmatpush1.bf16.msra.mxu0 %v18011_v20  ;;  %10446 = vmatpush1.bf16.msra.mxu1 %v18014_v50  ;;  %v18063_v20 = vld [vmem:[#allocation91 + $0xe4] ss:$16 sps:$4 sm:$0xff]   ;;  %v18066_v50 = vld [vmem:[#allocation91 + $0xec] ss:$16 sps:$4 sm:$0xff]  }
0x163e   :  { %10406 = vmatprep.subr.bf16.mxu0 %v18019_v61  ;;  %10447 = vmatprep.subr.bf16.mxu1 %v18022_v33  ;;  %v18061_v61 = vld [vmem:[#allocation91 + $0xe0] ss:$16 sps:$4 sm:$0xff]   ;;  %v18064_v33 = vld [vmem:[#allocation91 + $0xe8] ss:$16 sps:$4 sm:$0xff]  }
0x1641   :  { %10407 = vmatpush1.bf16.msra.mxu0 %v18017_v25  ;;  %10448 = vmatpush1.bf16.msra.mxu1 %v18020_v18  ;;  %v18069_v25 = vld [vmem:[#allocation91 + $0xc4] ss:$16 sps:$4 sm:$0xff]   ;;  %v18072_v18 = vld [vmem:[#allocation91 + $0xcc] ss:$16 sps:$4 sm:$0xff]  }
0x1642   :  { %10408 = vmatprep.subr.bf16.mxu0 %v18025_v40  ;;  %10449 = vmatprep.subr.bf16.mxu1 %v18028_v55  ;;  %v18067_v40 = vld [vmem:[#allocation91 + $0xc0] ss:$16 sps:$4 sm:$0xff]   ;;  %v18070_v55 = vld [vmem:[#allocation91 + $0xc8] ss:$16 sps:$4 sm:$0xff]  }
0x1645   :  { %10409 = vmatpush1.bf16.msra.mxu0 %v18023_v19  ;;  %10450 = vmatpush1.bf16.msra.mxu1 %v18026_v45  ;;  %v18075_v19 = vld [vmem:[#allocation91 + $0xa4] ss:$16 sps:$4 sm:$0xff]   ;;  %v18073_v45 = vld [vmem:[#allocation91 + $0xa0] ss:$16 sps:$4 sm:$0xff]  }
0x1646   :  { %10410 = vmatprep.subr.bf16.mxu0 %v18031_v37  ;;  %10451 = vmatprep.subr.bf16.mxu1 %v18034_v22  ;;  %v18076_v37 = vld [vmem:[#allocation91 + $0xa8] ss:$16 sps:$4 sm:$0xff]   ;;  %v18081_v22 = vld [vmem:[#allocation91 + $0x84] ss:$16 sps:$4 sm:$0xff]  }
0x1649   :  { %10411 = vmatpush1.bf16.msra.mxu0 %v18029_v53  ;;  %10452 = vmatpush1.bf16.msra.mxu1 %v18032_v11  ;;  %v18084_v53 = vld [vmem:[#allocation91 + $0x8c] ss:$16 sps:$4 sm:$0xff]   ;;  %v18079_v11 = vld [vmem:[#allocation91 + $0x80] ss:$16 sps:$4 sm:$0xff]  }
0x164a   :  { %10412 = vmatprep.subr.bf16.mxu0 %v18037_v39  ;;  %10453 = vmatprep.subr.bf16.mxu1 %v18040_v35  ;;  %v18082_v39 = vld [vmem:[#allocation91 + $0x88] ss:$16 sps:$4 sm:$0xff]   ;;  %v18087_v35 = vld [vmem:[#allocation91 + $0x64] ss:$16 sps:$4 sm:$0xff]  }
0x164d   :  { %10413 = vmatpush1.bf16.msra.mxu0 %v18035_v30  ;;  %10454 = vmatpush1.bf16.msra.mxu1 %v18038_v31  ;;  %v18090_v30 = vld [vmem:[#allocation91 + $0x6c] ss:$16 sps:$4 sm:$0xff]   ;;  %v18085_v31 = vld [vmem:[#allocation91 + $0x60] ss:$16 sps:$4 sm:$0xff]  }
0x164e   :  { %10414 = vmatprep.subr.bf16.mxu0 %v18043_v27  ;;  %10455 = vmatprep.subr.bf16.mxu1 %v18046_v5  ;;  %v18088_v27 = vld [vmem:[#allocation91 + $0x68] ss:$16 sps:$4 sm:$0xff]   ;;  %v18093_v5 = vld [vmem:[#allocation91 + $0x44] ss:$16 sps:$4 sm:$0xff]  }
0x1651   :  { %10415 = vmatpush1.bf16.msra.mxu0 %v18041_v16  ;;  %10456 = vmatpush1.bf16.msra.mxu1 %v18044_v49  ;;  %v18096_v16 = vld [vmem:[#allocation91 + $0x4c] ss:$16 sps:$4 sm:$0xff]   ;;  %v18091_v49 = vld [vmem:[#allocation91 + $0x40] ss:$16 sps:$4 sm:$0xff]  }
0x1652   :  { %10416 = vmatprep.subr.bf16.mxu0 %v18049_v8  ;;  %10457 = vmatprep.subr.bf16.mxu1 %v18052_v4  ;;  %v18094_v8 = vld [vmem:[#allocation91 + $0x48] ss:$16 sps:$4 sm:$0xff]   ;;  %v18099_v4 = vld [vmem:[#allocation91 + $0x24] ss:$16 sps:$4 sm:$0xff]  }
0x1655   :  { %10417 = vmatpush1.bf16.msra.mxu0 %v18047_v41  ;;  %10458 = vmatpush1.bf16.msra.mxu1 %v18050_v23  ;;  %v18102_v41 = vld [vmem:[#allocation91 + $0x2c] ss:$16 sps:$4 sm:$0xff]   ;;  %v18097_v23 = vld [vmem:[#allocation91 + $0x20] ss:$16 sps:$4 sm:$0xff]  }
0x1656   :  { %16859 = vmatprep.subr.bf16.mxu0 %v19930_v21  ;;  %16879 = vmatprep.subr.mxu1 %v19930_v21 }
0x1658   :  { %10435 = vmatmul.mubr.bf16.vlgmr.msra.gmra.mxu0 %v21667_v60  ;;  %10476 = vmatmul.mubr.bf16.vlgmr.msra.gmra.mxu1 %v21667_v60 }
0x1659   :  { %16860 = vmatpush3.bf16.msra.mxu0 %v18053_v6  ;;  %16875 = vmatprep.mubr.msk.bf16.mxu0 %vm19931_vm0, %v19930_v21  ;;  %v18100_v6 = vld [vmem:[#allocation91 + $0x28] ss:$16 sps:$4 sm:$0xff]  }
0x165a   :  { %16861 = vmatprep.subr.bf16.mxu0 %v19930_v21  ;;  %16897 = vmatprep.mubr.msk.f32.mxu1 %vm19931_vm0, %v19930_v21 }
0x165d   :  { %16862 = vmatpush3.bf16.msra.mxu0 %v18054_v7  ;;  %v18105_v7 = vld [vmem:[#allocation91 + $0x4] ss:$16 sps:$4 sm:$0xff]  }
0x165e   :  { %16863 = vmatprep.subr.bf16.mxu0 %v19930_v21 }
0x1661   :  { %16864 = vmatpush3.bf16.msra.mxu0 %v18055_v54  ;;  %v18108_v54 = vld [vmem:[#allocation91 + $0xc] ss:$16 sps:$4 sm:$0xff]  }
0x1662   :  { %16865 = vmatprep.subr.bf16.mxu0 %v19930_v21 }
0x1665   :  { %16866 = vmatpush3.bf16.msra.mxu0 %v18056_v58  ;;  %v18103_v58 = vld [vmem:[#allocation91] ss:$16 sps:$4 sm:$0xff]  }
0x1666   :  { %16867 = vmatprep.subr.bf16.mxu0 %v19930_v21 }
0x1669   :  { %16868 = vmatpush3.bf16.msra.mxu0 %v18057_v36  ;;  %v18106_v36 = vld [vmem:[#allocation91 + $0x8] ss:$16 sps:$4 sm:$0xff]  }
0x166a   :  { %16869 = vmatprep.subr.bf16.mxu0 %v19930_v21 }
0x166d   :  { %16870 = vmatpush3.bf16.msra.mxu0 %v18058_v52  ;;  %v15006_v52 = vld [vmem:[#allocation31] ss:$0 sm:$0xff] }
0x166e   :  { %16871 = vmatprep.subr.bf16.mxu0 %v19930_v21 }
0x1671   :  { %16872 = vmatpush3.bf16.msra.mxu0 %v18059_v42 }
0x1672   :  { %16873 = vmatprep.subr.bf16.mxu0 %v19930_v21 }
0x1675   :  { %16874 = vmatpush3.bf16.msra.mxu0 %v18060_v56 }
0x1676   :  { %10871 = vmatprep.subr.bf16.mxu0 %v18066_v50  ;;  %v15009_v50 = vld [vmem:[#allocation32] ss:$0 sm:$0xff] }
0x1678   :  { %16876 = vmatmul.mubr.bf16.vlgmr.msra.gmra.mxu0 %v21667_v60 }
0x1679   :  { %10903 = vmatprep.mubr.bf16.mxu0 %v19929_v0  ;;  %10872 = vmatpush1.bf16.msra.mxu0 %v18064_v33 }
0x167a   :  { %10873 = vmatprep.subr.bf16.mxu0 %v18072_v18 }
0x167d   :  { %10874 = vmatpush1.bf16.msra.mxu0 %v18070_v55  ;;  %v10917_v55 = vld [vmem:[#allocation13 + $0x20] sm:$0xff] }
0x16f8   :  { %v10354_v63 = vpop.f32.mrf.mxu0  ;;  %v10395_v3 = vpop.f32.mrf.mxu1 }
0x16fa   :  { %v10356_v59 = vpop.f32.mrf.mxu0  ;;  %v10397_v28 = vpop.f32.mrf.mxu1 }
0x16fc   :  { %v10358_v26 = vpop.f32.mrf.mxu0  ;;  %v10399_v24 = vpop.f32.mrf.mxu1 }
0x16fe   :  { %v10359_v51 = vpop.f32.mrf.mxu0  ;;  %v10400_v9 = vpop.f32.mrf.mxu1 }
0x1718   :  { %v10436_v12 = vpop.f32.mrf.mxu0  ;;  %v10477_v1 = vpop.f32.mrf.mxu1 }
0x171a   :  { %v10438_v29 = vpop.f32.mrf.mxu0  ;;  %v10479_v2 = vpop.f32.mrf.mxu1 }
0x171c   :  { %v10440_v15 = vpop.f32.mrf.mxu0  ;;  %v10481_v10 = vpop.f32.mrf.mxu1 }
0x171e   :  { %v10441_v34 = vpop.f32.mrf.mxu0  ;;  %v10482_v13 = vpop.f32.mrf.mxu1 }
0x1738   :  { %v10518_v17 = vpop.f32.mrf.mxu0 }
0x1739   :  { %16880 = vmatpush3.msra.mxu1 %v10518_v17 }
0x173a   :  { %v16877_v60 = vpop.f32.mrf.mxu0  ;;  %16881 = vmatprep.subr.mxu1 %v19930_v21 }
0x173b   :  { %16882 = vmatpush3.msra.mxu1 %v10479_v2 }
0x173c   :  { %v10521_v48 = vpop.f32.mrf.mxu0  ;;  %16883 = vmatprep.subr.mxu1 %v19930_v21 }
0x173d   :  { %16884 = vmatpush3.msra.mxu1 %v10477_v1 }
0x173e   :  { %v16878_v44 = vpop.f32.mrf.mxu0  ;;  %16885 = vmatprep.subr.mxu1 %v19930_v21 }
0x173f   :  { %16886 = vmatpush3.msra.mxu1 %v10438_v29  ;;  %v15008_v44 = vld [vmem:[#allocation34] ss:$0 sm:$0xff] }
0x1740   :  { %16887 = vmatprep.subr.mxu1 %v19930_v21 }
0x1741   :  { %16888 = vmatpush3.msra.mxu1 %v10436_v12 }
0x1742   :  { %16889 = vmatprep.subr.mxu1 %v19930_v21 }
0x1743   :  { %16890 = vmatpush3.msra.mxu1 %v10397_v28 }
0x1744   :  { %16891 = vmatprep.subr.mxu1 %v19930_v21 }
0x1745   :  { %16892 = vmatpush3.msra.mxu1 %v10395_v3 }
0x1746   :  { %16893 = vmatprep.subr.mxu1 %v19930_v21 }
0x1747   :  { %16894 = vmatpush3.msra.mxu1 %v10356_v59 }
0x1748   :  { %16895 = vmatprep.subr.mxu1 %v19930_v21 }
0x1749   :  { %16896 = vmatpush3.msra.mxu1 %v10354_v63 }
0x174a   :  { %16898 = vmatmul.mubr.msk.f32.vlgmr.msra.gmra.mxu1 %vm5972_vm3, %v21662_v62  ;;  %10830 = vmatprep.subr.bf16.mxu1 %v18063_v20  ;;  %v18078_v62 = vld [vmem:[#allocation91 + $0xac] ss:$16 sps:$4 sm:$0xff]  }
0x174b   :  { %10862 = vmatprep.mubr.bf16.mxu1 %v19929_v0  ;;  %10831 = vmatpush1.bf16.msra.mxu1 %v18061_v61 }
0x174c   :  { %10832 = vmatprep.subr.bf16.mxu1 %v18069_v25  ;;  %10875 = vmatprep.subr.bf16.mxu0 %v18078_v62 }
0x174d   :  { %10876 = vmatpush1.bf16.msra.mxu0 %v18076_v37 }
0x174e   :  { %10877 = vmatprep.subr.bf16.mxu0 %v18084_v53  ;;  %v10918_v53 = vld [vmem:[#allocation13 + $0x28] sm:$0xff] }
0x174f   :  { %10833 = vmatpush1.bf16.msra.mxu1 %v18067_v40  ;;  %v11116_v40 = vld [vmem:[#allocation13 + $0x40] sm:$0xff] }
0x1750   :  { %10834 = vmatprep.subr.bf16.mxu1 %v18075_v19 }
0x1751   :  { %10878 = vmatpush1.bf16.msra.mxu0 %v18082_v39 }
0x1752   :  { %10879 = vmatprep.subr.bf16.mxu0 %v18090_v30 }
0x1753   :  { %10835 = vmatpush1.bf16.msra.mxu1 %v18073_v45  ;;  %v11117_v45 = vld [vmem:[#allocation13 + $0x48] sm:$0xff] }
0x1754   :  { %10836 = vmatprep.subr.bf16.mxu1 %v18081_v22 }
0x1755   :  { %10880 = vmatpush1.bf16.msra.mxu0 %v18088_v27  ;;  %v10920_v27 = vld [vmem:[#allocation13 + $0x38] sm:$0xff] }
0x1756   :  { %10881 = vmatprep.subr.bf16.mxu0 %v18096_v16  ;;  %v10913_v16 = vld [vmem:[#allocation13 + $0x8] sm:$0xff] }
0x1757   :  { %10837 = vmatpush1.bf16.msra.mxu1 %v18079_v11 }
0x1758   :  { %10838 = vmatprep.subr.bf16.mxu1 %v18087_v35 }
0x1759   :  { %10882 = vmatpush1.bf16.msra.mxu0 %v18094_v8  ;;  %v11222_v8 = vld [vmem:[#allocation13 + $0x60] sm:$0xff] }
0x175a   :  { %10883 = vmatprep.subr.bf16.mxu0 %v18102_v41  ;;  %v18114_v41 = vld [vmem:[#allocation41 + $0x204] ss:$36 sps:$4 sm:$0xff]  }
0x175b   :  { %10839 = vmatpush1.bf16.msra.mxu1 %v18085_v31  ;;  %v10919_v31 = vld [vmem:[#allocation13 + $0x30] sm:$0xff] }
0x175c   :  { %10840 = vmatprep.subr.bf16.mxu1 %v18093_v5  ;;  %v10912_v5 = vld [vmem:[#allocation13] sm:$0xff] }
0x175d   :  { %10884 = vmatpush1.bf16.msra.mxu0 %v18100_v6  ;;  %v11340_v6 = vld [vmem:[#allocation2 + $0x10] sm:$0xff] }
0x175e   :  { %10885 = vmatprep.subr.bf16.mxu0 %v18108_v54  ;;  %v18112_v54 = vld [vmem:[#allocation41 + $0x200] ss:$36 sps:$4 sm:$0xff]  }
0x175f   :  { %10841 = vmatpush1.bf16.msra.mxu1 %v18091_v49  ;;  %v18111_v49 = vld [vmem:[#allocation41 + $0x1fc] ss:$36 sps:$4 sm:$0xff]  }
0x1760   :  { %10842 = vmatprep.subr.bf16.mxu1 %v18099_v4  ;;  %v11338_v4 = vld [vmem:[#allocation2] sm:$0xff] }
0x1761   :  { %10886 = vmatpush1.bf16.msra.mxu0 %v18106_v36  ;;  %v18120_v36 = vld [vmem:[#allocation41 + $0x1bc] ss:$36 sps:$4 sm:$0xff]  }
0x1763   :  { %10843 = vmatpush1.bf16.msra.mxu1 %v18097_v23  ;;  %v11339_v23 = vld [vmem:[#allocation2 + $0x8] sm:$0xff] }
0x1764   :  { %10844 = vmatprep.subr.bf16.mxu1 %v18105_v7  ;;  %v18109_v7 = vld [vmem:[#allocation41 + $0x1f8] ss:$36 sps:$4 sm:$0xff]  }
0x1767   :  { %10845 = vmatpush1.bf16.msra.mxu1 %v18103_v58  ;;  %v18117_v58 = vld [vmem:[#allocation41 + $0x1b4] ss:$36 sps:$4 sm:$0xff]  }
0x180a   :  { %v10597_v42 = vpop.f32.mrf.mxu1 }
0x180b   :  { %v10598_v56 = vadd.f32 %v15006_v52, %v10597_v42  ;;  %v11341_v52 = vld [vmem:[#allocation2 + $0x18] sm:$0xff]  ;;  %v18115_v42 = vld [vmem:[#allocation41 + $0x1b0] ss:$36 sps:$4 sm:$0xff]  }
0x180c   :  { %v16899_v63 = vpop.f32.mrf.mxu1 }
0x180d   :  { %v10601_v3 = vrot.slane %v10598_v56, 4  ;;  %v18123_v63 = vld [vmem:[#allocation41 + $0x16c] ss:$36 sps:$4 sm:$0xff]  }
0x180f   :  { %v10602_v59 = vadd.f32 %v10601_v3, %v10598_v56  ;;  %v18126_v3 = vld [vmem:[#allocation41 + $0x174] ss:$36 sps:$4 sm:$0xff]  }
0x1811   :  { %v10603_v28 = vrot.slane %v10602_v59, 2 }
0x1813   :  { %v10604_v26 = vadd.f32 %v10603_v28, %v10602_v59  ;;  %v18121_v59 = vld [vmem:[#allocation41 + $0x168] ss:$36 sps:$4 sm:$0xff]   ;;  %v18124_v28 = vld [vmem:[#allocation41 + $0x170] ss:$36 sps:$4 sm:$0xff]  }
0x1815   :  { %v10605_v24 = vrot.slane %v10604_v26, 1 }
0x1817   :  { %v10606_v51 = vadd.f32 %v10605_v24, %v10604_v26  ;;  %v18129_v26 = vld [vmem:[#allocation41 + $0x124] ss:$36 sps:$4 sm:$0xff]   ;;  %v18132_v24 = vld [vmem:[#allocation41 + $0x12c] ss:$36 sps:$4 sm:$0xff]  }
0x1819   :  { %v10607_v9 = vmul.f32 0.125, %v10606_v51  ;;  %v18127_v51 = vld [vmem:[#allocation41 + $0x120] ss:$36 sps:$4 sm:$0xff]  }
0x181b   :  { %v10608_v12 = vsub.f32 %v10598_v56, %v10607_v9  ;;  %v18118_v56 = vld [vmem:[#allocation41 + $0x1b8] ss:$36 sps:$4 sm:$0xff]   ;;  %v18130_v9 = vld [vmem:[#allocation41 + $0x128] ss:$36 sps:$4 sm:$0xff]  }
0x181d   :  { %v10609_v1 = vmul.f32 %v10608_v12, %v10608_v12 }
0x181f   :  { %v10610_v29 = vrot.slane %v10609_v1, 4 }
0x1821   :  { %v10611_v2 = vadd.f32 %v10610_v29, %v10609_v1  ;;  %v18138_v1 = vld [vmem:[#allocation41 + $0xe4] ss:$36 sps:$4 sm:$0xff]   ;;  %v18133_v29 = vld [vmem:[#allocation41 + $0xd8] ss:$36 sps:$4 sm:$0xff]  }
0x1823   :  { %v10612_v15 = vrot.slane %v10611_v2, 2 }
0x1825   :  { %v10613_v10 = vadd.f32 %v10612_v15, %v10611_v2  ;;  %v18136_v2 = vld [vmem:[#allocation41 + $0xe0] ss:$36 sps:$4 sm:$0xff]   ;;  %v18141_v15 = vld [vmem:[#allocation41 + $0x94] ss:$36 sps:$4 sm:$0xff]  }
0x1827   :  { %v10614_v34 = vrot.slane %v10613_v10, 1 }
0x1829   :  { %v10615_v13 = vadd.f32 %v10614_v34, %v10613_v10  ;;  %v18144_v10 = vld [vmem:[#allocation41 + $0x9c] ss:$36 sps:$4 sm:$0xff]   ;;  %v18139_v34 = vld [vmem:[#allocation41 + $0x90] ss:$36 sps:$4 sm:$0xff]  }
0x182b   :  { %v10616_v17 = vmul.f32 0.125, %v10615_v13  ;;  %v18142_v13 = vld [vmem:[#allocation41 + $0x98] ss:$36 sps:$4 sm:$0xff]  }
0x182d   :  { %v10617_v60 = vadd.f32 1e-05, %v10616_v17  ;;  %v18147_v17 = vld [vmem:[#allocation41 + $0x4c] ss:$36 sps:$4 sm:$0xff]  }
0x182f   :  { %18451 = vrsqrt.f32 %v10617_v60  ;;  %v18150_v60 = vld [vmem:[#allocation41 + $0x54] ss:$36 sps:$4 sm:$0xff]  }
0x183c   :  { %v18452_v48 = vpop.eup %18451 }
0x183d   :  { %v10619_v20 = vmul.f32 %v18452_v48, %v10608_v12  ;;  %v18135_v12 = vld [vmem:[#allocation41 + $0xdc] ss:$36 sps:$4 sm:$0xff]   ;;  %v18145_v48 = vld [vmem:[#allocation41 + $0x48] ss:$36 sps:$4 sm:$0xff]  }
0x183f   :  { %v10627_v61 = vmul.f32 %v15008_v44, %v10619_v20  ;;  %v18148_v44 = vld [vmem:[#allocation41 + $0x50] ss:$36 sps:$4 sm:$0xff]   ;;  %v18153_v20 = vld [vmem:[#allocation41 + $0x4] ss:$36 sps:$4 sm:$0xff]  }
0x1841   :  { %v10635_v33 = vadd.f32 %v15009_v50, %v10627_v61  ;;  %v18156_v50 = vld [vmem:[#allocation41 + $0xc] ss:$36 sps:$4 sm:$0xff]   ;;  %v18151_v61 = vld [vmem:[#allocation41] ss:$36 sps:$4 sm:$0xff]  }
0x1843   :  { %v10636_v25 = vmax.f32 %v10635_v33, 0.0  ;;  %v18154_v33 = vld [vmem:[#allocation41 + $0x8] ss:$36 sps:$4 sm:$0xff]  }
0x1845   :  { %v10669_v18 = vpack.c.bf16 %v10636_v25, %v10636_v25  ;;  %v18159_v25 = vld [vmem:[#allocation41 + $0x43c] ss:$36 sps:$4 sm:$0xff]  }
0x1847   :  { %10863 = vmatmul.mubr.bf16.vlgmr.msra.gmra.mxu1 %v10669_v18  ;;  %10904 = vmatmul.mubr.bf16.vlgmr.msra.gmra.mxu0 %v10669_v18  ;;  %v18162_v18 = vld [vmem:[#allocation41 + $0x444] ss:$36 sps:$4 sm:$0xff]  }
0x1848   :  { %16918 = vmatprep.mubr.msk.f32.mxu0 %vm6850_vm4, %v11116_v40  ;;  %16902 = vmatprep.mubr.msk.f32.mxu1 %vm6850_vm4, %v10917_v55  ;;  %v18157_v40 = vld [vmem:[#allocation41 + $0x438] ss:$36 sps:$4 sm:$0xff]   ;;  %v18160_v55 = vld [vmem:[#allocation41 + $0x440] ss:$36 sps:$4 sm:$0xff]  }
0x1907   :  { %v10864_v19 = vpop.f32.mrf.mxu1  ;;  %v10905_v62 = vpop.f32.mrf.mxu0 }
0x1908   :  { %16916 = vmatprep.subr.mxu0 %v10905_v62 }
0x1909   :  { %v10866_v37 = vpop.f32.mrf.mxu1  ;;  %v10907_v22 = vpop.f32.mrf.mxu0  ;;  %16917 = vmatpush3.msra.mxu0 %v10905_v62  ;;  %v18168_v62 = vld [vmem:[#allocation41 + $0x3fc] ss:$36 sps:$4 sm:$0xff]  }
0x190a   :  { %16900 = vmatprep.subr.mxu1 %v10866_v37  ;;  %16932 = vmatprep.subr.msk.mxu0 %vm1828_vm1, %v21349_v47 }
0x190b   :  { %v10868_v11 = vpop.f32.mrf.mxu1  ;;  %v10909_v39 = vpop.f32.mrf.mxu0  ;;  %16901 = vmatpush3.msra.mxu1 %v10866_v37  ;;  %16919 = vmatmul.mubr.msk.f32.vlgmr.msra.gmra.mxu0 %vm6850_vm4, %v11117_v45  ;;  %v18163_v45 = vld [vmem:[#allocation41 + $0x3f0] ss:$36 sps:$4 sm:$0xff]   ;;  %v18166_v37 = vld [vmem:[#allocation41 + $0x3f8] ss:$36 sps:$4 sm:$0xff]  }
0x190c   :  { %16933 = vmatpush3.msk.msra.mxu0 %vm1828_vm1, %v21349_v47  ;;  %16903 = vmatmul.mubr.msk.f32.vlgmr.msra.gmra.mxu1 %vm6850_vm4, %v10918_v53  ;;  %v11118_v47 = vld [vmem:[#allocation13 + $0x50] sm:$0xff] }
0x190d   :  { %16908 = vmatprep.subr.mxu1 %v10864_v19  ;;  %16934 = vmatprep.subr.mxu0 %v21355_v38  ;;  %v10869_v35 = vpop.f32.mrf.mxu1  ;;  %v10910_v30 = vpop.f32.mrf.mxu0  ;;  %v18171_v53 = vld [vmem:[#allocation41 + $0x3ac] ss:$36 sps:$4 sm:$0xff]   ;;  %v18174_v39 = vld [vmem:[#allocation41 + $0x3b4] ss:$36 sps:$4 sm:$0xff]  }
0x190e   :  { %16909 = vmatpush3.msra.mxu1 %v10864_v19  ;;  %16935 = vmatpush3.msra.mxu0 %v21355_v38  ;;  %v10914_v38 = vld [vmem:[#allocation13 + $0x10] sm:$0xff]  ;;  %v18177_v35 = vld [vmem:[#allocation41 + $0x364] ss:$36 sps:$4 sm:$0xff]  }
0x190f   :  { %16924 = vmatprep.subr.mxu1 %v10907_v22  ;;  %16936 = vmatprep.subr.mxu0 %v21361_v43  ;;  %v18165_v19 = vld [vmem:[#allocation41 + $0x3f4] ss:$36 sps:$4 sm:$0xff]   ;;  %v18180_v30 = vld [vmem:[#allocation41 + $0x36c] ss:$36 sps:$4 sm:$0xff]  }
0x1910   :  { %16905 = vmatprep.mubr.msk.f32.mxu1 %vm6850_vm4, %v10919_v31  ;;  %16937 = vmatpush3.msra.mxu0 %v21361_v43  ;;  %v10915_v43 = vld [vmem:[#allocation13 + $0x18] sm:$0xff]  ;;  %v18172_v11 = vld [vmem:[#allocation41 + $0x3b0] ss:$36 sps:$4 sm:$0xff]  }
0x1911   :  { %16906 = vmatmul.mubr.msk.f32.gmra.mxu1 %vm6850_vm4, %v10920_v27  ;;  %16938 = vmatprep.subr.mxu0 %v21367_v32  ;;  %v18175_v31 = vld [vmem:[#allocation41 + $0x360] ss:$36 sps:$4 sm:$0xff]   ;;  %v18178_v27 = vld [vmem:[#allocation41 + $0x368] ss:$36 sps:$4 sm:$0xff]  }
0x1912   :  { %16939 = vmatpush3.msra.mxu0 %v21367_v32  ;;  %16910 = vmatprep.mubr.msk.f32.mxu1 %vm6850_vm4, %v10912_v5  ;;  %v11119_v32 = vld [vmem:[#allocation13 + $0x58] sm:$0xff] }
0x1913   :  { %16940 = vmatprep.subr.mxu0 %v21373_v14  ;;  %16921 = vmatprep.mubr.msk.f32.mxu0 %vm6850_vm4, %v11118_v47  ;;  %v18183_v5 = vld [vmem:[#allocation41 + $0x31c] ss:$36 sps:$4 sm:$0xff]   ;;  %v18186_v47 = vld [vmem:[#allocation41 + $0x324] ss:$36 sps:$4 sm:$0xff]  }
0x1914   :  { %16941 = vmatpush3.msra.mxu0 %v21373_v14  ;;  %v11223_v14 = vld [vmem:[#allocation13 + $0x68] sm:$0xff] }
0x1915   :  { %16911 = vmatmul.mubr.msk.f32.vlgmr.msra.gmra.mxu1 %vm6850_vm4, %v10913_v16  ;;  %16942 = vmatprep.subr.mxu0 %v21379_v57  ;;  %v18181_v16 = vld [vmem:[#allocation41 + $0x318] ss:$36 sps:$4 sm:$0xff]  }
0x1916   :  { %16925 = vmatpush3.msra.mxu1 %v10907_v22  ;;  %16943 = vmatpush3.msra.mxu0 %v21379_v57  ;;  %v11224_v57 = vld [vmem:[#allocation13 + $0x70] sm:$0xff]  ;;  %v18169_v22 = vld [vmem:[#allocation41 + $0x3a8] ss:$36 sps:$4 sm:$0xff]  }
0x1917   :  { %16944 = vmatprep.subr.mxu0 %v21385_v46  ;;  %16913 = vmatprep.mubr.msk.f32.mxu1 %vm6850_vm4, %v10914_v38  ;;  %v18184_v38 = vld [vmem:[#allocation41 + $0x320] ss:$36 sps:$4 sm:$0xff]  }
0x1918   :  { %16945 = vmatpush3.msra.mxu0 %v21385_v46  ;;  %12339 = vmatprep.subr.bf16.mxu1 %v18111_v49  ;;  %v11225_v46 = vld [vmem:[#allocation13 + $0x78] sm:$0xff] }
0x1919   :  { %16914 = vmatmul.mubr.msk.f32.gmra.mxu1 %vm6850_vm4, %v10915_v43  ;;  %16922 = vmatmul.mubr.msk.f32.gmra.mxu0 %vm6850_vm4, %v11119_v32  ;;  %v18189_v49 = vld [vmem:[#allocation41 + $0x2d4] ss:$36 sps:$4 sm:$0xff]   ;;  %v18192_v43 = vld [vmem:[#allocation41 + $0x2dc] ss:$36 sps:$4 sm:$0xff]  }
0x191a   :  { %16926 = vmatprep.mubr.msk.f32.mxu1 %vm6850_vm4, %v11222_v8  ;;  %16946 = vmatprep.mubr.msk.f32.mxu0 %vm1806_vm2, %v11338_v4  ;;  %v18187_v32 = vld [vmem:[#allocation41 + $0x2d0] ss:$36 sps:$4 sm:$0xff]   ;;  %v18190_v8 = vld [vmem:[#allocation41 + $0x2d8] ss:$36 sps:$4 sm:$0xff]  }
0x191b   :  { %12392 = vmatprep.subr.bf16.mxu0 %v18114_v41  ;;  %v18195_v4 = vld [vmem:[#allocation41 + $0x28c] ss:$36 sps:$4 sm:$0xff]   ;;  %v18198_v41 = vld [vmem:[#allocation41 + $0x294] ss:$36 sps:$4 sm:$0xff]  }
0x191d   :  { %16927 = vmatmul.mubr.msk.f32.vlgmr.msra.gmra.mxu1 %vm6850_vm4, %v11223_v14  ;;  %16947 = vmatmul.mubr.msk.f32.vlgmr.msra.gmra.mxu0 %vm1806_vm2, %v11339_v23  ;;  %v18193_v14 = vld [vmem:[#allocation41 + $0x288] ss:$36 sps:$4 sm:$0xff]  }
0x191e   :  { %16929 = vmatprep.mubr.msk.f32.mxu1 %vm6850_vm4, %v11224_v57  ;;  %16949 = vmatprep.mubr.msk.f32.mxu0 %vm1806_vm2, %v11340_v6  ;;  %v18196_v57 = vld [vmem:[#allocation41 + $0x290] ss:$36 sps:$4 sm:$0xff]   ;;  %v18201_v23 = vld [vmem:[#allocation41 + $0x244] ss:$36 sps:$4 sm:$0xff]  }
0x191f   :  { %12340 = vmatpush1.bf16.msra.mxu1 %v18109_v7  ;;  %12393 = vmatpush1.bf16.msra.mxu0 %v18112_v54  ;;  %v18204_v6 = vld [vmem:[#allocation41 + $0x24c] ss:$36 sps:$4 sm:$0xff]   ;;  %v18199_v7 = vld [vmem:[#allocation41 + $0x240] ss:$36 sps:$4 sm:$0xff]  }
0x1920   :  { %12341 = vmatprep.subr.bf16.mxu1 %v18117_v58  ;;  %12394 = vmatprep.subr.bf16.mxu0 %v18120_v36  ;;  %v18202_v54 = vld [vmem:[#allocation41 + $0x248] ss:$36 sps:$4 sm:$0xff]   ;;  %v18210_v36 = vld [vmem:[#allocation41 + $0x214] ss:$36 sps:$4 sm:$0xff]  }
0x1921   :  { %16930 = vmatmul.mubr.msk.f32.gmra.mxu1 %vm6850_vm4, %v11225_v46  ;;  %16950 = vmatmul.mubr.msk.f32.gmra.mxu0 %vm1806_vm2, %v11341_v52  ;;  %v18207_v58 = vld [vmem:[#allocation41 + $0x20c] ss:$36 sps:$4 sm:$0xff]  }
0x1923   :  { %12342 = vmatpush1.bf16.msra.mxu1 %v18115_v42  ;;  %12395 = vmatpush1.bf16.msra.mxu0 %v18118_v56 }
0x1924   :  { %12343 = vmatprep.subr.bf16.mxu1 %v18123_v63  ;;  %12396 = vmatprep.subr.bf16.mxu0 %v18126_v3 }
0x1927   :  { %12344 = vmatpush1.bf16.msra.mxu1 %v18121_v59  ;;  %12397 = vmatpush1.bf16.msra.mxu0 %v18124_v28 }
0x1928   :  { %12345 = vmatprep.subr.bf16.mxu1 %v18129_v26  ;;  %12398 = vmatprep.subr.bf16.mxu0 %v18132_v24 }
0x192b   :  { %12346 = vmatpush1.bf16.msra.mxu1 %v18127_v51  ;;  %12399 = vmatpush1.bf16.msra.mxu0 %v18130_v9 }
0x192c   :  { %12347 = vmatprep.subr.bf16.mxu1 %v18135_v12  ;;  %12400 = vmatprep.subr.bf16.mxu0 %v18138_v1 }
0x192f   :  { %12348 = vmatpush1.bf16.msra.mxu1 %v18133_v29  ;;  %12401 = vmatpush1.bf16.msra.mxu0 %v18136_v2 }
0x1930   :  { %12349 = vmatprep.subr.bf16.mxu1 %v18141_v15  ;;  %12402 = vmatprep.subr.bf16.mxu0 %v18144_v10 }
0x1933   :  { %12350 = vmatpush1.bf16.msra.mxu1 %v18139_v34  ;;  %12403 = vmatpush1.bf16.msra.mxu0 %v18142_v13 }
0x1934   :  { %12351 = vmatprep.subr.bf16.mxu1 %v18147_v17  ;;  %12404 = vmatprep.subr.bf16.mxu0 %v18150_v60  ;;  %v15058_v17 = vld [vmem:[#allocation89] ss:$0 sm:$0xff] }
0x1937   :  { %12352 = vmatpush1.bf16.msra.mxu1 %v18145_v48  ;;  %12405 = vmatpush1.bf16.msra.mxu0 %v18148_v44 }
0x1938   :  { %12353 = vmatprep.subr.bf16.mxu1 %v18153_v20  ;;  %12406 = vmatprep.subr.bf16.mxu0 %v18156_v50 }
0x193b   :  { %12354 = vmatpush1.bf16.msra.mxu1 %v18151_v61  ;;  %12407 = vmatpush1.bf16.msra.mxu0 %v18154_v33 }
0x193c   :  { %12355 = vmatprep.subr.bf16.mxu1 %v18159_v25  ;;  %12408 = vmatprep.subr.bf16.mxu0 %v18162_v18 }
0x193f   :  { %12356 = vmatpush2.bf16.msra.mxu1 %v18157_v40  ;;  %12409 = vmatpush2.bf16.msra.mxu0 %v18160_v55 }
0x1940   :  { %12357 = vmatprep.subr.bf16.mxu1 %v18165_v19  ;;  %12410 = vmatprep.subr.bf16.mxu0 %v18168_v62  ;;  %v18205_v19 = vld [vmem:[#allocation41 + $0x208] ss:$36 sps:$4 sm:$0xff]   ;;  %v18208_v62 = vld [vmem:[#allocation41 + $0x210] ss:$36 sps:$4 sm:$0xff]  }
0x1943   :  { %12358 = vmatpush2.bf16.msra.mxu1 %v18163_v45  ;;  %12411 = vmatpush2.bf16.msra.mxu0 %v18166_v37 }
0x1944   :  { %12359 = vmatprep.subr.bf16.mxu1 %v18171_v53  ;;  %12412 = vmatprep.subr.bf16.mxu0 %v18174_v39  ;;  %v18216_v39 = vld [vmem:[#allocation41 + $0x1cc] ss:$36 sps:$4 sm:$0xff]  }
0x1947   :  { %12360 = vmatpush2.bf16.msra.mxu1 %v18169_v22  ;;  %12413 = vmatpush2.bf16.msra.mxu0 %v18172_v11  ;;  %v18213_v11 = vld [vmem:[#allocation41 + $0x1c4] ss:$36 sps:$4 sm:$0xff]  }
0x1948   :  { %12361 = vmatprep.subr.bf16.mxu1 %v18177_v35  ;;  %12414 = vmatprep.subr.bf16.mxu0 %v18180_v30 }
0x194b   :  { %12362 = vmatpush2.bf16.msra.mxu1 %v18175_v31  ;;  %12415 = vmatpush2.bf16.msra.mxu0 %v18178_v27  ;;  %v18211_v31 = vld [vmem:[#allocation41 + $0x1c0] ss:$36 sps:$4 sm:$0xff]   ;;  %v18214_v27 = vld [vmem:[#allocation41 + $0x1c8] ss:$36 sps:$4 sm:$0xff]  }
0x194c   :  { %12363 = vmatprep.subr.bf16.mxu1 %v18183_v5  ;;  %12416 = vmatprep.subr.bf16.mxu0 %v18186_v47  ;;  %v18219_v47 = vld [vmem:[#allocation41 + $0x17c] ss:$36 sps:$4 sm:$0xff]  }
0x194f   :  { %12364 = vmatpush2.bf16.msra.mxu1 %v18181_v16  ;;  %12417 = vmatpush2.bf16.msra.mxu0 %v18184_v38  ;;  %v18222_v16 = vld [vmem:[#allocation41 + $0x184] ss:$36 sps:$4 sm:$0xff]  }
0x1950   :  { %12365 = vmatprep.subr.bf16.mxu1 %v18189_v49  ;;  %12418 = vmatprep.subr.bf16.mxu0 %v18192_v43  ;;  %v18217_v49 = vld [vmem:[#allocation41 + $0x178] ss:$36 sps:$4 sm:$0xff]   ;;  %v18220_v43 = vld [vmem:[#allocation41 + $0x180] ss:$36 sps:$4 sm:$0xff]  }
0x1953   :  { %12366 = vmatpush2.bf16.msra.mxu1 %v18187_v32  ;;  %12419 = vmatpush2.bf16.msra.mxu0 %v18190_v8  ;;  %v18225_v8 = vld [vmem:[#allocation41 + $0x134] ss:$36 sps:$4 sm:$0xff]  }
0x1954   :  { %12367 = vmatprep.subr.bf16.mxu1 %v18195_v4  ;;  %12420 = vmatprep.subr.bf16.mxu0 %v18198_v41  ;;  %v18228_v4 = vld [vmem:[#allocation41 + $0x13c] ss:$36 sps:$4 sm:$0xff]   ;;  %v18223_v41 = vld [vmem:[#allocation41 + $0x130] ss:$36 sps:$4 sm:$0xff]  }
0x1957   :  { %12368 = vmatpush2.bf16.msra.mxu1 %v18193_v14  ;;  %12421 = vmatpush2.bf16.msra.mxu0 %v18196_v57  ;;  %v18226_v14 = vld [vmem:[#allocation41 + $0x138] ss:$36 sps:$4 sm:$0xff]   ;;  %v18231_v57 = vld [vmem:[#allocation41 + $0xec] ss:$36 sps:$4 sm:$0xff]  }
0x1958   :  { %12369 = vmatprep.subr.bf16.mxu1 %v18201_v23  ;;  %12422 = vmatprep.subr.bf16.mxu0 %v18204_v6  ;;  %v18234_v23 = vld [vmem:[#allocation41 + $0xf4] ss:$36 sps:$4 sm:$0xff]   ;;  %v18229_v6 = vld [vmem:[#allocation41 + $0xe8] ss:$36 sps:$4 sm:$0xff]  }
0x195b   :  { %12370 = vmatpush2.bf16.msra.mxu1 %v18199_v7  ;;  %12423 = vmatpush2.bf16.msra.mxu0 %v18202_v54  ;;  %v18232_v7 = vld [vmem:[#allocation41 + $0xf0] ss:$36 sps:$4 sm:$0xff]   ;;  %v18237_v54 = vld [vmem:[#allocation41 + $0xa4] ss:$36 sps:$4 sm:$0xff]  }
0x195c   :  { %12445 = vmatprep.subr.bf16.mxu1 %v18207_v58  ;;  %12498 = vmatprep.subr.bf16.mxu0 %v18210_v36  ;;  %v18240_v58 = vld [vmem:[#allocation41 + $0xac] ss:$36 sps:$4 sm:$0xff]   ;;  %v18235_v36 = vld [vmem:[#allocation41 + $0xa0] ss:$36 sps:$4 sm:$0xff]  }
0x19cb   :  { %v16920_v63 = vpop.f32.mrf.mxu0 }
0x19cc   :  { %v16904_v46 = vpop.f32.mrf.mxu1 }
0x19cd   :  { %v11198_v28 = vpop.f32.mrf.mxu0 }
0x19ce   :  { %v10999_v52 = vpop.f32.mrf.mxu1 }
0x19d1   :  { %v16907_v42 = vpop.f32.mrf.mxu1 }
0x19d3   :  { %v11009_v56 = vpop.f32.mrf.mxu1 }
0x19d5   :  { %v16912_v3 = vpop.f32.mrf.mxu1 }
0x19d6   :  { %v11102_v26 = vadd.f32 %v16912_v3, %v16904_v46  ;;  %v18238_v46 = vld [vmem:[#allocation41 + $0xa8] ss:$36 sps:$4 sm:$0xff]   ;;  %v18249_v3 = vld [vmem:[#allocation41 + $0x14] ss:$36 sps:$4 sm:$0xff]  }
0x19d7   :  { %v11096_v59 = vpop.f32.mrf.mxu1 }
0x19d8   :  { %v11097_v9 = vadd.f32 %v11096_v59, %v10999_v52  ;;  %v11218_v29 = vadd.f32 %v16920_v63, %v11102_v26  ;;  %v18243_v52 = vld [vmem:[#allocation41 + $0x5c] ss:$36 sps:$4 sm:$0xff]  }
0x19d9   :  { %v16915_v24 = vpop.f32.mrf.mxu1  ;;  %v16923_v51 = vpop.f32.mrf.mxu0  ;;  %v18244_v63 = vld [vmem:[#allocation41 + $0x60] ss:$36 sps:$4 sm:$0xff]   ;;  %v18250_v26 = vld [vmem:[#allocation41 + $0x18] ss:$36 sps:$4 sm:$0xff]  }
0x19da   :  { %v11217_v10 = vadd.f32 %v11198_v28, %v11097_v9  ;;  %v11112_v44 = vadd.f32 %v16915_v24, %v16907_v42  ;;  %v18246_v42 = vld [vmem:[#allocation41 + $0x64] ss:$36 sps:$4 sm:$0xff]   ;;  %v18252_v59 = vld [vmem:[#allocation41 + $0x1c] ss:$36 sps:$4 sm:$0xff]   ;;  %v18247_v28 = vld [vmem:[#allocation41 + $0x10] ss:$36 sps:$4 sm:$0xff]  }
0x19db   :  { %v11106_v12 = vpop.f32.mrf.mxu1  ;;  %v11208_v1 = vpop.f32.mrf.mxu0  ;;  %v18255_v24 = vld [vmem:[#allocation41 + $0x44c] ss:$36 sps:$4 sm:$0xff]  }
0x19dc   :  { %v11107_v34 = vadd.f32 %v11106_v12, %v11009_v56  ;;  %v11220_v37 = vadd.f32 %v16923_v51, %v11112_v44  ;;  %v18241_v56 = vld [vmem:[#allocation41 + $0x58] ss:$36 sps:$4 sm:$0xff]   ;;  %v18253_v9 = vld [vmem:[#allocation41 + $0x448] ss:$36 sps:$4 sm:$0xff]   ;;  %v18256_v12 = vld [vmem:[#allocation41 + $0x450] ss:$36 sps:$4 sm:$0xff]  }
0x19dd   :  { %v16928_v2 = vpop.f32.mrf.mxu1  ;;  %v16948_v15 = vpop.f32.mrf.mxu0  ;;  %v18258_v51 = vld [vmem:[#allocation41 + $0x454] ss:$36 sps:$4 sm:$0xff]  }
0x19de   :  { %v11324_v13 = vadd.f32 %v16928_v2, %v11218_v29  ;;  %v11219_v25 = vadd.f32 %v11208_v1, %v11107_v34  ;;  %v18261_v1 = vld [vmem:[#allocation41 + $0x404] ss:$36 sps:$4 sm:$0xff]   ;;  %v18264_v29 = vld [vmem:[#allocation41 + $0x40c] ss:$36 sps:$4 sm:$0xff]  }
0x19df   :  { %v11304_v60 = vpop.f32.mrf.mxu1  ;;  %v11420_v48 = vpop.f32.mrf.mxu0  ;;  %v18259_v2 = vld [vmem:[#allocation41 + $0x400] ss:$36 sps:$4 sm:$0xff]   ;;  %v18271_v44 = vld [vmem:[#allocation41 + $0x370] ss:$36 sps:$4 sm:$0xff]  }
0x19e0   :  { %v11323_v20 = vadd.f32 %v11304_v60, %v11217_v10  ;;  %v21737_v50 = vpack.c.bf16 %v16948_v15, %v11420_v48  ;;  %v11335_v18 = vadd.f32 %v15058_v17, %v11324_v13  ;;  %v18262_v15 = vld [vmem:[#allocation41 + $0x408] ss:$36 sps:$4 sm:$0xff]   ;;  %v18267_v10 = vld [vmem:[#allocation41 + $0x3bc] ss:$36 sps:$4 sm:$0xff]   ;;  %v18273_v60 = vld [vmem:[#allocation41 + $0x374] ss:$36 sps:$4 sm:$0xff]  }
0x19e1   :  { %v16931_v61 = vpop.f32.mrf.mxu1  ;;  %v16951_v33 = vpop.f32.mrf.mxu0  ;;  %v18270_v34 = vld [vmem:[#allocation41 + $0x3c4] ss:$36 sps:$4 sm:$0xff]   ;;  %v18265_v13 = vld [vmem:[#allocation41 + $0x3b8] ss:$36 sps:$4 sm:$0xff]  }
0x19e2   :  { %v11334_v40 = vadd.f32 %v15058_v17, %v11323_v20  ;;  %12371 = vmatprep.mubr.bf16.mxu1 %v21737_v50  ;;  %12424 = vmatprep.mubr.bf16.mxu0 %v21737_v50  ;;  %v11326_v30 = vadd.f32 %v16931_v61, %v11220_v37  ;;  %v18276_v48 = vld [vmem:[#allocation41 + $0x37c] ss:$36 sps:$4 sm:$0xff]   ;;  %v18279_v61 = vld [vmem:[#allocation41 + $0x32c] ss:$36 sps:$4 sm:$0xff]   ;;  %v18294_v37 = vld [vmem:[#allocation41 + $0x2a4] ss:$36 sps:$4 sm:$0xff]  }
0x19e3   :  { %v11314_v55 = vpop.f32.mrf.mxu1  ;;  %v11430_v45 = vpop.f32.mrf.mxu0  ;;  %v18274_v20 = vld [vmem:[#allocation41 + $0x378] ss:$36 sps:$4 sm:$0xff]  }
0x19e4   :  { %v21741_v22 = vpack.c.bf16 %v11335_v18, %v11334_v40  ;;  %v11325_v53 = vadd.f32 %v11314_v55, %v11219_v25  ;;  %v21743_v35 = vpack.c.bf16 %v16951_v33, %v11430_v45  ;;  %v11337_v38 = vadd.f32 %v15058_v17, %v11326_v30  ;;  %v18282_v33 = vld [vmem:[#allocation41 + $0x334] ss:$36 sps:$4 sm:$0xff]   ;;  %v18277_v25 = vld [vmem:[#allocation41 + $0x328] ss:$36 sps:$4 sm:$0xff]   ;;  %v18291_v45 = vld [vmem:[#allocation41 + $0x29c] ss:$36 sps:$4 sm:$0xff]  }
0x19e5   :  { %v18280_v18 = vld [vmem:[#allocation41 + $0x330] ss:$36 sps:$4 sm:$0xff]   ;;  %v18285_v40 = vld [vmem:[#allocation41 + $0x2e4] ss:$36 sps:$4 sm:$0xff]   ;;  %v18300_v30 = vld [vmem:[#allocation41 + $0x25c] ss:$36 sps:$4 sm:$0xff]  }
0x19e6   :  { %12372 = vmatmul.mubr.bf16.vlgmr.msra.gmra.mxu1 %v21741_v22  ;;  %12425 = vmatmul.mubr.bf16.vlgmr.msra.gmra.mxu0 %v21741_v22  ;;  %v11336_v5 = vadd.f32 %v15058_v17, %v11325_v53  ;;  %v18268_v17 = vld [vmem:[#allocation41 + $0x3c0] ss:$36 sps:$4 sm:$0xff]   ;;  %v18288_v55 = vld [vmem:[#allocation41 + $0x2ec] ss:$36 sps:$4 sm:$0xff]   ;;  %v18289_v53 = vld [vmem:[#allocation41 + $0x298] ss:$36 sps:$4 sm:$0xff]  }
0x19e7   :  { %12446 = vmatpush1.bf16.msra.mxu1 %v18205_v19  ;;  %12499 = vmatpush1.bf16.msra.mxu0 %v18208_v62  ;;  %v18283_v19 = vld [vmem:[#allocation41 + $0x2e0] ss:$36 sps:$4 sm:$0xff]   ;;  %v18286_v62 = vld [vmem:[#allocation41 + $0x2e8] ss:$36 sps:$4 sm:$0xff]  }
0x19e8   :  { %12447 = vmatprep.subr.bf16.mxu1 %v18213_v11  ;;  %12500 = vmatprep.subr.bf16.mxu0 %v18216_v39  ;;  %v21749_v32 = vpack.c.bf16 %v11337_v38, %v11336_v5  ;;  %v18292_v11 = vld [vmem:[#allocation41 + $0x2a0] ss:$36 sps:$4 sm:$0xff]   ;;  %v18297_v39 = vld [vmem:[#allocation41 + $0x254] ss:$36 sps:$4 sm:$0xff]  }
0x19e9   :  { %12381 = vmatprep.mubr.bf16.mxu1 %v21743_v35  ;;  %12434 = vmatprep.mubr.bf16.mxu0 %v21743_v35  ;;  %v18301_v5 = vld [vmem:[#allocation41 + $0x458] ss:$36 sps:$4 sm:$0xff]   ;;  %v18304_v38 = vld [vmem:[#allocation41 + $0x1d0] ss:$36 sps:$4 sm:$0xff]  }
0x19eb   :  { %12448 = vmatpush1.bf16.msra.mxu1 %v18211_v31  ;;  %12501 = vmatpush1.bf16.msra.mxu0 %v18214_v27  ;;  %v18295_v31 = vld [vmem:[#allocation41 + $0x250] ss:$36 sps:$4 sm:$0xff]   ;;  %v18298_v27 = vld [vmem:[#allocation41 + $0x258] ss:$36 sps:$4 sm:$0xff]  }
0x19ec   :  { %12449 = vmatprep.subr.bf16.mxu1 %v18219_v47  ;;  %12502 = vmatprep.subr.bf16.mxu0 %v18222_v16  ;;  %v18302_v47 = vld [vmem:[#allocation41 + $0x218] ss:$36 sps:$4 sm:$0xff]   ;;  %v18303_v16 = vld [vmem:[#allocation41 + $0x410] ss:$36 sps:$4 sm:$0xff]  }
0x19ee   :  { %12382 = vmatmul.mubr.bf16.gmra.mxu1 %v21749_v32  ;;  %12435 = vmatmul.mubr.bf16.gmra.mxu0 %v21749_v32 }
0x19ef   :  { %12450 = vmatpush1.bf16.msra.mxu1 %v18217_v49  ;;  %12503 = vmatpush1.bf16.msra.mxu0 %v18220_v43  ;;  %v18305_v49 = vld [vmem:[#allocation41 + $0x3c8] ss:$36 sps:$4 sm:$0xff]  }
0x19f0   :  { %12477 = vmatprep.mubr.bf16.mxu1 %v21737_v50  ;;  %12530 = vmatprep.mubr.bf16.mxu0 %v21737_v50  ;;  %v18306_v43 = vld [vmem:[#allocation41 + $0x188] ss:$36 sps:$4 sm:$0xff]  }
0x19f1   :  { %12451 = vmatprep.subr.bf16.mxu1 %v18225_v8  ;;  %12504 = vmatprep.subr.bf16.mxu0 %v18228_v4  ;;  %v18307_v8 = vld [vmem:[#allocation41 + $0x380] ss:$36 sps:$4 sm:$0xff]  }
0x19f2   :  { %v18308_v4 = vld [vmem:[#allocation41 + $0x140] ss:$36 sps:$4 sm:$0xff]  }
0x19f3   :  { %12452 = vmatpush1.bf16.msra.mxu1 %v18223_v41  ;;  %12505 = vmatpush1.bf16.msra.mxu0 %v18226_v14  ;;  %v18309_v41 = vld [vmem:[#allocation41 + $0x338] ss:$36 sps:$4 sm:$0xff]  }
0x19f4   :  { %12453 = vmatprep.subr.bf16.mxu1 %v18231_v57  ;;  %12506 = vmatprep.subr.bf16.mxu0 %v18234_v23  ;;  %v18310_v14 = vld [vmem:[#allocation41 + $0xf8] ss:$36 sps:$4 sm:$0xff]   ;;  %v18311_v57 = vld [vmem:[#allocation41 + $0x2f0] ss:$36 sps:$4 sm:$0xff]  }
0x19f5   :  { %v18312_v23 = vld [vmem:[#allocation41 + $0xb0] ss:$36 sps:$4 sm:$0xff]  }
0x19f7   :  { %12454 = vmatpush1.bf16.msra.mxu1 %v18229_v6  ;;  %12507 = vmatpush1.bf16.msra.mxu0 %v18232_v7  ;;  %v18313_v6 = vld [vmem:[#allocation41 + $0x2a8] ss:$36 sps:$4 sm:$0xff]  }
0x19f8   :  { %12455 = vmatprep.subr.bf16.mxu1 %v18237_v54  ;;  %12508 = vmatprep.subr.bf16.mxu0 %v18240_v58  ;;  %v18314_v7 = vld [vmem:[#allocation41 + $0x68] ss:$36 sps:$4 sm:$0xff]   ;;  %v18315_v54 = vld [vmem:[#allocation41 + $0x260] ss:$36 sps:$4 sm:$0xff]   ;;  %v21766_v58 = vld [vmem:[%s21997_s1 + $0x8] sm:$0xff] }
0x19fb   :  { %12456 = vmatpush1.bf16.msra.mxu1 %v18235_v36  ;;  %12509 = vmatpush1.bf16.msra.mxu0 %v18238_v46  ;;  %v21770_v36 = vld [vmem:[%s21997_s1 + $0x10] sm:$0xff] }
0x19fc   :  { %12457 = vmatprep.subr.bf16.mxu1 %v18243_v52  ;;  %12510 = vmatprep.subr.bf16.mxu0 %v18246_v42 }
0x19ff   :  { %12458 = vmatpush1.bf16.msra.mxu1 %v18241_v56  ;;  %12511 = vmatpush1.bf16.msra.mxu0 %v18244_v63 }
0x1a00   :  { %12459 = vmatprep.subr.bf16.mxu1 %v18249_v3  ;;  %12512 = vmatprep.subr.bf16.mxu0 %v18252_v59 }
0x1a03   :  { %12460 = vmatpush1.bf16.msra.mxu1 %v18247_v28  ;;  %12513 = vmatpush1.bf16.msra.mxu0 %v18250_v26 }
0x1a04   :  { %12461 = vmatprep.subr.bf16.mxu1 %v18255_v24  ;;  %12514 = vmatprep.subr.bf16.mxu0 %v18258_v51 }
0x1a07   :  { %12462 = vmatpush2.bf16.msra.mxu1 %v18253_v9  ;;  %12515 = vmatpush2.bf16.msra.mxu0 %v18256_v12 }
0x1a08   :  { %12463 = vmatprep.subr.bf16.mxu1 %v18261_v1  ;;  %12516 = vmatprep.subr.bf16.mxu0 %v18264_v29 }
0x1a0b   :  { %12464 = vmatpush2.bf16.msra.mxu1 %v18259_v2  ;;  %12517 = vmatpush2.bf16.msra.mxu0 %v18262_v15 }
0x1a0c   :  { %12465 = vmatprep.subr.bf16.mxu1 %v18267_v10  ;;  %12518 = vmatprep.subr.bf16.mxu0 %v18270_v34 }
0x1a0f   :  { %12466 = vmatpush2.bf16.msra.mxu1 %v18265_v13  ;;  %12519 = vmatpush2.bf16.msra.mxu0 %v18268_v17 }
0x1a10   :  { %12467 = vmatprep.subr.bf16.mxu1 %v18273_v60  ;;  %12520 = vmatprep.subr.bf16.mxu0 %v18276_v48 }
0x1a13   :  { %12468 = vmatpush2.bf16.msra.mxu1 %v18271_v44  ;;  %12521 = vmatpush2.bf16.msra.mxu0 %v18274_v20 }
0x1a14   :  { %12469 = vmatprep.subr.bf16.mxu1 %v18279_v61  ;;  %12522 = vmatprep.subr.bf16.mxu0 %v18282_v33 }
0x1a17   :  { %12470 = vmatpush2.bf16.msra.mxu1 %v18277_v25  ;;  %12523 = vmatpush2.bf16.msra.mxu0 %v18280_v18 }
0x1a18   :  { %12471 = vmatprep.subr.bf16.mxu1 %v18285_v40  ;;  %12524 = vmatprep.subr.bf16.mxu0 %v18288_v55 }
0x1a1b   :  { %12472 = vmatpush2.bf16.msra.mxu1 %v18283_v19  ;;  %12525 = vmatpush2.bf16.msra.mxu0 %v18286_v62 }
0x1a1c   :  { %12473 = vmatprep.subr.bf16.mxu1 %v18291_v45  ;;  %12526 = vmatprep.subr.bf16.mxu0 %v18294_v37 }
0x1a1f   :  { %12474 = vmatpush2.bf16.msra.mxu1 %v18289_v53  ;;  %12527 = vmatpush2.bf16.msra.mxu0 %v18292_v11  ;;  %v21777_v53 = vld [vmem:[%s21997_s1] sm:$0xff] }
0x1a20   :  { %12475 = vmatprep.subr.bf16.mxu1 %v18297_v39  ;;  %12528 = vmatprep.subr.bf16.mxu0 %v18300_v30  ;;  %v21780_v39 = vld [vmem:[%s21997_s1 + $0x20] sm:$0xff] }
0x1a23   :  { %12476 = vmatpush2.bf16.msra.mxu1 %v18295_v31  ;;  %12529 = vmatpush2.bf16.msra.mxu0 %v18298_v27  ;;  %v21786_v27 = vld [vmem:[%s21997_s1 + $0x18] sm:$0xff] }
0x1a24   :  { %15785 = vmatprep.subr.bf16.mxu1 %v18301_v5  ;;  %v21789_v5 = vld [vmem:[%s21997_s1 + $0x38] sm:$0xff] }
0x1a26   :  { %12478 = vmatmul.mubr.bf16.vlgmr.msra.gmra.mxu1 %v21741_v22  ;;  %12531 = vmatmul.mubr.bf16.vlgmr.msra.gmra.mxu0 %v21741_v22 }
0x1a27   :  { %12487 = vmatprep.mubr.bf16.mxu1 %v21743_v35  ;;  %12540 = vmatprep.mubr.bf16.mxu0 %v21743_v35 }
0x1a28   :  { %15786 = vmatpush3.bf16.msra.mxu1 %v18302_v47 }
0x1a29   :  { %15787 = vmatprep.subr.bf16.mxu1 %v18303_v16 }
0x1a2c   :  { %15788 = vmatpush3.bf16.msra.mxu1 %v18304_v38  ;;  %v21794_v38 = vld [vmem:[%s21997_s1 + $0x30] sm:$0xff] }
0x1a2d   :  { %15789 = vmatprep.subr.bf16.mxu1 %v18305_v49  ;;  %v21797_v49 = vld [vmem:[%s21997_s1 + $0x50] sm:$0xff] }
0x1a2e   :  { %12488 = vmatmul.mubr.bf16.gmra.mxu1 %v21749_v32  ;;  %12541 = vmatmul.mubr.bf16.gmra.mxu0 %v21749_v32 }
0x1a2f   :  { %12583 = vmatprep.mubr.bf16.mxu1 %v21737_v50  ;;  %v18316_v50 = vld [vmem:[#allocation41 + $0x20] ss:$36 sps:$4 sm:$0xff]   ;;  %12696 = vmatprep.mubr.f32.mxu0 %v21766_v58 }
0x1a30   :  { %15790 = vmatpush3.bf16.msra.mxu1 %v18306_v43 }
0x1a31   :  { %15791 = vmatprep.subr.bf16.mxu1 %v18307_v8  ;;  %v21801_v8 = vld [vmem:[%s21997_s1 + $0x28] sm:$0xff] }
0x1a34   :  { %15792 = vmatpush3.bf16.msra.mxu1 %v18308_v4  ;;  %v21805_v4 = vld [vmem:[%s21997_s1 + $0x48] sm:$0xff] }
0x1a35   :  { %15793 = vmatprep.subr.bf16.mxu1 %v18309_v41  ;;  %v21808_v41 = vld [vmem:[%s21997_s1 + $0x40] sm:$0xff] }
0x1a38   :  { %15794 = vmatpush3.bf16.msra.mxu1 %v18310_v14  ;;  %v21816_v14 = vld [vmem:[%s21997_s1 + $0x58] sm:$0xff] }
0x1a39   :  { %15795 = vmatprep.subr.bf16.mxu1 %v18311_v57  ;;  %v18319_v57 = vld [vmem:[#allocation47 + $0x1fc] ss:$36 sps:$4 sm:$0xff]  }
0x1a3c   :  { %15796 = vmatpush3.bf16.msra.mxu1 %v18312_v23  ;;  %v18322_v23 = vld [vmem:[#allocation47 + $0x204] ss:$36 sps:$4 sm:$0xff]  }
0x1a3d   :  { %15797 = vmatprep.subr.bf16.mxu1 %v18313_v6  ;;  %v18317_v6 = vld [vmem:[#allocation47 + $0x1f8] ss:$36 sps:$4 sm:$0xff]  }
0x1a40   :  { %15798 = vmatpush3.bf16.msra.mxu1 %v18314_v7  ;;  %v18320_v7 = vld [vmem:[#allocation47 + $0x200] ss:$36 sps:$4 sm:$0xff]  }
0x1a41   :  { %15799 = vmatprep.subr.bf16.mxu1 %v18315_v54  ;;  %v18325_v54 = vld [vmem:[#allocation47 + $0x1b4] ss:$36 sps:$4 sm:$0xff]  }
0x1a44   :  { %15800 = vmatpush3.bf16.msra.mxu1 %v18316_v50  ;;  %v18328_v50 = vld [vmem:[#allocation47 + $0x1bc] ss:$36 sps:$4 sm:$0xff]  }
0x1a47   :  { %12584 = vmatmul.mubr.bf16.vlgmr.msra.gmra.mxu1 %v21741_v22 }
0x1a48   :  { %12591 = vmatprep.mubr.bf16.mxu1 %v21743_v35 }
0x1a4f   :  { %12592 = vmatmul.mubr.bf16.gmra.mxu1 %v21749_v32 }
0x1a50   :  { %16960 = vmatprep.mubr.msk.f32.mxu1 %vm12619_vm6, %v21770_v36 }
0x1aa6   :  { %v12426_v46 = vpop.f32.mrf.mxu0  ;;  %v21774_v52 = vpop.f32.mrf.mxu1 }
0x1aa8   :  { %v12428_v42 = vpop.f32.mrf.mxu0  ;;  %v12375_v56 = vpop.f32.mrf.mxu1 }
0x1aaa   :  { %v12430_v22 = vpop.f32.mrf.mxu0  ;;  %v12377_v63 = vpop.f32.mrf.mxu1 }
0x1aac   :  { %v12432_v35 = vpop.f32.mrf.mxu0  ;;  %v12379_v3 = vpop.f32.mrf.mxu1 }
0x1aae   :  { %v12436_v32 = vpop.f32.mrf.mxu0  ;;  %v12383_v59 = vpop.f32.mrf.mxu1 }
0x1ab0   :  { %v12438_v28 = vpop.f32.mrf.mxu0  ;;  %v12385_v26 = vpop.f32.mrf.mxu1 }
0x1ab2   :  { %v12440_v24 = vpop.f32.mrf.mxu0  ;;  %v12387_v51 = vpop.f32.mrf.mxu1 }
0x1ab4   :  { %v12442_v9 = vpop.f32.mrf.mxu0  ;;  %v12389_v12 = vpop.f32.mrf.mxu1 }
0x1ae6   :  { %v12532_v1 = vpop.f32.mrf.mxu0  ;;  %v12479_v29 = vpop.f32.mrf.mxu1 }
0x1ae8   :  { %v12534_v2 = vpop.f32.mrf.mxu0  ;;  %v12481_v10 = vpop.f32.mrf.mxu1 }
0x1aea   :  { %v12536_v15 = vpop.f32.mrf.mxu0  ;;  %v12483_v17 = vpop.f32.mrf.mxu1 }
0x1aec   :  { %v12538_v34 = vpop.f32.mrf.mxu0  ;;  %v12485_v44 = vpop.f32.mrf.mxu1 }
0x1aee   :  { %v12542_v13 = vpop.f32.mrf.mxu0  ;;  %v12489_v61 = vpop.f32.mrf.mxu1 }
0x1af0   :  { %v12544_v60 = vpop.f32.mrf.mxu0  ;;  %v12491_v33 = vpop.f32.mrf.mxu1 }
0x1af2   :  { %v12546_v48 = vpop.f32.mrf.mxu0  ;;  %v12493_v25 = vpop.f32.mrf.mxu1 }
0x1af4   :  { %v12548_v20 = vpop.f32.mrf.mxu0  ;;  %v12495_v18 = vpop.f32.mrf.mxu1 }
0x1af5   :  { %15813 = vmatprep.subr.mxu0 %v12548_v20  ;;  %v18370_v20 = vld [vmem:[#allocation47 + $0x214] ss:$36 sps:$4 sm:$0xff]  }
0x1af6   :  { %15814 = vmatpush3.msra.mxu0 %v12442_v9  ;;  %v18349_v9 = vld [vmem:[#allocation47 + $0x94] ss:$36 sps:$4 sm:$0xff]  }
0x1af7   :  { %15815 = vmatprep.subr.mxu0 %v12544_v60  ;;  %v18359_v60 = vld [vmem:[#allocation47] ss:$36 sps:$4 sm:$0xff]  }
0x1af8   :  { %15816 = vmatpush3.msra.mxu0 %v12438_v28  ;;  %v18343_v28 = vld [vmem:[#allocation47 + $0xdc] ss:$36 sps:$4 sm:$0xff]  }
0x1af9   :  { %15817 = vmatprep.subr.mxu0 %v12538_v34  ;;  %v18356_v34 = vld [vmem:[#allocation47 + $0x50] ss:$36 sps:$4 sm:$0xff]  }
0x1afa   :  { %15818 = vmatpush3.msra.mxu0 %v12432_v35  ;;  %v18337_v35 = vld [vmem:[#allocation47 + $0x124] ss:$36 sps:$4 sm:$0xff]  }
0x1afb   :  { %15819 = vmatprep.subr.mxu0 %v12534_v2  ;;  %v18355_v2 = vld [vmem:[#allocation47 + $0x4c] ss:$36 sps:$4 sm:$0xff]  }
0x1afc   :  { %15820 = vmatpush3.msra.mxu0 %v12428_v42  ;;  %v18331_v42 = vld [vmem:[#allocation47 + $0x16c] ss:$36 sps:$4 sm:$0xff]  }
0x1afd   :  { %15821 = vmatprep.subr.mxu0 %v12546_v48  ;;  %v18362_v48 = vld [vmem:[#allocation47 + $0x8] ss:$36 sps:$4 sm:$0xff]  }
0x1afe   :  { %15822 = vmatpush3.msra.mxu0 %v12440_v24  ;;  %v18341_v24 = vld [vmem:[#allocation47 + $0xd8] ss:$36 sps:$4 sm:$0xff]  }
0x1aff   :  { %15823 = vmatprep.subr.mxu0 %v12542_v13  ;;  %v18361_v13 = vld [vmem:[#allocation47 + $0x4] ss:$36 sps:$4 sm:$0xff]  }
0x1b00   :  { %15824 = vmatpush3.msra.mxu0 %v12436_v32  ;;  %v18335_v32 = vld [vmem:[#allocation47 + $0x120] ss:$36 sps:$4 sm:$0xff]  }
0x1b01   :  { %15825 = vmatprep.subr.mxu0 %v12536_v15  ;;  %v18358_v15 = vld [vmem:[#allocation47 + $0x54] ss:$36 sps:$4 sm:$0xff]  }
0x1b02   :  { %15826 = vmatpush3.msra.mxu0 %v12430_v22  ;;  %v18329_v22 = vld [vmem:[#allocation47 + $0x168] ss:$36 sps:$4 sm:$0xff]  }
0x1b03   :  { %15827 = vmatprep.subr.mxu0 %v12532_v1  ;;  %v18347_v1 = vld [vmem:[#allocation47 + $0x90] ss:$36 sps:$4 sm:$0xff]  }
0x1b04   :  { %15828 = vmatpush3.msra.mxu0 %v12426_v46  ;;  %v18323_v46 = vld [vmem:[#allocation47 + $0x1b0] ss:$36 sps:$4 sm:$0xff]  }
0x1b05   :  { %15829 = vmatprep.subr.mxu0 %v12495_v18 }
0x1b06   :  { %15830 = vmatpush3.msra.mxu0 %v12389_v12  ;;  %v18352_v12 = vld [vmem:[#allocation47 + $0x9c] ss:$36 sps:$4 sm:$0xff]  }
0x1b07   :  { %v15801_v40 = vpop.f32.mrf.mxu1  ;;  %15831 = vmatprep.subr.mxu0 %v12491_v33 }
0x1b08   :  { %15832 = vmatpush3.msra.mxu0 %v12385_v26  ;;  %v18346_v26 = vld [vmem:[#allocation47 + $0xe4] ss:$36 sps:$4 sm:$0xff]  }
0x1b09   :  { %v15802_v55 = vpop.f32.mrf.mxu1  ;;  %15833 = vmatprep.subr.mxu0 %v12485_v44  ;;  %v18367_v44 = vld [vmem:[#allocation47 + $0x20c] ss:$36 sps:$4 sm:$0xff]  }
0x1b0a   :  { %15834 = vmatpush3.msra.mxu0 %v12379_v3  ;;  %v15803_v43 = vadd.f32 %v15802_v55, %v15801_v40  ;;  %v18340_v3 = vld [vmem:[#allocation47 + $0x12c] ss:$36 sps:$4 sm:$0xff]  }
0x1b0b   :  { %v15804_v19 = vpop.f32.mrf.mxu1  ;;  %15835 = vmatprep.subr.mxu0 %v12481_v10  ;;  %v18353_v10 = vld [vmem:[#allocation47 + $0x48] ss:$36 sps:$4 sm:$0xff]  }
0x1b0c   :  { %15836 = vmatpush3.msra.mxu0 %v12375_v56  ;;  %v18334_v56 = vld [vmem:[#allocation47 + $0x174] ss:$36 sps:$4 sm:$0xff]  }
0x1b0d   :  { %v15805_v62 = vpop.f32.mrf.mxu1  ;;  %15837 = vmatprep.subr.mxu0 %v12493_v25 }
0x1b0e   :  { %15838 = vmatpush3.msra.mxu0 %v12387_v51  ;;  %v15806_v16 = vadd.f32 %v15805_v62, %v15804_v19  ;;  %v18344_v51 = vld [vmem:[#allocation47 + $0xe0] ss:$36 sps:$4 sm:$0xff]   ;;  %v15208_v62 = vld [vmem:[#allocation37] ss:$0 sm:$0xff] }
0x1b0f   :  { %v15807_v45 = vpop.f32.mrf.mxu1  ;;  %15839 = vmatprep.subr.mxu0 %v12489_v61 }
0x1b10   :  { %15840 = vmatpush3.msra.mxu0 %v12383_v59  ;;  %v18338_v59 = vld [vmem:[#allocation47 + $0x128] ss:$36 sps:$4 sm:$0xff]  }
0x1b11   :  { %v15808_v37 = vpop.f32.mrf.mxu1  ;;  %15841 = vmatprep.subr.mxu0 %v12483_v17  ;;  %v18364_v17 = vld [vmem:[#allocation47 + $0xc] ss:$36 sps:$4 sm:$0xff]  }
0x1b12   :  { %15842 = vmatpush3.msra.mxu0 %v12377_v63  ;;  %v15809_v47 = vadd.f32 %v15808_v37, %v15807_v45  ;;  %v18332_v63 = vld [vmem:[#allocation47 + $0x170] ss:$36 sps:$4 sm:$0xff]  }
0x1b13   :  { %v15810_v11 = vpop.f32.mrf.mxu1  ;;  %15843 = vmatprep.subr.mxu0 %v12479_v29  ;;  %v18350_v29 = vld [vmem:[#allocation47 + $0x98] ss:$36 sps:$4 sm:$0xff]  }
0x1b14   :  { %15844 = vmatpush3.msra.mxu0 %v21774_v52  ;;  %v18326_v52 = vld [vmem:[#allocation47 + $0x1b8] ss:$36 sps:$4 sm:$0xff]  }
0x1b15   :  { %v15811_v30 = vpop.f32.mrf.mxu1  ;;  %12697 = vmatmul.mubr.f32.vlgmr.msra.gmra.mxu0 %v21777_v53  ;;  %13313 = vmatprep.subr.bf16.mxu0 %v18319_v57 }
0x1b16   :  { %v15812_v31 = vadd.f32 %v15811_v30, %v15810_v11  ;;  %12701 = vmatprep.mubr.f32.mxu0 %v21780_v39  ;;  %13314 = vmatpush1.bf16.msra.mxu0 %v18317_v6 }
0x1b17   :  { %13315 = vmatprep.subr.bf16.mxu0 %v18325_v54 }
0x1b18   :  { %16952 = vmatprep.subr.mxu1 %v15812_v31 }
0x1b19   :  { %16953 = vmatpush3.msra.mxu1 %v15812_v31  ;;  %12702 = vmatmul.mubr.f32.gmra.mxu0 %v21786_v27 }
0x1b1a   :  { %16954 = vmatprep.subr.mxu1 %v15809_v47  ;;  %12706 = vmatprep.mubr.f32.mxu0 %v21789_v5 }
0x1b1b   :  { %16955 = vmatpush3.msra.mxu1 %v15809_v47  ;;  %13316 = vmatpush1.bf16.msra.mxu0 %v18323_v46 }
0x1b1c   :  { %16956 = vmatprep.subr.mxu1 %v15806_v16  ;;  %13317 = vmatprep.subr.bf16.mxu0 %v18331_v42 }
0x1b1d   :  { %16957 = vmatpush3.msra.mxu1 %v15806_v16  ;;  %12707 = vmatmul.mubr.f32.gmra.mxu0 %v21794_v38 }
0x1b1e   :  { %16958 = vmatprep.subr.mxu1 %v15803_v43  ;;  %12711 = vmatprep.mubr.f32.mxu0 %v21797_v49 }
0x1b1f   :  { %16959 = vmatpush3.msra.mxu1 %v15803_v43  ;;  %13318 = vmatpush1.bf16.msra.mxu0 %v18329_v22 }
0x1b20   :  { %16961 = vmatmul.mubr.msk.f32.vlgmr.msra.gmra.mxu1 %vm12619_vm6, %v21801_v8  ;;  %13366 = vmatprep.subr.bf16.mxu1 %v18322_v23 }
0x1b21   :  { %12712 = vmatmul.mubr.f32.gmra.mxu0 %v21805_v4  ;;  %16963 = vmatprep.mubr.msk.f32.mxu1 %vm12619_vm6, %v21808_v41 }
0x1b22   :  { %13345 = vmatprep.mubr.bf16.mxu0 %v19929_v0  ;;  %13367 = vmatpush1.bf16.msra.mxu1 %v18320_v7 }
0x1b23   :  { %13368 = vmatprep.subr.bf16.mxu1 %v18328_v50  ;;  %13319 = vmatprep.subr.bf16.mxu0 %v18337_v35 }
0x1b24   :  { %16964 = vmatmul.mubr.msk.f32.gmra.mxu1 %vm12619_vm6, %v21816_v14  ;;  %13320 = vmatpush1.bf16.msra.mxu0 %v18335_v32 }
0x1b25   :  { %13398 = vmatprep.mubr.bf16.mxu1 %v19929_v0  ;;  %13321 = vmatprep.subr.bf16.mxu0 %v18343_v28 }
0x1b26   :  { %13369 = vmatpush1.bf16.msra.mxu1 %v18326_v52 }
0x1b27   :  { %13370 = vmatprep.subr.bf16.mxu1 %v18334_v56 }
0x1b28   :  { %13322 = vmatpush1.bf16.msra.mxu0 %v18341_v24 }
0x1b29   :  { %13323 = vmatprep.subr.bf16.mxu0 %v18349_v9 }
0x1b2a   :  { %13371 = vmatpush1.bf16.msra.mxu1 %v18332_v63 }
0x1b2b   :  { %13372 = vmatprep.subr.bf16.mxu1 %v18340_v3 }
0x1b2c   :  { %13324 = vmatpush1.bf16.msra.mxu0 %v18347_v1 }
0x1b2d   :  { %13325 = vmatprep.subr.bf16.mxu0 %v18355_v2 }
0x1b2e   :  { %13373 = vmatpush1.bf16.msra.mxu1 %v18338_v59 }
0x1b2f   :  { %13374 = vmatprep.subr.bf16.mxu1 %v18346_v26 }
0x1b30   :  { %13326 = vmatpush1.bf16.msra.mxu0 %v18353_v10 }
0x1b31   :  { %13327 = vmatprep.subr.bf16.mxu0 %v18361_v13 }
0x1b32   :  { %13375 = vmatpush1.bf16.msra.mxu1 %v18344_v51 }
0x1b33   :  { %13376 = vmatprep.subr.bf16.mxu1 %v18352_v12 }
0x1b34   :  { %13328 = vmatpush1.bf16.msra.mxu0 %v18359_v60 }
0x1b35   :  { %13419 = vmatprep.subr.bf16.mxu0 %v18367_v44 }
0x1b36   :  { %13377 = vmatpush1.bf16.msra.mxu1 %v18350_v29 }
0x1b37   :  { %13378 = vmatprep.subr.bf16.mxu1 %v18358_v15 }
0x1b3a   :  { %13379 = vmatpush1.bf16.msra.mxu1 %v18356_v34 }
0x1b3b   :  { %13380 = vmatprep.subr.bf16.mxu1 %v18364_v17 }
0x1b3e   :  { %13381 = vmatpush1.bf16.msra.mxu1 %v18362_v48 }
0x1b3f   :  { %13472 = vmatprep.subr.bf16.mxu1 %v18370_v20 }
0x1bd5   :  { %v15845_v61 = vpop.f32.mrf.mxu0 }
0x1bd7   :  { %v15846_v33 = vpop.f32.mrf.mxu0 }
0x1bd8   :  { %v15847_v40 = vadd.f32 %v15846_v33, %v15845_v61 }
0x1bd9   :  { %v15848_v25 = vpop.f32.mrf.mxu0 }
0x1bda   :  { %v12699_v47 = vadd.f32 %v15847_v40, %v15208_v62 }
0x1bdb   :  { %v15849_v18 = vpop.f32.mrf.mxu0 }
0x1bdc   :  { %v15850_v55 = vadd.f32 %v15849_v18, %v15848_v25 }
0x1bdd   :  { %v15851_v19 = vpop.f32.mrf.mxu0 }
0x1bde   :  { %v12704_v30 = vadd.f32 %v15850_v55, %v15208_v62  ;;  %v15213_v55 = vld [vmem:[#allocation40] ss:$0 sm:$0xff] }
0x1bdf   :  { %v15852_v45 = vpop.f32.mrf.mxu0 }
0x1be0   :  { %v16962_v37 = vpop.f32.mrf.mxu1  ;;  %v15853_v11 = vadd.f32 %v15852_v45, %v15851_v19 }
0x1be1   :  { %v15854_v31 = vpop.f32.mrf.mxu0  ;;  %v12789_v7 = vadd.f32 %v16962_v37, %v12704_v30 }
0x1be2   :  { %v12783_v16 = vpop.f32.mrf.mxu1  ;;  %v12709_v54 = vadd.f32 %v15853_v11, %v15208_v62  ;;  %v15214_v11 = vld [vmem:[#allocation38] ss:$0 sm:$0xff] }
0x1be3   :  { %v12784_v43 = vadd.f32 %v12783_v16, %v12699_v47  ;;  %v15855_v57 = vpop.f32.mrf.mxu0 }
0x1be4   :  { %v15856_v23 = vadd.f32 %v15855_v57, %v15854_v31  ;;  %v16965_v6 = vpop.f32.mrf.mxu1 }
0x1be5   :  { %v12802_v52 = vadd.f32 %v12789_v7, %v12784_v43 }
0x1be6   :  { %v12714_v50 = vadd.f32 %v15856_v23, %v15208_v62  ;;  %v12793_v46 = vpop.f32.mrf.mxu1 }
0x1be7   :  { %v12794_v42 = vadd.f32 %v12793_v46, %v12709_v54  ;;  %v18368_v54 = vld [vmem:[#allocation47 + $0x210] ss:$36 sps:$4 sm:$0xff]  }
0x1be8   :  { %v12799_v56 = vadd.f32 %v16965_v6, %v12714_v50 }
0x1be9   :  { %v12803_v22 = vadd.f32 %v12802_v52, %v12794_v42 }
0x1beb   :  { %v12804_v63 = vadd.f32 %v12803_v22, %v12799_v56  ;;  %v18371_v22 = vld [vmem:[#allocation47 + $0x1c0] ss:$36 sps:$4 sm:$0xff]  }
0x1bed   :  { %v12805_v35 = vrot.slane %v12804_v63, 4 }
0x1bef   :  { %v12806_v3 = vadd.f32 %v12805_v35, %v12804_v63  ;;  %v18374_v63 = vld [vmem:[#allocation47 + $0x1c8] ss:$36 sps:$4 sm:$0xff]  }
0x1bf1   :  { %v12807_v32 = vrot.slane %v12806_v3, 2 }
0x1bf3   :  { %v12808_v59 = vadd.f32 %v12807_v32, %v12806_v3  ;;  %v18379_v32 = vld [vmem:[#allocation47 + $0x17c] ss:$36 sps:$4 sm:$0xff]  }
0x1bf5   :  { %v12809_v28 = vrot.slane %v12808_v59, 1 }
0x1bf7   :  { %v12810_v26 = vadd.f32 %v12809_v28, %v12808_v59  ;;  %v18382_v59 = vld [vmem:[#allocation47 + $0x184] ss:$36 sps:$4 sm:$0xff]   ;;  %v18377_v28 = vld [vmem:[#allocation47 + $0x178] ss:$36 sps:$4 sm:$0xff]  }
0x1bf9   :  { %v12812_v24 = vmul.f32 0.03125, %v12810_v26  ;;  %v18380_v26 = vld [vmem:[#allocation47 + $0x180] ss:$36 sps:$4 sm:$0xff]  }
0x1bfb   :  { %v12813_v51 = vsub.f32 %v12784_v43, %v12812_v24  ;;  %v12814_v9 = vsub.f32 %v12789_v7, %v12812_v24  ;;  %v12815_v12 = vsub.f32 %v12794_v42, %v12812_v24  ;;  %v12816_v1 = vsub.f32 %v12799_v56, %v12812_v24  ;;  %v18365_v7 = vld [vmem:[#allocation47 + $0x208] ss:$36 sps:$4 sm:$0xff]  }
0x1bfc   :  { %v18373_v42 = vld [vmem:[#allocation47 + $0x1c4] ss:$36 sps:$4 sm:$0xff]   ;;  %v18376_v56 = vld [vmem:[#allocation47 + $0x1cc] ss:$36 sps:$4 sm:$0xff]  }
0x1bfd   :  { %v12817_v29 = vmul.f32 %v12813_v51, %v12813_v51  ;;  %v12818_v2 = vmul.f32 %v12814_v9, %v12814_v9  ;;  %v12819_v15 = vmul.f32 %v12815_v12, %v12815_v12  ;;  %v12820_v34 = vmul.f32 %v12816_v1, %v12816_v1 }
0x1bff   :  { %v12821_v10 = vadd.f32 %v12818_v2, %v12817_v29  ;;  %v18391_v29 = vld [vmem:[#allocation47 + $0xec] ss:$36 sps:$4 sm:$0xff]   ;;  %v18394_v2 = vld [vmem:[#allocation47 + $0xf4] ss:$36 sps:$4 sm:$0xff]  }
0x1c01   :  { %v12822_v13 = vadd.f32 %v12821_v10, %v12819_v15  ;;  %v18389_v15 = vld [vmem:[#allocation47 + $0xe8] ss:$36 sps:$4 sm:$0xff]   ;;  %v18392_v10 = vld [vmem:[#allocation47 + $0xf0] ss:$36 sps:$4 sm:$0xff]  }
0x1c03   :  { %v12823_v17 = vadd.f32 %v12822_v13, %v12820_v34  ;;  %v18397_v34 = vld [vmem:[#allocation47 + $0xa4] ss:$36 sps:$4 sm:$0xff]   ;;  %v18400_v13 = vld [vmem:[#allocation47 + $0xac] ss:$36 sps:$4 sm:$0xff]  }
0x1c05   :  { %v12824_v60 = vrot.slane %v12823_v17, 4 }
0x1c07   :  { %v12825_v48 = vadd.f32 %v12824_v60, %v12823_v17  ;;  %v18395_v17 = vld [vmem:[#allocation47 + $0xa0] ss:$36 sps:$4 sm:$0xff]   ;;  %v18398_v60 = vld [vmem:[#allocation47 + $0xa8] ss:$36 sps:$4 sm:$0xff]  }
0x1c09   :  { %v12826_v44 = vrot.slane %v12825_v48, 2 }
0x1c0b   :  { %v12827_v20 = vadd.f32 %v12826_v44, %v12825_v48  ;;  %v18403_v48 = vld [vmem:[#allocation47 + $0x5c] ss:$36 sps:$4 sm:$0xff]   ;;  %v18406_v44 = vld [vmem:[#allocation47 + $0x64] ss:$36 sps:$4 sm:$0xff]  }
0x1c0d   :  { %v12828_v61 = vrot.slane %v12827_v20, 1 }
0x1c0f   :  { %v12829_v33 = vadd.f32 %v12828_v61, %v12827_v20  ;;  %v18401_v20 = vld [vmem:[#allocation47 + $0x58] ss:$36 sps:$4 sm:$0xff]   ;;  %v18404_v61 = vld [vmem:[#allocation47 + $0x60] ss:$36 sps:$4 sm:$0xff]  }
0x1c11   :  { %v12830_v25 = vmul.f32 0.03125, %v12829_v33  ;;  %v18409_v33 = vld [vmem:[#allocation47 + $0x14] ss:$36 sps:$4 sm:$0xff]  }
0x1c13   :  { %v12831_v18 = vadd.f32 1e-05, %v12830_v25  ;;  %v18412_v25 = vld [vmem:[#allocation47 + $0x1c] ss:$36 sps:$4 sm:$0xff]  }
0x1c15   :  { %18453 = vrsqrt.f32 %v12831_v18  ;;  %v18407_v18 = vld [vmem:[#allocation47 + $0x10] ss:$36 sps:$4 sm:$0xff]  }
0x1c22   :  { %v18454_v40 = vpop.eup %18453 }
0x1c23   :  { %v12833_v19 = vmul.f32 %v18454_v40, %v12813_v51  ;;  %v12834_v62 = vmul.f32 %v18454_v40, %v12814_v9  ;;  %v12835_v45 = vmul.f32 %v18454_v40, %v12815_v12  ;;  %v12836_v37 = vmul.f32 %v18454_v40, %v12816_v1  ;;  %v18385_v51 = vld [vmem:[#allocation47 + $0x134] ss:$36 sps:$4 sm:$0xff]   ;;  %v18388_v9 = vld [vmem:[#allocation47 + $0x13c] ss:$36 sps:$4 sm:$0xff]  }
0x1c24   :  { %v18383_v12 = vld [vmem:[#allocation47 + $0x130] ss:$36 sps:$4 sm:$0xff]   ;;  %v18386_v1 = vld [vmem:[#allocation47 + $0x138] ss:$36 sps:$4 sm:$0xff]  }
0x1c25   :  { %v12844_v30 = vmul.f32 %v15213_v55, %v12833_v19  ;;  %v12845_v31 = vmul.f32 %v15213_v55, %v12834_v62  ;;  %v12846_v47 = vmul.f32 %v15213_v55, %v12835_v45  ;;  %v12847_v16 = vmul.f32 %v15213_v55, %v12836_v37  ;;  %v18410_v40 = vld [vmem:[#allocation47 + $0x18] ss:$36 sps:$4 sm:$0xff]   ;;  %v18414_v19 = vld [vmem:[#allocation47 + $0x1d0] ss:$36 sps:$4 sm:$0xff]   ;;  %v18415_v62 = vld [vmem:[#allocation47 + $0x188] ss:$36 sps:$4 sm:$0xff]  }
0x1c26   :  { %v18413_v55 = vld [vmem:[#allocation47 + $0x218] ss:$36 sps:$4 sm:$0xff]   ;;  %v18416_v45 = vld [vmem:[#allocation47 + $0x140] ss:$36 sps:$4 sm:$0xff]  }
0x1c27   :  { %v12855_v43 = vadd.f32 %v15214_v11, %v12844_v30  ;;  %v12856_v57 = vadd.f32 %v15214_v11, %v12845_v31  ;;  %v12857_v50 = vadd.f32 %v15214_v11, %v12846_v47  ;;  %v12858_v46 = vadd.f32 %v15214_v11, %v12847_v16  ;;  %v18417_v37 = vld [vmem:[#allocation47 + $0xf8] ss:$36 sps:$4 sm:$0xff]   ;;  %v18418_v11 = vld [vmem:[#allocation47 + $0xb0] ss:$36 sps:$4 sm:$0xff]   ;;  %v18420_v30 = vld [vmem:[#allocation47 + $0x20] ss:$36 sps:$4 sm:$0xff]  }
0x1c29   :  { %v12859_v23 = vmax.f32 %v12855_v43, 0.0  ;;  %v12860_v6 = vmax.f32 %v12856_v57, 0.0  ;;  %v12861_v35 = vmax.f32 %v12857_v50, 0.0  ;;  %v12862_v3 = vmax.f32 %v12858_v46, 0.0 }
0x1c2b   :  { %v21822_v52 = vpack.c.bf16 %v12860_v6, %v12859_v23  ;;  %v21828_v24 = vpack.c.bf16 %v12862_v3, %v12861_v35 }
0x1c2d   :  { %13346 = vmatmul.mubr.bf16.vlgmr.msra.gmra.mxu0 %v21822_v52  ;;  %13399 = vmatmul.mubr.bf16.vlgmr.msra.gmra.mxu1 %v21822_v52 }
0x1c2e   :  { %13420 = vmatpush1.bf16.msra.mxu0 %v18365_v7  ;;  %13473 = vmatpush1.bf16.msra.mxu1 %v18368_v54 }
0x1c2f   :  { %13421 = vmatprep.subr.bf16.mxu0 %v18373_v42  ;;  %13474 = vmatprep.subr.bf16.mxu1 %v18376_v56 }
0x1c30   :  { %13355 = vmatprep.mubr.bf16.mxu0 %v19929_v0  ;;  %13408 = vmatprep.mubr.bf16.mxu1 %v19929_v0 }
0x1c32   :  { %13422 = vmatpush1.bf16.msra.mxu0 %v18371_v22  ;;  %13475 = vmatpush1.bf16.msra.mxu1 %v18374_v63 }
0x1c33   :  { %13423 = vmatprep.subr.bf16.mxu0 %v18379_v32  ;;  %13476 = vmatprep.subr.bf16.mxu1 %v18382_v59 }
0x1c35   :  { %13356 = vmatmul.mubr.bf16.gmra.mxu0 %v21828_v24  ;;  %13409 = vmatmul.mubr.bf16.gmra.mxu1 %v21828_v24 }
0x1c36   :  { %13424 = vmatpush1.bf16.msra.mxu0 %v18377_v28  ;;  %13477 = vmatpush1.bf16.msra.mxu1 %v18380_v26 }
0x1c37   :  { %13425 = vmatprep.subr.bf16.mxu0 %v18385_v51  ;;  %13478 = vmatprep.subr.bf16.mxu1 %v18388_v9 }
0x1c38   :  { %13451 = vmatprep.mubr.bf16.mxu0 %v19929_v0  ;;  %13504 = vmatprep.mubr.bf16.mxu1 %v19929_v0 }
0x1c3a   :  { %13426 = vmatpush1.bf16.msra.mxu0 %v18383_v12  ;;  %13479 = vmatpush1.bf16.msra.mxu1 %v18386_v1 }
0x1c3b   :  { %13427 = vmatprep.subr.bf16.mxu0 %v18391_v29  ;;  %13480 = vmatprep.subr.bf16.mxu1 %v18394_v2 }
0x1c3e   :  { %13428 = vmatpush1.bf16.msra.mxu0 %v18389_v15  ;;  %13481 = vmatpush1.bf16.msra.mxu1 %v18392_v10 }
0x1c3f   :  { %13429 = vmatprep.subr.bf16.mxu0 %v18397_v34  ;;  %13482 = vmatprep.subr.bf16.mxu1 %v18400_v13 }
0x1c42   :  { %13430 = vmatpush1.bf16.msra.mxu0 %v18395_v17  ;;  %13483 = vmatpush1.bf16.msra.mxu1 %v18398_v60 }
0x1c43   :  { %13431 = vmatprep.subr.bf16.mxu0 %v18403_v48  ;;  %13484 = vmatprep.subr.bf16.mxu1 %v18406_v44 }
0x1c46   :  { %13432 = vmatpush1.bf16.msra.mxu0 %v18401_v20  ;;  %13485 = vmatpush1.bf16.msra.mxu1 %v18404_v61  ;;  %v15287_v61 = vld [vmem:[#allocation43] ss:$0 sm:$0xff] }
0x1c47   :  { %13433 = vmatprep.subr.bf16.mxu0 %v18409_v33  ;;  %13486 = vmatprep.subr.bf16.mxu1 %v18412_v25 }
0x1c4a   :  { %13434 = vmatpush1.bf16.msra.mxu0 %v18407_v18  ;;  %13487 = vmatpush1.bf16.msra.mxu1 %v18410_v40 }
0x1c4b   :  { %16966 = vmatprep.subr.bf16.mxu0 %v18413_v55 }
0x1c4d   :  { %13452 = vmatmul.mubr.bf16.vlgmr.msra.gmra.mxu0 %v21822_v52  ;;  %13505 = vmatmul.mubr.bf16.vlgmr.msra.gmra.mxu1 %v21822_v52 }
0x1c4e   :  { %16967 = vmatpush3.bf16.msra.mxu0 %v18413_v55  ;;  %13461 = vmatprep.mubr.bf16.mxu0 %v19929_v0 }
0x1c4f   :  { %16968 = vmatprep.subr.bf16.mxu0 %v18414_v19  ;;  %13514 = vmatprep.mubr.bf16.mxu1 %v19929_v0  ;;  %v18419_v0 = vld [vmem:[#allocation47 + $0x68] ss:$36 sps:$4 sm:$0xff]  }
0x1c52   :  { %16969 = vmatpush3.bf16.msra.mxu0 %v18414_v19 }
0x1c53   :  { %16970 = vmatprep.subr.bf16.mxu0 %v18415_v62 }
0x1c55   :  { %13462 = vmatmul.mubr.bf16.gmra.mxu0 %v21828_v24  ;;  %13515 = vmatmul.mubr.bf16.gmra.mxu1 %v21828_v24 }
0x1c56   :  { %16971 = vmatpush3.bf16.msra.mxu0 %v18415_v62  ;;  %16982 = vmatprep.mubr.bf16.mxu0 %v21822_v52 }
0x1c57   :  { %16972 = vmatprep.subr.bf16.mxu0 %v18416_v45  ;;  %13645 = vmatprep.mubr.f32.mxu1 %v21766_v58 }
0x1c5a   :  { %16973 = vmatpush3.bf16.msra.mxu0 %v18416_v45 }
0x1c5b   :  { %16974 = vmatprep.subr.bf16.mxu0 %v18417_v37 }
0x1c5e   :  { %16975 = vmatpush3.bf16.msra.mxu0 %v18417_v37 }
0x1c5f   :  { %16976 = vmatprep.subr.bf16.mxu0 %v18418_v11 }
0x1c62   :  { %16977 = vmatpush3.bf16.msra.mxu0 %v18418_v11 }
0x1c63   :  { %16978 = vmatprep.subr.bf16.mxu0 %v18419_v0 }
0x1c66   :  { %16979 = vmatpush3.bf16.msra.mxu0 %v18419_v0 }
0x1c67   :  { %16980 = vmatprep.subr.bf16.mxu0 %v18420_v30 }
0x1c6a   :  { %16981 = vmatpush3.bf16.msra.mxu0 %v18420_v30 }
0x1c6d   :  { %16983 = vmatmul.mubr.bf16.vlgmr.msra.gmra.mxu0 %v21828_v24 }
0x1c6e   :  { %16994 = vmatprep.mubr.msk.f32.mxu0 %vm12619_vm6, %v21770_v36 }
0x1ced   :  { %v13400_v31 = vpop.f32.mrf.mxu1  ;;  %v21845_v47 = vpop.f32.mrf.mxu0 }
0x1cef   :  { %v13402_v58 = vpop.f32.mrf.mxu1  ;;  %v13349_v16 = vpop.f32.mrf.mxu0 }
0x1cf1   :  { %v13404_v43 = vpop.f32.mrf.mxu1  ;;  %v21847_v57 = vpop.f32.mrf.mxu0 }
0x1cf3   :  { %v13406_v23 = vpop.f32.mrf.mxu1  ;;  %v13353_v6 = vpop.f32.mrf.mxu0 }
0x1cf5   :  { %v13410_v7 = vpop.f32.mrf.mxu1  ;;  %v13357_v54 = vpop.f32.mrf.mxu0 }
0x1cf7   :  { %v13412_v50 = vpop.f32.mrf.mxu1  ;;  %v13359_v46 = vpop.f32.mrf.mxu0 }
0x1cf9   :  { %v13414_v52 = vpop.f32.mrf.mxu1  ;;  %v13361_v42 = vpop.f32.mrf.mxu0 }
0x1cfb   :  { %v13416_v56 = vpop.f32.mrf.mxu1  ;;  %v13363_v22 = vpop.f32.mrf.mxu0 }
0x1d0d   :  { %v13506_v63 = vpop.f32.mrf.mxu1  ;;  %v13453_v36 = vpop.f32.mrf.mxu0 }
0x1d0f   :  { %v13508_v35 = vpop.f32.mrf.mxu1  ;;  %v13455_v32 = vpop.f32.mrf.mxu0 }
0x1d11   :  { %v13510_v3 = vpop.f32.mrf.mxu1  ;;  %v13457_v26 = vpop.f32.mrf.mxu0 }
0x1d13   :  { %v13512_v59 = vpop.f32.mrf.mxu1  ;;  %v13459_v9 = vpop.f32.mrf.mxu0 }
0x1d15   :  { %v13516_v28 = vpop.f32.mrf.mxu1  ;;  %v13463_v1 = vpop.f32.mrf.mxu0 }
0x1d17   :  { %v13518_v24 = vpop.f32.mrf.mxu1  ;;  %v13465_v29 = vpop.f32.mrf.mxu0 }
0x1d19   :  { %v13520_v51 = vpop.f32.mrf.mxu1  ;;  %v13467_v2 = vpop.f32.mrf.mxu0 }
0x1d1b   :  { %v13522_v12 = vpop.f32.mrf.mxu1  ;;  %v13469_v15 = vpop.f32.mrf.mxu0 }
0x1d1c   :  { %15875 = vmatprep.subr.mxu1 %v13522_v12 }
0x1d1d   :  { %15876 = vmatpush3.msra.mxu1 %v13416_v56 }
0x1d1e   :  { %15877 = vmatprep.subr.mxu1 %v13518_v24 }
0x1d1f   :  { %15878 = vmatpush3.msra.mxu1 %v13412_v50 }
0x1d20   :  { %15879 = vmatprep.subr.mxu1 %v13512_v59 }
0x1d21   :  { %15880 = vmatpush3.msra.mxu1 %v13406_v23 }
0x1d22   :  { %15881 = vmatprep.subr.mxu1 %v13508_v35 }
0x1d23   :  { %15882 = vmatpush3.msra.mxu1 %v13402_v58 }
0x1d24   :  { %15883 = vmatprep.subr.mxu1 %v13520_v51 }
0x1d25   :  { %15884 = vmatpush3.msra.mxu1 %v13414_v52 }
0x1d26   :  { %15885 = vmatprep.subr.mxu1 %v13516_v28 }
0x1d27   :  { %15886 = vmatpush3.msra.mxu1 %v13410_v7 }
0x1d28   :  { %15887 = vmatprep.subr.mxu1 %v13510_v3 }
0x1d29   :  { %15888 = vmatpush3.msra.mxu1 %v13404_v43 }
0x1d2a   :  { %15889 = vmatprep.subr.mxu1 %v13506_v63 }
0x1d2b   :  { %15890 = vmatpush3.msra.mxu1 %v13400_v31 }
0x1d2c   :  { %15891 = vmatprep.subr.mxu1 %v13469_v15 }
0x1d2d   :  { %v16984_v10 = vpop.f32.mrf.mxu0  ;;  %15892 = vmatpush3.msra.mxu1 %v13363_v22 }
0x1d2e   :  { %15893 = vmatprep.subr.mxu1 %v13465_v29 }
0x1d2f   :  { %v13559_v34 = vpop.f32.mrf.mxu0  ;;  %15894 = vmatpush3.msra.mxu1 %v13359_v46 }
0x1d30   :  { %15895 = vmatprep.subr.mxu1 %v13459_v9 }
0x1d31   :  { %v16985_v13 = vpop.f32.mrf.mxu0  ;;  %15896 = vmatpush3.msra.mxu1 %v13353_v6 }
0x1d32   :  { %15897 = vmatprep.subr.mxu1 %v13455_v32  ;;  %16986 = vmatprep.subr.mxu0 %v16985_v13 }
0x1d33   :  { %15898 = vmatpush3.msra.mxu1 %v13349_v16  ;;  %16987 = vmatpush3.msra.mxu0 %v16985_v13  ;;  %v13562_v17 = vpop.f32.mrf.mxu0 }
0x1d34   :  { %15899 = vmatprep.subr.mxu1 %v13467_v2  ;;  %16988 = vmatprep.subr.mxu0 %v16984_v10 }
0x1d35   :  { %15900 = vmatpush3.msra.mxu1 %v13361_v42  ;;  %16989 = vmatpush3.msra.mxu0 %v16984_v10 }
0x1d36   :  { %15901 = vmatprep.subr.mxu1 %v13463_v1  ;;  %16990 = vmatprep.subr.mxu0 %v13562_v17 }
0x1d37   :  { %15902 = vmatpush3.msra.mxu1 %v13357_v54  ;;  %16991 = vmatpush3.msra.mxu0 %v13562_v17 }
0x1d38   :  { %15903 = vmatprep.subr.mxu1 %v13457_v26  ;;  %16992 = vmatprep.subr.mxu0 %v13559_v34 }
0x1d39   :  { %15904 = vmatpush3.msra.mxu1 %v21847_v57  ;;  %16993 = vmatpush3.msra.mxu0 %v13559_v34  ;;  %v15292_v34 = vld [vmem:[#allocation46] ss:$0 sm:$0xff] }
0x1d3a   :  { %15905 = vmatprep.subr.mxu1 %v13453_v36  ;;  %16995 = vmatmul.mubr.msk.f32.vlgmr.msra.gmra.mxu0 %vm12619_vm6, %v21801_v8  ;;  %v18422_v8 = vld [vmem:[#allocation85 + $0x30] sm:$0xff]  }
0x1d3b   :  { %15906 = vmatpush3.msra.mxu1 %v21845_v47  ;;  %16997 = vmatprep.mubr.msk.f32.mxu0 %vm12619_vm6, %v21808_v41  ;;  %v18424_v41 = vld [vmem:[#allocation85 + $0x20] sm:$0xff]  }
0x1d3c   :  { %13646 = vmatmul.mubr.f32.vlgmr.msra.gmra.mxu1 %v21777_v53  ;;  %17000 = vmatprep.subr.mxu0 %v19930_v21  ;;  %v18421_v53 = vld [vmem:[#allocation85 + $0x38] sm:$0xff]  }
0x1d3d   :  { %13650 = vmatprep.mubr.f32.mxu1 %v21780_v39  ;;  %17029 = vmatprep.subr.bf16.mxu1 %v18421_v53  ;;  %v18423_v39 = vld [vmem:[#allocation85 + $0x28] sm:$0xff]  }
0x1d3e   :  { %16998 = vmatmul.mubr.msk.f32.gmra.mxu0 %vm12619_vm6, %v21816_v14  ;;  %17030 = vmatpush3.bf16.msra.mxu1 %v18421_v53 }
0x1d3f   :  { %17008 = vmatprep.mubr.msk.f32.mxu0 %vm19931_vm0, %v19930_v21  ;;  %17031 = vmatprep.subr.bf16.mxu1 %v18422_v8 }
0x1d40   :  { %13651 = vmatmul.mubr.f32.gmra.mxu1 %v21786_v27  ;;  %v18425_v27 = vld [vmem:[#allocation85 + $0x18] sm:$0xff]  }
0x1d41   :  { %13655 = vmatprep.mubr.f32.mxu1 %v21789_v5 }
0x1d42   :  { %17032 = vmatpush3.bf16.msra.mxu1 %v18422_v8 }
0x1d43   :  { %17033 = vmatprep.subr.bf16.mxu1 %v18423_v39 }
0x1d44   :  { %13656 = vmatmul.mubr.f32.gmra.mxu1 %v21794_v38 }
0x1d45   :  { %13660 = vmatprep.mubr.f32.mxu1 %v21797_v49 }
0x1d46   :  { %17034 = vmatpush3.bf16.msra.mxu1 %v18423_v39  ;;  %v15293_v39 = vld [vmem:[#allocation44] ss:$0 sm:$0xff] }
0x1d47   :  { %17035 = vmatprep.subr.bf16.mxu1 %v18424_v41 }
0x1d48   :  { %13661 = vmatmul.mubr.f32.gmra.mxu1 %v21805_v4 }
0x1d4a   :  { %17036 = vmatpush3.bf16.msra.mxu1 %v18424_v41 }
0x1d4b   :  { %17037 = vmatprep.subr.bf16.mxu1 %v18425_v27 }
0x1d4e   :  { %17038 = vmatpush3.bf16.msra.mxu1 %v18425_v27 }
0x1dfa   :  { %v16996_v60 = vpop.f32.mrf.mxu0 }
0x1dfc   :  { %v15907_v14 = vpop.f32.mrf.mxu1  ;;  %v13732_v4 = vpop.f32.mrf.mxu0 }
0x1dfe   :  { %v15908_v5 = vpop.f32.mrf.mxu1  ;;  %v16999_v33 = vpop.f32.mrf.mxu0 }
0x1dff   :  { %v15909_v48 = vadd.f32 %v15908_v5, %v15907_v14 }
0x1e00   :  { %v15910_v38 = vpop.f32.mrf.mxu1  ;;  %v13742_v62 = vpop.f32.mrf.mxu0 }
0x1e01   :  { %v13648_v55 = vadd.f32 %v15909_v48, %v15287_v61 }
0x1e02   :  { %v15911_v49 = vpop.f32.mrf.mxu1 }
0x1e03   :  { %v15912_v44 = vadd.f32 %v15911_v49, %v15910_v38  ;;  %v13733_v0 = vadd.f32 %v13732_v4, %v13648_v55  ;;  %v13815_v55 = vld [vmem:[#allocation5 + $0x20] sm:$0xff] }
0x1e04   :  { %v15913_v20 = vpop.f32.mrf.mxu1 }
0x1e05   :  { %v13653_v25 = vadd.f32 %v15912_v44, %v15287_v61 }
0x1e06   :  { %v15914_v18 = vpop.f32.mrf.mxu1 }
0x1e07   :  { %v15915_v40 = vadd.f32 %v15914_v18, %v15913_v20  ;;  %v13738_v45 = vadd.f32 %v16996_v60, %v13653_v25  ;;  %v13812_v25 = vld [vmem:[#allocation5 + $0x8] sm:$0xff]  ;;  %v13813_v18 = vld [vmem:[#allocation5 + $0x10] sm:$0xff] }
0x1e08   :  { %v15916_v19 = vpop.f32.mrf.mxu1 }
0x1e09   :  { %v13658_v37 = vadd.f32 %v15915_v40, %v15287_v61  ;;  %v13751_v47 = vadd.f32 %v13738_v45, %v13733_v0  ;;  %v13814_v40 = vld [vmem:[#allocation5 + $0x18] sm:$0xff] }
0x1e0a   :  { %v15917_v11 = vpop.f32.mrf.mxu1 }
0x1e0b   :  { %v15918_v30 = vadd.f32 %v15917_v11, %v15916_v19  ;;  %v13743_v31 = vadd.f32 %v13742_v62, %v13658_v37  ;;  %v13816_v19 = vld [vmem:[#allocation5 + $0x28] sm:$0xff]  ;;  %v13817_v62 = vld [vmem:[#allocation5 + $0x30] sm:$0x3] }
0x1e0c   :  { %v18427_v37 = vld [vmem:[#allocation85 + $0x8] sm:$0xff]   ;;  %v18428_v11 = vld [vmem:[#allocation85] sm:$0xff]  }
0x1e0d   :  { %v13663_v58 = vadd.f32 %v15918_v30, %v15287_v61  ;;  %v13752_v43 = vadd.f32 %v13751_v47, %v13743_v31 }
0x1e0f   :  { %v13748_v16 = vadd.f32 %v16999_v33, %v13663_v58  ;;  %v13811_v33 = vld [vmem:[#allocation5] sm:$0xff] }
0x1e11   :  { %v13753_v57 = vadd.f32 %v13752_v43, %v13748_v16 }
0x1e13   :  { %v13754_v23 = vrot.slane %v13753_v57, 4 }
0x1e15   :  { %v13755_v6 = vadd.f32 %v13754_v23, %v13753_v57 }
0x1e17   :  { %v13756_v7 = vrot.slane %v13755_v6, 2 }
0x1e19   :  { %v13757_v54 = vadd.f32 %v13756_v7, %v13755_v6 }
0x1e1b   :  { %v13758_v50 = vrot.slane %v13757_v54, 1 }
0x1e1d   :  { %v13759_v46 = vadd.f32 %v13758_v50, %v13757_v54 }
0x1e1f   :  { %v13760_v52 = vmul.f32 0.03125, %v13759_v46 }
0x1e21   :  { %v13761_v42 = vsub.f32 %v13733_v0, %v13760_v52  ;;  %v13762_v56 = vsub.f32 %v13738_v45, %v13760_v52  ;;  %v13763_v22 = vsub.f32 %v13743_v31, %v13760_v52  ;;  %v13764_v63 = vsub.f32 %v13748_v16, %v13760_v52  ;;  %v18426_v45 = vld [vmem:[#allocation85 + $0x10] sm:$0xff]  }
0x1e22   :  { %17039 = vmatprep.subr.bf16.mxu1 %v18426_v45 }
0x1e23   :  { %v13765_v36 = vmul.f32 %v13761_v42, %v13761_v42  ;;  %v13766_v35 = vmul.f32 %v13762_v56, %v13762_v56  ;;  %v13767_v3 = vmul.f32 %v13763_v22, %v13763_v22  ;;  %v13768_v59 = vmul.f32 %v13764_v63, %v13764_v63  ;;  %17040 = vmatpush3.bf16.msra.mxu1 %v18426_v45 }
0x1e24   :  { %17041 = vmatprep.subr.bf16.mxu1 %v18427_v37 }
0x1e25   :  { %v13769_v32 = vadd.f32 %v13766_v35, %v13765_v36 }
0x1e27   :  { %v13770_v28 = vadd.f32 %v13769_v32, %v13767_v3  ;;  %17042 = vmatpush3.bf16.msra.mxu1 %v18427_v37 }
0x1e28   :  { %17043 = vmatprep.subr.bf16.mxu1 %v18428_v11 }
0x1e29   :  { %v13771_v26 = vadd.f32 %v13770_v28, %v13768_v59 }
0x1e2b   :  { %v13772_v24 = vrot.slane %v13771_v26, 4  ;;  %17044 = vmatpush3.bf16.msra.mxu1 %v18428_v11 }
0x1e2d   :  { %v13773_v51 = vadd.f32 %v13772_v24, %v13771_v26 }
0x1e2f   :  { %v13774_v9 = vrot.slane %v13773_v51, 2 }
0x1e31   :  { %v13775_v12 = vadd.f32 %v13774_v9, %v13773_v51 }
0x1e33   :  { %v13776_v1 = vrot.slane %v13775_v12, 1 }
0x1e35   :  { %v13777_v29 = vadd.f32 %v13776_v1, %v13775_v12 }
0x1e37   :  { %v13778_v2 = vmul.f32 0.03125, %v13777_v29 }
0x1e39   :  { %v13779_v15 = vadd.f32 1e-05, %v13778_v2 }
0x1e3b   :  { %18455 = vrsqrt.f32 %v13779_v15 }
0x1e48   :  { %v18456_v10 = vpop.eup %18455 }
0x1e49   :  { %v13783_v13 = vmul.f32 %v18456_v10, %v13763_v22  ;;  %v13784_v17 = vmul.f32 %v18456_v10, %v13764_v63  ;;  %v13782_v53 = vmul.f32 %v18456_v10, %v13762_v56  ;;  %v13781_v8 = vmul.f32 %v18456_v10, %v13761_v42 }
0x1e4b   :  { %v13794_v41 = vmul.f32 %v15292_v34, %v13783_v13  ;;  %v13795_v14 = vmul.f32 %v15292_v34, %v13784_v17  ;;  %v13793_v27 = vmul.f32 %v15292_v34, %v13782_v53  ;;  %v13792_v38 = vmul.f32 %v15292_v34, %v13781_v8 }
0x1e4d   :  { %v13806_v5 = vadd.f32 %v15293_v39, %v13795_v14  ;;  %v13805_v60 = vadd.f32 %v15293_v39, %v13794_v41  ;;  %v13804_v4 = vadd.f32 %v15293_v39, %v13793_v27  ;;  %v13803_v44 = vadd.f32 %v15293_v39, %v13792_v38 }
0x1e4f   :  { %v13810_v49 = vmax.f32 %v13806_v5, 0.0  ;;  %v13809_v48 = vmax.f32 %v13805_v60, 0.0  ;;  %v13808_v20 = vmax.f32 %v13804_v4, 0.0  ;;  %v13807_v61 = vmax.f32 %v13803_v44, 0.0 }
0x1e51   :  { %17001 = vmatpush3.msra.mxu0 %v13810_v49 }
0x1e52   :  { %17002 = vmatprep.subr.mxu0 %v19930_v21 }
0x1e53   :  { %17003 = vmatpush3.msra.mxu0 %v13809_v48 }
0x1e54   :  { %17004 = vmatprep.subr.mxu0 %v19930_v21 }
0x1e55   :  { %17005 = vmatpush3.msra.mxu0 %v13808_v20 }
0x1e56   :  { %17006 = vmatprep.subr.mxu0 %v19930_v21 }
0x1e57   :  { %17007 = vmatpush3.msra.mxu0 %v13807_v61 }
0x1e58   :  { %17009 = vmatmul.mubr.msk.f32.vlgmr.msra.gmra.mxu0 %vm12619_vm6, %v13811_v33 }
0x1e59   :  { %17011 = vmatprep.mubr.msk.f32.mxu0 %vm19931_vm0, %v19930_v21 }
0x1e5c   :  { %17012 = vmatmul.mubr.msk.f32.gmra.mxu0 %vm12619_vm6, %v13812_v25 }
0x1e5d   :  { %17014 = vmatprep.mubr.msk.f32.mxu0 %vm19931_vm0, %v19930_v21 }
0x1e60   :  { %17015 = vmatmul.mubr.msk.f32.gmra.mxu0 %vm12619_vm6, %v13813_v18 }
0x1e61   :  { %17017 = vmatprep.mubr.msk.f32.mxu0 %vm19931_vm0, %v19930_v21 }
0x1e64   :  { %17018 = vmatmul.mubr.msk.f32.gmra.mxu0 %vm12619_vm6, %v13814_v40 }
0x1e65   :  { %17020 = vmatprep.mubr.msk.f32.mxu0 %vm19931_vm0, %v19930_v21 }
0x1e68   :  { %17021 = vmatmul.mubr.msk.f32.gmra.mxu0 %vm12619_vm6, %v13815_v55 }
0x1e69   :  { %17023 = vmatprep.mubr.msk.f32.mxu0 %vm19931_vm0, %v19930_v21 }
0x1e6c   :  { %17024 = vmatmul.mubr.msk.f32.gmra.mxu0 %vm12619_vm6, %v13816_v19 }
0x1e6d   :  { %17026 = vmatprep.mubr.msk.f32.mxu0 %vm19931_vm0, %v19930_v21 }
0x1e70   :  { %17027 = vmatmul.mubr.msk.f32.gmra.mxu0 %vm12619_vm6, %v13817_v62 }
0x1f18   :  { %v13905_v0 = vpop.f32.mrf.mxu0 }
0x1f1a   :  { %v17010_v30 = vpop.f32.mrf.mxu0 }
0x1f1c   :  { %v13910_v31 = vpop.f32.mrf.mxu0 }
0x1f1d   :  { %v13939_v47 = vpack.c.bf16 %v13910_v31, %v13905_v0 }
0x1f1e   :  { %v17013_v58 = vpop.f32.mrf.mxu0 }
0x1f1f   :  { %17045 = vmatprep.mubr.bf16.mxu1 %v13939_v47 }
0x1f20   :  { %v13915_v16 = vpop.f32.mrf.mxu0 }
0x1f22   :  { %v17016_v21 = vpop.f32.mrf.mxu0 }
0x1f24   :  { %v13920_v43 = vpop.f32.mrf.mxu0 }
0x1f25   :  { %v13940_v57 = vpack.c.bf16 %v13920_v43, %v13915_v16 }
0x1f26   :  { %v17019_v23 = vpop.f32.mrf.mxu0 }
0x1f27   :  { %17046 = vmatmul.mubr.bf16.vlgmr.msra.gmra.mxu1 %v13940_v57 }
0x1f28   :  { %v13925_v6 = vpop.f32.mrf.mxu0 }
0x1f2a   :  { %v17022_v7 = vpop.f32.mrf.mxu0 }
0x1f2c   :  { %v13930_v54 = vpop.f32.mrf.mxu0 }
0x1f2d   :  { %v13941_v50 = vpack.c.bf16 %v13930_v54, %v13925_v6 }
0x1f2e   :  { %v17025_v46 = vpop.f32.mrf.mxu0 }
0x1f2f   :  { %17049 = vmatprep.mubr.bf16.mxu1 %v13941_v50 }
0x1f30   :  { %v13935_v52 = vpop.f32.mrf.mxu0 }
0x1f31   :  { %v13942_v42 = vpack.c.bf16 %v13935_v52, %v13935_v52 }
0x1f32   :  { %v17028_v56 = vpop.f32.mrf.mxu0 }
0x1f33   :  { %17050 = vmatmul.mubr.bf16.gmra.mxu1 %v13942_v42 }
0x1f34   :  { %19726 = shalt.err (!%p19723_p5)
}
0x1f35   :  { %14104 = dma.vmem_to_hbm [thread:$0]  %s14102_s21, 32, %s20266_s4, [#allocation4]   ;;  %v15301_v22 = vld [vmem:[#allocation83] ss:$0 sm:$0xff] }
0x1fe7   :  { %v17047_v63 = vpop.f32.mrf.mxu1 }
0x1fe8   :  { %v14057_v36 = vadd.f32 %v17047_v63, %v15301_v22 }
0x1fe9   :  { %v14048_v35 = vpop.f32.mrf.mxu1 }
0x1fea   :  { %18457 = vtanh.f32 %v14057_v36  ;;  %v14049_v3 = vadd.f32 %v15301_v22, %v14048_v35 }
0x1feb   :  { %v17048_v32 = vpop.f32.mrf.mxu1 }
0x1fec   :  { %18459 = vtanh.f32 %v14049_v3  ;;  %v14060_v59 = vadd.f32 %v17048_v32, %v15301_v22 }
0x1fed   :  { %v14051_v28 = vpop.f32.mrf.mxu1 }
0x1fee   :  { %18461 = vtanh.f32 %v14060_v59  ;;  %v14052_v26 = vadd.f32 %v15301_v22, %v14051_v28 }
0x1ff0   :  { %18463 = vtanh.f32 %v14052_v26 }
0x1ff3   :  { %v17051_v24 = vpop.f32.mrf.mxu1 }
0x1ff4   :  { %v14073_v51 = vadd.f32 %v17051_v24, %v15301_v22 }
0x1ff5   :  { %v14064_v9 = vpop.f32.mrf.mxu1 }
0x1ff6   :  { %18465 = vtanh.f32 %v14073_v51  ;;  %v14065_v12 = vadd.f32 %v15301_v22, %v14064_v9 }
0x1ff7   :  { %v18458_v1 = vpop.eup %18457  ;;  %v17052_v29 = vpop.f32.mrf.mxu1 }
0x1ff8   :  { %14087 = vst [vmem:[%s20261_s13 + $0x10] sm:$0xff] %v18458_v1  ;;  %18467 = vtanh.f32 %v14065_v12 }
0x1ff9   :  { %v18460_v2 = vpop.eup %18459  ;;  %v14067_v15 = vpop.f32.mrf.mxu1 }
0x1ffa   :  { %14085 = vst [vmem:[%s20261_s13] sm:$0xff] %v18460_v2  ;;  %v14068_v10 = vadd.f32 %v15301_v22, %v14067_v15 }
0x1ffb   :  { %v18462_v34 = vpop.eup %18461 }
0x1ffc   :  { %14088 = vst [vmem:[%s20261_s13 + $0x18] sm:$0xff] %v18462_v34  ;;  %18469 = vtanh.f32 %v14068_v10 }
0x1ffd   :  { %v18464_v13 = vpop.eup %18463 }
0x1ffe   :  { %14086 = vst [vmem:[%s20261_s13 + $0x8] sm:$0xff] %v18464_v13 }
0x2003   :  { %v18466_v17 = vpop.eup %18465 }
0x2004   :  { %14091 = vst [vmem:[%s20261_s13 + $0x30] sm:$0x3] %v18466_v17 }
0x2005   :  { %v18468_v53 = vpop.eup %18467 }
0x2006   :  { %14089 = vst [vmem:[%s20261_s13 + $0x20] sm:$0xff] %v18468_v53 }
0x2009   :  { %v18470_v8 = vpop.eup %18469 }
0x200a   :  { %14090 = vst [vmem:[%s20261_s13 + $0x28] sm:$0xff] %v18470_v8 }
0x200b   :  { %19795 = dma.done.wait [#allocation4], 32  }
0x200c   :  { %19796 = vsyncadd [#allocation4], 4294967264 }
0x200d   :  { %14110 = vsyncpa [#allocation3], 1 }
0x200e   :  { %14111 = vsyncpa [#allocation6], 1 }
0x200f   :  { %14112 = vsyncpa [#allocation9], 1 }
0x2010   :  { %14113 = vsyncpa [#allocation12], 1 }
0x2011   :  { %14114 = vsyncpa [#allocation15], 1 }
0x2012   :  { %14115 = vsyncpa [#allocation18], 1 }
0x2013   :  { %14116 = vsyncpa [#allocation21], 1 }
0x2014   :  { %14117 = vsyncpa [#allocation24], 1 }
0x2015   :  { %14118 = vsyncpa [#allocation27], 1 }
0x2016   :  { %14119 = vsyncpa [#allocation30], 1 }
0x2017   :  { %14120 = vsyncpa [#allocation33], 1 }
0x2018   :  { %14121 = vsyncpa [#allocation36], 1 }
0x2019   :  { %14122 = vsyncpa [#allocation39], 1 }
0x201a   :  { %14123 = vsyncpa [#allocation42], 1 }
0x201b   :  { %14124 = vsyncpa [#allocation45], 1 }
0x201c   :  { %14125 = vsyncpa [#allocation48], 1 }
0x201d   :  { %14126 = vsyncpa [#allocation51], 1 }
0x201e   :  { %14127 = vsyncpa [#allocation54], 1 }
0x201f   :  { %14128 = vsyncpa [#allocation57], 1 }
0x2020   :  { %14129 = vsyncpa [#allocation60], 1 }
0x2021   :  { %14130 = vsyncpa [#allocation63], 1 }
0x2022   :  { %14131 = vsyncpa [#allocation66], 1 }
0x2023   :  { %14132 = vsyncpa [#allocation69], 1 }
0x2024   :  { %14133 = vsyncpa [#allocation72], 1 }
0x2025   :  { %14134 = vsyncpa [#allocation75], 1 }
0x2026   :  { %14135 = vsyncpa [#allocation78], 1 }
0x2027   :  { %14136 = vsyncpa [#allocation81], 1 }
0x2028   :  { %14137 = vsyncpa [#allocation84], 1 }
0x2029   :  { %14138 = vsyncpa [#allocation87], 1 }
0x202a   :  { %14139 = vsyncpa [#allocation90], 1 }
0x202b   :  { %14140 = vsyncpa [#allocation4], 1 }

</bundles_post_ra>
